<compile_context>
chip_gen: v6e
topology: v6e:2x2x1
jax: 0.10.0
libtpu: 0.0.40
codegen_flags: <defaults>
</compile_context>

<pallas_src>
import functools

import jax
import jax.numpy as jnp
from jax.experimental import pallas as pl
from jax.experimental.pallas import tpu as pltpu


def _conv_bn_relu_ln_kernel(x_ref, wcat_ref, bias_ref, lnw_ref, lnb_ref, o_ref,
                            *, tb, ln_eps):
    # x_ref: (TB, C, L); dim (=L) sits on the 128-wide lane axis.
    C = x_ref.shape[1]
    L = x_ref.shape[2]

    # Pack TB samples side by side along the lane / matmul-N axis: (C, TB*L).
    # L == 128, so every concat boundary is lane-tile aligned (no relayout).
    x_wide = jnp.concatenate(
        [x_ref[b].astype(jnp.float32) for b in range(tb)], axis=-1)

    # Conv neighbor taps via XLU lane rotation + per-sample boundary zero mask
    # (the zero boundary is exactly the conv's padding=1; the mask also kills
    # wrap-around across the packed-sample boundaries).
    lane_in_seg = jax.lax.broadcasted_iota(jnp.int32, x_wide.shape, 1) % L
    xm1 = jnp.where(lane_in_seg == 0, 0.0,
                    pltpu.roll(x_wide, shift=1, axis=1))              # x[:, l-1]
    xp1 = jnp.where(lane_in_seg == L - 1, 0.0,
                    pltpu.roll(x_wide, shift=tb * L - 1, axis=1))     # x[:, l+1]

    # Single fused MXU matmul: (C, 3C) @ (3C, TB*L). BN scale is already folded
    # into the weights; bias = conv_bias*bn_scale + bn_shift. Then ReLU.
    stacked = jnp.concatenate([xm1, x_wide, xp1], axis=0)             # (3C, TB*L)
    y = jnp.dot(wcat_ref[...], stacked, preferred_element_type=jnp.float32)
    y = jnp.maximum(y + bias_ref[...], 0.0)

    # Per-sample nn.LayerNorm(dim) over the lane axis (biased variance, PyTorch-style).
    lnw = lnw_ref[...]
    lnb = lnb_ref[...]
    for b in range(tb):
        yb = y[:, b * L:(b + 1) * L]                                   # lane-tile aligned slice
        mu = jnp.mean(yb, axis=-1, keepdims=True)
        var = jnp.mean(jnp.square(yb - mu), axis=-1, keepdims=True)
        yb = (yb - mu) * jax.lax.rsqrt(var + ln_eps)
        o_ref[b] = (yb * lnw + lnb).astype(o_ref.dtype)


def mamba_block_forward(ipt, params, *, bn_eps=1e-5, ln_eps=1e-5):
    """ipt: (B, 101, dim). Returns (B, 101, dim) = LayerNorm(ReLU(BN(Conv1d(ipt))))."""
    B, C, L = ipt.shape
    w = params["conv_w"].astype(jnp.float32)                           # (C, C, 3)
    assert w.shape == (C, C, 3)

    # Fold eval-mode BatchNorm1d into the conv weights / bias (constant hoist):
    #   BN(Wx + cb) = (inv*W) x + (cb*inv + beta - mean*inv),  inv = gamma/sqrt(var+eps)
    inv = (params["bn_gamma"] / jnp.sqrt(params["bn_var"] + bn_eps)).astype(jnp.float32)
    w = w * inv[:, None, None]
    bias = (params["conv_b"].astype(jnp.float32) * inv
            + params["bn_beta"].astype(jnp.float32)
            - params["bn_mean"].astype(jnp.float32) * inv).reshape(C, 1)

    # Fused conv operand: [W(:,:,0) | W(:,:,1) | W(:,:,2)]  -> (C, 3C), K = 3C.
    wcat = jnp.concatenate([w[:, :, 0], w[:, :, 1], w[:, :, 2]], axis=1)

    lnw = params["ln_w"].reshape(1, L).astype(jnp.float32)
    lnb = params["ln_b"].reshape(1, L).astype(jnp.float32)

    # Largest divisor of B that is <= 8 samples per grid step.
    tb = min(B, 8)
    while B % tb:
        tb -= 1

    whole = lambda i: (0, 0)
    kernel = functools.partial(_conv_bn_relu_ln_kernel, tb=tb, ln_eps=ln_eps)

    out = pl.pallas_call(
        kernel,
        out_shape=jax.ShapeDtypeStruct((B, C, L), ipt.dtype),
        grid_spec=pltpu.PrefetchScalarGridSpec(
            num_scalar_prefetch=0,
            grid=(B // tb,),
            in_specs=[
                pl.BlockSpec((tb, C, L), lambda i: (i, 0, 0)),  # TB samples / step
                pl.BlockSpec((C, 3 * C), whole),                # fused conv weights (BN folded)
                pl.BlockSpec((C, 1), whole),                    # fused conv+BN bias
                pl.BlockSpec((1, L), whole),                    # LN weight
                pl.BlockSpec((1, L), whole),                    # LN bias
            ],
            out_specs=pl.BlockSpec((tb, C, L), lambda i: (i, 0, 0)),
        ),
        compiler_params=pltpu.CompilerParams(
            dimension_semantics=("parallel",),   # batch axis shards across TCs
        ),
    )(ipt, wcat, bias, lnw, lnb)

    # TODO(synk): Mamba(dim) selective-scan encoder (external mamba_ssm dependency, not
    # defined in the spec) is not translated; returning the normalized features it consumes.
    return out


def mamba_block_ref(ipt, params, *, bn_eps=1e-5, ln_eps=1e-5):
    """Pure-JAX reference for the implemented portion of MambaBlock.forward."""
    B, C, L = ipt.shape
    xpad = jnp.pad(ipt, ((0, 0), (0, 0), (1, 1)))
    w = params["conv_w"]
    y = sum(jnp.einsum("oi,bil->bol", w[:, :, k], xpad[:, :, k:k + L]) for k in range(3))
    y = y + params["conv_b"][None, :, None]
    y = (y - params["bn_mean"][None, :, None]) * jax.lax.rsqrt(
        params["bn_var"][None, :, None] + bn_eps)
    y = y * params["bn_gamma"][None, :, None] + params["bn_beta"][None, :, None]
    y = jnp.maximum(y, 0.0)
    mu = y.mean(-1, keepdims=True)
    var = ((y - mu) ** 2).mean(-1, keepdims=True)
    y = (y - mu) * jax.lax.rsqrt(var + ln_eps)
    return y * params["ln_w"] + params["ln_b"]


if __name__ == "__main__":
    key = jax.random.PRNGKey(0)
    ks = jax.random.split(key, 9)
    B, C, dim = 16, 101, 128   # Conv1d fixes C=101; dim = hidden / LayerNorm axis (lane-dense)

    params = {
        "conv_w":   0.05 * jax.random.normal(ks[0], (C, C, 3), jnp.float32),
        "conv_b":   0.05 * jax.random.normal(ks[1], (C,), jnp.float32),
        "bn_gamma": 1.0 + 0.1 * jax.random.normal(ks[2], (C,), jnp.float32),
        "bn_beta":  0.1 * jax.random.normal(ks[3], (C,), jnp.float32),
        "bn_mean":  0.1 * jax.random.normal(ks[4], (C,), jnp.float32),
        "bn_var":   jax.random.uniform(ks[5], (C,), jnp.float32, 0.5, 1.5),
        "ln_w":     1.0 + 0.1 * jax.random.normal(ks[6], (dim,), jnp.float32),
        "ln_b":     0.1 * jax.random.normal(ks[7], (dim,), jnp.float32),
    }
    ipt = jax.random.normal(ks[8], (B, C, dim), jnp.float32)

    out = mamba_block_forward(ipt, params)
    out = jax.block_until_ready(out)

    ref = mamba_block_ref(ipt, params)
    assert out.shape == (B, C, dim)
    err = float(jnp.max(jnp.abs(out - ref)))
    assert jnp.allclose(out, ref, atol=1e-4, rtol=1e-4), f"max abs err {err}"

    print("KERNEL_OK")
</pallas_src>

<mosaic_0001>
module attributes {stable_mosaic.version = 11 : i64} {
  func.func @_conv_bn_relu_ln_kernel(%arg0: i32, %arg1: memref<8x101x128xf32, #tpu.memory_space<vmem>>, %arg2: memref<101x303xf32, #tpu.memory_space<vmem>>, %arg3: memref<101x1xf32, #tpu.memory_space<vmem>>, %arg4: memref<1x128xf32, #tpu.memory_space<vmem>>, %arg5: memref<1x128xf32, #tpu.memory_space<vmem>>, %arg6: memref<8x101x128xf32, #tpu.memory_space<vmem>>) attributes {dimension_semantics = [#tpu.dimension_semantics<parallel>], iteration_bounds = array<i64: 2>, scalar_prefetch = 0 : i64, scratch_operands = 0 : i64, tpu.core_type = #tpu.core_type<tc>, window_params = [{transform_indices = @transform_0, window_bounds = array<i64: 8, 101, 128>}, {pipeline_mode = #tpu.pipeline_mode<synchronous>, transform_indices = @transform_1, window_bounds = array<i64: 101, 303>}, {pipeline_mode = #tpu.pipeline_mode<synchronous>, transform_indices = @transform_2, window_bounds = array<i64: 101, 1>}, {pipeline_mode = #tpu.pipeline_mode<synchronous>, transform_indices = @transform_3, window_bounds = array<i64: 1, 128>}, {pipeline_mode = #tpu.pipeline_mode<synchronous>, transform_indices = @transform_4, window_bounds = array<i64: 1, 128>}, {transform_indices = @transform_5, window_bounds = array<i64: 8, 101, 128>}]} {
    %c0 = arith.constant 0 : index
    %c0_0 = arith.constant 0 : index
    %c0_1 = arith.constant 0 : index
    %0 = vector.load %arg1[%c0, %c0_0, %c0_1] : memref<8x101x128xf32, #tpu.memory_space<vmem>>, vector<1x101x128xf32>
    %1 = vector.shape_cast %0 : vector<1x101x128xf32> to vector<101x128xf32>
    %c1 = arith.constant 1 : index
    %c0_2 = arith.constant 0 : index
    %c0_3 = arith.constant 0 : index
    %2 = vector.load %arg1[%c1, %c0_2, %c0_3] : memref<8x101x128xf32, #tpu.memory_space<vmem>>, vector<1x101x128xf32>
    %3 = vector.shape_cast %2 : vector<1x101x128xf32> to vector<101x128xf32>
    %c2 = arith.constant 2 : index
    %c0_4 = arith.constant 0 : index
    %c0_5 = arith.constant 0 : index
    %4 = vector.load %arg1[%c2, %c0_4, %c0_5] : memref<8x101x128xf32, #tpu.memory_space<vmem>>, vector<1x101x128xf32>
    %5 = vector.shape_cast %4 : vector<1x101x128xf32> to vector<101x128xf32>
    %c3 = arith.constant 3 : index
    %c0_6 = arith.constant 0 : index
    %c0_7 = arith.constant 0 : index
    %6 = vector.load %arg1[%c3, %c0_6, %c0_7] : memref<8x101x128xf32, #tpu.memory_space<vmem>>, vector<1x101x128xf32>
    %7 = vector.shape_cast %6 : vector<1x101x128xf32> to vector<101x128xf32>
    %c4 = arith.constant 4 : index
    %c0_8 = arith.constant 0 : index
    %c0_9 = arith.constant 0 : index
    %8 = vector.load %arg1[%c4, %c0_8, %c0_9] : memref<8x101x128xf32, #tpu.memory_space<vmem>>, vector<1x101x128xf32>
    %9 = vector.shape_cast %8 : vector<1x101x128xf32> to vector<101x128xf32>
    %c5 = arith.constant 5 : index
    %c0_10 = arith.constant 0 : index
    %c0_11 = arith.constant 0 : index
    %10 = vector.load %arg1[%c5, %c0_10, %c0_11] : memref<8x101x128xf32, #tpu.memory_space<vmem>>, vector<1x101x128xf32>
    %11 = vector.shape_cast %10 : vector<1x101x128xf32> to vector<101x128xf32>
    %c6 = arith.constant 6 : index
    %c0_12 = arith.constant 0 : index
    %c0_13 = arith.constant 0 : index
    %12 = vector.load %arg1[%c6, %c0_12, %c0_13] : memref<8x101x128xf32, #tpu.memory_space<vmem>>, vector<1x101x128xf32>
    %13 = vector.shape_cast %12 : vector<1x101x128xf32> to vector<101x128xf32>
    %c7 = arith.constant 7 : index
    %c0_14 = arith.constant 0 : index
    %c0_15 = arith.constant 0 : index
    %14 = vector.load %arg1[%c7, %c0_14, %c0_15] : memref<8x101x128xf32, #tpu.memory_space<vmem>>, vector<1x101x128xf32>
    %15 = vector.shape_cast %14 : vector<1x101x128xf32> to vector<101x128xf32>
    %16 = tpu.concatenate %1, %3, %5, %7, %9, %11, %13, %15 in 1 : vector<101x128xf32>, vector<101x128xf32>, vector<101x128xf32>, vector<101x128xf32>, vector<101x128xf32>, vector<101x128xf32>, vector<101x128xf32>, vector<101x128xf32> -> vector<101x1024xf32>
    %17 = tpu.iota {dimensions = array<i32: 1>} : vector<101x1024xi32>
    %c128_i32 = arith.constant 128 : i32
    %c0_i32 = arith.constant 0 : i32
    %18 = arith.cmpi eq, %c128_i32, %c0_i32 : i32
    %c1_i32 = arith.constant 1 : i32
    %19 = arith.select %18, %c1_i32, %c128_i32 : i32
    %20 = vector.broadcast %19 : i32 to vector<101x1024xi32>
    %21 = arith.remsi %17, %20 : vector<101x1024xi32>
    %c0_i32_16 = arith.constant 0 : i32
    %22 = vector.broadcast %c0_i32_16 : i32 to vector<101x1024xi32>
    %23 = arith.cmpi ne, %21, %22 : vector<101x1024xi32>
    %c0_i32_17 = arith.constant 0 : i32
    %24 = vector.broadcast %c0_i32_17 : i32 to vector<101x1024xi32>
    %25 = arith.cmpi slt, %21, %24 : vector<101x1024xi32>
    %c0_i32_18 = arith.constant 0 : i32
    %26 = arith.cmpi slt, %19, %c0_i32_18 : i32
    %27 = vector.broadcast %26 : i1 to vector<101x1024xi1>
    %28 = vector.broadcast %27 : vector<101x1024xi1> to vector<101x1024xi1>
    %29 = arith.xori %25, %28 : vector<101x1024xi1>
    %30 = arith.andi %29, %23 : vector<101x1024xi1>
    %31 = vector.broadcast %19 : i32 to vector<101x1024xi32>
    %32 = arith.addi %21, %31 : vector<101x1024xi32>
    %33 = arith.select %30, %32, %21 : vector<101x1024xi1>, vector<101x1024xi32>
    %c0_i32_19 = arith.constant 0 : i32
    %34 = vector.broadcast %c0_i32_19 : i32 to vector<101x1024xi32>
    %35 = arith.cmpi eq, %33, %34 : vector<101x1024xi32>
    %c1_i32_20 = arith.constant 1 : i32
    %36 = tpu.dynamic_rotate %16 by %c1_i32_20 dim 1 : vector<101x1024xf32>, i32 -> vector<101x1024xf32>
    %cst = arith.constant 0.000000e+00 : f32
    %37 = vector.broadcast %cst : f32 to vector<101x1024xf32>
    %38 = arith.select %35, %37, %36 : vector<101x1024xi1>, vector<101x1024xf32>
    %c127_i32 = arith.constant 127 : i32
    %39 = vector.broadcast %c127_i32 : i32 to vector<101x1024xi32>
    %40 = arith.cmpi eq, %33, %39 : vector<101x1024xi32>
    %c1023_i32 = arith.constant 1023 : i32
    %41 = tpu.dynamic_rotate %16 by %c1023_i32 dim 1 : vector<101x1024xf32>, i32 -> vector<101x1024xf32>
    %cst_21 = arith.constant 0.000000e+00 : f32
    %42 = vector.broadcast %cst_21 : f32 to vector<101x1024xf32>
    %43 = arith.select %40, %42, %41 : vector<101x1024xi1>, vector<101x1024xf32>
    %44 = tpu.concatenate %38, %16, %43 in 0 : vector<101x1024xf32>, vector<101x1024xf32>, vector<101x1024xf32> -> vector<303x1024xf32>
    %c0_22 = arith.constant 0 : index
    %c0_23 = arith.constant 0 : index
    %45 = vector.load %arg2[%c0_22, %c0_23] : memref<101x303xf32, #tpu.memory_space<vmem>>, vector<101x303xf32>
    %cst_24 = arith.constant dense<0.000000e+00> : vector<101x1024xf32>
    %46 = tpu.matmul %45, %44, %cst_24 {dimension_numbers = #tpu.dot_dimension_numbers<[1], [0], [0], [1], [0, 0, 1, 1], [], []>} : vector<101x303xf32>, vector<303x1024xf32>, vector<101x1024xf32> -> vector<101x1024xf32>
    %c0_25 = arith.constant 0 : index
    %c0_26 = arith.constant 0 : index
    %47 = vector.load %arg3[%c0_25, %c0_26] : memref<101x1xf32, #tpu.memory_space<vmem>>, vector<101x1xf32>
    %48 = vector.broadcast %47 : vector<101x1xf32> to vector<101x1024xf32>
    %49 = arith.addf %46, %48 : vector<101x1024xf32>
    %cst_27 = arith.constant 0.000000e+00 : f32
    %50 = vector.broadcast %cst_27 : f32 to vector<101x1024xf32>
    %51 = arith.maximumf %49, %50 : vector<101x1024xf32>
    %c0_28 = arith.constant 0 : index
    %c0_29 = arith.constant 0 : index
    %52 = vector.load %arg4[%c0_28, %c0_29] : memref<1x128xf32, #tpu.memory_space<vmem>>, vector<1x128xf32>
    %c0_30 = arith.constant 0 : index
    %c0_31 = arith.constant 0 : index
    %53 = vector.load %arg5[%c0_30, %c0_31] : memref<1x128xf32, #tpu.memory_space<vmem>>, vector<1x128xf32>
    %54 = vector.extract_strided_slice %51 {offsets = [0, 0], sizes = [101, 128], strides = [1, 1]} : vector<101x1024xf32> to vector<101x128xf32>
    %cst_32 = arith.constant dense<0.000000e+00> : vector<101xf32>
    %55 = vector.multi_reduction <add>, %54, %cst_32 [1] : vector<101x128xf32> to vector<101xf32>
    %56 = vector.shape_cast %55 : vector<101xf32> to vector<101x1xf32>
    %cst_33 = arith.constant 1.280000e+02 : f32
    %57 = vector.broadcast %cst_33 : f32 to vector<101x1xf32>
    %58 = arith.divf %56, %57 : vector<101x1xf32>
    %59 = vector.broadcast %58 : vector<101x1xf32> to vector<101x128xf32>
    %60 = arith.subf %54, %59 : vector<101x128xf32>
    %61 = arith.mulf %60, %60 : vector<101x128xf32>
    %cst_34 = arith.constant dense<0.000000e+00> : vector<101xf32>
    %62 = vector.multi_reduction <add>, %61, %cst_34 [1] : vector<101x128xf32> to vector<101xf32>
    %63 = vector.shape_cast %62 : vector<101xf32> to vector<101x1xf32>
    %cst_35 = arith.constant 1.280000e+02 : f32
    %64 = vector.broadcast %cst_35 : f32 to vector<101x1xf32>
    %65 = arith.divf %63, %64 : vector<101x1xf32>
    %66 = vector.broadcast %58 : vector<101x1xf32> to vector<101x128xf32>
    %67 = arith.subf %54, %66 : vector<101x128xf32>
    %cst_36 = arith.constant 9.99999974E-6 : f32
    %68 = vector.broadcast %cst_36 : f32 to vector<101x1xf32>
    %69 = arith.addf %65, %68 : vector<101x1xf32>
    %70 = math.rsqrt %69 : vector<101x1xf32>
    %71 = vector.broadcast %70 : vector<101x1xf32> to vector<101x128xf32>
    %72 = arith.mulf %67, %71 : vector<101x128xf32>
    %73 = vector.broadcast %52 : vector<1x128xf32> to vector<101x128xf32>
    %74 = arith.mulf %72, %73 : vector<101x128xf32>
    %75 = vector.broadcast %53 : vector<1x128xf32> to vector<101x128xf32>
    %76 = arith.addf %74, %75 : vector<101x128xf32>
    %c0_37 = arith.constant 0 : index
    %c0_38 = arith.constant 0 : index
    %c0_39 = arith.constant 0 : index
    %77 = vector.load %arg6[%c0_37, %c0_38, %c0_39] : memref<8x101x128xf32, #tpu.memory_space<vmem>>, vector<1x101x128xf32>
    %78 = vector.shape_cast %77 : vector<1x101x128xf32> to vector<101x128xf32>
    %79 = vector.shape_cast %76 : vector<101x128xf32> to vector<1x101x128xf32>
    tpu.vector_store %arg6[%c0_37, %c0_38, %c0_39], %79 {strides = array<i32>} : memref<8x101x128xf32, #tpu.memory_space<vmem>>, vector<1x101x128xf32>,
    %80 = vector.extract_strided_slice %51 {offsets = [0, 128], sizes = [101, 128], strides = [1, 1]} : vector<101x1024xf32> to vector<101x128xf32>
    %cst_40 = arith.constant dense<0.000000e+00> : vector<101xf32>
    %81 = vector.multi_reduction <add>, %80, %cst_40 [1] : vector<101x128xf32> to vector<101xf32>
    %82 = vector.shape_cast %81 : vector<101xf32> to vector<101x1xf32>
    %cst_41 = arith.constant 1.280000e+02 : f32
    %83 = vector.broadcast %cst_41 : f32 to vector<101x1xf32>
    %84 = arith.divf %82, %83 : vector<101x1xf32>
    %85 = vector.broadcast %84 : vector<101x1xf32> to vector<101x128xf32>
    %86 = arith.subf %80, %85 : vector<101x128xf32>
    %87 = arith.mulf %86, %86 : vector<101x128xf32>
    %cst_42 = arith.constant dense<0.000000e+00> : vector<101xf32>
    %88 = vector.multi_reduction <add>, %87, %cst_42 [1] : vector<101x128xf32> to vector<101xf32>
    %89 = vector.shape_cast %88 : vector<101xf32> to vector<101x1xf32>
    %cst_43 = arith.constant 1.280000e+02 : f32
    %90 = vector.broadcast %cst_43 : f32 to vector<101x1xf32>
    %91 = arith.divf %89, %90 : vector<101x1xf32>
    %92 = vector.broadcast %84 : vector<101x1xf32> to vector<101x128xf32>
    %93 = arith.subf %80, %92 : vector<101x128xf32>
    %cst_44 = arith.constant 9.99999974E-6 : f32
    %94 = vector.broadcast %cst_44 : f32 to vector<101x1xf32>
    %95 = arith.addf %91, %94 : vector<101x1xf32>
    %96 = math.rsqrt %95 : vector<101x1xf32>
    %97 = vector.broadcast %96 : vector<101x1xf32> to vector<101x128xf32>
    %98 = arith.mulf %93, %97 : vector<101x128xf32>
    %99 = vector.broadcast %52 : vector<1x128xf32> to vector<101x128xf32>
    %100 = arith.mulf %98, %99 : vector<101x128xf32>
    %101 = vector.broadcast %53 : vector<1x128xf32> to vector<101x128xf32>
    %102 = arith.addf %100, %101 : vector<101x128xf32>
    %c1_45 = arith.constant 1 : index
    %c0_46 = arith.constant 0 : index
    %c0_47 = arith.constant 0 : index
    %103 = vector.load %arg6[%c1_45, %c0_46, %c0_47] : memref<8x101x128xf32, #tpu.memory_space<vmem>>, vector<1x101x128xf32>
    %104 = vector.shape_cast %103 : vector<1x101x128xf32> to vector<101x128xf32>
    %105 = vector.shape_cast %102 : vector<101x128xf32> to vector<1x101x128xf32>
    tpu.vector_store %arg6[%c1_45, %c0_46, %c0_47], %105 {strides = array<i32>} : memref<8x101x128xf32, #tpu.memory_space<vmem>>, vector<1x101x128xf32>,
    %106 = vector.extract_strided_slice %51 {offsets = [0, 256], sizes = [101, 128], strides = [1, 1]} : vector<101x1024xf32> to vector<101x128xf32>
    %cst_48 = arith.constant dense<0.000000e+00> : vector<101xf32>
    %107 = vector.multi_reduction <add>, %106, %cst_48 [1] : vector<101x128xf32> to vector<101xf32>
    %108 = vector.shape_cast %107 : vector<101xf32> to vector<101x1xf32>
    %cst_49 = arith.constant 1.280000e+02 : f32
    %109 = vector.broadcast %cst_49 : f32 to vector<101x1xf32>
    %110 = arith.divf %108, %109 : vector<101x1xf32>
    %111 = vector.broadcast %110 : vector<101x1xf32> to vector<101x128xf32>
    %112 = arith.subf %106, %111 : vector<101x128xf32>
    %113 = arith.mulf %112, %112 : vector<101x128xf32>
    %cst_50 = arith.constant dense<0.000000e+00> : vector<101xf32>
    %114 = vector.multi_reduction <add>, %113, %cst_50 [1] : vector<101x128xf32> to vector<101xf32>
    %115 = vector.shape_cast %114 : vector<101xf32> to vector<101x1xf32>
    %cst_51 = arith.constant 1.280000e+02 : f32
    %116 = vector.broadcast %cst_51 : f32 to vector<101x1xf32>
    %117 = arith.divf %115, %116 : vector<101x1xf32>
    %118 = vector.broadcast %110 : vector<101x1xf32> to vector<101x128xf32>
    %119 = arith.subf %106, %118 : vector<101x128xf32>
    %cst_52 = arith.constant 9.99999974E-6 : f32
    %120 = vector.broadcast %cst_52 : f32 to vector<101x1xf32>
    %121 = arith.addf %117, %120 : vector<101x1xf32>
    %122 = math.rsqrt %121 : vector<101x1xf32>
    %123 = vector.broadcast %122 : vector<101x1xf32> to vector<101x128xf32>
    %124 = arith.mulf %119, %123 : vector<101x128xf32>
    %125 = vector.broadcast %52 : vector<1x128xf32> to vector<101x128xf32>
    %126 = arith.mulf %124, %125 : vector<101x128xf32>
    %127 = vector.broadcast %53 : vector<1x128xf32> to vector<101x128xf32>
    %128 = arith.addf %126, %127 : vector<101x128xf32>
    %c2_53 = arith.constant 2 : index
    %c0_54 = arith.constant 0 : index
    %c0_55 = arith.constant 0 : index
    %129 = vector.load %arg6[%c2_53, %c0_54, %c0_55] : memref<8x101x128xf32, #tpu.memory_space<vmem>>, vector<1x101x128xf32>
    %130 = vector.shape_cast %129 : vector<1x101x128xf32> to vector<101x128xf32>
    %131 = vector.shape_cast %128 : vector<101x128xf32> to vector<1x101x128xf32>
    tpu.vector_store %arg6[%c2_53, %c0_54, %c0_55], %131 {strides = array<i32>} : memref<8x101x128xf32, #tpu.memory_space<vmem>>, vector<1x101x128xf32>,
    %132 = vector.extract_strided_slice %51 {offsets = [0, 384], sizes = [101, 128], strides = [1, 1]} : vector<101x1024xf32> to vector<101x128xf32>
    %cst_56 = arith.constant dense<0.000000e+00> : vector<101xf32>
    %133 = vector.multi_reduction <add>, %132, %cst_56 [1] : vector<101x128xf32> to vector<101xf32>
    %134 = vector.shape_cast %133 : vector<101xf32> to vector<101x1xf32>
    %cst_57 = arith.constant 1.280000e+02 : f32
    %135 = vector.broadcast %cst_57 : f32 to vector<101x1xf32>
    %136 = arith.divf %134, %135 : vector<101x1xf32>
    %137 = vector.broadcast %136 : vector<101x1xf32> to vector<101x128xf32>
    %138 = arith.subf %132, %137 : vector<101x128xf32>
    %139 = arith.mulf %138, %138 : vector<101x128xf32>
    %cst_58 = arith.constant dense<0.000000e+00> : vector<101xf32>
    %140 = vector.multi_reduction <add>, %139, %cst_58 [1] : vector<101x128xf32> to vector<101xf32>
    %141 = vector.shape_cast %140 : vector<101xf32> to vector<101x1xf32>
    %cst_59 = arith.constant 1.280000e+02 : f32
    %142 = vector.broadcast %cst_59 : f32 to vector<101x1xf32>
    %143 = arith.divf %141, %142 : vector<101x1xf32>
    %144 = vector.broadcast %136 : vector<101x1xf32> to vector<101x128xf32>
    %145 = arith.subf %132, %144 : vector<101x128xf32>
    %cst_60 = arith.constant 9.99999974E-6 : f32
    %146 = vector.broadcast %cst_60 : f32 to vector<101x1xf32>
    %147 = arith.addf %143, %146 : vector<101x1xf32>
    %148 = math.rsqrt %147 : vector<101x1xf32>
    %149 = vector.broadcast %148 : vector<101x1xf32> to vector<101x128xf32>
    %150 = arith.mulf %145, %149 : vector<101x128xf32>
    %151 = vector.broadcast %52 : vector<1x128xf32> to vector<101x128xf32>
    %152 = arith.mulf %150, %151 : vector<101x128xf32>
    %153 = vector.broadcast %53 : vector<1x128xf32> to vector<101x128xf32>
    %154 = arith.addf %152, %153 : vector<101x128xf32>
    %c3_61 = arith.constant 3 : index
    %c0_62 = arith.constant 0 : index
    %c0_63 = arith.constant 0 : index
    %155 = vector.load %arg6[%c3_61, %c0_62, %c0_63] : memref<8x101x128xf32, #tpu.memory_space<vmem>>, vector<1x101x128xf32>
    %156 = vector.shape_cast %155 : vector<1x101x128xf32> to vector<101x128xf32>
    %157 = vector.shape_cast %154 : vector<101x128xf32> to vector<1x101x128xf32>
    tpu.vector_store %arg6[%c3_61, %c0_62, %c0_63], %157 {strides = array<i32>} : memref<8x101x128xf32, #tpu.memory_space<vmem>>, vector<1x101x128xf32>,
    %158 = vector.extract_strided_slice %51 {offsets = [0, 512], sizes = [101, 128], strides = [1, 1]} : vector<101x1024xf32> to vector<101x128xf32>
    %cst_64 = arith.constant dense<0.000000e+00> : vector<101xf32>
    %159 = vector.multi_reduction <add>, %158, %cst_64 [1] : vector<101x128xf32> to vector<101xf32>
    %160 = vector.shape_cast %159 : vector<101xf32> to vector<101x1xf32>
    %cst_65 = arith.constant 1.280000e+02 : f32
    %161 = vector.broadcast %cst_65 : f32 to vector<101x1xf32>
    %162 = arith.divf %160, %161 : vector<101x1xf32>
    %163 = vector.broadcast %162 : vector<101x1xf32> to vector<101x128xf32>
    %164 = arith.subf %158, %163 : vector<101x128xf32>
    %165 = arith.mulf %164, %164 : vector<101x128xf32>
    %cst_66 = arith.constant dense<0.000000e+00> : vector<101xf32>
    %166 = vector.multi_reduction <add>, %165, %cst_66 [1] : vector<101x128xf32> to vector<101xf32>
    %167 = vector.shape_cast %166 : vector<101xf32> to vector<101x1xf32>
    %cst_67 = arith.constant 1.280000e+02 : f32
    %168 = vector.broadcast %cst_67 : f32 to vector<101x1xf32>
    %169 = arith.divf %167, %168 : vector<101x1xf32>
    %170 = vector.broadcast %162 : vector<101x1xf32> to vector<101x128xf32>
    %171 = arith.subf %158, %170 : vector<101x128xf32>
    %cst_68 = arith.constant 9.99999974E-6 : f32
    %172 = vector.broadcast %cst_68 : f32 to vector<101x1xf32>
    %173 = arith.addf %169, %172 : vector<101x1xf32>
    %174 = math.rsqrt %173 : vector<101x1xf32>
    %175 = vector.broadcast %174 : vector<101x1xf32> to vector<101x128xf32>
    %176 = arith.mulf %171, %175 : vector<101x128xf32>
    %177 = vector.broadcast %52 : vector<1x128xf32> to vector<101x128xf32>
    %178 = arith.mulf %176, %177 : vector<101x128xf32>
    %179 = vector.broadcast %53 : vector<1x128xf32> to vector<101x128xf32>
    %180 = arith.addf %178, %179 : vector<101x128xf32>
    %c4_69 = arith.constant 4 : index
    %c0_70 = arith.constant 0 : index
    %c0_71 = arith.constant 0 : index
    %181 = vector.load %arg6[%c4_69, %c0_70, %c0_71] : memref<8x101x128xf32, #tpu.memory_space<vmem>>, vector<1x101x128xf32>
    %182 = vector.shape_cast %181 : vector<1x101x128xf32> to vector<101x128xf32>
    %183 = vector.shape_cast %180 : vector<101x128xf32> to vector<1x101x128xf32>
    tpu.vector_store %arg6[%c4_69, %c0_70, %c0_71], %183 {strides = array<i32>} : memref<8x101x128xf32, #tpu.memory_space<vmem>>, vector<1x101x128xf32>,
    %184 = vector.extract_strided_slice %51 {offsets = [0, 640], sizes = [101, 128], strides = [1, 1]} : vector<101x1024xf32> to vector<101x128xf32>
    %cst_72 = arith.constant dense<0.000000e+00> : vector<101xf32>
    %185 = vector.multi_reduction <add>, %184, %cst_72 [1] : vector<101x128xf32> to vector<101xf32>
    %186 = vector.shape_cast %185 : vector<101xf32> to vector<101x1xf32>
    %cst_73 = arith.constant 1.280000e+02 : f32
    %187 = vector.broadcast %cst_73 : f32 to vector<101x1xf32>
    %188 = arith.divf %186, %187 : vector<101x1xf32>
    %189 = vector.broadcast %188 : vector<101x1xf32> to vector<101x128xf32>
    %190 = arith.subf %184, %189 : vector<101x128xf32>
    %191 = arith.mulf %190, %190 : vector<101x128xf32>
    %cst_74 = arith.constant dense<0.000000e+00> : vector<101xf32>
    %192 = vector.multi_reduction <add>, %191, %cst_74 [1] : vector<101x128xf32> to vector<101xf32>
    %193 = vector.shape_cast %192 : vector<101xf32> to vector<101x1xf32>
    %cst_75 = arith.constant 1.280000e+02 : f32
    %194 = vector.broadcast %cst_75 : f32 to vector<101x1xf32>
    %195 = arith.divf %193, %194 : vector<101x1xf32>
    %196 = vector.broadcast %188 : vector<101x1xf32> to vector<101x128xf32>
    %197 = arith.subf %184, %196 : vector<101x128xf32>
    %cst_76 = arith.constant 9.99999974E-6 : f32
    %198 = vector.broadcast %cst_76 : f32 to vector<101x1xf32>
    %199 = arith.addf %195, %198 : vector<101x1xf32>
    %200 = math.rsqrt %199 : vector<101x1xf32>
    %201 = vector.broadcast %200 : vector<101x1xf32> to vector<101x128xf32>
    %202 = arith.mulf %197, %201 : vector<101x128xf32>
    %203 = vector.broadcast %52 : vector<1x128xf32> to vector<101x128xf32>
    %204 = arith.mulf %202, %203 : vector<101x128xf32>
    %205 = vector.broadcast %53 : vector<1x128xf32> to vector<101x128xf32>
    %206 = arith.addf %204, %205 : vector<101x128xf32>
    %c5_77 = arith.constant 5 : index
    %c0_78 = arith.constant 0 : index
    %c0_79 = arith.constant 0 : index
    %207 = vector.load %arg6[%c5_77, %c0_78, %c0_79] : memref<8x101x128xf32, #tpu.memory_space<vmem>>, vector<1x101x128xf32>
    %208 = vector.shape_cast %207 : vector<1x101x128xf32> to vector<101x128xf32>
    %209 = vector.shape_cast %206 : vector<101x128xf32> to vector<1x101x128xf32>
    tpu.vector_store %arg6[%c5_77, %c0_78, %c0_79], %209 {strides = array<i32>} : memref<8x101x128xf32, #tpu.memory_space<vmem>>, vector<1x101x128xf32>,
    %210 = vector.extract_strided_slice %51 {offsets = [0, 768], sizes = [101, 128], strides = [1, 1]} : vector<101x1024xf32> to vector<101x128xf32>
    %cst_80 = arith.constant dense<0.000000e+00> : vector<101xf32>
    %211 = vector.multi_reduction <add>, %210, %cst_80 [1] : vector<101x128xf32> to vector<101xf32>
    %212 = vector.shape_cast %211 : vector<101xf32> to vector<101x1xf32>
    %cst_81 = arith.constant 1.280000e+02 : f32
    %213 = vector.broadcast %cst_81 : f32 to vector<101x1xf32>
    %214 = arith.divf %212, %213 : vector<101x1xf32>
    %215 = vector.broadcast %214 : vector<101x1xf32> to vector<101x128xf32>
    %216 = arith.subf %210, %215 : vector<101x128xf32>
    %217 = arith.mulf %216, %216 : vector<101x128xf32>
    %cst_82 = arith.constant dense<0.000000e+00> : vector<101xf32>
    %218 = vector.multi_reduction <add>, %217, %cst_82 [1] : vector<101x128xf32> to vector<101xf32>
    %219 = vector.shape_cast %218 : vector<101xf32> to vector<101x1xf32>
    %cst_83 = arith.constant 1.280000e+02 : f32
    %220 = vector.broadcast %cst_83 : f32 to vector<101x1xf32>
    %221 = arith.divf %219, %220 : vector<101x1xf32>
    %222 = vector.broadcast %214 : vector<101x1xf32> to vector<101x128xf32>
    %223 = arith.subf %210, %222 : vector<101x128xf32>
    %cst_84 = arith.constant 9.99999974E-6 : f32
    %224 = vector.broadcast %cst_84 : f32 to vector<101x1xf32>
    %225 = arith.addf %221, %224 : vector<101x1xf32>
    %226 = math.rsqrt %225 : vector<101x1xf32>
    %227 = vector.broadcast %226 : vector<101x1xf32> to vector<101x128xf32>
    %228 = arith.mulf %223, %227 : vector<101x128xf32>
    %229 = vector.broadcast %52 : vector<1x128xf32> to vector<101x128xf32>
    %230 = arith.mulf %228, %229 : vector<101x128xf32>
    %231 = vector.broadcast %53 : vector<1x128xf32> to vector<101x128xf32>
    %232 = arith.addf %230, %231 : vector<101x128xf32>
    %c6_85 = arith.constant 6 : index
    %c0_86 = arith.constant 0 : index
    %c0_87 = arith.constant 0 : index
    %233 = vector.load %arg6[%c6_85, %c0_86, %c0_87] : memref<8x101x128xf32, #tpu.memory_space<vmem>>, vector<1x101x128xf32>
    %234 = vector.shape_cast %233 : vector<1x101x128xf32> to vector<101x128xf32>
    %235 = vector.shape_cast %232 : vector<101x128xf32> to vector<1x101x128xf32>
    tpu.vector_store %arg6[%c6_85, %c0_86, %c0_87], %235 {strides = array<i32>} : memref<8x101x128xf32, #tpu.memory_space<vmem>>, vector<1x101x128xf32>,
    %236 = vector.extract_strided_slice %51 {offsets = [0, 896], sizes = [101, 128], strides = [1, 1]} : vector<101x1024xf32> to vector<101x128xf32>
    %cst_88 = arith.constant dense<0.000000e+00> : vector<101xf32>
    %237 = vector.multi_reduction <add>, %236, %cst_88 [1] : vector<101x128xf32> to vector<101xf32>
    %238 = vector.shape_cast %237 : vector<101xf32> to vector<101x1xf32>
    %cst_89 = arith.constant 1.280000e+02 : f32
    %239 = vector.broadcast %cst_89 : f32 to vector<101x1xf32>
    %240 = arith.divf %238, %239 : vector<101x1xf32>
    %241 = vector.broadcast %240 : vector<101x1xf32> to vector<101x128xf32>
    %242 = arith.subf %236, %241 : vector<101x128xf32>
    %243 = arith.mulf %242, %242 : vector<101x128xf32>
    %cst_90 = arith.constant dense<0.000000e+00> : vector<101xf32>
    %244 = vector.multi_reduction <add>, %243, %cst_90 [1] : vector<101x128xf32> to vector<101xf32>
    %245 = vector.shape_cast %244 : vector<101xf32> to vector<101x1xf32>
    %cst_91 = arith.constant 1.280000e+02 : f32
    %246 = vector.broadcast %cst_91 : f32 to vector<101x1xf32>
    %247 = arith.divf %245, %246 : vector<101x1xf32>
    %248 = vector.broadcast %240 : vector<101x1xf32> to vector<101x128xf32>
    %249 = arith.subf %236, %248 : vector<101x128xf32>
    %cst_92 = arith.constant 9.99999974E-6 : f32
    %250 = vector.broadcast %cst_92 : f32 to vector<101x1xf32>
    %251 = arith.addf %247, %250 : vector<101x1xf32>
    %252 = math.rsqrt %251 : vector<101x1xf32>
    %253 = vector.broadcast %252 : vector<101x1xf32> to vector<101x128xf32>
    %254 = arith.mulf %249, %253 : vector<101x128xf32>
    %255 = vector.broadcast %52 : vector<1x128xf32> to vector<101x128xf32>
    %256 = arith.mulf %254, %255 : vector<101x128xf32>
    %257 = vector.broadcast %53 : vector<1x128xf32> to vector<101x128xf32>
    %258 = arith.addf %256, %257 : vector<101x128xf32>
    %c7_93 = arith.constant 7 : index
    %c0_94 = arith.constant 0 : index
    %c0_95 = arith.constant 0 : index
    %259 = vector.load %arg6[%c7_93, %c0_94, %c0_95] : memref<8x101x128xf32, #tpu.memory_space<vmem>>, vector<1x101x128xf32>
    %260 = vector.shape_cast %259 : vector<1x101x128xf32> to vector<101x128xf32>
    %261 = vector.shape_cast %258 : vector<101x128xf32> to vector<1x101x128xf32>
    tpu.vector_store %arg6[%c7_93, %c0_94, %c0_95], %261 {strides = array<i32>} : memref<8x101x128xf32, #tpu.memory_space<vmem>>, vector<1x101x128xf32>,
    return
  }
  func.func @transform_0(%arg0: i32) -> (i32, i32, i32) {
    %c0_i32 = arith.constant 0 : i32
    %c0_i32_0 = arith.constant 0 : i32
    %c0_i32_1 = arith.constant 0 : i32
    return %arg0, %c0_i32, %c0_i32_0 : i32, i32, i32
  }
  func.func @transform_1(%arg0: i32) -> (i32, i32) {
    %c0_i32 = arith.constant 0 : i32
    %c0_i32_0 = arith.constant 0 : i32
    %c0_i32_1 = arith.constant 0 : i32
    return %c0_i32, %c0_i32_0 : i32, i32
  }
  func.func @transform_2(%arg0: i32) -> (i32, i32) {
    %c0_i32 = arith.constant 0 : i32
    %c0_i32_0 = arith.constant 0 : i32
    %c0_i32_1 = arith.constant 0 : i32
    return %c0_i32, %c0_i32_0 : i32, i32
  }
  func.func @transform_3(%arg0: i32) -> (i32, i32) {
    %c0_i32 = arith.constant 0 : i32
    %c0_i32_0 = arith.constant 0 : i32
    %c0_i32_1 = arith.constant 0 : i32
    return %c0_i32, %c0_i32_0 : i32, i32
  }
  func.func @transform_4(%arg0: i32) -> (i32, i32) {
    %c0_i32 = arith.constant 0 : i32
    %c0_i32_0 = arith.constant 0 : i32
    %c0_i32_1 = arith.constant 0 : i32
    return %c0_i32, %c0_i32_0 : i32, i32
  }
  func.func @transform_5(%arg0: i32) -> (i32, i32, i32) {
    %c0_i32 = arith.constant 0 : i32
    %c0_i32_0 = arith.constant 0 : i32
    %c0_i32_1 = arith.constant 0 : i32
    return %arg0, %c0_i32, %c0_i32_0 : i32, i32, i32
  }
}

</mosaic_0001>

<bundles_post_ra>
// kernel: tpu_custom_call.1
= control target key start
LH: loop header
LB: loop body
LE: loop exit
PB: predicated region body
PF: predicated region fallthrough
CT: control target
= control target key end

     0   :  { %s5975_s18 = smov 0   ;;  %s11891_s0 = inlined_call_operand.vmem [shape: f32[16,101,128], index: 0, kind: input, shape index: {}]   ;;  %s11892_s1 = inlined_call_operand.vmem [shape: f32[101,303], index: 1, kind: input, shape index: {}]   ;;  %s11893_s2 = inlined_call_operand.vmem [shape: f32[101,1], index: 2, kind: input, shape index: {}]   ;;  %s11894_s3 = inlined_call_operand.vmem [shape: f32[1,128], index: 3, kind: input, shape index: {}]   ;;  %s11895_s4 = inlined_call_operand.vmem [shape: f32[1,128], index: 4, kind: input, shape index: {}]   ;;  %s11896_s5 = inlined_call_operand.vmem [shape: f32[16,101,128], index: 5, kind: output, shape index: {}]  }
   0x1 LB: > { %s5107_s19 = sadd.s32 4294967295, %s5939_s18   ;;  %p5111_p0 = scmp.ge.s32.totalorder %s5939_s18, 1  ;;  %s5939_s18 = sphi %s5975_s18, %s15_s18  }
   0x2   : > { %p189_p1 = scmp.lt.s32.totalorder %s5939_s18, 3 }
   0x4   : > { %p190_p2 = pnand %p5111_p0, %p189_p1 }
   0x6   : > { %193 = sbr.rel (%p190_p2) target bundleno = 1793 (0x701), region = 40 }
   0xb   : > { %s5112_s20 = sshll.u32 %s5107_s19, 3  ;;  %s5941_s25 = smov 1   ;;  %vm1403_vm0 = vcmask 1044480   ;;  %vm1820_vm5 = vcmask 1041408   ;;  %vm2290_vm7 = vcmask 1046528   ;;  %vm2250_vm11 = vcmask 384000  }
   0xc   : > { %p220_p3 = scmp.lt.s32.totalorder %s5112_s20, 15  ;;  %s5942_s26 = smov 127  }
   0xe   : > { %s12990_s20 = smov (!%p220_p3, %s5112_s20), 15 }
   0xf   : > { %s5566_s21 = smul.u32 104, %s12990_s20 }
  0x11   : > { %s5991_s24 = scalar_lea.vmem %s11891_s0, %s5566_s21  ;;  %s10548_s10 = scalar_lea.vmem %s11896_s5, %s5566_s21 }
  0x12   : > { %v5994_v0 = vld [vmem:[%s5991_s24 + $0x10] sm:$0xff]  ;;  %v5997_v1 = vld [vmem:[%s5991_s24] sm:$0xff]  ;;  %v6004_v2 = vld [vmem:[%s5991_s24 + $0x18] sm:$0xff] }
  0x13   : > { %461 = vrot.lane.b32.xlu1 %v5994_v0, %s5941_s25  ;;  %457 = vrot.lane.b32.xlu0 %v5997_v1, %s5941_s25  ;;  %v6007_v3 = vld [vmem:[%s5991_s24 + $0x8] sm:$0xff]  ;;  %v6017_v5 = vld [vmem:[%s5991_s24 + $0x20] sm:$0xff]  ;;  %v1428_v19 = vrot.slane %v5994_v0, 3  ;;  %v11897_v20 = vrot.slane %v6004_v2, 3  ;;  %v11899_v26 = vrot.slane %v5997_v1, 3 }
  0x14   : > { %v6014_v4 = vld [vmem:[%s5991_s24 + $0x28] sm:$0xff]  ;;  %v6024_v6 = vld [vmem:[%s5991_s24 + $0x38] sm:$0xff]  ;;  %v6027_v7 = vld [vmem:[%s5991_s24 + $0x30] sm:$0xff]  ;;  %v1412_v23 = vrot.slane %v6007_v3, 3 }
  0x15   : > { %v6034_v8 = vld [vmem:[%s5991_s24 + $0x48] sm:$0xff]  ;;  %v6037_v9 = vld [vmem:[%s5991_s24 + $0x40] sm:$0xff]  ;;  %v6044_v10 = vld [vmem:[%s5991_s24 + $0x58] sm:$0xff]  ;;  %v1445_v27 = vsel %vm1403_vm0, %v1428_v19, %v11897_v20 }
  0x16   : > { %v6047_v11 = vld [vmem:[%s5991_s24 + $0x50] sm:$0xff]  ;;  %v6054_v12 = vld [vmem:[%s5991_s24 + $0x68] sm:$0xff]  ;;  %v6057_v13 = vld [vmem:[%s5991_s24 + $0x60] sm:$0x1f]  ;;  %v1429_v31 = vsel %vm1403_vm0, %v1412_v23, %v1428_v19  ;;  %v1413_v33 = vsel %vm1403_vm0, %v11899_v26, %v1412_v23 }
  0x17   : > { %463 = vrot.lane.b32.xlu1 %v6004_v2, %s5941_s25  ;;  %459 = vrot.lane.b32.xlu0 %v6007_v3, %s5941_s25  ;;  %v6064_v14 = vld [vmem:[%s5991_s24 + $0x78] sm:$0xff]  ;;  %v6067_v15 = vld [vmem:[%s5991_s24 + $0x70] sm:$0xff]  ;;  %v11900_v24 = vrot.slane %v6054_v12, 3 }
  0x18   : > { %v6070_v16 = vld [vmem:[%s5991_s24 + $0x80] sm:$0xff]  ;;  %v1430_v17 = vrot.slane %v6064_v14, 3  ;;  %v1414_v21 = vrot.slane %v6067_v15, 3  ;;  %v6082_v22 = vld [vmem:[%s5991_s24 + $0x88] sm:$0xff]  ;;  %v6098_v28 = vld [vmem:[%s5991_s24 + $0x98] sm:$0xff] }
  0x19   : > { %v11898_v18 = vrot.slane %v6070_v16, 3  ;;  %v6101_v29 = vld [vmem:[%s5991_s24 + $0x90] sm:$0xff]  ;;  %v6116_v34 = vld [vmem:[%s5991_s24 + $0xa8] sm:$0xff]  ;;  %v6119_v35 = vld [vmem:[%s5991_s24 + $0xa0] sm:$0xff] }
  0x1a   : > { %v1431_v30 = vsel %vm1403_vm0, %v1414_v21, %v1430_v17  ;;  %v1415_v32 = vsel %vm1403_vm0, %v11900_v24, %v1414_v21  ;;  %v6126_v36 = vld [vmem:[%s5991_s24 + $0xb8] sm:$0xff]  ;;  %v6129_v37 = vld [vmem:[%s5991_s24 + $0xb0] sm:$0xff]  ;;  %v6136_v38 = vld [vmem:[%s5991_s24 + $0xc8] sm:$0x1f] }
  0x1b   : > { %467 = vrot.lane.b32.xlu1 %v6014_v4, %s5941_s25  ;;  %465 = vrot.lane.b32.xlu0 %v6017_v5, %s5941_s25  ;;  %v1447_v25 = vsel %vm1403_vm0, %v1430_v17, %v11898_v18  ;;  %v6139_v39 = vld [vmem:[%s5991_s24 + $0xc0] sm:$0xff]  ;;  %v6146_v40 = vld [vmem:[%s5991_s24 + $0xd8] sm:$0xff] }
  0x1c   : > { %2307 = vmatprep.subr.mxu0 %v1447_v25  ;;  %v6149_v41 = vld [vmem:[%s5991_s24 + $0xd0] sm:$0xff]  ;;  %v6156_v42 = vld [vmem:[%s5991_s24 + $0xe8] sm:$0xff]  ;;  %v6159_v43 = vld [vmem:[%s5991_s24 + $0xe0] sm:$0xff] }
  0x1d   : > { %2308 = vmatpush1.msra.mxu0 %v1445_v27  ;;  %v6166_v44 = vld [vmem:[%s5991_s24 + $0xf8] sm:$0xff]  ;;  %v6169_v45 = vld [vmem:[%s5991_s24 + $0xf0] sm:$0xff]  ;;  %v6176_v46 = vld [vmem:[%s5991_s24 + $0x108] sm:$0xff] }
  0x1e   : > { %2309 = vmatprep.subr.mxu0 %v1431_v30  ;;  %v6179_v47 = vld [vmem:[%s5991_s24 + $0x100] sm:$0xff]  ;;  %v6186_v48 = vld [vmem:[%s5991_s24 + $0x118] sm:$0xff]  ;;  %v6189_v49 = vld [vmem:[%s5991_s24 + $0x110] sm:$0xff] }
  0x1f   : > { %471 = vrot.lane.b32.xlu1 %v6024_v6, %s5941_s25  ;;  %469 = vrot.lane.b32.xlu0 %v6027_v7, %s5941_s25  ;;  %v6196_v50 = vld [vmem:[%s5991_s24 + $0x128] sm:$0xff]  ;;  %v6199_v51 = vld [vmem:[%s5991_s24 + $0x120] sm:$0xff] }
  0x20   : > { %2310 = vmatpush1.msra.mxu0 %v1429_v31  ;;  %v6206_v52 = vld [vmem:[%s5991_s24 + $0x138] sm:$0xff]  ;;  %v6209_v53 = vld [vmem:[%s5991_s24 + $0x130] sm:$0x1f]  ;;  %v6216_v54 = vld [vmem:[%s5991_s24 + $0x148] sm:$0xff] }
  0x21   : > { %2311 = vmatprep.subr.mxu0 %v1415_v32  ;;  %v6219_v55 = vld [vmem:[%s5991_s24 + $0x140] sm:$0xff]  ;;  %v6226_v56 = vld [vmem:[%s5991_s24 + $0x158] sm:$0xff]  ;;  %v6229_v57 = vld [vmem:[%s5991_s24 + $0x150] sm:$0xff] }
  0x22   : > { %2312 = vmatpush1.msra.mxu0 %v1413_v33  ;;  %v6236_v58 = vld [vmem:[%s5991_s24 + $0x168] sm:$0xff]  ;;  %v6239_v59 = vld [vmem:[%s5991_s24 + $0x160] sm:$0xff]  ;;  %v6246_v60 = vld [vmem:[%s5991_s24 + $0x178] sm:$0xff] }
  0x23   : > { %475 = vrot.lane.b32.xlu1 %v6034_v8, %s5941_s25  ;;  %473 = vrot.lane.b32.xlu0 %v6037_v9, %s5941_s25  ;;  %12225 = vst [vmem:[#allocation2_spill] sm:$0xff] %v6246_v60  ;;  %v6249_v61 = vld [vmem:[%s5991_s24 + $0x170] sm:$0xff]  ;;  %v6256_v62 = vld [vmem:[%s5991_s24 + $0x188] sm:$0xff] }
  0x24   : > { %12226 = vst [vmem:[#allocation3_spill] sm:$0xff] %v6249_v61  ;;  %12227 = vst [vmem:[#allocation4_spill] sm:$0xff] %v6256_v62  ;;  %v6259_v63 = vld [vmem:[%s5991_s24 + $0x180] sm:$0xff]  ;;  %v6266_v17 = vld [vmem:[%s5991_s24 + $0x198] sm:$0x1f] }
  0x25   : > { %12228 = vst [vmem:[#allocation5_spill] sm:$0xff] %v6259_v63  ;;  %12229 = vst [vmem:[#allocation6_spill] sm:$0xff] %v6266_v17  ;;  %v6269_v19 = vld [vmem:[%s5991_s24 + $0x190] sm:$0xff]  ;;  %v6276_v21 = vld [vmem:[%s5991_s24 + $0x1a8] sm:$0xff] }
  0x26   : > { %12230 = vst [vmem:[#allocation7_spill] sm:$0xff] %v6269_v19  ;;  %v6279_v23 = vld [vmem:[%s5991_s24 + $0x1a0] sm:$0xff]  ;;  %v6286_v25 = vld [vmem:[%s5991_s24 + $0x1b8] sm:$0xff]  ;;  %v6289_v27 = vld [vmem:[%s5991_s24 + $0x1b0] sm:$0xff] }
  0x27   : > { %479 = vrot.lane.b32.xlu1 %v6044_v10, %s5941_s25  ;;  %477 = vrot.lane.b32.xlu0 %v6047_v11, %s5941_s25  ;;  %12231 = vst [vmem:[#allocation8_spill] sm:$0xff] %v6279_v23  ;;  %v6296_v30 = vld [vmem:[%s5991_s24 + $0x1c8] sm:$0xff]  ;;  %v6299_v31 = vld [vmem:[%s5991_s24 + $0x1c0] sm:$0xff] }
  0x28   : > { %v6306_v32 = vld [vmem:[%s5991_s24 + $0x1d8] sm:$0xff]  ;;  %v6309_v33 = vld [vmem:[%s5991_s24 + $0x1d0] sm:$0xff]  ;;  %v6320_v26 = vld [vmem:[%s5991_s24 + $0x1e8] sm:$0xff] }
  0x29   : > { %12232 = vst [vmem:[#allocation9_spill] sm:$0xff] %v6306_v32  ;;  %12235 = vst [vmem:[#allocation12_spill] sm:$0xff] %v6320_v26  ;;  %v6323_v24 = vld [vmem:[%s5991_s24 + $0x1e0] sm:$0xff] }
  0x2a   : > { %12236 = vst [vmem:[#allocation13_spill] sm:$0xff] %v6323_v24 }
  0x2b   : > { %483 = vrot.lane.b32.xlu1 %v6054_v12, %s5941_s25  ;;  %481 = vrot.lane.b32.xlu0 %v6057_v13, %s5941_s25 }
  0x2f   : > { %487 = vrot.lane.b32.xlu1 %v6064_v14, %s5941_s25  ;;  %485 = vrot.lane.b32.xlu0 %v6067_v15, %s5941_s25 }
  0x33   : > { %491 = vrot.lane.b32.xlu1 %v6082_v22, %s5941_s25  ;;  %489 = vrot.lane.b32.xlu0 %v6070_v16, %s5941_s25 }
  0x37   : > { %495 = vrot.lane.b32.xlu1 %v6098_v28, %s5941_s25  ;;  %493 = vrot.lane.b32.xlu0 %v6101_v29, %s5941_s25 }
  0x3b   : > { %499 = vrot.lane.b32.xlu1 %v6116_v34, %s5941_s25  ;;  %497 = vrot.lane.b32.xlu0 %v6119_v35, %s5941_s25 }
  0x3f   : > { %503 = vrot.lane.b32.xlu1 %v6126_v36, %s5941_s25  ;;  %501 = vrot.lane.b32.xlu0 %v6129_v37, %s5941_s25 }
  0x43   : > { %507 = vrot.lane.b32.xlu1 %v6136_v38, %s5941_s25  ;;  %505 = vrot.lane.b32.xlu0 %v6139_v39, %s5941_s25 }
  0x47   : > { %511 = vrot.lane.b32.xlu1 %v6146_v40, %s5941_s25  ;;  %509 = vrot.lane.b32.xlu0 %v6149_v41, %s5941_s25 }
  0x4b   : > { %515 = vrot.lane.b32.xlu1 %v6156_v42, %s5941_s25  ;;  %513 = vrot.lane.b32.xlu0 %v6159_v43, %s5941_s25 }
  0x4f   : > { %519 = vrot.lane.b32.xlu1 %v6166_v44, %s5941_s25  ;;  %517 = vrot.lane.b32.xlu0 %v6169_v45, %s5941_s25 }
  0x53   : > { %523 = vrot.lane.b32.xlu1 %v6176_v46, %s5941_s25  ;;  %521 = vrot.lane.b32.xlu0 %v6179_v47, %s5941_s25 }
  0x57   : > { %527 = vrot.lane.b32.xlu1 %v6186_v48, %s5941_s25  ;;  %525 = vrot.lane.b32.xlu0 %v6189_v49, %s5941_s25 }
  0x5b   : > { %531 = vrot.lane.b32.xlu1 %v6196_v50, %s5941_s25  ;;  %529 = vrot.lane.b32.xlu0 %v6199_v51, %s5941_s25 }
  0x5f   : > { %535 = vrot.lane.b32.xlu1 %v6206_v52, %s5941_s25  ;;  %533 = vrot.lane.b32.xlu0 %v6209_v53, %s5941_s25 }
  0x63   : > { %539 = vrot.lane.b32.xlu1 %v6216_v54, %s5941_s25  ;;  %537 = vrot.lane.b32.xlu0 %v6219_v55, %s5941_s25 }
  0x67   : > { %543 = vrot.lane.b32.xlu1 %v6226_v56, %s5941_s25  ;;  %541 = vrot.lane.b32.xlu0 %v6229_v57, %s5941_s25 }
  0x6b   : > { %547 = vrot.lane.b32.xlu1 %v6236_v58, %s5941_s25  ;;  %545 = vrot.lane.b32.xlu0 %v6239_v59, %s5941_s25 }
  0x6f   : > { %551 = vrot.lane.b32.xlu1 %v6246_v60, %s5941_s25  ;;  %549 = vrot.lane.b32.xlu0 %v6249_v61, %s5941_s25 }
  0x73   : > { %555 = vrot.lane.b32.xlu1 %v6256_v62, %s5941_s25  ;;  %553 = vrot.lane.b32.xlu0 %v6259_v63, %s5941_s25 }
  0x77   : > { %559 = vrot.lane.b32.xlu1 %v6266_v17, %s5941_s25  ;;  %557 = vrot.lane.b32.xlu0 %v6269_v19, %s5941_s25 }
  0x7b   : > { %563 = vrot.lane.b32.xlu1 %v6276_v21, %s5941_s25  ;;  %561 = vrot.lane.b32.xlu0 %v6279_v23, %s5941_s25 }
  0x7f   : > { %567 = vrot.lane.b32.xlu1 %v6286_v25, %s5941_s25  ;;  %565 = vrot.lane.b32.xlu0 %v6289_v27, %s5941_s25 }
  0x83   : > { %571 = vrot.lane.b32.xlu1 %v6296_v30, %s5941_s25  ;;  %569 = vrot.lane.b32.xlu0 %v6299_v31, %s5941_s25 }
  0x85   : > { %v6311_v20 = vpop.permute.xlu1 %461  ;;  %v6313_v18 = vpop.permute.xlu0 %457 }
  0x86   : > { %12233 = vst [vmem:[#allocation10_spill] sm:$0xff] %v6311_v20  ;;  %12234 = vst [vmem:[#allocation11_spill] sm:$0xff] %v6313_v18  ;;  %v6334_v18 = vld [vmem:[%s5991_s24 + $0x1f8] sm:$0xff]  ;;  %v6337_v20 = vld [vmem:[%s5991_s24 + $0x1f0] sm:$0xff] }
  0x87   : > { %575 = vrot.lane.b32.xlu1 %v6306_v32, %s5941_s25  ;;  %573 = vrot.lane.b32.xlu0 %v6309_v33, %s5941_s25  ;;  %12239 = vst [vmem:[#allocation16_spill] sm:$0xff] %v6334_v18  ;;  %12240 = vst [vmem:[#allocation17_spill] sm:$0xff] %v6337_v20 }
  0x89   : > { %v6325_v61 = vpop.permute.xlu1 %463  ;;  %v6327_v60 = vpop.permute.xlu0 %459 }
  0x8a   : > { %12237 = vst [vmem:[#allocation14_spill] sm:$0xff] %v6325_v61  ;;  %12238 = vst [vmem:[#allocation15_spill] sm:$0xff] %v6327_v60  ;;  %v6348_v60 = vld [vmem:[%s5991_s24 + $0x208] sm:$0xff]  ;;  %v6351_v61 = vld [vmem:[%s5991_s24 + $0x200] sm:$0x1f] }
  0x8b   : > { %579 = vrot.lane.b32.xlu1 %v6320_v26, %s5941_s25  ;;  %577 = vrot.lane.b32.xlu0 %v6323_v24, %s5941_s25  ;;  %12243 = vst [vmem:[#allocation20_spill] sm:$0xff] %v6348_v60  ;;  %12244 = vst [vmem:[#allocation21_spill] sm:$0xff] %v6351_v61 }
  0x8d   : > { %v6339_v32 = vpop.permute.xlu1 %467  ;;  %v6341_v63 = vpop.permute.xlu0 %465 }
  0x8e   : > { %12241 = vst [vmem:[#allocation18_spill] sm:$0xff] %v6339_v32  ;;  %12242 = vst [vmem:[#allocation19_spill] sm:$0xff] %v6341_v63  ;;  %v6362_v63 = vld [vmem:[%s5991_s24 + $0x218] sm:$0xff]  ;;  %v6365_v32 = vld [vmem:[%s5991_s24 + $0x210] sm:$0xff] }
  0x8f   : > { %583 = vrot.lane.b32.xlu1 %v6334_v18, %s5941_s25  ;;  %581 = vrot.lane.b32.xlu0 %v6337_v20, %s5941_s25  ;;  %12247 = vst [vmem:[#allocation24_spill] sm:$0xff] %v6362_v63  ;;  %12248 = vst [vmem:[#allocation25_spill] sm:$0xff] %v6365_v32  ;;  %v344_v18 = vlaneseq }
  0x91   : > { %v6353_v24 = vpop.permute.xlu1 %471  ;;  %v6355_v26 = vpop.permute.xlu0 %469 }
  0x92   : > { %12245 = vst [vmem:[#allocation22_spill] sm:$0xff] %v6353_v24  ;;  %12246 = vst [vmem:[#allocation23_spill] sm:$0xff] %v6355_v26  ;;  %v6376_v26 = vld [vmem:[%s5991_s24 + $0x228] sm:$0xff]  ;;  %v6379_v24 = vld [vmem:[%s5991_s24 + $0x220] sm:$0xff] }
  0x93   : > { %587 = vrot.lane.b32.xlu1 %v6348_v60, %s5941_s25  ;;  %585 = vrot.lane.b32.xlu0 %v6351_v61, %s5941_s25  ;;  %12251 = vst [vmem:[#allocation28_spill] sm:$0xff] %v6376_v26  ;;  %12252 = vst [vmem:[#allocation29_spill] sm:$0xff] %v6379_v24 }
  0x95   : > { %v6367_v20 = vpop.permute.xlu1 %475  ;;  %v6369_v62 = vpop.permute.xlu0 %473 }
  0x96   : > { %12249 = vst [vmem:[#allocation26_spill] sm:$0xff] %v6367_v20  ;;  %12250 = vst [vmem:[#allocation27_spill] sm:$0xff] %v6369_v62  ;;  %v6390_v62 = vld [vmem:[%s5991_s24 + $0x238] sm:$0xff]  ;;  %v6393_v20 = vld [vmem:[%s5991_s24 + $0x230] sm:$0xff] }
  0x97   : > { %591 = vrot.lane.b32.xlu1 %v6362_v63, %s5941_s25  ;;  %589 = vrot.lane.b32.xlu0 %v6365_v32, %s5941_s25  ;;  %12255 = vst [vmem:[#allocation32_spill] sm:$0xff] %v6390_v62  ;;  %12256 = vst [vmem:[#allocation33_spill] sm:$0xff] %v6393_v20 }
  0x99   : > { %v6381_v60 = vpop.permute.xlu1 %479  ;;  %v6383_v61 = vpop.permute.xlu0 %477 }
  0x9a   : > { %12253 = vst [vmem:[#allocation30_spill] sm:$0xff] %v6381_v60  ;;  %12254 = vst [vmem:[#allocation31_spill] sm:$0xff] %v6383_v61  ;;  %v6404_v61 = vld [vmem:[%s5991_s24 + $0x248] sm:$0xff]  ;;  %v6407_v60 = vld [vmem:[%s5991_s24 + $0x240] sm:$0xff] }
  0x9b   : > { %595 = vrot.lane.b32.xlu1 %v6376_v26, %s5941_s25  ;;  %593 = vrot.lane.b32.xlu0 %v6379_v24, %s5941_s25  ;;  %12259 = vst [vmem:[#allocation36_spill] sm:$0xff] %v6404_v61  ;;  %12260 = vst [vmem:[#allocation37_spill] sm:$0xff] %v6407_v60 }
  0x9d   : > { %v6395_v32 = vpop.permute.xlu1 %483  ;;  %v6397_v63 = vpop.permute.xlu0 %481 }
  0x9e   : > { %12257 = vst [vmem:[#allocation34_spill] sm:$0xff] %v6395_v32  ;;  %12258 = vst [vmem:[#allocation35_spill] sm:$0xff] %v6397_v63  ;;  %v6418_v32 = vld [vmem:[%s5991_s24 + $0x258] sm:$0xff] }
  0x9f   : > { %599 = vrot.lane.b32.xlu1 %v6390_v62, %s5941_s25  ;;  %597 = vrot.lane.b32.xlu0 %v6393_v20, %s5941_s25  ;;  %12263 = vst [vmem:[#allocation40_spill] sm:$0xff] %v6418_v32  ;;  %v6421_v62 = vld [vmem:[%s5991_s24 + $0x250] sm:$0xff] }
  0xa0   : > { %12264 = vst [vmem:[#allocation41_spill] sm:$0xff] %v6421_v62 }
  0xa1   : > { %v6409_v24 = vpop.permute.xlu1 %487  ;;  %v6411_v26 = vpop.permute.xlu0 %485 }
  0xa2   : > { %12261 = vst [vmem:[#allocation38_spill] sm:$0xff] %v6409_v24  ;;  %12262 = vst [vmem:[#allocation39_spill] sm:$0xff] %v6411_v26  ;;  %v6432_v26 = vld [vmem:[%s5991_s24 + $0x268] sm:$0x1f] }
  0xa3   : > { %603 = vrot.lane.b32.xlu1 %v6404_v61, %s5941_s25  ;;  %601 = vrot.lane.b32.xlu0 %v6407_v60, %s5941_s25  ;;  %12267 = vst [vmem:[#allocation44_spill] sm:$0xff] %v6432_v26  ;;  %v6435_v60 = vld [vmem:[%s5991_s24 + $0x260] sm:$0xff] }
  0xa4   : > { %12268 = vst [vmem:[#allocation45_spill] sm:$0xff] %v6435_v60 }
  0xa5   : > { %v6423_v20 = vpop.permute.xlu1 %491  ;;  %v6425_v17 = vpop.permute.xlu0 %489 }
  0xa6   : > { %12265 = vst [vmem:[#allocation42_spill] sm:$0xff] %v6423_v20  ;;  %12266 = vst [vmem:[#allocation43_spill] sm:$0xff] %v6425_v17  ;;  %v6441_v20 = vand.u32 127, %v344_v18  ;;  %v6448_v17 = vld [vmem:[%s5991_s24 + $0x278] sm:$0xff]  ;;  %v6465_v18 = vld [vmem:[%s5991_s24 + $0x288] sm:$0xff] }
  0xa7   : > { %607 = vrot.lane.b32.xlu1 %v6418_v32, %s5941_s25  ;;  %605 = vrot.lane.b32.xlu0 %v6421_v62, %s5941_s25  ;;  %12271 = vst [vmem:[#allocation48_spill] sm:$0xff] %v6448_v17  ;;  %v6451_v62 = vld [vmem:[%s5991_s24 + $0x270] sm:$0xff]  ;;  %12276 = vst [vmem:[#allocation53_spill] sm:$0xff] %v6465_v18 }
  0xa8   : > { %12272 = vst [vmem:[#allocation49_spill] sm:$0xff] %v6451_v62  ;;  %v6454_v32 = vadd.s32 128, %v6441_v20  ;;  %vm665_vm2 = vcmp.lt.s32.totalorder %v6441_v20, 1  ;;  %vm1090_vm3 = vcmp.lt.s32.totalorder %v6441_v20, 127  ;;  %vm874_vm6 = vcmp.eq.s32.totalorder %v6441_v20, 127 }
  0xa9   : > { %v6437_v24 = vpop.permute.xlu1 %495  ;;  %v6439_v61 = vpop.permute.xlu0 %493  ;;  %vm449_vm8 = vcmp.eq.s32.totalorder %v6441_v20, 0 }
  0xaa   : > { %12269 = vst [vmem:[#allocation46_spill] sm:$0xff] %v6437_v24  ;;  %12270 = vst [vmem:[#allocation47_spill] sm:$0xff] %v6439_v61 }
  0xab   : > { %611 = vrot.lane.b32.xlu1 %v6432_v26, %s5941_s25  ;;  %609 = vrot.lane.b32.xlu0 %v6435_v60, %s5941_s25  ;;  %12273 = vst [vmem:[#allocation50_spill] sm:$0xff] %v6454_v32  ;;  %v6468_v26 = vld [vmem:[%s5991_s24 + $0x280] sm:$0xff]  ;;  %v11952_v60 = vand.u32 127, %v6454_v32  ;;  %vm7057_vm10 = vmneg %vm449_vm8 }
  0xac   : > { %12277 = vst [vmem:[#allocation54_spill] sm:$0xff] %v6468_v26  ;;  %v6513_v32 = vld [vmem:[%s5991_s24 + $0x2a0] sm:$0xff] }
  0xad   : > { %v6456_v24 = vpop.permute.xlu1 %499  ;;  %v6458_v61 = vpop.permute.xlu0 %497  ;;  %vm6487_vm1 = vcmp.eq.s32.totalorder %v11952_v60, 0  ;;  %12288 = vst [vmem:[#allocation62_spill] sm:$0xff] %v6513_v32 }
  0xae   : > { %12274 = vst [vmem:[#allocation51_spill] sm:$0xff] %v6456_v24  ;;  %12275 = vst [vmem:[#allocation52_spill] sm:$0xff] %v6458_v61  ;;  %v6480_v61 = vld [vmem:[%s5991_s24 + $0x298] sm:$0xff]  ;;  %v6483_v24 = vld [vmem:[%s5991_s24 + $0x290] sm:$0xff] }
  0xaf   : > { %615 = vrot.lane.b32.xlu1 %v6448_v17, %s5941_s25  ;;  %613 = vrot.lane.b32.xlu0 %v6451_v62, %s5941_s25  ;;  %12280 = vst [vmem:[#allocation57_spill] sm:$0xff] %v6483_v24  ;;  %v12281_v62 = vmov 0  ;;  %vm7028_vm9 = vmneg %vm6487_vm1 }
  0xb0   : > { %v12282_v62 = vsel %vm6487_vm1, 4294967295, %v12281_v62 }
  0xb1   : > { %v6471_v23 = vpop.permute.xlu1 %503  ;;  %v6473_v19 = vpop.permute.xlu0 %501  ;;  %12283 = vst [vmem:[#allocation58_spill] sm:$0xff] %v12282_v62 }
  0xb2   : > { %12278 = vst [vmem:[#allocation55_spill] sm:$0xff] %v6471_v23  ;;  %12279 = vst [vmem:[#allocation56_spill] sm:$0xff] %v6473_v19 }
  0xb3   : > { %619 = vrot.lane.b32.xlu1 %v6465_v18, %s5941_s25  ;;  %617 = vrot.lane.b32.xlu0 %v6468_v26, %s5941_s25  ;;  %v12286_v26 = vrot.slane %v6054_v12, 3  ;;  %v6510_v18 = vld [vmem:[%s5991_s24 + $0x2a8] sm:$0xff] }
  0xb4   : > { %12287 = vst [vmem:[#allocation61_spill] sm:$0xff] %v6510_v18 }
  0xb5   : > { %v6492_v19 = vpop.permute.xlu1 %507  ;;  %v6494_v23 = vpop.permute.xlu0 %505 }
  0xb6   : > { %12284 = vst [vmem:[#allocation59_spill] sm:$0xff] %v6492_v19  ;;  %12285 = vst [vmem:[#allocation60_spill] sm:$0xff] %v6494_v23  ;;  %v756_v17 = vsel %vm665_vm2, %v6397_v63, %v6492_v19 }
  0xb7   : > { %623 = vrot.lane.b32.xlu1 %v6480_v61, %s5941_s25  ;;  %621 = vrot.lane.b32.xlu0 %v6483_v24, %s5941_s25  ;;  %v867_v60 = vsel %vm6487_vm1, 0.0, %v756_v17  ;;  %v6524_v17 = vld [vmem:[%s5991_s24 + $0x2b8] sm:$0xff] }
  0xb8   : > { %v2118_v23 = vsel %vm1403_vm0, %v867_v60, %v12286_v26  ;;  %12291 = vst [vmem:[#allocation65_spill] sm:$0xff] %v6524_v17  ;;  %v6527_v26 = vld [vmem:[%s5991_s24 + $0x2b0] sm:$0xff] }
  0xb9   : > { %v6515_v19 = vpop.permute.xlu1 %511  ;;  %v6517_v63 = vpop.permute.xlu0 %509  ;;  %2313 = vmatprep.subr.mxu0 %v2118_v23  ;;  %12292 = vst [vmem:[#allocation66_spill] sm:$0xff] %v6527_v26  ;;  %v6538_v23 = vld [vmem:[%s5991_s24 + $0x2c8] sm:$0xff] }
  0xba   : > { %12289 = vst [vmem:[#allocation63_spill] sm:$0xff] %v6515_v19  ;;  %12290 = vst [vmem:[#allocation64_spill] sm:$0xff] %v6517_v63  ;;  %v6541_v63 = vld [vmem:[%s5991_s24 + $0x2c0] sm:$0xff] }
  0xbb   : > { %627 = vrot.lane.b32.xlu1 %v6510_v18, %s5941_s25  ;;  %625 = vrot.lane.b32.xlu0 %v6513_v32, %s5941_s25  ;;  %12295 = vst [vmem:[#allocation69_spill] sm:$0xff] %v6538_v23  ;;  %12296 = vst [vmem:[#allocation70_spill] sm:$0xff] %v6541_v63 }
  0xbd   : > { %v6529_v60 = vpop.permute.xlu1 %515  ;;  %v6531_v62 = vpop.permute.xlu0 %513 }
  0xbe   : > { %12293 = vst [vmem:[#allocation67_spill] sm:$0xff] %v6529_v60  ;;  %12294 = vst [vmem:[#allocation68_spill] sm:$0xff] %v6531_v62  ;;  %v5194_v62 = vld [vmem:[%s5991_s24 + $0x2d8] sm:$0xff]  ;;  %v6553_v60 = vld [vmem:[%s5991_s24 + $0x2d0] sm:$0x1f] }
  0xbf   : > { %631 = vrot.lane.b32.xlu1 %v6524_v17, %s5941_s25  ;;  %629 = vrot.lane.b32.xlu0 %v6527_v26, %s5941_s25  ;;  %12299 = vst [vmem:[#allocation73_spill] sm:$0xff] %v6553_v60 }
  0xc1   : > { %v6543_v19 = vpop.permute.xlu1 %519  ;;  %v6545_v18 = vpop.permute.xlu0 %517 }
  0xc2   : > { %12297 = vst [vmem:[#allocation71_spill] sm:$0xff] %v6543_v19  ;;  %12298 = vst [vmem:[#allocation72_spill] sm:$0xff] %v6545_v18  ;;  %v6563_v18 = vld [vmem:[%s5991_s24 + $0x2e8] sm:$0xff]  ;;  %v5195_v19 = vld [vmem:[%s5991_s24 + $0x2e0] sm:$0xff] }
  0xc3   : > { %635 = vrot.lane.b32.xlu1 %v6538_v23, %s5941_s25  ;;  %633 = vrot.lane.b32.xlu0 %v6541_v63, %s5941_s25  ;;  %12302 = vst [vmem:[#allocation76_spill] sm:$0xff] %v6563_v18 }
  0xc5   : > { %v6555_v26 = vpop.permute.xlu1 %523  ;;  %v6557_v17 = vpop.permute.xlu0 %521 }
  0xc6   : > { %12300 = vst [vmem:[#allocation74_spill] sm:$0xff] %v6555_v26  ;;  %12301 = vst [vmem:[#allocation75_spill] sm:$0xff] %v6557_v17  ;;  %v6574_v17 = vld [vmem:[%s5991_s24 + $0x2f8] sm:$0xff] }
  0xc7   : > { %639 = vrot.lane.b32.xlu1 %v5194_v62, %s5941_s25  ;;  %637 = vrot.lane.b32.xlu0 %v6553_v60, %s5941_s25  ;;  %12305 = vst [vmem:[#allocation79_spill] sm:$0xff] %v6574_v17  ;;  %v6577_v62 = vld [vmem:[%s5991_s24 + $0x2f0] sm:$0xff] }
  0xc8   : > { %12306 = vst [vmem:[#allocation80_spill] sm:$0xff] %v6577_v62 }
  0xc9   : > { %v6566_v23 = vpop.permute.xlu1 %527  ;;  %v6568_v63 = vpop.permute.xlu0 %525 }
  0xca   : > { %12303 = vst [vmem:[#allocation77_spill] sm:$0xff] %v6566_v23  ;;  %12304 = vst [vmem:[#allocation78_spill] sm:$0xff] %v6568_v63  ;;  %v6588_v63 = vld [vmem:[%s5991_s24 + $0x308] sm:$0xff] }
  0xcb   : > { %643 = vrot.lane.b32.xlu1 %v6563_v18, %s5941_s25  ;;  %641 = vrot.lane.b32.xlu0 %v5195_v19, %s5941_s25  ;;  %12309 = vst [vmem:[#allocation83_spill] sm:$0xff] %v6588_v63  ;;  %v6591_v18 = vld [vmem:[%s5991_s24 + $0x300] sm:$0xff] }
  0xcc   : > { %12310 = vst [vmem:[#allocation84_spill] sm:$0xff] %v6591_v18 }
  0xcd   : > { %v6579_v26 = vpop.permute.xlu1 %531  ;;  %v6581_v60 = vpop.permute.xlu0 %529 }
  0xce   : > { %12307 = vst [vmem:[#allocation81_spill] sm:$0xff] %v6579_v26  ;;  %12308 = vst [vmem:[#allocation82_spill] sm:$0xff] %v6581_v60  ;;  %v5202_v60 = vld [vmem:[%s5991_s24 + $0x318] sm:$0xff]  ;;  %v5201_v26 = vld [vmem:[%s5991_s24 + $0x310] sm:$0xff] }
  0xcf   : > { %647 = vrot.lane.b32.xlu1 %v6574_v17, %s5941_s25  ;;  %645 = vrot.lane.b32.xlu0 %v6577_v62, %s5941_s25  ;;  %v5204_v62 = vld [vmem:[%s5991_s24 + $0x328] sm:$0xff] }
  0xd1   : > { %v6593_v19 = vpop.permute.xlu1 %535  ;;  %v6595_v23 = vpop.permute.xlu0 %533 }
  0xd2   : > { %12311 = vst [vmem:[#allocation85_spill] sm:$0xff] %v6593_v19  ;;  %12312 = vst [vmem:[#allocation86_spill] sm:$0xff] %v6595_v23  ;;  %v5203_v19 = vld [vmem:[%s5991_s24 + $0x320] sm:$0xff] }
  0xd3   : > { %651 = vrot.lane.b32.xlu1 %v6588_v63, %s5941_s25  ;;  %649 = vrot.lane.b32.xlu0 %v6591_v18, %s5941_s25 }
  0xd5   : > { %v6603_v17 = vpop.permute.xlu1 %539  ;;  %v6605_v24 = vpop.permute.xlu0 %537 }
  0xd7   : > { %655 = vrot.lane.b32.xlu1 %v5202_v60, %s5941_s25  ;;  %653 = vrot.lane.b32.xlu0 %v5201_v26, %s5941_s25 }
  0xd9   : > { %v6611_v32 = vpop.permute.xlu1 %543  ;;  %v6613_v23 = vpop.permute.xlu0 %541 }
  0xdb   : > { %659 = vrot.lane.b32.xlu1 %v5204_v62, %s5941_s25  ;;  %657 = vrot.lane.b32.xlu0 %v5203_v19, %s5941_s25 }
  0xdd   : > { %v6617_v63 = vpop.permute.xlu1 %547  ;;  %v6619_v18 = vpop.permute.xlu0 %545 }
  0xde   : > { %12313 = vst [vmem:[#allocation87_spill] sm:$0xff] %v6617_v63 }
  0xdf   : > { %932 = vrot.lane.b32.xlu1 %v6136_v38, %s5942_s26  ;;  %930 = vrot.lane.b32.xlu0 %v6139_v39, %s5942_s26 }
  0xe1   : > { %v6625_v26 = vpop.permute.xlu1 %551  ;;  %v6627_v60 = vpop.permute.xlu0 %549 }
  0xe3   : > { %958 = vrot.lane.b32.xlu1 %v6209_v53, %s5942_s26  ;;  %956 = vrot.lane.b32.xlu0 %v6196_v50, %s5942_s26 }
  0xe5   : > { %v6633_v62 = vpop.permute.xlu1 %555  ;;  %v6635_v19 = vpop.permute.xlu0 %553 }
  0xe7   : > { %906 = vrot.lane.b32.xlu1 %v6057_v13, %s5942_s26  ;;  %904 = vrot.lane.b32.xlu0 %v6044_v10, %s5942_s26 }
  0xe9   : > { %v6641_v38 = vpop.permute.xlu1 %559  ;;  %v6643_v39 = vpop.permute.xlu0 %557 }
  0xea   : > { %12314 = vst [vmem:[#allocation88_spill] sm:$0xff] %v6641_v38 }
  0xeb   : > { %954 = vrot.lane.b32.xlu1 %v6199_v51, %s5942_s26  ;;  %928 = vrot.lane.b32.xlu0 %v6126_v36, %s5942_s26 }
  0xed   : > { %v6649_v50 = vpop.permute.xlu1 %563  ;;  %v6651_v53 = vpop.permute.xlu0 %561 }
  0xee   : > { %12315 = vst [vmem:[#allocation89_spill] sm:$0xff] %v6649_v50  ;;  %12316 = vst [vmem:[#allocation90_spill] sm:$0xff] %v6651_v53 }
  0xef   : > { %926 = vrot.lane.b32.xlu1 %v6129_v37, %s5942_s26  ;;  %902 = vrot.lane.b32.xlu0 %v6047_v11, %s5942_s26 }
  0xf1   : > { %v6657_v10 = vpop.permute.xlu1 %567  ;;  %v6659_v13 = vpop.permute.xlu0 %565 }
  0xf2   : > { %12317 = vst [vmem:[#allocation91_spill] sm:$0xff] %v6657_v10  ;;  %12318 = vst [vmem:[#allocation92_spill] sm:$0xff] %v6659_v13 }
  0xf3   : > { %900 = vrot.lane.b32.xlu1 %v6034_v8, %s5942_s26  ;;  %952 = vrot.lane.b32.xlu0 %v6186_v48, %s5942_s26 }
  0xf5   : > { %v6665_v36 = vpop.permute.xlu1 %571  ;;  %v6667_v51 = vpop.permute.xlu0 %569 }
  0xf6   : > { %12319 = vst [vmem:[#allocation93_spill] sm:$0xff] %v6665_v36  ;;  %12320 = vst [vmem:[#allocation94_spill] sm:$0xff] %v6667_v51  ;;  %v11989_v51 = vmov 0.0   ;;  %v12376_v36 = vld [vmem:[#allocation17_spill] sm:$0xff] }
  0xf7   : > { %950 = vrot.lane.b32.xlu1 %v6189_v49, %s5942_s26  ;;  %924 = vrot.lane.b32.xlu0 %v6116_v34, %s5942_s26 }
  0xf8   : > { %2514 = vmatprep.mubr.f32.mxu1 %v11989_v51 }
  0xf9   : > { %v6673_v11 = vpop.permute.xlu1 %575  ;;  %v6675_v37 = vpop.permute.xlu0 %573 }
  0xfa   : > { %12321 = vst [vmem:[#allocation95_spill] sm:$0xff] %v6673_v11  ;;  %12322 = vst [vmem:[#allocation96_spill] sm:$0xff] %v6675_v37 }
  0xfb   : > { %922 = vrot.lane.b32.xlu1 %v6119_v35, %s5942_s26  ;;  %898 = vrot.lane.b32.xlu0 %v6037_v9, %s5942_s26  ;;  %v5206_v9 = vld [vmem:[%s5991_s24 + $0x338] sm:$0x1f] }
  0xfd   : > { %v6681_v8 = vpop.permute.xlu1 %579  ;;  %v6683_v48 = vpop.permute.xlu0 %577 }
  0xfe   : > { %12323 = vst [vmem:[#allocation97_spill] sm:$0xff] %v6681_v8  ;;  %12324 = vst [vmem:[#allocation98_spill] sm:$0xff] %v6683_v48  ;;  %v12389_v48 = vld [vmem:[#allocation29_spill] sm:$0xff] }
  0xff   : > { %896 = vrot.lane.b32.xlu1 %v6024_v6, %s5942_s26  ;;  %948 = vrot.lane.b32.xlu0 %v6176_v46, %s5942_s26  ;;  %v5205_v46 = vld [vmem:[%s5991_s24 + $0x330] sm:$0xff]  ;;  %v12398_v8 = vld [vmem:[#allocation25_spill] sm:$0xff] }
 0x101   : > { %v6689_v34 = vpop.permute.xlu1 %583  ;;  %v6691_v49 = vpop.permute.xlu0 %581 }
 0x102   : > { %12325 = vst [vmem:[#allocation99_spill] sm:$0xff] %v6689_v34  ;;  %12326 = vst [vmem:[#allocation100_spill] sm:$0xff] %v6691_v49  ;;  %v12416_v34 = vld [vmem:[#allocation45_spill] sm:$0xff] }
 0x103   : > { %946 = vrot.lane.b32.xlu1 %v6179_v47, %s5942_s26  ;;  %920 = vrot.lane.b32.xlu0 %v6098_v28, %s5942_s26 }
 0x105   : > { %v6699_v35 = vpop.permute.xlu1 %587  ;;  %v6701_v6 = vpop.permute.xlu0 %585 }
 0x106   : > { %12327 = vst [vmem:[#allocation101_spill] sm:$0xff] %v6699_v35  ;;  %12328 = vst [vmem:[#allocation102_spill] sm:$0xff] %v6701_v6  ;;  %v12435_v6 = vld [vmem:[#allocation27_spill] sm:$0xff] }
 0x107   : > { %894 = vrot.lane.b32.xlu1 %v6027_v7, %s5942_s26  ;;  %663 = vrot.lane.b32.xlu0 %v5206_v9, %s5941_s25 }
 0x109   : > { %v6707_v13 = vpop.permute.xlu1 %591  ;;  %v6709_v51 = vpop.permute.xlu0 %589 }
 0x10a   : > { %12329 = vst [vmem:[#allocation103_spill] sm:$0xff] %v6707_v13  ;;  %12330 = vst [vmem:[#allocation104_spill] sm:$0xff] %v6709_v51 }
 0x10b   : > { %918 = vrot.lane.b32.xlu1 %v6101_v29, %s5942_s26  ;;  %661 = vrot.lane.b32.xlu0 %v5205_v46, %s5941_s25 }
 0x10d   : > { %v6714_v28 = vpop.permute.xlu1 %595  ;;  %v6716_v47 = vpop.permute.xlu0 %593 }
 0x10e   : > { %12331 = vst [vmem:[#allocation105_spill] sm:$0xff] %v6714_v28  ;;  %12332 = vst [vmem:[#allocation106_spill] sm:$0xff] %v6716_v47 }
 0x10f   : > { %892 = vrot.lane.b32.xlu1 %v6014_v4, %s5942_s26  ;;  %944 = vrot.lane.b32.xlu0 %v6166_v44, %s5942_s26 }
 0x111   : > { %v6722_v7 = vpop.permute.xlu1 %599  ;;  %v6724_v9 = vpop.permute.xlu0 %597 }
 0x112   : > { %12333 = vst [vmem:[#allocation107_spill] sm:$0xff] %v6722_v7  ;;  %12334 = vst [vmem:[#allocation108_spill] sm:$0xff] %v6724_v9 }
 0x113   : > { %942 = vrot.lane.b32.xlu1 %v6169_v45, %s5942_s26  ;;  %916 = vrot.lane.b32.xlu0 %v6082_v22, %s5942_s26 }
 0x115   : > { %v6730_v29 = vpop.permute.xlu1 %603  ;;  %v6732_v46 = vpop.permute.xlu0 %601 }
 0x116   : > { %12335 = vst [vmem:[#allocation109_spill] sm:$0xff] %v6730_v29  ;;  %12336 = vst [vmem:[#allocation110_spill] sm:$0xff] %v6732_v46 }
 0x117   : > { %914 = vrot.lane.b32.xlu1 %v6070_v16, %s5942_s26  ;;  %890 = vrot.lane.b32.xlu0 %v6017_v5, %s5942_s26 }
 0x119   : > { %v6738_v4 = vpop.permute.xlu1 %607  ;;  %v6740_v44 = vpop.permute.xlu0 %605 }
 0x11a   : > { %12337 = vst [vmem:[#allocation111_spill] sm:$0xff] %v6738_v4  ;;  %12338 = vst [vmem:[#allocation112_spill] sm:$0xff] %v6740_v44  ;;  %v1416_v4 = vrot.slane %v6146_v40, 3 }
 0x11b   : > { %888 = vrot.lane.b32.xlu1 %v6004_v2, %s5942_s26  ;;  %940 = vrot.lane.b32.xlu0 %v6156_v42, %s5942_s26 }
 0x11d   : > { %v6746_v22 = vpop.permute.xlu1 %611  ;;  %v6748_v45 = vpop.permute.xlu0 %609 }
 0x11e   : > { %12339 = vst [vmem:[#allocation113_spill] sm:$0xff] %v6746_v22  ;;  %12340 = vst [vmem:[#allocation114_spill] sm:$0xff] %v6748_v45  ;;  %v12422_v45 = vld [vmem:[#allocation86_spill] sm:$0xff] }
 0x11f   : > { %938 = vrot.lane.b32.xlu1 %v6159_v43, %s5942_s26  ;;  %912 = vrot.lane.b32.xlu0 %v6064_v14, %s5942_s26 }
 0x121   : > { %v6754_v5 = vpop.permute.xlu1 %615  ;;  %v6756_v35 = vpop.permute.xlu0 %613 }
 0x122   : > { %12341 = vst [vmem:[#allocation115_spill] sm:$0xff] %v6754_v5  ;;  %12342 = vst [vmem:[#allocation116_spill] sm:$0xff] %v6756_v35 }
 0x123   : > { %910 = vrot.lane.b32.xlu1 %v6067_v15, %s5942_s26  ;;  %886 = vrot.lane.b32.xlu0 %v5994_v0, %s5942_s26 }
 0x125   : > { %v6762_v51 = vpop.permute.xlu1 %619  ;;  %v6764_v13 = vpop.permute.xlu0 %617 }
 0x126   : > { %12343 = vst [vmem:[#allocation117_spill] sm:$0xff] %v6762_v51  ;;  %12344 = vst [vmem:[#allocation118_spill] sm:$0xff] %v6764_v13 }
 0x127   : > { %884 = vrot.lane.b32.xlu1 %v6007_v3, %s5942_s26  ;;  %936 = vrot.lane.b32.xlu0 %v6146_v40, %s5942_s26 }
 0x129   : > { %v6770_v14 = vpop.permute.xlu1 %623  ;;  %v6772_v5 = vpop.permute.xlu0 %621 }
 0x12a   : > { %12345 = vst [vmem:[#allocation119_spill] sm:$0xff] %v6770_v14  ;;  %12346 = vst [vmem:[#allocation120_spill] sm:$0xff] %v6772_v5  ;;  %v2134_v14 = vld [vmem:[%s11892_s1 + $0x8] sm:$0xff] }
 0x12b   : > { %934 = vrot.lane.b32.xlu1 %v6149_v41, %s5942_s26  ;;  %908 = vrot.lane.b32.xlu0 %v6054_v12, %s5942_s26 }
 0x12c   : > { %2371 = vmatprep.mubr.f32.mxu0 %v2134_v14 }
 0x12d   : > { %v6778_v0 = vpop.permute.xlu1 %627  ;;  %v6780_v15 = vpop.permute.xlu0 %625 }
 0x12e   : > { %12347 = vst [vmem:[#allocation121_spill] sm:$0xff] %v6778_v0  ;;  %12348 = vst [vmem:[#allocation122_spill] sm:$0xff] %v6780_v15  ;;  %v12364_v0 = vld [vmem:[#allocation8_spill] sm:$0xff] }
 0x12f   : > { %972 = vrot.lane.b32.xlu1 %v6236_v58, %s5942_s26  ;;  %970 = vrot.lane.b32.xlu0 %v6239_v59, %s5942_s26 }
 0x131   : > { %v6786_v3 = vpop.permute.xlu1 %631  ;;  %v6788_v13 = vpop.permute.xlu0 %629 }
 0x132   : > { %12349 = vst [vmem:[#allocation123_spill] sm:$0xff] %v6786_v3  ;;  %12350 = vst [vmem:[#allocation124_spill] sm:$0xff] %v6788_v13 }
 0x133   : > { %998 = vrot.lane.b32.xlu1 %v6309_v33, %s5942_s26  ;;  %996 = vrot.lane.b32.xlu0 %v6296_v30, %s5942_s26 }
 0x135   : > { %v6794_v12 = vpop.permute.xlu1 %635  ;;  %v6796_v51 = vpop.permute.xlu0 %633 }
 0x136   : > { %12351 = vst [vmem:[#allocation125_spill] sm:$0xff] %v6794_v12  ;;  %12352 = vst [vmem:[#allocation126_spill] sm:$0xff] %v6796_v51  ;;  %v12367_v51 = vld [vmem:[#allocation16_spill] sm:$0xff] }
 0x137   : > { %968 = vrot.lane.b32.xlu1 %v6226_v56, %s5942_s26  ;;  %882 = vrot.lane.b32.xlu0 %v5997_v1, %s5942_s26 }
 0x139   : > { %v6802_v58 = vpop.permute.xlu1 %639  ;;  %v6804_v59 = vpop.permute.xlu0 %637 }
 0x13a   : > { %12353 = vst [vmem:[#allocation127_spill] sm:$0xff] %v6802_v58  ;;  %12354 = vst [vmem:[#allocation128_spill] sm:$0xff] %v6804_v59  ;;  %v12369_v59 = vld [vmem:[#allocation4_spill] sm:$0xff] }
 0x13b   : > { %966 = vrot.lane.b32.xlu1 %v6229_v57, %s5942_s26  ;;  %994 = vrot.lane.b32.xlu0 %v6299_v31, %s5942_s26 }
 0x13d   : > { %v6810_v30 = vpop.permute.xlu1 %643  ;;  %v6812_v33 = vpop.permute.xlu0 %641 }
 0x13e   : > { %12355 = vst [vmem:[#allocation129_spill] sm:$0xff] %v6810_v30  ;;  %12356 = vst [vmem:[#allocation130_spill] sm:$0xff] %v6812_v33 }
 0x13f   : > { %964 = vrot.lane.b32.xlu1 %v6216_v54, %s5942_s26  ;;  %992 = vrot.lane.b32.xlu0 %v6286_v25, %s5942_s26 }
 0x141   : > { %v6818_v56 = vpop.permute.xlu1 %647  ;;  %v6820_v35 = vpop.permute.xlu0 %645 }
 0x142   : > { %12357 = vst [vmem:[#allocation131_spill] sm:$0xff] %v6818_v56  ;;  %12358 = vst [vmem:[#allocation132_spill] sm:$0xff] %v6820_v35 }
 0x143   : > { %962 = vrot.lane.b32.xlu1 %v6219_v55, %s5942_s26  ;;  %990 = vrot.lane.b32.xlu0 %v6289_v27, %s5942_s26  ;;  %v12363_v27 = vld [vmem:[#allocation7_spill] sm:$0xff] }
 0x145   : > { %v6826_v31 = vpop.permute.xlu1 %651  ;;  %v6828_v5 = vpop.permute.xlu0 %649 }
 0x146   : > { %12359 = vst [vmem:[#allocation133_spill] sm:$0xff] %v6826_v31  ;;  %12360 = vst [vmem:[#allocation134_spill] sm:$0xff] %v6828_v5 }
 0x147   : > { %960 = vrot.lane.b32.xlu1 %v6206_v52, %s5942_s26  ;;  %988 = vrot.lane.b32.xlu0 %v6276_v21, %s5942_s26  ;;  %v12368_v21 = vld [vmem:[#allocation6_spill] sm:$0xff] }
 0x149   : > { %v6837_v25 = vpop.permute.xlu1 %655  ;;  %v6839_v15 = vpop.permute.xlu0 %653 }
 0x14a   : > { %12361 = vst [vmem:[#allocation135_spill] sm:$0xff] %v6837_v25  ;;  %12362 = vst [vmem:[#allocation136_spill] sm:$0xff] %v6839_v15 }
 0x14b   : > { %982 = vrot.lane.b32.xlu1 %v12363_v27, %s5942_s26  ;;  %986 = vrot.lane.b32.xlu0 %v12364_v0, %s5942_s26  ;;  %v12370_v27 = vld [vmem:[#allocation21_spill] sm:$0xff]  ;;  %v12371_v0 = vld [vmem:[#allocation50_spill] sm:$0xff] }
 0x14c   : > { %v12372_v47 = vand.u32 127, %v12371_v0  ;;  %v12375_v0 = vld [vmem:[#allocation33_spill] sm:$0xff] }
 0x14d   : > { %v6845_v13 = vpop.permute.xlu1 %659  ;;  %v6847_v3 = vpop.permute.xlu0 %657 }
 0x14e   : > { %12365 = vst [vmem:[#allocation7_spill] sm:$0xff] %v6845_v13  ;;  %12366 = vst [vmem:[#allocation8_spill] sm:$0xff] %v6847_v3  ;;  %vm6860_vm4 = vcmp.eq.s32.totalorder %v12372_v47, 127 }
 0x14f   : > { %1008 = vrot.lane.b32.xlu1 %v12367_v51, %s5942_s26  ;;  %984 = vrot.lane.b32.xlu0 %v12368_v21, %s5942_s26 }
 0x151   : > { %v933_v14 = vpop.permute.xlu1 %932  ;;  %v931_v12 = vpop.permute.xlu0 %930 }
 0x153   : > { %980 = vrot.lane.b32.xlu1 %v12369_v59, %s5942_s26  ;;  %1010 = vrot.lane.b32.xlu0 %v12370_v27, %s5942_s26 }
 0x155   : > { %v6864_v51 = vpop.permute.xlu1 %958  ;;  %v6866_v10 = vpop.permute.xlu0 %956 }
 0x156   : > { %v1168_v21 = vsel %vm1090_vm3, %v933_v14, %v6864_v51  ;;  %v1167_v59 = vsel %vm1090_vm3, %v931_v12, %v6866_v10 }
 0x157   : > { %v1292_v27 = vsel %vm6860_vm4, 0.0, %v1168_v21  ;;  %v1284_v47 = vsel %vm6860_vm4, 0.0, %v1167_v59  ;;  %1022 = vrot.lane.b32.xlu1 %v12375_v0, %s5942_s26  ;;  %1006 = vrot.lane.b32.xlu0 %v12376_v36, %s5942_s26  ;;  %v12379_v0 = vld [vmem:[#allocation32_spill] sm:$0xff] }
 0x158   : > { %v2007_v9 = vrot.slane %v1292_v27, 6  ;;  %v1991_v53 = vrot.slane %v1284_v47, 6 }
 0x159   : > { %v6883_v50 = vpop.permute.xlu1 %906  ;;  %v6885_v37 = vpop.permute.xlu0 %904 }
 0x15a   : > { %12377 = vst [vmem:[#allocation16_spill] sm:$0xff] %v6883_v50  ;;  %12378 = vst [vmem:[#allocation6_spill] sm:$0xff] %v6885_v37  ;;  %v1181_v21 = vsel %vm1090_vm3, %v6883_v50, %v933_v14  ;;  %v1180_v59 = vsel %vm1090_vm3, %v6885_v37, %v931_v12  ;;  %v2008_v36 = vsel %vm1820_vm5, %v1991_v53, %v2007_v9 }
 0x15b   : > { %v1291_v27 = vsel %vm874_vm6, 0.0, %v1181_v21  ;;  %v1283_v47 = vsel %vm874_vm6, 0.0, %v1180_v59  ;;  %1048 = vrot.lane.b32.xlu1 %v6480_v61, %s5942_s26  ;;  %1024 = vrot.lane.b32.xlu0 %v12379_v0, %s5942_s26  ;;  %v12380_v61 = vld [vmem:[#allocation5_spill] sm:$0xff] }
 0x15c   : > { %v2005_v7 = vrot.slane %v1291_v27, 6  ;;  %v1989_v14 = vrot.slane %v1283_v47, 6  ;;  %5255 = vmatprep.subr.msk.mxu1 %vm2290_vm7, %v2008_v36  ;;  %v12381_v27 = vld [vmem:[#allocation62_spill] sm:$0xff] }
 0x15d   : > { %v6903_v50 = vpop.permute.xlu1 %954  ;;  %v929_v12 = vpop.permute.xlu0 %928 }
 0x15e   : > { %v1166_v9 = vsel %vm1090_vm3, %v929_v12, %v6903_v50  ;;  %v2006_v21 = vsel %vm1820_vm5, %v1989_v14, %v2005_v7 }
 0x15f   : > { %v1276_v59 = vsel %vm6860_vm4, 0.0, %v1166_v9  ;;  %978 = vrot.lane.b32.xlu1 %v12380_v61, %s5942_s26  ;;  %1050 = vrot.lane.b32.xlu0 %v12381_v27, %s5942_s26  ;;  %v12383_v61 = vld [vmem:[#allocation28_spill] sm:$0xff] }
 0x160   : > { %v1975_v47 = vrot.slane %v1276_v59, 6  ;;  %5256 = vmatpush1.msk.msra.mxu1 %vm2290_vm7, %v2006_v21  ;;  %v12384_v27 = vld [vmem:[#allocation12_spill] sm:$0xff] }
 0x161   : > { %v927_v36 = vpop.permute.xlu1 %926  ;;  %v6916_v0 = vpop.permute.xlu0 %902 }
 0x162   : > { %12382 = vst [vmem:[#allocation4_spill] sm:$0xff] %v6916_v0  ;;  %v1179_v37 = vsel %vm1090_vm3, %v6916_v0, %v929_v12  ;;  %v1992_v7 = vsel %vm1820_vm5, %v1975_v47, %v1991_v53 }
 0x163   : > { %v1275_v9 = vsel %vm874_vm6, 0.0, %v1179_v37  ;;  %1020 = vrot.lane.b32.xlu1 %v12383_v61, %s5942_s26  ;;  %1004 = vrot.lane.b32.xlu0 %v12384_v27, %s5942_s26  ;;  %v12387_v27 = vld [vmem:[#allocation57_spill] sm:$0xff] }
 0x164   : > { %v1973_v59 = vrot.slane %v1275_v9, 6  ;;  %2472 = vmatprep.subr.mxu1 %v1992_v7  ;;  %v12386_v9 = vld [vmem:[#allocation2_spill] sm:$0xff] }
 0x165   : > { %v6928_v21 = vpop.permute.xlu1 %900  ;;  %v6930_v11 = vpop.permute.xlu0 %952 }
 0x166   : > { %12385 = vst [vmem:[#allocation21_spill] sm:$0xff] %v6928_v21  ;;  %v1178_v12 = vsel %vm1090_vm3, %v6928_v21, %v927_v36  ;;  %v1165_v53 = vsel %vm1090_vm3, %v927_v36, %v6930_v11  ;;  %v1990_v37 = vsel %vm1820_vm5, %v1973_v59, %v1989_v14 }
 0x167   : > { %v1267_v61 = vsel %vm874_vm6, 0.0, %v1178_v12  ;;  %v1268_v7 = vsel %vm6860_vm4, 0.0, %v1165_v53  ;;  %976 = vrot.lane.b32.xlu1 %v12386_v9, %s5942_s26  ;;  %1046 = vrot.lane.b32.xlu0 %v12387_v27, %s5942_s26 }
 0x168   : > { %v1957_v0 = vrot.slane %v1267_v61, 6  ;;  %v1959_v21 = vrot.slane %v1268_v7, 6  ;;  %2473 = vmatpush1.msra.mxu1 %v1990_v37  ;;  %v12390_v61 = vld [vmem:[#allocation13_spill] sm:$0xff] }
 0x169   : > { %v6947_v46 = vpop.permute.xlu1 %950  ;;  %v925_v36 = vpop.permute.xlu0 %924 }
 0x16a   : > { %12388 = vst [vmem:[#allocation50_spill] sm:$0xff] %v6947_v46  ;;  %v1164_v14 = vsel %vm1090_vm3, %v925_v36, %v6947_v46  ;;  %v1976_v12 = vsel %vm1820_vm5, %v1959_v21, %v1975_v47  ;;  %v1974_v53 = vsel %vm1820_vm5, %v1957_v0, %v1973_v59 }
 0x16b   : > { %v1260_v9 = vsel %vm6860_vm4, 0.0, %v1164_v14  ;;  %1018 = vrot.lane.b32.xlu1 %v12389_v48, %s5942_s26  ;;  %1002 = vrot.lane.b32.xlu0 %v12390_v61, %s5942_s26  ;;  %v12392_v48 = vld [vmem:[#allocation3_spill] sm:$0xff]  ;;  %v12393_v61 = vld [vmem:[#allocation53_spill] sm:$0xff] }
 0x16c   : > { %v1943_v37 = vrot.slane %v1260_v9, 6  ;;  %2474 = vmatprep.subr.mxu1 %v1976_v12 }
 0x16d   : > { %2475 = vmatpush1.msra.mxu1 %v1974_v53  ;;  %v923_v7 = vpop.permute.xlu1 %922  ;;  %v6960_v27 = vpop.permute.xlu0 %898 }
 0x16e   : > { %12391 = vst [vmem:[#allocation33_spill] sm:$0xff] %v6960_v27  ;;  %v1177_v47 = vsel %vm1090_vm3, %v6960_v27, %v925_v36  ;;  %v1960_v59 = vsel %vm1820_vm5, %v1943_v37, %v1959_v21 }
 0x16f   : > { %v1259_v14 = vsel %vm874_vm6, 0.0, %v1177_v47  ;;  %974 = vrot.lane.b32.xlu1 %v12392_v48, %s5942_s26  ;;  %1044 = vrot.lane.b32.xlu0 %v12393_v61, %s5942_s26  ;;  %v12397_v61 = vld [vmem:[#allocation9_spill] sm:$0xff] }
 0x170   : > { %v1941_v12 = vrot.slane %v1259_v14, 6  ;;  %2476 = vmatprep.subr.mxu1 %v1960_v59  ;;  %v12396_v14 = vld [vmem:[#allocation24_spill] sm:$0xff] }
 0x171   : > { %v6972_v53 = vpop.permute.xlu1 %896  ;;  %v6974_v9 = vpop.permute.xlu0 %948 }
 0x172   : > { %12394 = vst [vmem:[#allocation17_spill] sm:$0xff] %v6972_v53  ;;  %12395 = vst [vmem:[#allocation32_spill] sm:$0xff] %v6974_v9  ;;  %v1176_v36 = vsel %vm1090_vm3, %v6972_v53, %v923_v7  ;;  %v1163_v21 = vsel %vm1090_vm3, %v923_v7, %v6974_v9  ;;  %v1958_v47 = vsel %vm1820_vm5, %v1941_v12, %v1957_v0 }
 0x173   : > { %v1251_v48 = vsel %vm874_vm6, 0.0, %v1176_v36  ;;  %v1252_v59 = vsel %vm6860_vm4, 0.0, %v1163_v21  ;;  %1016 = vrot.lane.b32.xlu1 %v12396_v14, %s5942_s26  ;;  %1000 = vrot.lane.b32.xlu0 %v12397_v61, %s5942_s26 }
 0x174   : > { %v1925_v27 = vrot.slane %v1251_v48, 6  ;;  %v1927_v53 = vrot.slane %v1252_v59, 6  ;;  %2477 = vmatpush1.msra.mxu1 %v1958_v47  ;;  %v12399_v48 = vld [vmem:[#allocation54_spill] sm:$0xff]  ;;  %v1434_v59 = vrot.slane %v6216_v54, 3  ;;  %v7023_v54 = vadd.s32 384, %v6441_v20 }
 0x175   : > { %v6991_v29 = vpop.permute.xlu1 %946  ;;  %v921_v7 = vpop.permute.xlu0 %920 }
 0x176   : > { %v1162_v0 = vsel %vm1090_vm3, %v921_v7, %v6991_v29  ;;  %v1944_v36 = vsel %vm1820_vm5, %v1927_v53, %v1943_v37  ;;  %v1942_v21 = vsel %vm1820_vm5, %v1925_v27, %v1941_v12 }
 0x177   : > { %v1244_v14 = vsel %vm6860_vm4, 0.0, %v1162_v0  ;;  %1014 = vrot.lane.b32.xlu1 %v12398_v8, %s5942_s26  ;;  %1042 = vrot.lane.b32.xlu0 %v12399_v48, %s5942_s26  ;;  %v12402_v0 = vld [vmem:[#allocation35_spill] sm:$0xff]  ;;  %v7044_v48 = vadd.s32 256, %v6441_v20 }
 0x178   : > { %v7004_v47 = vrot.slane %v1244_v14, 6  ;;  %2478 = vmatprep.subr.mxu1 %v1944_v36 }
 0x179   : > { %2479 = vmatpush1.msra.mxu1 %v1942_v21  ;;  %v7009_v12 = vpop.permute.xlu1 %894  ;;  %v7011_v61 = vpop.permute.xlu0 %663  ;;  %v1432_v21 = vrot.slane %v6159_v43, 3 }
 0x17a   : > { %12400 = vst [vmem:[#allocation5_spill] sm:$0xff] %v7009_v12  ;;  %12401 = vst [vmem:[#allocation62_spill] sm:$0xff] %v7011_v61  ;;  %v1175_v8 = vsel %vm1090_vm3, %v7009_v12, %v921_v7  ;;  %v769_v36 = vsel %vm665_vm2, %v7011_v61, %v12402_v0  ;;  %v1928_v14 = vsel %vm1820_vm5, %v7004_v47, %v1927_v53  ;;  %v12406_v0 = vld [vmem:[#allocation20_spill] sm:$0xff]  ;;  %v12413_v61 = vld [vmem:[#allocation30_spill] sm:$0xff] }
 0x17b   : > { %v7034_v7 = vsel %vm874_vm6, 0.0, %v1175_v8  ;;  %1012 = vrot.lane.b32.xlu1 %v12406_v0, %s5942_s26  ;;  %v12407_v53 = vld [vmem:[#allocation48_spill] sm:$0xff]  ;;  %v866_v12 = vsel %vm449_vm8, 0.0, %v769_v36  ;;  %2480 = vmatprep.subr.mxu1 %v1928_v14  ;;  %v12408_v8 = vrot.slane %v5997_v1, 3  ;;  %v1418_v0 = vrot.slane %v6219_v55, 3 }
 0x17c   : > { %1040 = vrot.lane.b32.xlu0 %v12407_v53, %s5942_s26  ;;  %v12412_v36 = vld [vmem:[#allocation60_spill] sm:$0xff]  ;;  %v12415_v14 = vrot.slane %v6229_v57, 3 }
 0x17d   : > { %v2117_v44 = vsel %vm1403_vm0, %v866_v12, %v12408_v8  ;;  %v7051_v9 = vpop.permute.xlu1 %918  ;;  %v7053_v53 = vpop.permute.xlu0 %661  ;;  %v755_v1 = vsel %vm665_vm2, %v12413_v61, %v12412_v36 }
 0x17e   : > { %12409 = vst [vmem:[#allocation28_spill] sm:$0xff] %v7053_v53  ;;  %2314 = vmatpush1.msra.mxu0 %v2117_v44  ;;  %v768_v55 = vsel %vm665_vm2, %v7053_v53, %v12413_v61  ;;  %v12414_v44 = vrot.slane %v7034_v7, 6  ;;  %v1451_v8 = vsel %vm1403_vm0, %v1434_v59, %v12415_v14  ;;  %v2135_v61 = vld [vmem:[%s11892_s1 + $0x10] sm:$0xff]  ;;  %v12419_v14 = vld [vmem:[#allocation31_spill] sm:$0xff]  ;;  %v1407_v53 = vrot.slane %v6206_v52, 3 }
 0x17f   : > { %5208 = vmatprep.subr.msk.mxu0 %vm7028_vm9, %v755_v1  ;;  %1034 = vrot.lane.b32.xlu1 %v12416_v34, %s5942_s26  ;;  %v12417_v1 = vld [vmem:[#allocation49_spill] sm:$0xff]  ;;  %v12420_v34 = vrot.slane %v6156_v42, 3  ;;  %v1406_v52 = vrot.slane %v6149_v41, 3 }
 0x180   : > { %v1926_v12 = vsel %vm1820_vm5, %v12414_v44, %v1925_v27  ;;  %1038 = vrot.lane.b32.xlu0 %v12417_v1, %s5942_s26  ;;  %5210 = vmatpush1.msk.msra.mxu0 %vm7057_vm10, %v768_v55  ;;  %v12418_v44 = vld [vmem:[#allocation55_spill] sm:$0xff]  ;;  %v767_v55 = vsel %vm665_vm2, %v6845_v13, %v12419_v14  ;;  %v12432_v41 = vld [vmem:[#allocation69_spill] sm:$0xff] }
 0x181   : > { %2481 = vmatpush1.msra.mxu1 %v1926_v12  ;;  %v754_v40 = vsel %vm665_vm2, %v12419_v14, %v12418_v44  ;;  %v1449_v1 = vsel %vm1403_vm0, %v1432_v21, %v12420_v34  ;;  %v7098_v49 = vpop.permute.xlu1 %892  ;;  %v7100_v27 = vpop.permute.xlu0 %944  ;;  %v1435_v12 = vsel %vm1403_vm0, %v1418_v0, %v1434_v59  ;;  %v730_v34 = vsel %vm665_vm2, %v12422_v45, %v6641_v38  ;;  %v12431_v38 = vld [vmem:[#allocation59_spill] sm:$0xff]  ;;  %v12444_v59 = vld [vmem:[#allocation73_spill] sm:$0xff] }
 0x182   : > { %5212 = vmatprep.subr.msk.mxu0 %vm7028_vm9, %v754_v40  ;;  %2593 = vmatprep.subr.mxu1 %v1451_v8  ;;  %12421 = vst [vmem:[#allocation12_spill] sm:$0xff] %v7098_v49  ;;  %v12423_v8 = vld [vmem:[#allocation56_spill] sm:$0xff]  ;;  %v12424_v40 = vld [vmem:[#allocation26_spill] sm:$0xff]  ;;  %v12425_v14 = vand.u32 127, %v7023_v54  ;;  %v12447_v13 = vld [vmem:[#allocation81_spill] sm:$0xff] }
 0x183   : > { %5257 = vmatmul.mubr.msk.f32.vlgmr.msra.gmra.mxu1 %vm2250_vm11, %v2135_v61  ;;  %5214 = vmatpush1.msk.msra.mxu0 %vm7057_vm10, %v767_v55  ;;  %v753_v46 = vsel %vm665_vm2, %v12424_v40, %v12423_v8  ;;  %v1433_v61 = vsel %vm1403_vm0, %v1416_v4, %v1432_v21  ;;  %v12428_v55 = vand.u32 127, %v7044_v48  ;;  %v1419_v21 = vsel %vm1403_vm0, %v1407_v53, %v1418_v0 }
 0x184   : > { %vm7121_vm12 = vcmp.eq.s32.totalorder %v12425_v14, 0  ;;  %2594 = vmatpush1.msra.mxu1 %v1449_v1  ;;  %5216 = vmatprep.subr.msk.mxu0 %vm7028_vm9, %v753_v46  ;;  %v743_v14 = vsel %vm665_vm2, %v12431_v38, %v12422_v45  ;;  %v766_v46 = vsel %vm665_vm2, %v6847_v3, %v12424_v40  ;;  %v12433_v1 = vld [vmem:[#allocation44_spill] sm:$0xff]  ;;  %v765_v40 = vsel %vm665_vm2, %v6837_v25, %v12435_v6  ;;  %v12472_v3 = vld [vmem:[#allocation37_spill] sm:$0xff] }
 0x185   : > { %vm7131_vm13 = vcmp.eq.s32.totalorder %v12428_v55, 0  ;;  %2595 = vmatprep.subr.mxu1 %v1435_v12  ;;  %1060 = vrot.lane.b32.xlu1 %v12432_v41, %s5942_s26  ;;  %v12434_v55 = vld [vmem:[#allocation51_spill] sm:$0xff]  ;;  %v7154_v45 = vpop.permute.xlu1 %942  ;;  %v1417_v12 = vsel %vm1403_vm0, %v1406_v52, %v1416_v4  ;;  %v7157_v41 = vpop.permute.xlu0 %916  ;;  %v869_v0 = vsel %vm7121_vm12, 0.0, %v730_v34  ;;  %v12436_v4 = vld [vmem:[#allocation52_spill] sm:$0xff]  ;;  %vm7180_vm14 = vmneg %vm7121_vm12 }
 0x186   : > { %1036 = vrot.lane.b32.xlu0 %v12433_v1, %s5942_s26  ;;  %5218 = vmatpush1.msk.msra.mxu0 %vm7057_vm10, %v766_v46  ;;  %v752_v38 = vsel %vm665_vm2, %v12435_v6, %v12434_v55  ;;  %v868_v46 = vsel %vm7131_vm13, 0.0, %v743_v14  ;;  %v12437_v1 = vld [vmem:[#allocation22_spill] sm:$0xff]  ;;  %v12440_v14 = vld [vmem:[#allocation40_spill] sm:$0xff]  ;;  %vm7196_vm15 = vmneg %vm7131_vm13 }
 0x187   : > { %2596 = vmatpush1.msra.mxu1 %v1433_v61  ;;  %5220 = vmatprep.subr.msk.mxu0 %vm7028_vm9, %v752_v38  ;;  %v751_v34 = vsel %vm665_vm2, %v12437_v1, %v12436_v4  ;;  %v2120_v61 = vsel %vm1403_vm0, %v869_v0, %v1407_v53  ;;  %v2119_v0 = vsel %vm1403_vm0, %v868_v46, %v1406_v52  ;;  %v12448_v46 = vld [vmem:[#allocation47_spill] sm:$0xff] }
 0x188   : > { %2597 = vmatprep.subr.mxu1 %v1419_v21  ;;  %5222 = vmatpush1.msk.msra.mxu0 %vm7057_vm10, %v765_v40  ;;  %v764_v21 = vsel %vm665_vm2, %v6839_v15, %v12437_v1  ;;  %v12445_v40 = vld [vmem:[#allocation46_spill] sm:$0xff]  ;;  %v12446_v1 = vld [vmem:[#allocation23_spill] sm:$0xff]  ;;  %v742_v52 = vsel %vm665_vm2, %v12412_v36, %v12447_v13 }
 0x189   : > { %2598 = vmatpush1.msra.mxu1 %v1417_v12  ;;  %5224 = vmatprep.subr.msk.mxu0 %vm7028_vm9, %v751_v34  ;;  %v7190_v38 = vpop.permute.xlu1 %914  ;;  %v7192_v12 = vpop.permute.xlu0 %890  ;;  %v750_v34 = vsel %vm665_vm2, %v12446_v1, %v12445_v40  ;;  %v12470_v15 = vld [vmem:[#allocation11_spill] sm:$0xff] }
 0x18a   : > { %2599 = vmatprep.subr.mxu1 %v2120_v61  ;;  %1032 = vrot.lane.b32.xlu1 %v12440_v14, %s5942_s26  ;;  %12441 = vst [vmem:[#allocation2_spill] sm:$0xff] %v7192_v12  ;;  %v729_v61 = vsel %vm665_vm2, %v12447_v13, %v6643_v39  ;;  %v763_v14 = vsel %vm665_vm2, %v6826_v31, %v12446_v1  ;;  %v12452_v13 = vld [vmem:[#allocation41_spill] sm:$0xff] }
 0x18b   : > { %1062 = vrot.lane.b32.xlu0 %v12444_v59, %s5942_s26  ;;  %5226 = vmatpush1.msk.msra.mxu0 %vm7057_vm10, %v764_v21  ;;  %v12449_v21 = vld [vmem:[#allocation18_spill] sm:$0xff] }
 0x18c   : > { %2600 = vmatpush1.msra.mxu1 %v2119_v0  ;;  %5228 = vmatprep.subr.msk.mxu0 %vm7028_vm9, %v750_v34  ;;  %v749_v59 = vsel %vm665_vm2, %v12449_v21, %v12448_v46  ;;  %v12450_v0 = vld [vmem:[#allocation82_spill] sm:$0xff] }
 0x18d   : > { %5271 = vmatprep.subr.msk.mxu1 %vm7180_vm14, %v729_v61  ;;  %5230 = vmatpush1.msk.msra.mxu0 %vm7057_vm10, %v763_v14  ;;  %v728_v36 = vsel %vm665_vm2, %v12450_v0, %v6633_v62  ;;  %v7239_v1 = vpop.permute.xlu1 %888  ;;  %v7241_v34 = vpop.permute.xlu0 %940  ;;  %v762_v61 = vsel %vm665_vm2, %v6828_v5, %v12449_v21  ;;  %v741_v14 = vsel %vm665_vm2, %v12418_v44, %v12450_v0  ;;  %v12456_v21 = vld [vmem:[#allocation77_spill] sm:$0xff] }
 0x18e   : > { %5273 = vmatpush1.msk.msra.mxu1 %vm7196_vm15, %v742_v52  ;;  %5232 = vmatprep.subr.msk.mxu0 %vm7028_vm9, %v749_v59  ;;  %12451 = vst [vmem:[#allocation57_spill] sm:$0xff] %v7239_v1  ;;  %v12453_v52 = vld [vmem:[#allocation70_spill] sm:$0xff]  ;;  %v727_v44 = vsel %vm665_vm2, %v12456_v21, %v6635_v19 }
 0x18f   : > { %5275 = vmatprep.subr.msk.mxu1 %vm7180_vm14, %v728_v36  ;;  %1030 = vrot.lane.b32.xlu1 %v12452_v13, %s5942_s26  ;;  %v12454_v59 = vld [vmem:[#allocation42_spill] sm:$0xff]  ;;  %v12455_v36 = vld [vmem:[#allocation19_spill] sm:$0xff] }
 0x190   : > { %1058 = vrot.lane.b32.xlu0 %v12453_v52, %s5942_s26  ;;  %5234 = vmatpush1.msk.msra.mxu0 %vm7057_vm10, %v762_v61  ;;  %v748_v13 = vsel %vm665_vm2, %v12455_v36, %v12454_v59  ;;  %v761_v0 = vsel %vm665_vm2, %v6818_v56, %v12455_v36  ;;  %v740_v61 = vsel %vm665_vm2, %v12423_v8, %v12456_v21  ;;  %v12457_v52 = vld [vmem:[#allocation43_spill] sm:$0xff]  ;;  %v12459_v8 = vld [vmem:[#allocation78_spill] sm:$0xff] }
 0x191   : > { %5277 = vmatpush1.msk.msra.mxu1 %vm7196_vm15, %v741_v14  ;;  %5236 = vmatprep.subr.msk.mxu0 %vm7028_vm9, %v748_v13  ;;  %v1161_v14 = vsel %vm1090_vm3, %v7051_v9, %v7100_v27  ;;  %v12458_v13 = vld [vmem:[#allocation14_spill] sm:$0xff]  ;;  %v7291_v56 = vpop.permute.xlu1 %938  ;;  %v913_v5 = vpop.permute.xlu0 %912  ;;  %v726_v21 = vsel %vm665_vm2, %v12459_v8, %v6625_v26 }
 0x192   : > { %5279 = vmatprep.subr.msk.mxu1 %vm7180_vm14, %v727_v44  ;;  %5238 = vmatpush1.msk.msra.mxu0 %vm7057_vm10, %v761_v0  ;;  %v747_v36 = vsel %vm665_vm2, %v12458_v13, %v12457_v52  ;;  %v1174_v44 = vsel %vm1090_vm3, %v7098_v49, %v7051_v9  ;;  %v12460_v0 = vld [vmem:[#allocation36_spill] sm:$0xff]  ;;  %v1236_v31 = vsel %vm6860_vm4, 0.0, %v1161_v14  ;;  %v1160_v9 = vsel %vm1090_vm3, %v7157_v41, %v7154_v45  ;;  %v12464_v14 = vld [vmem:[#allocation74_spill] sm:$0xff] }
 0x193   : > { %5281 = vmatpush1.msk.msra.mxu1 %vm7196_vm15, %v740_v61  ;;  %5240 = vmatprep.subr.msk.mxu0 %vm7028_vm9, %v747_v36  ;;  %v760_v61 = vsel %vm665_vm2, %v6820_v35, %v12458_v13  ;;  %v739_v36 = vsel %vm665_vm2, %v12434_v55, %v12459_v8  ;;  %v12462_v13 = vld [vmem:[#allocation38_spill] sm:$0xff]  ;;  %v1173_v55 = vsel %vm1090_vm3, %v7192_v12, %v7157_v41 }
 0x194   : > { %5283 = vmatprep.subr.msk.mxu1 %vm7180_vm14, %v726_v21  ;;  %1028 = vrot.lane.b32.xlu1 %v12460_v0, %s5942_s26  ;;  %v12461_v21 = vld [vmem:[#allocation65_spill] sm:$0xff]  ;;  %v12463_v0 = vld [vmem:[#allocation10_spill] sm:$0xff]  ;;  %v725_v8 = vsel %vm665_vm2, %v12464_v14, %v6627_v60  ;;  %v738_v41 = vsel %vm665_vm2, %v12436_v4, %v12464_v14  ;;  %v1895_v14 = vrot.slane %v1236_v31, 6  ;;  %v12471_v31 = vld [vmem:[#allocation71_spill] sm:$0xff] }
 0x195   : > { %1056 = vrot.lane.b32.xlu0 %v12461_v21, %s5942_s26  ;;  %5242 = vmatpush1.msk.msra.mxu0 %vm7057_vm10, %v760_v61  ;;  %v746_v49 = vsel %vm665_vm2, %v12463_v0, %v12462_v13  ;;  %v759_v61 = vsel %vm665_vm2, %v6810_v30, %v12463_v0  ;;  %v911_v21 = vpop.permute.xlu1 %910  ;;  %v7347_v35 = vpop.permute.xlu0 %886  ;;  %v12466_v0 = vld [vmem:[#allocation39_spill] sm:$0xff]  ;;  %v12469_v12 = vld [vmem:[#allocation34_spill] sm:$0xff] }
 0x196   : > { %5285 = vmatpush1.msk.msra.mxu1 %vm7196_vm15, %v739_v36  ;;  %5244 = vmatprep.subr.msk.mxu0 %vm7028_vm9, %v746_v49  ;;  %12465 = vst [vmem:[#allocation29_spill] sm:$0xff] %v7347_v35  ;;  %v7355_v49 = vsel %vm874_vm6, 0.0, %v1174_v44  ;;  %v1159_v36 = vsel %vm1090_vm3, %v7190_v38, %v7241_v34  ;;  %v12467_v30 = vld [vmem:[#allocation15_spill] sm:$0xff]  ;;  %v1228_v44 = vsel %vm6860_vm4, 0.0, %v1160_v9  ;;  %v744_v25 = vsel %vm665_vm2, %v12470_v15, %v12469_v12 }
 0x197   : > { %5287 = vmatprep.subr.msk.mxu1 %vm7180_vm14, %v725_v8  ;;  %5246 = vmatpush1.msk.msra.mxu0 %vm7057_vm10, %v759_v61  ;;  %v745_v4 = vsel %vm665_vm2, %v12467_v30, %v12466_v0  ;;  %v12468_v8 = vld [vmem:[#allocation75_spill] sm:$0xff]  ;;  %v736_v9 = vsel %vm665_vm2, %v12448_v46, %v12471_v31  ;;  %v758_v46 = vsel %vm665_vm2, %v6812_v33, %v12467_v30 }
 0x198   : > { %5289 = vmatpush1.msk.msra.mxu1 %vm7196_vm15, %v738_v41  ;;  %5248 = vmatprep.subr.msk.mxu0 %vm7028_vm9, %v745_v4  ;;  %v724_v61 = vsel %vm665_vm2, %v12468_v8, %v6617_v63  ;;  %v7389_v41 = vsel %vm874_vm6, 0.0, %v1173_v55  ;;  %v1172_v4 = vsel %vm1090_vm3, %v7239_v1, %v7190_v38  ;;  %v737_v55 = vsel %vm665_vm2, %v12445_v40, %v12468_v8  ;;  %v7995_v1 = vld [vmem:[%s5991_s24 + $0x220] sm:$0xff] }
 0x199   : > { %5291 = vmatprep.subr.msk.mxu1 %vm7180_vm14, %v724_v61  ;;  %1026 = vrot.lane.b32.xlu1 %v12472_v3, %s5942_s26  ;;  %v1893_v63 = vrot.slane %v7355_v49, 6  ;;  %v1220_v38 = vsel %vm6860_vm4, 0.0, %v1159_v36  ;;  %v1158_v61 = vsel %vm1090_vm3, %v913_v5, %v7291_v56  ;;  %v12473_v3 = vld [vmem:[#allocation66_spill] sm:$0xff]  ;;  %v7417_v30 = vpop.permute.xlu1 %884  ;;  %v7419_v33 = vpop.permute.xlu0 %936  ;;  %v1879_v40 = vrot.slane %v1228_v44, 6  ;;  %12507 = vst [vmem:[#allocation48_spill] sm:$0xff] %v7995_v1 }
 0x19a   : > { %1054 = vrot.lane.b32.xlu0 %v12473_v3, %s5942_s26  ;;  %5250 = vmatpush1.msk.msra.mxu0 %vm7057_vm10, %v758_v46  ;;  %12474 = vst [vmem:[#allocation13_spill] sm:$0xff] %v7417_v30  ;;  %v723_v49 = vsel %vm665_vm2, %v12471_v31, %v6619_v18  ;;  %v1171_v36 = vsel %vm1090_vm3, %v7347_v35, %v913_v5  ;;  %v1877_v8 = vrot.slane %v7389_v41, 6  ;;  %v1219_v37 = vsel %vm874_vm6, 0.0, %v1172_v4  ;;  %v12475_v41 = vld [vmem:[#allocation72_spill] sm:$0xff] }
 0x19b   : > { %5293 = vmatpush1.msk.msra.mxu1 %vm7196_vm15, %v737_v55  ;;  %5252 = vmatprep.subr.msk.mxu0 %vm7028_vm9, %v744_v25  ;;  %v757_v44 = vsel %vm665_vm2, %v6802_v58, %v12470_v15  ;;  %v1912_v25 = vsel %vm1820_vm5, %v1895_v14, %v7004_v47  ;;  %v1157_v5 = vsel %vm1090_vm3, %v911_v21, %v7419_v33  ;;  %v1863_v31 = vrot.slane %v1220_v38, 6  ;;  %v2168_v58 = vld [vmem:[%s11892_s1 + $0x118] sm:$0xff] }
 0x19c   : > { %5295 = vmatprep.subr.msk.mxu1 %vm7180_vm14, %v723_v49  ;;  %5254 = vmatpush1.msk.msra.mxu0 %vm7057_vm10, %v757_v44  ;;  %v1212_v15 = vsel %vm6860_vm4, 0.0, %v1158_v61  ;;  %v722_v43 = vsel %vm665_vm2, %v12475_v41, %v6611_v32  ;;  %v1170_v47 = vsel %vm1090_vm3, %v7417_v30, %v911_v21  ;;  %v735_v4 = vsel %vm665_vm2, %v12454_v59, %v12475_v41  ;;  %v12478_v59 = vld [vmem:[#allocation61_spill] sm:$0xff] }
 0x19d   : > { %5297 = vmatpush1.msk.msra.mxu1 %vm7196_vm15, %v736_v9  ;;  %2339 = vmatprep.subr.mxu0 %v1912_v25  ;;  %v1211_v46 = vsel %vm874_vm6, 0.0, %v1171_v36  ;;  %v12476_v9 = vld [vmem:[#allocation84_spill] sm:$0xff]  ;;  %v12477_v55 = vrot.slane %v7034_v7, 6  ;;  %v7472_v61 = vpop.permute.xlu1 %934  ;;  %v7474_v21 = vpop.permute.xlu0 %908  ;;  %v1861_v3 = vrot.slane %v1219_v37, 6  ;;  %v1896_v49 = vsel %vm1820_vm5, %v1879_v40, %v1895_v14  ;;  %v12479_v37 = vld [vmem:[#allocation67_spill] sm:$0xff] }
 0x19e   : > { %5299 = vmatprep.subr.msk.mxu1 %vm7180_vm14, %v722_v43  ;;  %1074 = vrot.lane.b32.xlu1 %v12476_v9, %s5942_s26  ;;  %v1204_v36 = vsel %vm6860_vm4, 0.0, %v1157_v5  ;;  %v1156_v7 = vsel %vm1090_vm3, %v7474_v21, %v7472_v61  ;;  %v1847_v44 = vrot.slane %v1212_v15, 6  ;;  %v721_v25 = vsel %vm665_vm2, %v12479_v37, %v6613_v23 }
 0x19f   : > { %v1910_v38 = vsel %vm1820_vm5, %v1893_v63, %v12477_v55  ;;  %1052 = vrot.lane.b32.xlu0 %v12478_v59, %s5942_s26  ;;  %5301 = vmatpush1.msk.msra.mxu1 %vm7196_vm15, %v735_v4  ;;  %v7493_v14 = vsel %vm874_vm6, 0.0, %v1170_v47  ;;  %v1894_v5 = vsel %vm1820_vm5, %v1877_v8, %v1893_v63  ;;  %v734_v15 = vsel %vm665_vm2, %v12457_v52, %v12479_v37  ;;  %v12483_v52 = vld [vmem:[#allocation68_spill] sm:$0xff] }
 0x1a0   : > { %2340 = vmatpush2.msra.mxu0 %v1910_v38  ;;  %v1845_v41 = vrot.slane %v1211_v46, 6  ;;  %5303 = vmatprep.subr.msk.mxu1 %vm7180_vm14, %v721_v25  ;;  %v1880_v43 = vsel %vm1820_vm5, %v1863_v31, %v1879_v40  ;;  %v1196_v4 = vsel %vm6860_vm4, 0.0, %v1156_v7  ;;  %v12480_v47 = vand.u32 127, %v7044_v48  ;;  %v12484_v48 = vld [vmem:[#allocation79_spill] sm:$0xff] }
 0x1a1   : > { %2341 = vmatprep.subr.mxu0 %v1896_v49  ;;  %5305 = vmatpush1.msk.msra.mxu1 %vm7196_vm15, %v734_v15  ;;  %v1831_v63 = vrot.slane %v1204_v36, 6  ;;  %v720_v46 = vsel %vm665_vm2, %v12483_v52, %v6603_v17  ;;  %v973_v40 = vpop.permute.xlu1 %972  ;;  %v971_v55 = vpop.permute.xlu0 %970  ;;  %v1829_v28 = vrot.slane %v7493_v14, 6  ;;  %v1878_v38 = vsel %vm1820_vm5, %v1861_v3, %v1877_v8  ;;  %v12485_v7 = vld [vmem:[#allocation83_spill] sm:$0xff] }
 0x1a2   : > { %2342 = vmatpush2.msra.mxu0 %v1894_v5  ;;  %vm7507_vm1 = vcmp.eq.s32.totalorder %v12480_v47, 127  ;;  %5307 = vmatprep.subr.msk.mxu1 %vm7180_vm14, %v720_v46  ;;  %v1149_v59 = vsel %vm1090_vm3, %v6991_v29, %v973_v40  ;;  %v1148_v49 = vsel %vm1090_vm3, %v7100_v27, %v971_v55  ;;  %v733_v36 = vsel %vm665_vm2, %v12462_v13, %v12483_v52  ;;  %v12486_v25 = vld [vmem:[#allocation63_spill] sm:$0xff]  ;;  %v12492_v46 = vld [vmem:[#allocation76_spill] sm:$0xff] }
 0x1a3   : > { %2343 = vmatprep.subr.mxu0 %v1880_v43  ;;  %1072 = vrot.lane.b32.xlu1 %v12484_v48, %s5942_s26  ;;  %v1864_v37 = vsel %vm1820_vm5, %v1847_v44, %v1863_v31  ;;  %v7536_v8 = vrot.slane %v1196_v4, 6  ;;  %v732_v29 = vsel %vm665_vm2, %v12466_v0, %v12486_v25  ;;  %v12487_v27 = vand.u32 127, %v7023_v54  ;;  %v12490_v54 = vld [vmem:[#allocation85_spill] sm:$0xff]  ;;  %v12491_v0 = vld [vmem:[#allocation64_spill] sm:$0xff] }
 0x1a4   : > { %1076 = vrot.lane.b32.xlu0 %v12485_v7, %s5942_s26  ;;  %2344 = vmatpush2.msra.mxu0 %v1878_v38  ;;  %v719_v13 = vsel %vm665_vm2, %v12486_v25, %v6605_v24  ;;  %v1862_v31 = vsel %vm1820_vm5, %v1845_v41, %v1861_v3  ;;  %v718_v15 = vsel %vm665_vm2, %v12491_v0, %v12490_v54  ;;  %v1245_v4 = vsel %vm7507_vm1, 0.0, %v1149_v59 }
 0x1a5   : > { %vm7544_vm4 = vcmp.eq.s32.totalorder %v12487_v27, 127  ;;  %5309 = vmatpush1.msk.msra.mxu1 %vm7196_vm15, %v733_v36  ;;  %2345 = vmatprep.subr.mxu0 %v1864_v37  ;;  %v1848_v43 = vsel %vm1820_vm5, %v1831_v63, %v1847_v44  ;;  %v1237_v47 = vsel %vm7507_vm1, 0.0, %v1148_v49  ;;  %v7566_v52 = vpop.permute.xlu1 %998  ;;  %v7568_v3 = vpop.permute.xlu0 %996  ;;  %v1846_v44 = vsel %vm1820_vm5, %v1829_v28, %v1845_v41  ;;  %v12493_v49 = vld [vmem:[#allocation80_spill] sm:$0xff] }
 0x1a6   : > { %5311 = vmatprep.subr.msk.mxu1 %vm7180_vm14, %v719_v13  ;;  %2346 = vmatpush2.msra.mxu0 %v1862_v31  ;;  %v1136_v48 = vsel %vm1090_vm3, %v973_v40, %v7566_v52  ;;  %v1135_v38 = vsel %vm1090_vm3, %v971_v55, %v7568_v3  ;;  %v731_v59 = vsel %vm665_vm2, %v12469_v12, %v12491_v0  ;;  %v7599_v6 = vrot.slane %v1245_v4, 6  ;;  %v5790_v31 = vld [vmem:[%s5991_s24 + $0x2e0] sm:$0xff] }
 0x1a7   : > { %5313 = vmatpush1.msk.msra.mxu1 %vm7196_vm15, %v732_v29  ;;  %1068 = vrot.lane.b32.xlu1 %v12492_v46, %s5942_s26  ;;  %v1832_v41 = vsel %vm1820_vm5, %v7536_v8, %v1831_v63  ;;  %v1246_v40 = vsel %vm7544_vm4, 0.0, %v1136_v48  ;;  %v1238_v55 = vsel %vm7544_vm4, 0.0, %v1135_v38  ;;  %v7601_v12 = vrot.slane %v1237_v47, 6  ;;  %v2138_v63 = vld [vmem:[%s11892_s1 + $0x28] sm:$0xff]  ;;  %v5789_v29 = vld [vmem:[%s5991_s24 + $0x2d8] sm:$0xff]  ;;  %v2141_v46 = vld [vmem:[%s11892_s1 + $0x40] sm:$0xff] }
 0x1a8   : > { %5315 = vmatprep.subr.msk.mxu1 %vm7180_vm14, %v718_v15  ;;  %1070 = vrot.lane.b32.xlu0 %v12493_v49, %s5942_s26  ;;  %v7603_v36 = vrot.slane %v1246_v40, 6  ;;  %v7605_v7 = vrot.slane %v1238_v55, 6  ;;  %v12494_v37 = vmov 0.0   ;;  %v5791_v15 = vld [vmem:[%s5991_s24 + $0xc8] sm:$0x1f]  ;;  %v5793_v38 = vld [vmem:[%s5991_s24 + $0xc0] sm:$0xff] }
 0x1a9   : > { %2347 = vmatprep.subr.mxu0 %v1848_v43  ;;  %5317 = vmatpush1.msk.msra.mxu1 %vm7196_vm15, %v731_v59  ;;  %v969_v25 = vpop.permute.xlu1 %968  ;;  %v7611_v53 = vpop.permute.xlu0 %882  ;;  %v1590_v43 = vrot.slane %v5791_v15, 3  ;;  %v1914_v47 = vsel %vm1820_vm5, %v7601_v12, %v7599_v6  ;;  %v1574_v59 = vrot.slane %v5793_v38, 3  ;;  %v5794_v40 = vld [vmem:[%s5991_s24 + $0x58] sm:$0xff]  ;;  %v7670_v38 = vld [vmem:[%s5991_s24 + $0xb0] sm:$0xff] }
 0x1aa   : > { %2348 = vmatpush2.msra.mxu0 %v1846_v44  ;;  %2520 = vmatprep.mubr.f32.mxu1 %v12494_v37  ;;  %12495 = vst [vmem:[#allocation3_spill] sm:$0xff] %v7611_v53  ;;  %v1169_v27 = vsel %vm1090_vm3, %v7611_v53, %v7474_v21  ;;  %v1916_v13 = vsel %vm1820_vm5, %v7605_v7, %v7603_v36  ;;  %v5792_v44 = vld [vmem:[%s5991_s24 + $0x60] sm:$0x1f]  ;;  %v1572_v55 = vrot.slane %v5794_v40, 3  ;;  %v1542_v40 = vrot.slane %v7670_v38, 3  ;;  %v5810_v53 = vld [vmem:[%s5991_s24 + $0x30] sm:$0xff] }
 0x1ab   : > { %1064 = vrot.lane.b32.xlu1 %v5789_v29, %s5942_s26  ;;  %2349 = vmatprep.subr.mxu0 %v1832_v41  ;;  %v1195_v0 = vsel %vm874_vm6, 0.0, %v1169_v27  ;;  %v1147_v21 = vsel %vm1090_vm3, %v7154_v45, %v969_v25  ;;  %v1588_v48 = vrot.slane %v5792_v44, 3  ;;  %v5944_v41 = vmov 0  }
 0x1ac   : > { %1066 = vrot.lane.b32.xlu0 %v5790_v31, %s5942_s26  ;;  %5258 = vmatmul.mubr.msk.f32.gmra.mxu1 %vm2250_vm11, %v2138_v63  ;;  %v1821_v4 = vrot.slane %v1195_v0, 6  ;;  %v5795_v63 = vld [vmem:[%s5991_s24 + $0x318] sm:$0xff]  ;;  %v5797_v0 = vld [vmem:[%s5991_s24 + $0x310] sm:$0xff]  ;;  %v1229_v15 = vsel %vm7507_vm1, 0.0, %v1147_v21 }
 0x1ad   : > { %2625 = vmatprep.subr.mxu1 %v1916_v13  ;;  %2526 = vmatprep.mubr.f32.mxu1 %v12494_v37  ;;  %v967_v45 = vpop.permute.xlu1 %966  ;;  %v7640_v49 = vpop.permute.xlu0 %994  ;;  %v5796_v13 = vld [vmem:[%s5991_s24 + $0xb8] sm:$0xff] }
 0x1ae   : > { %2626 = vmatpush2.msra.mxu1 %v1914_v47  ;;  %5580 = vset.pattern.permute.xlu1 %v5944_v41  ;;  %v1134_v29 = vsel %vm1090_vm3, %v969_v25, %v7640_v49  ;;  %v1830_v27 = vsel %vm1820_vm5, %v1821_v4, %v1829_v28  ;;  %v1558_v31 = vrot.slane %v5796_v13, 3  ;;  %v1146_v14 = vsel %vm1090_vm3, %v7241_v34, %v967_v45  ;;  %v2144_v21 = vld [vmem:[%s11892_s1 + $0x58] sm:$0xff]  ;;  %v5800_v13 = vld [vmem:[%s5991_s24 + $0x328] sm:$0xff] }
 0x1af   : > { %1080 = vrot.lane.b32.xlu1 %v5795_v63, %s5942_s26  ;;  %v1230_v47 = vsel %vm7544_vm4, 0.0, %v1134_v29  ;;  %2350 = vmatpush2.msra.mxu0 %v1830_v27  ;;  %v2126_v28 = vsel %vm1820_vm5, %v1590_v43, %v7536_v8  ;;  %v2125_v8 = vsel %vm1820_vm5, %v1588_v48, %v1821_v4  ;;  %v1591_v29 = vsel %vm1403_vm0, %v1574_v59, %v1590_v43 }
 0x1b0   : > { %1078 = vrot.lane.b32.xlu0 %v5797_v0, %s5942_s26  ;;  %5259 = vmatmul.mubr.msk.f32.gmra.mxu1 %vm2250_vm11, %v2141_v46  ;;  %v1883_v25 = vrot.slane %v1230_v47, 6  ;;  %v5798_v46 = vld [vmem:[%s5991_s24 + $0x50] sm:$0xff]  ;;  %v7677_v27 = vrot.slane %v1229_v15, 6  ;;  %v1589_v47 = vsel %vm1403_vm0, %v1572_v55, %v1588_v48  ;;  %v1221_v15 = vsel %vm7507_vm1, 0.0, %v1146_v14  ;;  %v7702_v14 = vld [vmem:[%s5991_s24 + $0xa0] sm:$0xff] }
 0x1b1   : > { %2532 = vmatprep.mubr.f32.mxu1 %v12494_v37  ;;  %v1556_v44 = vrot.slane %v5798_v46, 3  ;;  %2351 = vmatprep.subr.mxu0 %v2126_v28  ;;  %v965_v34 = vpop.permute.xlu1 %964  ;;  %v7673_v63 = vpop.permute.xlu0 %992  ;;  %v5801_v28 = vld [vmem:[%s5991_s24 + $0x48] sm:$0xff]  ;;  %v1575_v48 = vsel %vm1403_vm0, %v1558_v31, %v1574_v59 }
 0x1b2   : > { %12496 = vst [vmem:[#allocation53_spill] sm:$0xff] %v7673_v63  ;;  %5579 = vset.pattern.permute.xlu0 %v5944_v41  ;;  %v1133_v0 = vsel %vm1090_vm3, %v967_v45, %v7673_v63  ;;  %2352 = vmatpush2.msra.mxu0 %v2125_v8  ;;  %v1900_v4 = vsel %vm1820_vm5, %v1883_v25, %v7605_v7  ;;  %v1540_v43 = vrot.slane %v5801_v28, 3  ;;  %v5802_v41 = vld [vmem:[%s5991_s24 + $0x320] sm:$0xff]  ;;  %v5803_v46 = vld [vmem:[%s5991_s24 + $0xa8] sm:$0xff] }
 0x1b3   : > { %1084 = vrot.lane.b32.xlu1 %v5800_v13, %s5942_s26  ;;  %v1222_v45 = vsel %vm7544_vm4, 0.0, %v1133_v0  ;;  %v1526_v38 = vrot.slane %v5803_v46, 3  ;;  %v1145_v7 = vsel %vm1090_vm3, %v7291_v56, %v965_v34  ;;  %2353 = vmatprep.subr.mxu0 %v1591_v29  ;;  %v5804_v13 = vld [vmem:[%s5991_s24 + $0x40] sm:$0xff]  ;;  %v2147_v56 = vld [vmem:[%s11892_s1 + $0x70] sm:$0xff]  ;;  %v1573_v29 = vsel %vm1403_vm0, %v1556_v44, %v1572_v55  ;;  %v5807_v55 = vld [vmem:[%s5991_s24 + $0x38] sm:$0xff] }
 0x1b4   : > { %1082 = vrot.lane.b32.xlu0 %v5802_v41, %s5942_s26  ;;  %5260 = vmatmul.mubr.msk.f32.gmra.mxu1 %vm2250_vm11, %v2144_v21  ;;  %v1867_v8 = vrot.slane %v1222_v45, 6  ;;  %v1524_v28 = vrot.slane %v5804_v13, 3  ;;  %v1510_v21 = vrot.slane %v7702_v14, 3  ;;  %v7713_v41 = vrot.slane %v1221_v15, 6  ;;  %v5806_v45 = vld [vmem:[%s5991_s24 + $0x338] sm:$0x1f] }
 0x1b5   : > { %2627 = vmatprep.subr.mxu1 %v1900_v4  ;;  %2354 = vmatpush2.msra.mxu0 %v1589_v47  ;;  %v963_v59 = vpop.permute.xlu1 %962  ;;  %v7709_v0 = vpop.permute.xlu0 %990  ;;  %v1559_v4 = vsel %vm1403_vm0, %v1542_v40, %v1558_v31  ;;  %v1898_v47 = vsel %vm1820_vm5, %v7677_v27, %v7601_v12  ;;  %v1508_v31 = vrot.slane %v5807_v55, 3  ;;  %v5808_v15 = vld [vmem:[%s5991_s24 + $0x330] sm:$0xff]  ;;  %v1557_v14 = vsel %vm1403_vm0, %v1540_v43, %v1556_v44 }
 0x1b6   : > { %2538 = vmatprep.mubr.f32.mxu1 %v12494_v37  ;;  %12497 = vst [vmem:[#allocation24_spill] sm:$0xff] %v7709_v0  ;;  %2355 = vmatprep.subr.mxu0 %v1575_v48  ;;  %v1132_v46 = vsel %vm1090_vm3, %v965_v34, %v7709_v0  ;;  %v1884_v13 = vsel %vm1820_vm5, %v1867_v8, %v1883_v25  ;;  %v1213_v48 = vsel %vm7507_vm1, 0.0, %v1145_v7  ;;  %v1492_v7 = vrot.slane %v5810_v53, 3 }
 0x1b7   : > { %1088 = vrot.lane.b32.xlu1 %v5806_v45, %s5942_s26  ;;  %2628 = vmatpush2.msra.mxu1 %v1898_v47  ;;  %v1214_v12 = vsel %vm7544_vm4, 0.0, %v1132_v46  ;;  %v5809_v45 = vld [vmem:[%s5991_s24 + $0x98] sm:$0xff]  ;;  %v1144_v25 = vsel %vm1090_vm3, %v7419_v33, %v963_v59  ;;  %v5811_v47 = vld [vmem:[%s5991_s24 + $0x90] sm:$0xff]  ;;  %v2150_v46 = vld [vmem:[%s11892_s1 + $0x88] sm:$0xff]  ;;  %v1541_v33 = vsel %vm1403_vm0, %v1524_v28, %v1540_v43  ;;  %v1882_v53 = vsel %vm1820_vm5, %v7713_v41, %v7677_v27 }
 0x1b8   : > { %1086 = vrot.lane.b32.xlu0 %v5808_v15, %s5942_s26  ;;  %v1494_v34 = vrot.slane %v5809_v45, 3  ;;  %5261 = vmatmul.mubr.msk.f32.gmra.mxu1 %vm2250_vm11, %v2147_v56  ;;  %v1851_v55 = vrot.slane %v1214_v12, 6  ;;  %v1543_v15 = vsel %vm1403_vm0, %v1526_v38, %v1542_v40  ;;  %v1478_v30 = vrot.slane %v5811_v47, 3  ;;  %v5813_v27 = vld [vmem:[%s5991_s24 + $0x88] sm:$0xff] }
 0x1b9   : > { %2356 = vmatpush2.msra.mxu0 %v1573_v29  ;;  %2629 = vmatprep.subr.mxu1 %v1884_v13  ;;  %v961_v44 = vpop.permute.xlu1 %960  ;;  %v7743_v45 = vpop.permute.xlu0 %988  ;;  %v1527_v56 = vsel %vm1403_vm0, %v1510_v21, %v1526_v38  ;;  %v1849_v40 = vrot.slane %v1213_v48, 6  ;;  %v5812_v13 = vld [vmem:[%s5991_s24 + $0x28] sm:$0xff]  ;;  %v1205_v43 = vsel %vm7507_vm1, 0.0, %v1144_v25  ;;  %v1525_v48 = vsel %vm1403_vm0, %v1508_v31, %v1524_v28  ;;  %v5814_v25 = vld [vmem:[%s5991_s24 + $0x20] sm:$0xff] }
 0x1ba   : > { %2357 = vmatprep.subr.mxu0 %v1559_v4  ;;  %12498 = vst [vmem:[#allocation9_spill] sm:$0xff] %v7743_v45  ;;  %2544 = vmatprep.mubr.f32.mxu1 %v12494_v37  ;;  %v1131_v29 = vsel %vm1090_vm3, %v963_v59, %v7743_v45  ;;  %v1868_v4 = vsel %vm1820_vm5, %v1851_v55, %v1867_v8  ;;  %v1476_v12 = vrot.slane %v5812_v13, 3  ;;  %v2153_v28 = vld [vmem:[%s11892_s1 + $0xa0] sm:$0xff]  ;;  %v12512_v0 = vrot.slane %v7995_v1, 3 }
 0x1bb   : > { %2358 = vmatpush2.msra.mxu0 %v1557_v14  ;;  %2630 = vmatpush2.msra.mxu1 %v1882_v53  ;;  %v1206_v38 = vsel %vm7544_vm4, 0.0, %v1131_v29  ;;  %v1462_v14 = vrot.slane %v5813_v27, 3  ;;  %v1143_v59 = vsel %vm1090_vm3, %v7472_v61, %v961_v44  ;;  %v1511_v47 = vsel %vm1403_vm0, %v1494_v34, %v1510_v21 }
 0x1bc   : > { %2359 = vmatprep.subr.mxu0 %v1543_v15  ;;  %5262 = vmatmul.mubr.msk.f32.gmra.mxu1 %vm2250_vm11, %v2150_v46  ;;  %v1835_v8 = vrot.slane %v1206_v38, 6  ;;  %v1460_v15 = vrot.slane %v5814_v25, 3  ;;  %v1509_v61 = vsel %vm1403_vm0, %v1492_v7, %v1508_v31  ;;  %v1495_v46 = vsel %vm1403_vm0, %v1478_v30, %v1494_v34 }
 0x1bd   : > { %2360 = vmatpush2.msra.mxu0 %v1541_v33  ;;  %2631 = vmatprep.subr.mxu1 %v1868_v4  ;;  %v7768_v53 = vpop.permute.xlu1 %982  ;;  %v7773_v29 = vpop.permute.xlu0 %986  ;;  %v1833_v33 = vrot.slane %v1205_v43, 6  ;;  %v1866_v21 = vsel %vm1820_vm5, %v1849_v40, %v7713_v41  ;;  %v1197_v13 = vsel %vm7507_vm1, 0.0, %v1143_v59  ;;  %v1493_v34 = vsel %vm1403_vm0, %v1476_v12, %v1492_v7 }
 0x1be   : > { %2361 = vmatprep.subr.mxu0 %v1527_v56  ;;  %12499 = vst [vmem:[#allocation25_spill] sm:$0xff] %v7773_v29  ;;  %2550 = vmatprep.mubr.f32.mxu1 %v12494_v37  ;;  %v1130_v56 = vsel %vm1090_vm3, %v961_v44, %v7773_v29  ;;  %v1852_v4 = vsel %vm1820_vm5, %v1835_v8, %v1851_v55  ;;  %v5815_v44 = vld [vmem:[%s5991_s24 + $0x198] sm:$0x1f]  ;;  %v12501_v59 = vrot.slane %v6070_v16, 3  ;;  %v12502_v16 = vrot.slane %v6004_v2, 3  ;;  %v5819_v2 = vld [vmem:[%s5991_s24 + $0x188] sm:$0xff] }
 0x1bf   : > { %2362 = vmatpush2.msra.mxu0 %v1525_v48  ;;  %2632 = vmatpush2.msra.mxu1 %v1866_v21  ;;  %v1198_v31 = vsel %vm7544_vm4, 0.0, %v1130_v56  ;;  %v1479_v41 = vsel %vm1403_vm0, %v1462_v14, %v1478_v30  ;;  %v1594_v38 = vrot.slane %v5815_v44, 3  ;;  %v2156_v48 = vld [vmem:[%s11892_s1 + $0xb8] sm:$0xff]  ;;  %v1477_v7 = vsel %vm1403_vm0, %v1460_v15, %v1476_v12  ;;  %v5817_v21 = vld [vmem:[%s5991_s24 + $0x128] sm:$0xff] }
 0x1c0   : > { %2363 = vmatprep.subr.mxu0 %v1511_v47  ;;  %5263 = vmatmul.mubr.msk.f32.gmra.mxu1 %vm2250_vm11, %v2153_v28  ;;  %v1824_v43 = vrot.slane %v1198_v31, 6  ;;  %v1463_v30 = vsel %vm1403_vm0, %v12501_v59, %v1462_v14  ;;  %v1823_v47 = vrot.slane %v1197_v13, 6  ;;  %v1850_v25 = vsel %vm1820_vm5, %v1833_v33, %v1849_v40  ;;  %v5818_v40 = vld [vmem:[%s5991_s24 + $0x130] sm:$0x1f] }
 0x1c1   : > { %2364 = vmatpush2.msra.mxu0 %v1509_v61  ;;  %2633 = vmatprep.subr.mxu1 %v1852_v4  ;;  %v7792_v55 = vpop.permute.xlu1 %1008  ;;  %v985_v27 = vpop.permute.xlu0 %984  ;;  %v1461_v14 = vsel %vm1403_vm0, %v12502_v16, %v1460_v15  ;;  %v1576_v56 = vrot.slane %v5817_v21, 3  ;;  %v1592_v4 = vrot.slane %v5818_v40, 3  ;;  %v1562_v31 = vrot.slane %v5819_v2, 3  ;;  %v5822_v40 = vld [vmem:[%s5991_s24 + $0x118] sm:$0xff]  ;;  %v7869_v2 = vld [vmem:[%s5991_s24 + $0x110] sm:$0xff] }
 0x1c2   : > { %2365 = vmatprep.subr.mxu0 %v1495_v46  ;;  %12500 = vst [vmem:[#allocation54_spill] sm:$0xff] %v7792_v55  ;;  %2556 = vmatprep.mubr.f32.mxu1 %v12494_v37  ;;  %v1141_v28 = vsel %vm1090_vm3, %v7768_v53, %v7792_v55  ;;  %v1836_v61 = vsel %vm1820_vm5, %v1824_v43, %v1835_v8  ;;  %v5816_v46 = vld [vmem:[%s5991_s24 + $0x190] sm:$0xff]  ;;  %v7820_v8 = vld [vmem:[%s11892_s1] sm:$0xff] }
 0x1c3   : > { %2366 = vmatpush2.msra.mxu0 %v1493_v34  ;;  %v1578_v12 = vrot.slane %v5816_v46, 3  ;;  %2634 = vmatpush2.msra.mxu1 %v1850_v25  ;;  %v1286_v13 = vsel %vm7544_vm4, 0.0, %v1141_v28  ;;  %v1155_v15 = vsel %vm1090_vm3, %v6864_v51, %v985_v27  ;;  %v2128_v44 = vsel %vm1820_vm5, %v1594_v38, %v1824_v43  ;;  %v7834_v25 = vld [vmem:[%s5991_s24 + $0x180] sm:$0xff]  ;;  %v5836_v55 = vld [vmem:[%s5991_s24 + $0x1b0] sm:$0xff] }
 0x1c4   : > { %2367 = vmatprep.subr.mxu0 %v1479_v41  ;;  %5264 = vmatmul.mubr.msk.f32.gmra.mxu1 %vm2250_vm11, %v2156_v48  ;;  %v2159_v41 = vld [vmem:[%s11892_s1 + $0xd0] sm:$0xff]  ;;  %v1546_v28 = vrot.slane %v7834_v25, 3  ;;  %v1834_v51 = vsel %vm1820_vm5, %v1823_v47, %v1833_v33  ;;  %v7845_v43 = vld [vmem:[%s11892_s1 + $0x20] sm:$0xff]  ;;  %v7851_v46 = vrot.slane %v1286_v13, 6  ;;  %v1293_v16 = vsel %vm7507_vm1, 0.0, %v1155_v15  ;;  %v5824_v15 = vld [vmem:[%s5991_s24 + $0x178] sm:$0xff] }
 0x1c5   : > { %2368 = vmatpush2.msra.mxu0 %v1477_v7  ;;  %2635 = vmatprep.subr.mxu1 %v1836_v61  ;;  %v981_v34 = vpop.permute.xlu1 %980  ;;  %v7830_v48 = vpop.permute.xlu0 %1010  ;;  %v5820_v7 = vld [vmem:[%s5991_s24 + $0x120] sm:$0xff]  ;;  %v1154_v61 = vsel %vm1090_vm3, %v6866_v10, %v7768_v53  ;;  %v2127_v10 = vsel %vm1820_vm5, %v1592_v4, %v1823_v47  ;;  %v7864_v53 = vld [vmem:[%s11892_s1 + $0x18] sm:$0xff]  ;;  %v1593_v21 = vsel %vm1403_vm0, %v1576_v56, %v1592_v4  ;;  %v1544_v13 = vrot.slane %v5822_v40, 3  ;;  %v2162_v47 = vld [vmem:[%s11892_s1 + $0xe8] sm:$0xff] }
 0x1c6   : > { %2369 = vmatprep.subr.mxu0 %v1463_v30  ;;  %12503 = vst [vmem:[#allocation35_spill] sm:$0xff] %v7830_v48  ;;  %v1560_v59 = vrot.slane %v5820_v7, 3  ;;  %2562 = vmatprep.mubr.f32.mxu1 %v12494_v37  ;;  %v1142_v30 = vsel %vm1090_vm3, %v985_v27, %v7830_v48  ;;  %v1595_v27 = vsel %vm1403_vm0, %v1578_v12, %v1594_v38  ;;  %v12054_v38 = vrot.slane %v7869_v2, 3  ;;  %v7940_v25 = vld [vmem:[%s11892_s1 + $0x50] sm:$0xff] }
 0x1c7   : > { %2370 = vmatpush2.msra.mxu0 %v1461_v14  ;;  %2636 = vmatpush2.msra.mxu1 %v1834_v51  ;;  %v1294_v33 = vsel %vm7544_vm4, 0.0, %v1142_v30  ;;  %v1530_v7 = vrot.slane %v5824_v15, 3  ;;  %v1579_v4 = vsel %vm1403_vm0, %v1562_v31, %v1578_v12  ;;  %v1285_v51 = vsel %vm7507_vm1, 0.0, %v1154_v61  ;;  %v7895_v12 = vld [vmem:[%s11892_s1 + $0x38] sm:$0xff] }
 0x1c8   : > { %2372 = vmatmul.mubr.f32.vlgmr.msra.gmra.mxu0 %v7820_v8  ;;  %5265 = vmatmul.mubr.msk.f32.gmra.mxu1 %vm2250_vm11, %v2159_v41  ;;  %v2011_v14 = vrot.slane %v1294_v33, 6  ;;  %v1153_v30 = vsel %vm1090_vm3, %v6903_v50, %v981_v34  ;;  %v2009_v40 = vrot.slane %v1293_v16, 6  ;;  %v1563_v61 = vsel %vm1403_vm0, %v1546_v28, %v1562_v31 }
 0x1c9   : > { %2637 = vmatprep.subr.mxu1 %v2128_v44  ;;  %2377 = vmatprep.mubr.f32.mxu0 %v7845_v43  ;;  %v7874_v41 = vpop.permute.xlu1 %1022  ;;  %v7880_v44 = vpop.permute.xlu0 %1006  ;;  %v1993_v15 = vrot.slane %v1285_v51, 6  ;;  %v1277_v31 = vsel %vm7507_vm1, 0.0, %v1153_v30  ;;  %v2165_v51 = vld [vmem:[%s11892_s1 + $0x100] sm:$0xff]  ;;  %v1547_v30 = vsel %vm1403_vm0, %v1530_v7, %v1546_v28  ;;  %v1436_v29 = vrot.slane %v5836_v55, 3 }
 0x1ca   : > { %2638 = vmatpush2.msra.mxu1 %v2127_v10  ;;  %12504 = vst [vmem:[#allocation58_spill] sm:$0xff] %v7880_v44  ;;  %2568 = vmatprep.mubr.f32.mxu1 %v12494_v37  ;;  %v1140_v33 = vsel %vm1090_vm3, %v981_v34, %v7880_v44  ;;  %v1577_v10 = vsel %vm1403_vm0, %v1560_v59, %v1576_v56  ;;  %v5825_v34 = vld [vmem:[%s5991_s24 + $0x170] sm:$0xff]  ;;  %v12509_v55 = vrot.slane %v6229_v57, 3  ;;  %v12511_v57 = vrot.slane %v6156_v42, 3 }
 0x1cb   : > { %2639 = vmatprep.subr.mxu1 %v1595_v27  ;;  %v1278_v50 = vsel %vm7544_vm4, 0.0, %v1140_v33  ;;  %v2012_v56 = vsel %vm1820_vm5, %v7851_v46, %v2011_v14  ;;  %v1514_v27 = vrot.slane %v5825_v34, 3  ;;  %v1561_v14 = vsel %vm1403_vm0, %v1544_v13, %v1560_v59  ;;  %v5826_v33 = vld [vmem:[%s5991_s24 + $0x108] sm:$0xff] }
 0x1cc   : > { %2378 = vmatmul.mubr.f32.gmra.mxu0 %v7864_v53  ;;  %2640 = vmatpush2.msra.mxu1 %v1593_v21  ;;  %v7907_v16 = vrot.slane %v1278_v50, 6  ;;  %v7912_v21 = vld [vmem:[%s11892_s1 + $0x30] sm:$0xff]  ;;  %v1512_v50 = vrot.slane %v5826_v33, 3  ;;  %v5827_v59 = vld [vmem:[%s5991_s24 + $0x168] sm:$0xff]  ;;  %v2010_v34 = vsel %vm1820_vm5, %v1993_v15, %v2009_v40  ;;  %v7943_v33 = vrot.slane %v1277_v31, 6 }
 0x1cd   : > { %5266 = vmatmul.mubr.msk.f32.gmra.mxu1 %vm2250_vm11, %v2162_v47  ;;  %2641 = vmatprep.subr.mxu1 %v1579_v4  ;;  %v7918_v47 = vpop.permute.xlu1 %1048  ;;  %v7920_v4 = vpop.permute.xlu0 %1024  ;;  %v1531_v40 = vsel %vm1403_vm0, %v1514_v27, %v1530_v7  ;;  %v7955_v31 = vld [vmem:[%s11892_s1 + $0x48] sm:$0xff] }
 0x1ce   : > { %2642 = vmatpush2.msra.mxu1 %v1577_v10  ;;  %2383 = vmatprep.mubr.f32.mxu0 %v7895_v12  ;;  %v1498_v10 = vrot.slane %v5827_v59, 3  ;;  %v5829_v59 = vld [vmem:[%s5991_s24 + $0x160] sm:$0xff] }
 0x1cf   : > { %2643 = vmatprep.subr.mxu1 %v1563_v61  ;;  %5318 = vmatprep.subr.msk.mxu0 %vm2290_vm7, %v2012_v56  ;;  %v1545_v61 = vsel %vm1403_vm0, %v12054_v38, %v1544_v13  ;;  %v5828_v56 = vld [vmem:[%s5991_s24 + $0x100] sm:$0xff]  ;;  %v1996_v13 = vsel %vm1820_vm5, %v7907_v16, %v7851_v46  ;;  %v1482_v38 = vrot.slane %v5829_v59, 3  ;;  %v12505_v46 = vrot.slane %v7869_v2, 3  ;;  %v5831_v59 = vld [vmem:[%s5991_s24 + $0x158] sm:$0xff] }
 0x1d0   : > { %2384 = vmatmul.mubr.f32.gmra.mxu0 %v7912_v21  ;;  %2574 = vmatprep.mubr.f32.mxu1 %v12494_v37  ;;  %v1496_v28 = vrot.slane %v5828_v56, 3  ;;  %v1515_v35 = vsel %vm1403_vm0, %v1498_v10, %v1514_v27  ;;  %v1994_v2 = vsel %vm1820_vm5, %v7943_v33, %v1993_v15 }
 0x1d1   : > { %2644 = vmatpush2.msra.mxu1 %v1561_v14  ;;  %5319 = vmatpush1.msk.msra.mxu0 %vm2290_vm7, %v2010_v34  ;;  %v979_v14 = vpop.permute.xlu1 %978  ;;  %v7957_v56 = vpop.permute.xlu0 %1050  ;;  %v5830_v34 = vld [vmem:[%s5991_s24 + $0xf8] sm:$0xff] }
 0x1d2   : > { %5267 = vmatmul.mubr.msk.f32.gmra.mxu1 %vm2250_vm11, %v2165_v51  ;;  %2645 = vmatprep.subr.mxu1 %v1547_v30  ;;  %v1480_v7 = vrot.slane %v5830_v34, 3  ;;  %v1529_v51 = vsel %vm1403_vm0, %v1512_v50, %v12505_v46  ;;  %v1466_v30 = vrot.slane %v5831_v59, 3  ;;  %v5832_v34 = vld [vmem:[%s5991_s24 + $0xf0] sm:$0xff]  ;;  %v1513_v46 = vsel %vm1403_vm0, %v1496_v28, %v1512_v50 }
 0x1d3   : > { %2646 = vmatpush2.msra.mxu1 %v1545_v61  ;;  %2389 = vmatprep.mubr.f32.mxu0 %v7940_v25  ;;  %v1464_v61 = vrot.slane %v5832_v34, 3  ;;  %v1499_v59 = vsel %vm1403_vm0, %v1482_v38, %v1498_v10  ;;  %v7988_v34 = vld [vmem:[%s11892_s1 + $0x60] sm:$0xff]  ;;  %v1152_v44 = vsel %vm1090_vm3, %v6930_v11, %v979_v14 }
 0x1d4   : > { %2647 = vmatprep.subr.mxu1 %v1531_v40  ;;  %2758 = vmatprep.subr.mxu0 %v1996_v13  ;;  %v7978_v40 = vld [vmem:[%s11892_s1 + $0x68] sm:$0xff]  ;;  %v7981_v13 = vld [vmem:[%s5991_s24 + $0x218] sm:$0xff]  ;;  %v1497_v10 = vsel %vm1403_vm0, %v1480_v7, %v1496_v28 }
 0x1d5   : > { %2390 = vmatmul.mubr.f32.gmra.mxu0 %v7955_v31  ;;  %2580 = vmatprep.mubr.f32.mxu1 %v12494_v37  ;;  %v1438_v27 = vrot.slane %v7981_v13, 3  ;;  %v7990_v15 = vpop.permute.xlu1 %1020  ;;  %v7992_v50 = vpop.permute.xlu0 %1004  ;;  %v8007_v13 = vadd.s32 512, %v6441_v20  ;;  %v1481_v11 = vsel %vm1403_vm0, %v1464_v61, %v1480_v7  ;;  %v8041_v7 = vld [vmem:[%s11892_s1 + $0x78] sm:$0xff] }
 0x1d6   : > { %2648 = vmatpush2.msra.mxu1 %v1529_v51  ;;  %2759 = vmatpush1.msra.mxu0 %v1994_v2  ;;  %12506 = vst [vmem:[#allocation20_spill] sm:$0xff] %v7992_v50  ;;  %v7999_v51 = vadd.s32 640, %v6441_v20  ;;  %v1139_v2 = vsel %vm1090_vm3, %v979_v14, %v7992_v50  ;;  %v8020_v50 = vld [vmem:[%s5991_s24 + $0x1b8] sm:$0xff]  ;;  %v8029_v14 = vld [vmem:[%s11892_s1 + $0x80] sm:$0xff] }
 0x1d7   : > { %5268 = vmatmul.mubr.msk.f32.gmra.mxu1 %vm2250_vm11, %v2168_v58  ;;  %2649 = vmatprep.subr.mxu1 %v1515_v35  ;;  %v2171_v35 = vld [vmem:[%s11892_s1 + $0x130] sm:$0x1f]  ;;  %v1483_v58 = vsel %vm1403_vm0, %v1466_v30, %v1482_v38  ;;  %v1270_v28 = vsel %vm7544_vm4, 0.0, %v1139_v2  ;;  %12508 = vst [vmem:[#allocation60_spill] sm:$0xff] %v8020_v50 }
 0x1d8   : > { %2650 = vmatpush2.msra.mxu1 %v1513_v46  ;;  %2395 = vmatprep.mubr.f32.mxu0 %v7978_v40  ;;  %v5837_v38 = vld [vmem:[%s5991_s24 + $0x210] sm:$0xff]  ;;  %v8033_v2 = vrot.slane %v1270_v28, 6  ;;  %v5838_v28 = vld [vmem:[%s5991_s24 + $0x1a8] sm:$0xff] }
 0x1d9   : > { %2651 = vmatprep.subr.mxu1 %v1499_v59  ;;  %2396 = vmatmul.mubr.f32.gmra.mxu0 %v7988_v34  ;;  %v1422_v46 = vrot.slane %v5837_v38, 3  ;;  %v1467_v59 = vsel %vm1403_vm0, %v12509_v55, %v1466_v30  ;;  %v977_v48 = vpop.permute.xlu1 %976  ;;  %v8043_v45 = vpop.permute.xlu0 %1046  ;;  %v1465_v30 = vsel %vm1403_vm0, %v12511_v57, %v1464_v61  ;;  %v1420_v55 = vrot.slane %v5838_v28, 3  ;;  %v8065_v61 = vld [vmem:[%s11892_s1 + $0x98] sm:$0xff] }
 0x1da   : > { %2586 = vmatprep.mubr.f32.mxu1 %v12494_v37  ;;  %2652 = vmatpush2.msra.mxu1 %v1497_v10  ;;  %12510 = vst [vmem:[#allocation30_spill] sm:$0xff] %v8043_v45  ;;  %v1269_v10 = vsel %vm7507_vm1, 0.0, %v1152_v44  ;;  %v1455_v38 = vsel %vm1403_vm0, %v1438_v27, %v12512_v0  ;;  %v12513_v44 = vrot.slane %v8020_v50, 3  ;;  %v8073_v0 = vld [vmem:[%s11892_s1 + $0x8] sm:$0xff] }
 0x1db   : > { %5269 = vmatmul.mubr.msk.f32.gmra.mxu1 %vm2250_vm11, %v2171_v35  ;;  %2653 = vmatprep.subr.mxu1 %v1483_v58  ;;  %v5839_v35 = vld [vmem:[%s5991_s24 + $0x1a0] sm:$0xff]  ;;  %12514 = vst [vmem:[#allocation45_spill] sm:$0xff] %v8073_v0  ;;  %v1439_v57 = vsel %vm1403_vm0, %v1422_v46, %v1438_v27  ;;  %v1437_v1 = vsel %vm1403_vm0, %v1420_v55, %v1436_v29 }
 0x1dc   : > { %2654 = vmatpush2.msra.mxu1 %v1481_v11  ;;  %2401 = vmatprep.mubr.f32.mxu0 %v8029_v14  ;;  %v1453_v42 = vsel %vm1403_vm0, %v1436_v29, %v12513_v44  ;;  %v1408_v58 = vrot.slane %v5839_v35, 3  ;;  %v8068_v11 = vrot.slane %v1269_v10, 6  ;;  %v5841_v10 = vld [vmem:[%s5991_s24 + $0x208] sm:$0xff] }
 0x1dd   : > { %2655 = vmatprep.subr.mxu1 %v1467_v59  ;;  %2402 = vmatmul.mubr.f32.gmra.mxu0 %v8041_v7  ;;  %v1980_v59 = vsel %vm1820_vm5, %v8033_v2, %v7907_v16  ;;  %v8080_v28 = vpop.permute.xlu1 %1018  ;;  %v8082_v44 = vpop.permute.xlu0 %1002  ;;  %v1409_v35 = vrot.slane %v5841_v10, 3  ;;  %v8093_v16 = vld [vmem:[%s11892_s1 + $0x90] sm:$0xff]  ;;  %v12530_v10 = vld [vmem:[#allocation114_spill] sm:$0xff] }
 0x1de   : > { %2656 = vmatpush2.msra.mxu1 %v1465_v30  ;;  %2657 = vmatprep.mubr.f32.mxu1 %v8073_v0  ;;  %12515 = vst [vmem:[#allocation49_spill] sm:$0xff] %v8082_v44  ;;  %v12516_v30 = vld [vmem:[#allocation102_spill] sm:$0xff]  ;;  %v1138_v27 = vsel %vm1090_vm3, %v977_v48, %v8082_v44  ;;  %v12517_v0 = vand.u32 127, %v7999_v51  ;;  %v1421_v29 = vsel %vm1403_vm0, %v1408_v58, %v1420_v55 }
 0x1df   : > { %v704_v37 = vsel %vm665_vm2, %v12516_v30, %v6746_v22  ;;  %2658 = vmatmul.mubr.f32.vlgmr.msra.gmra.mxu1 %v7820_v8  ;;  %2879 = vmatprep.subr.mxu1 %v1455_v38  ;;  %v12520_v22 = vand.u32 127, %v8007_v13  ;;  %v12523_v38 = vld [vmem:[#allocation88_spill] sm:$0xff]  ;;  %v12524_v44 = vld [vmem:[#allocation50_spill] sm:$0xff]  ;;  %v1423_v63 = vsel %vm1403_vm0, %v1409_v35, %v1422_v46  ;;  %v12531_v8 = vld [vmem:[#allocation99_spill] sm:$0xff] }
 0x1e0   : > { %vm8100_vm6 = vcmp.eq.s32.totalorder %v12517_v0, 0  ;;  %v717_v50 = vsel %vm665_vm2, %v12523_v38, %v12516_v30  ;;  %2880 = vmatpush1.msra.mxu1 %v1453_v42  ;;  %2407 = vmatprep.mubr.f32.mxu0 %v8065_v61  ;;  %v1262_v0 = vsel %vm7544_vm4, 0.0, %v1138_v27  ;;  %v1978_v42 = vsel %vm1820_vm5, %v8068_v11, %v7943_v33  ;;  %v8131_v30 = vld [vmem:[%s11892_s1 + $0xb0] sm:$0xff]  ;;  %v8144_v33 = vld [vmem:[%s11892_s1 + $0xa8] sm:$0xff] }
 0x1e1   : > { %vm8106_vm8 = vcmp.eq.s32.totalorder %v12520_v22, 0  ;;  %v1151_v22 = vsel %vm1090_vm3, %v12524_v44, %v977_v48  ;;  %2760 = vmatprep.subr.mxu0 %v1980_v59  ;;  %2881 = vmatprep.subr.mxu1 %v1439_v57  ;;  %v871_v48 = vsel %vm8100_vm6, 0.0, %v704_v37  ;;  %v975_v59 = vpop.permute.xlu1 %974  ;;  %v8135_v46 = vpop.permute.xlu0 %1044  ;;  %v8139_v57 = vrot.slane %v1262_v0, 6  ;;  %vm8153_vm9 = vmneg %vm8100_vm6 }
 0x1e2   : > { %2408 = vmatmul.mubr.f32.gmra.mxu0 %v8093_v16  ;;  %2663 = vmatprep.mubr.f32.mxu1 %v7845_v43  ;;  %12525 = vst [vmem:[#allocation55_spill] sm:$0xff] %v8135_v46  ;;  %v870_v43 = vsel %vm8106_vm8, 0.0, %v717_v50  ;;  %v1261_v55 = vsel %vm7507_vm1, 0.0, %v1151_v22  ;;  %v2122_v37 = vsel %vm1403_vm0, %v871_v48, %v1409_v35  ;;  %vm8159_vm10 = vmneg %vm8106_vm8  ;;  %v703_v38 = vsel %vm665_vm2, %v12531_v8, %v12530_v10 }
 0x1e3   : > { %2761 = vmatpush1.msra.mxu0 %v1978_v42  ;;  %2882 = vmatpush1.msra.mxu1 %v1437_v1  ;;  %v1945_v27 = vrot.slane %v1261_v55, 6  ;;  %v716_v22 = vsel %vm665_vm2, %v6643_v39, %v12531_v8  ;;  %v12533_v42 = vld [vmem:[#allocation100_spill] sm:$0xff]  ;;  %v12537_v8 = vld [vmem:[#allocation97_spill] sm:$0xff] }
 0x1e4   : > { %2664 = vmatmul.mubr.f32.gmra.mxu1 %v7864_v53  ;;  %2883 = vmatprep.subr.mxu1 %v1423_v63  ;;  %v2121_v63 = vsel %vm1403_vm0, %v870_v43, %v1408_v58  ;;  %v8168_v53 = vld [vmem:[%s11892_s1 + $0xc8] sm:$0xff]  ;;  %v1964_v58 = vsel %vm1820_vm5, %v8139_v57, %v8033_v2 }
 0x1e5   : > { %2884 = vmatpush1.msra.mxu1 %v1421_v29  ;;  %2413 = vmatprep.mubr.f32.mxu0 %v8131_v30  ;;  %v8170_v44 = vpop.permute.xlu1 %1016  ;;  %v8172_v35 = vpop.permute.xlu0 %1000  ;;  %v12532_v2 = vld [vmem:[#allocation111_spill] sm:$0xff]  ;;  %v12534_v29 = vld [vmem:[#allocation32_spill] sm:$0xff]  ;;  %v1962_v5 = vsel %vm1820_vm5, %v1945_v27, %v8068_v11  ;;  %v714_v11 = vsel %vm665_vm2, %v6635_v19, %v12537_v8 }
 0x1e6   : > { %2885 = vmatprep.subr.mxu1 %v2122_v37  ;;  %2414 = vmatmul.mubr.f32.gmra.mxu0 %v8144_v33  ;;  %v1137_v0 = vsel %vm1090_vm3, %v975_v59, %v8172_v35  ;;  %v702_v39 = vsel %vm665_vm2, %v12533_v42, %v12532_v2  ;;  %v1150_v48 = vsel %vm1090_vm3, %v12534_v29, %v975_v59  ;;  %v8226_v59 = vld [vmem:[%s11892_s1 + $0xe0] sm:$0xff] }
 0x1e7   : > { %2669 = vmatprep.mubr.f32.mxu1 %v7895_v12  ;;  %2886 = vmatpush1.msra.mxu1 %v2121_v63  ;;  %v8195_v12 = vld [vmem:[%s11892_s1 + $0xc0] sm:$0xff]  ;;  %v715_v37 = vsel %vm665_vm2, %v6633_v62, %v12533_v42  ;;  %v12536_v63 = vld [vmem:[#allocation112_spill] sm:$0xff] }
 0x1e8   : > { %2670 = vmatmul.mubr.f32.gmra.mxu1 %v7912_v21  ;;  %5334 = vmatprep.subr.msk.mxu1 %vm8153_vm9, %v703_v38  ;;  %v1254_v21 = vsel %vm7544_vm4, 0.0, %v1137_v0  ;;  %v701_v62 = vsel %vm665_vm2, %v12537_v8, %v12536_v63  ;;  %v12538_v0 = vld [vmem:[#allocation109_spill] sm:$0xff]  ;;  %v12541_v29 = vld [vmem:[#allocation110_spill] sm:$0xff]  ;;  %v12544_v8 = vld [vmem:[#allocation96_spill] sm:$0xff] }
 0x1e9   : > { %5336 = vmatpush1.msk.msra.mxu1 %vm8159_vm10, %v716_v22  ;;  %2419 = vmatprep.mubr.f32.mxu0 %v8168_v53  ;;  %v8211_v43 = vpop.permute.xlu1 %1014  ;;  %v8213_v55 = vpop.permute.xlu0 %1042  ;;  %v1931_v38 = vrot.slane %v1254_v21, 6  ;;  %v12539_v22 = vld [vmem:[#allocation98_spill] sm:$0xff] }
 0x1ea   : > { %2762 = vmatprep.subr.mxu0 %v1964_v58  ;;  %5338 = vmatprep.subr.msk.mxu1 %vm8153_vm9, %v702_v39  ;;  %12535 = vst [vmem:[#allocation31_spill] sm:$0xff] %v8213_v55  ;;  %v1253_v58 = vsel %vm7507_vm1, 0.0, %v1150_v48  ;;  %v700_v42 = vsel %vm665_vm2, %v12539_v22, %v12538_v0  ;;  %v713_v9 = vsel %vm665_vm2, %v6625_v26, %v12539_v22  ;;  %v12542_v48 = vld [vmem:[#allocation95_spill] sm:$0xff] }
 0x1eb   : > { %2420 = vmatmul.mubr.f32.gmra.mxu0 %v8195_v12  ;;  %2675 = vmatprep.mubr.f32.mxu1 %v7940_v25  ;;  %v8237_v25 = vld [vmem:[%s11892_s1 + $0xd8] sm:$0xff]  ;;  %v1929_v21 = vrot.slane %v1253_v58, 6  ;;  %v699_v26 = vsel %vm665_vm2, %v12542_v48, %v12541_v29 }
 0x1ec   : > { %2763 = vmatpush1.msra.mxu0 %v1962_v5  ;;  %5340 = vmatpush1.msk.msra.mxu1 %vm8159_vm10, %v715_v37  ;;  %v1948_v37 = vsel %vm1820_vm5, %v1931_v38, %v8139_v57  ;;  %v712_v5 = vsel %vm665_vm2, %v6627_v60, %v12542_v48  ;;  %v12543_v57 = vld [vmem:[#allocation107_spill] sm:$0xff] }
 0x1ed   : > { %2676 = vmatmul.mubr.f32.gmra.mxu1 %v7955_v31  ;;  %5342 = vmatprep.subr.msk.mxu1 %vm8153_vm9, %v701_v62  ;;  %v8255_v39 = vpop.permute.xlu1 %1012  ;;  %v8269_v31 = vld [vmem:[%s11892_s1 + $0xf8] sm:$0xff]  ;;  %v698_v60 = vsel %vm665_vm2, %v12544_v8, %v12543_v57  ;;  %v1946_v22 = vsel %vm1820_vm5, %v1929_v21, %v1945_v27 }
 0x1ee   : > { %5344 = vmatpush1.msk.msra.mxu1 %vm8159_vm10, %v714_v11  ;;  %2425 = vmatprep.mubr.f32.mxu0 %v8226_v59  ;;  %v8257_v19 = vpop.permute.xlu0 %1040  ;;  %v12546_v11 = vld [vmem:[#allocation87_spill] sm:$0xff]  ;;  %v12550_v27 = vld [vmem:[#allocation93_spill] sm:$0xff] }
 0x1ef   : > { %12540 = vst [vmem:[#allocation86_spill] sm:$0xff] %v8257_v19  ;;  %5346 = vmatprep.subr.msk.mxu1 %vm8153_vm9, %v700_v42  ;;  %2426 = vmatmul.mubr.f32.gmra.mxu0 %v8237_v25  ;;  %v711_v58 = vsel %vm665_vm2, %v12546_v11, %v12544_v8  ;;  %v1932_v42 = vsel %vm1820_vm5, %v7603_v36, %v1931_v38  ;;  %v12551_v38 = vand.u32 127, %v7999_v51  ;;  %v12554_v51 = vld [vmem:[#allocation91_spill] sm:$0xff] }
 0x1f0   : > { %2681 = vmatprep.mubr.f32.mxu1 %v7978_v40  ;;  %5348 = vmatpush1.msk.msra.mxu1 %vm8159_vm10, %v713_v9  ;;  %v8290_v40 = vld [vmem:[%s11892_s1 + $0xf0] sm:$0xff]  ;;  %v12547_v9 = vld [vmem:[#allocation89_spill] sm:$0xff]  ;;  %v1109_v8 = vsel %vm1090_vm3, %v7874_v41, %v7918_v47  ;;  %v708_v11 = vsel %vm665_vm2, %v6613_v23, %v12554_v51  ;;  %v1108_v23 = vsel %vm1090_vm3, %v7990_v15, %v8043_v45 }
 0x1f1   : > { %2682 = vmatmul.mubr.f32.gmra.mxu1 %v7988_v34  ;;  %5350 = vmatprep.subr.msk.mxu1 %vm8153_vm9, %v699_v26  ;;  %v8299_v62 = vpop.permute.xlu1 %1034  ;;  %v8318_v48 = vsel %vm665_vm2, %v6605_v24, %v12547_v9  ;;  %v12548_v26 = vld [vmem:[#allocation90_spill] sm:$0xff]  ;;  %v8335_v24 = vld [vmem:[%s11892_s1 + $0x110] sm:$0xff]  ;;  %vm8343_vm12 = vcmp.eq.s32.totalorder %v12551_v38, 127 }
 0x1f2   : > { %5352 = vmatpush1.msk.msra.mxu1 %vm8159_vm10, %v712_v5  ;;  %2431 = vmatprep.mubr.f32.mxu0 %v8269_v31  ;;  %v8301_v34 = vpop.permute.xlu0 %1038 }
 0x1f3   : > { %12545 = vst [vmem:[#allocation56_spill] sm:$0xff] %v8301_v34  ;;  %2764 = vmatprep.subr.mxu0 %v1948_v37  ;;  %5354 = vmatprep.subr.msk.mxu1 %vm8153_vm9, %v698_v60  ;;  %v8324_v37 = vsel %vm665_vm2, %v12490_v54, %v12548_v26  ;;  %v710_v54 = vsel %vm665_vm2, %v6619_v18, %v12550_v27  ;;  %v8361_v18 = vld [vmem:[%s11892_s1 + $0x108] sm:$0xff] }
 0x1f4   : > { %2432 = vmatmul.mubr.f32.gmra.mxu0 %v8290_v40  ;;  %2687 = vmatprep.mubr.f32.mxu1 %v8029_v14  ;;  %v12549_v14 = vld [vmem:[#allocation108_spill] sm:$0xff]  ;;  %v1110_v60 = vsel %vm1090_vm3, %v7920_v4, %v7957_v56 }
 0x1f5   : > { %2765 = vmatpush1.msra.mxu0 %v1946_v22  ;;  %5356 = vmatpush1.msk.msra.mxu1 %vm8159_vm10, %v711_v58  ;;  %v697_v36 = vsel %vm665_vm2, %v12550_v27, %v12549_v14  ;;  %v12555_v58 = vld [vmem:[#allocation92_spill] sm:$0xff] }
 0x1f6   : > { %2688 = vmatmul.mubr.f32.gmra.mxu1 %v8041_v7  ;;  %5358 = vmatprep.subr.msk.mxu1 %vm8153_vm9, %v697_v36  ;;  %v707_v22 = vsel %vm665_vm2, %v6603_v17, %v12555_v58  ;;  %v1930_v7 = vsel %vm1820_vm5, %v7599_v6, %v1929_v21  ;;  %v12556_v36 = vand.u32 127, %v8007_v13  ;;  %v1122_v17 = vsel %vm1090_vm3, %v7568_v3, %v7874_v41  ;;  %v12559_v6 = vld [vmem:[#allocation105_spill] sm:$0xff]  ;;  %v12560_v21 = vld [vmem:[#allocation94_spill] sm:$0xff] }
 0x1f7   : > { %2766 = vmatprep.subr.mxu0 %v1932_v42  ;;  %5360 = vmatpush1.msk.msra.mxu1 %vm8159_vm10, %v710_v54  ;;  %v8375_v27 = vpop.permute.xlu1 %1060  ;;  %v696_v13 = vsel %vm665_vm2, %v12560_v21, %v12559_v6  ;;  %v709_v3 = vsel %vm665_vm2, %v6611_v32, %v12560_v21  ;;  %v1240_v41 = vsel %vm8343_vm12, 0.0, %v1109_v8  ;;  %v1123_v54 = vsel %vm1090_vm3, %v7566_v52, %v7920_v4  ;;  %v8416_v32 = vld [vmem:[%s11892_s1 + $0x128] sm:$0x1f]  ;;  %v12561_v52 = vld [vmem:[#allocation106_spill] sm:$0xff] }
 0x1f8   : > { %vm8379_vm13 = vcmp.eq.s32.totalorder %v12556_v36, 127  ;;  %2767 = vmatpush1.msra.mxu0 %v1930_v7  ;;  %2437 = vmatprep.mubr.f32.mxu0 %v8335_v24  ;;  %v8396_v42 = vpop.permute.xlu0 %1036  ;;  %v1248_v7 = vsel %vm8343_vm12, 0.0, %v1110_v60  ;;  %v1107_v8 = vsel %vm1090_vm3, %v8080_v28, %v8135_v46  ;;  %v695_v4 = vsel %vm665_vm2, %v12554_v51, %v12561_v52  ;;  %v12562_v60 = vld [vmem:[#allocation103_spill] sm:$0xff]  ;;  %v8436_v21 = vld [vmem:[%s11892_s1 + $0x120] sm:$0x1f] }
 0x1f9   : > { %5362 = vmatprep.subr.msk.mxu1 %vm8153_vm9, %v696_v13  ;;  %2438 = vmatmul.mubr.f32.gmra.mxu0 %v8361_v18  ;;  %v694_v36 = vsel %vm665_vm2, %v12555_v58, %v12562_v60  ;;  %v1121_v13 = vsel %vm1090_vm3, %v7640_v49, %v7990_v15  ;;  %v1232_v51 = vsel %vm8343_vm12, 0.0, %v1108_v23  ;;  %v1903_v46 = vrot.slane %v1240_v41, 6  ;;  %v12565_v41 = vld [vmem:[#allocation104_spill] sm:$0xff] }
 0x1fa   : > { %2693 = vmatprep.mubr.f32.mxu1 %v8065_v61  ;;  %5364 = vmatpush1.msk.msra.mxu1 %vm8159_vm10, %v709_v3  ;;  %v1239_v61 = vsel %vm8379_vm13, 0.0, %v1122_v17  ;;  %v12563_v3 = vld [vmem:[#allocation53_spill] sm:$0xff]  ;;  %v1247_v17 = vsel %vm8379_vm13, 0.0, %v1123_v54  ;;  %v8455_v45 = vrot.slane %v1248_v7, 6  ;;  %v1106_v49 = vsel %vm1090_vm3, %v8170_v44, %v8213_v55  ;;  %v12578_v55 = vld [vmem:[#allocation20_spill] sm:$0xff] }
 0x1fb   : > { %v1120_v58 = vsel %vm1090_vm3, %v12563_v3, %v8080_v28  ;;  %2694 = vmatmul.mubr.f32.gmra.mxu1 %v8093_v16  ;;  %5366 = vmatprep.subr.msk.mxu1 %vm8153_vm9, %v695_v4  ;;  %v1224_v28 = vsel %vm8343_vm12, 0.0, %v1107_v8  ;;  %v12564_v16 = vld [vmem:[#allocation24_spill] sm:$0xff]  ;;  %v12566_v54 = vld [vmem:[#allocation101_spill] sm:$0xff]  ;;  %v1887_v4 = vrot.slane %v1232_v51, 6  ;;  %v1105_v3 = vsel %vm1090_vm3, %v8211_v43, %v8257_v19 }
 0x1fc   : > { %5368 = vmatpush1.msk.msra.mxu1 %vm8159_vm10, %v708_v11  ;;  %2443 = vmatprep.mubr.f32.mxu0 %v8416_v32  ;;  %v8464_v15 = vpop.permute.xlu1 %1032  ;;  %v1119_v23 = vsel %vm1090_vm3, %v12564_v16, %v8170_v44  ;;  %v693_v11 = vsel %vm665_vm2, %v12547_v9, %v12565_v41  ;;  %v692_v7 = vsel %vm665_vm2, %v12548_v26, %v12566_v54  ;;  %v1231_v44 = vsel %vm8379_vm13, 0.0, %v1121_v13  ;;  %v12567_v16 = vld [vmem:[#allocation9_spill] sm:$0xff] }
 0x1fd   : > { %5370 = vmatprep.subr.msk.mxu1 %vm8153_vm9, %v694_v36  ;;  %2444 = vmatmul.mubr.f32.gmra.mxu0 %v8436_v21  ;;  %v8483_v8 = vpop.permute.xlu0 %1062  ;;  %v1223_v36 = vsel %vm8379_vm13, 0.0, %v1120_v58  ;;  %v1901_v9 = vrot.slane %v1239_v61, 6  ;;  %v8496_v26 = vrot.slane %v1247_v17, 6  ;;  %v1118_v13 = vsel %vm1090_vm3, %v12567_v16, %v8211_v43 }
 0x1fe   : > { %2699 = vmatprep.mubr.f32.mxu1 %v8131_v30  ;;  %5372 = vmatpush1.msk.msra.mxu1 %vm8159_vm10, %v707_v22  ;;  %v1216_v51 = vsel %vm8343_vm12, 0.0, %v1106_v49  ;;  %v1871_v30 = vrot.slane %v1224_v28, 6  ;;  %v1215_v22 = vsel %vm8379_vm13, 0.0, %v1119_v23  ;;  %v1104_v61 = vsel %vm1090_vm3, %v8255_v39, %v8301_v34  ;;  %v12569_v49 = vld [vmem:[#allocation25_spill] sm:$0xff] }
 0x1ff   : > { %2700 = vmatmul.mubr.f32.gmra.mxu1 %v8144_v33  ;;  %5374 = vmatprep.subr.msk.mxu1 %vm8153_vm9, %v693_v11  ;;  %v12568_v43 = vmov 0.0   ;;  %v1920_v33 = vsel %vm1820_vm5, %v1903_v46, %v8455_v45  ;;  %v1885_v58 = vrot.slane %v1231_v44, 6  ;;  %v1869_v17 = vrot.slane %v1223_v36, 6  ;;  %v8535_v36 = vld [vmem:[%s11892_s1 + $0x10] sm:$0xff] }
 0x200   : > { %5376 = vmatpush1.msk.msra.mxu1 %vm8159_vm10, %v8318_v48  ;;  %2800 = vmatprep.mubr.f32.mxu0 %v12568_v43  ;;  %v1117_v28 = vsel %vm1090_vm3, %v12569_v49, %v8255_v39  ;;  %v1208_v23 = vsel %vm8343_vm12, 0.0, %v1105_v3  ;;  %v1207_v11 = vsel %vm8379_vm13, 0.0, %v1118_v13  ;;  %v1855_v44 = vrot.slane %v1216_v51, 6 }
 0x201   : > { %5378 = vmatprep.subr.msk.mxu1 %vm8153_vm9, %v692_v7  ;;  %2705 = vmatprep.mubr.f32.mxu1 %v8168_v53  ;;  %v8528_v48 = vpop.permute.xlu1 %1030  ;;  %v1904_v1 = vsel %vm1820_vm5, %v1887_v4, %v1903_v46  ;;  %v1853_v39 = vrot.slane %v1215_v22, 6  ;;  %v1200_v7 = vsel %vm8343_vm12, 0.0, %v1104_v61  ;;  %v1918_v3 = vsel %vm1820_vm5, %v1901_v9, %v8496_v26  ;;  %v8560_v22 = vld [vmem:[%s11892_s1 + $0x28] sm:$0xff] }
 0x202   : > { %5320 = vmatmul.mubr.msk.f32.vlgmr.msra.gmra.mxu0 %vm2250_vm11, %v8535_v36  ;;  %5380 = vmatpush1.msk.msra.mxu1 %vm8159_vm10, %v8324_v37  ;;  %v8543_v53 = vpop.permute.xlu0 %1058  ;;  %v1199_v16 = vsel %vm8379_vm13, 0.0, %v1117_v28  ;;  %v1839_v13 = vrot.slane %v1208_v23, 6  ;;  %v1888_v46 = vsel %vm1820_vm5, %v1871_v30, %v1887_v4  ;;  %v1837_v50 = vrot.slane %v1207_v11, 6  ;;  %v8578_v11 = vld [vmem:[%s5991_s24 + $0x260] sm:$0xff] }
 0x203   : > { %2706 = vmatmul.mubr.f32.gmra.mxu1 %v8195_v12  ;;  %2911 = vmatprep.subr.mxu1 %v1920_v33  ;;  %v1902_v12 = vsel %vm1820_vm5, %v1885_v58, %v1901_v9  ;;  %v1886_v37 = vsel %vm1820_vm5, %v1869_v17, %v1885_v58  ;;  %v1826_v51 = vrot.slane %v1200_v7, 6  ;;  %v1872_v4 = vsel %vm1820_vm5, %v1855_v44, %v1871_v30  ;;  %v5844_v58 = vld [vmem:[%s5991_s24 + $0x268] sm:$0x1f]  ;;  %v5845_v30 = vld [vmem:[%s5991_s24 + $0x200] sm:$0x1f] }
 0x204   : > { %2912 = vmatpush2.msra.mxu1 %v1918_v3  ;;  %2806 = vmatprep.mubr.f32.mxu0 %v12568_v43  ;;  %v1870_v9 = vsel %vm1820_vm5, %v1853_v39, %v1869_v17  ;;  %v1598_v49 = vrot.slane %v5844_v58, 3  ;;  %v1856_v28 = vsel %vm1820_vm5, %v1839_v13, %v1855_v44  ;;  %v1596_v23 = vrot.slane %v5845_v30, 3  ;;  %v8590_v44 = vld [vmem:[%s5991_s24 + $0x1f8] sm:$0xff]  ;;  %v5853_v58 = vld [vmem:[%s5991_s24 + $0x250] sm:$0xff] }
 0x205   : > { %2913 = vmatprep.subr.mxu1 %v1904_v1  ;;  %2711 = vmatprep.mubr.f32.mxu1 %v8226_v59  ;;  %v1825_v59 = vrot.slane %v1199_v16, 6  ;;  %v1582_v17 = vrot.slane %v8578_v11, 3  ;;  %v8584_v1 = vld [vmem:[%s11892_s1 + $0x40] sm:$0xff]  ;;  %v1115_v7 = vsel %vm1090_vm3, %v8299_v62, %v8375_v27  ;;  %v1116_v3 = vsel %vm1090_vm3, %v8396_v42, %v8483_v8 }
 0x206   : > { %5321 = vmatmul.mubr.msk.f32.gmra.mxu0 %vm2250_vm11, %v8560_v22  ;;  %2914 = vmatpush2.msra.mxu1 %v1902_v12  ;;  %v8565_v61 = vpop.permute.xlu1 %1028  ;;  %12570 = vst [vmem:[#allocation26_spill] sm:$0xff] %v8584_v1  ;;  %v12571_v11 = vld [vmem:[#allocation54_spill] sm:$0xff]  ;;  %v12572_v12 = vld [vmem:[#allocation35_spill] sm:$0xff]  ;;  %v1296_v34 = vsel %vm8343_vm12, 0.0, %v1116_v3  ;;  %v1114_v3 = vsel %vm1090_vm3, %v8464_v15, %v8543_v53  ;;  %v1126_v60 = vsel %vm1090_vm3, %v12578_v55, %v8528_v48 }
 0x207   : > { %2712 = vmatmul.mubr.f32.gmra.mxu1 %v8237_v25  ;;  %2915 = vmatprep.subr.mxu1 %v1888_v46  ;;  %v8569_v33 = vpop.permute.xlu0 %1056  ;;  %v1854_v25 = vsel %vm1820_vm5, %v1837_v50, %v1853_v39  ;;  %v1838_v16 = vsel %vm1820_vm5, %v1825_v59, %v1837_v50  ;;  %v8606_v46 = vld [vmem:[%s5991_s24 + $0x1d8] sm:$0xff]  ;;  %v1550_v39 = vrot.slane %v5853_v58, 3  ;;  %v5857_v58 = vld [vmem:[%s5991_s24 + $0x248] sm:$0xff] }
 0x208   : > { %2916 = vmatpush2.msra.mxu1 %v1886_v37  ;;  %2812 = vmatprep.mubr.f32.mxu0 %v12568_v43  ;;  %v8610_v37 = vld [vmem:[%s5991_s24 + $0x1d0] sm:$0xff] }
 0x209   : > { %2917 = vmatprep.subr.mxu1 %v1872_v4  ;;  %2717 = vmatprep.mubr.f32.mxu1 %v8269_v31  ;;  %v1840_v31 = vsel %vm1820_vm5, %v1826_v51, %v1839_v13  ;;  %v1128_v4 = vsel %vm1090_vm3, %v12571_v11, %v8299_v62  ;;  %v8640_v62 = vld [vmem:[%s11892_s1 + $0x58] sm:$0xff] }
 0x20a   : > { %5322 = vmatmul.mubr.msk.f32.gmra.mxu0 %vm2250_vm11, %v8584_v1  ;;  %2918 = vmatpush2.msra.mxu1 %v1870_v9  ;;  %v8614_v9 = vld [vmem:[%s5991_s24 + $0x1f0] sm:$0xff]  ;;  %12573 = vst [vmem:[#allocation59_spill] sm:$0xff] %v8640_v62  ;;  %v1287_v11 = vsel %vm8379_vm13, 0.0, %v1128_v4  ;;  %v2172_v4 = vld [vmem:[%s11893_s2] sm:$0xff] }
 0x20b   : > { %2718 = vmatmul.mubr.f32.gmra.mxu1 %v8290_v40  ;;  %2919 = vmatprep.subr.mxu1 %v1856_v28  ;;  %v8603_v13 = vpop.permute.xlu1 %1026  ;;  %v2130_v40 = vsel %vm1820_vm5, %v1598_v49, %v1826_v51  ;;  %v5852_v28 = vld [vmem:[%s5991_s24 + $0x258] sm:$0xff]  ;;  %v2129_v51 = vsel %vm1820_vm5, %v1596_v23, %v1825_v59  ;;  %v1997_v19 = vrot.slane %v1287_v11, 6 }
 0x20c   : > { %2920 = vmatpush2.msra.mxu1 %v1854_v25  ;;  %2818 = vmatprep.mubr.f32.mxu0 %v12568_v43  ;;  %v8619_v50 = vpop.permute.xlu0 %1054  ;;  %v1566_v30 = vrot.slane %v5852_v28, 3  ;;  %v1129_v25 = vsel %vm1090_vm3, %v12572_v12, %v8396_v42  ;;  %v1288_v28 = vsel %vm8343_vm12, 0.0, %v1115_v7  ;;  %v5855_v42 = vld [vmem:[%s5991_s24 + $0x1e8] sm:$0xff]  ;;  %v12574_v12 = vrot.slane %v8590_v44, 3  ;;  %v12575_v7 = vld [vmem:[#allocation58_spill] sm:$0xff] }
 0x20d   : > { %2921 = vmatprep.subr.mxu1 %v1840_v31  ;;  %2723 = vmatprep.mubr.f32.mxu1 %v8335_v24  ;;  %v1599_v24 = vsel %vm1403_vm0, %v1582_v17, %v1598_v49  ;;  %v1548_v59 = vrot.slane %v5855_v42, 3  ;;  %v8647_v31 = vld [vmem:[%s5991_s24 + $0x1e0] sm:$0xff]  ;;  %v1534_v49 = vrot.slane %v5857_v58, 3  ;;  %v1295_v42 = vsel %vm8379_vm13, 0.0, %v1129_v25 }
 0x20e   : > { %5323 = vmatmul.mubr.msk.f32.gmra.mxu0 %vm2250_vm11, %v8640_v62  ;;  %2922 = vmatpush2.msra.mxu1 %v1838_v16  ;;  %v1597_v16 = vsel %vm1403_vm0, %v12574_v12, %v1596_v23  ;;  %v1127_v62 = vsel %vm1090_vm3, %v12575_v7, %v8464_v15  ;;  %v2015_v25 = vrot.slane %v1296_v34, 6  ;;  %v1113_v15 = vsel %vm1090_vm3, %v8528_v48, %v8569_v33  ;;  %v8687_v12 = vld [vmem:[%s5991_s24 + $0x240] sm:$0xff]  ;;  %v2174_v48 = vld [vmem:[%s11893_s2 + $0x10] sm:$0xff] }
 0x20f   : > { %2724 = vmatmul.mubr.f32.gmra.mxu1 %v8361_v18  ;;  %2923 = vmatprep.subr.mxu1 %v2130_v40  ;;  %v2173_v18 = vld [vmem:[%s11893_s2 + $0x8] sm:$0xff]  ;;  %v8676_v40 = vrot.slane %v1288_v28, 6  ;;  %v1518_v58 = vrot.slane %v8687_v12, 3  ;;  %v1280_v34 = vsel %vm8343_vm12, 0.0, %v1114_v3  ;;  %v8695_v28 = vld [vmem:[%s11892_s1 + $0x70] sm:$0xff]  ;;  %v1567_v12 = vsel %vm1403_vm0, %v1550_v39, %v1566_v30 }
 0x210   : > { %2924 = vmatpush2.msra.mxu1 %v2129_v51  ;;  %2824 = vmatprep.mubr.f32.mxu0 %v12568_v43  ;;  %v8671_v23 = vpop.permute.xlu1 %1074  ;;  %v1583_v51 = vsel %vm1403_vm0, %v1566_v30, %v1582_v17  ;;  %v12577_v17 = vrot.slane %v8614_v9, 3  ;;  %v2013_v1 = vrot.slane %v1295_v42, 6  ;;  %v1279_v3 = vsel %vm8379_vm13, 0.0, %v1127_v62 }
 0x211   : > { %2925 = vmatprep.subr.mxu1 %v1599_v24  ;;  %2729 = vmatprep.mubr.f32.mxu1 %v8416_v32  ;;  %v8684_v7 = vpop.permute.xlu0 %1052  ;;  %v12576_v32 = vrot.slane %v8590_v44, 3  ;;  %v1112_v30 = vsel %vm1090_vm3, %v8565_v61, %v8619_v50  ;;  %v1983_v11 = vrot.slane %v1280_v34, 6  ;;  %v2016_v9 = vsel %vm1820_vm5, %v8676_v40, %v2015_v25  ;;  %v12581_v34 = vld [vmem:[#allocation49_spill] sm:$0xff] }
 0x212   : > { %5324 = vmatmul.mubr.msk.f32.gmra.mxu0 %vm2250_vm11, %v8695_v28  ;;  %2926 = vmatpush2.msra.mxu1 %v1597_v16  ;;  %v8712_v16 = vld [vmem:[%s5991_s24 + $0x238] sm:$0xff]  ;;  %v12579_v62 = vmov %v12577_v17  ;;  %v1535_v25 = vsel %vm1403_vm0, %v1518_v58, %v1534_v49 }
 0x213   : > { %v1581_v24 = vsel %vm1403_vm0, %v12577_v17, %v12576_v32  ;;  %2192 = vperm.xlu1 %5580, %v2173_v18   ;;  %2187 = vperm.xlu0 %5579, %v2172_v4   ;;  %v1502_v44 = vrot.slane %v8712_v16, 3  ;;  %v1272_v32 = vsel %vm8343_vm12, 0.0, %v1113_v15  ;;  %v1565_v55 = vsel %vm1403_vm0, %v1548_v59, %v12579_v62  ;;  %v5863_v62 = vld [vmem:[%s5991_s24 + $0x230] sm:$0xff] }
 0x214   : > { %2730 = vmatmul.mubr.f32.gmra.mxu1 %v8436_v21  ;;  %2927 = vmatprep.subr.mxu1 %v1583_v51  ;;  %v1551_v18 = vsel %vm1403_vm0, %v1534_v49, %v1550_v39  ;;  %v12580_v4 = vrot.slane %v8647_v31, 3  ;;  %v1981_v15 = vrot.slane %v1279_v3, 6  ;;  %v1271_v51 = vsel %vm8379_vm13, 0.0, %v1126_v60  ;;  %v8746_v39 = vld [vmem:[%s11892_s1 + $0x88] sm:$0xff] }
 0x215   : > { %2928 = vmatpush2.msra.mxu1 %v1581_v24  ;;  %2830 = vmatprep.mubr.f32.mxu0 %v12568_v43  ;;  %v8729_v42 = vpop.permute.xlu1 %1072  ;;  %v1125_v17 = vsel %vm1090_vm3, %v12581_v34, %v8565_v61  ;;  %v1967_v24 = vrot.slane %v1272_v32, 6  ;;  %v1264_v60 = vsel %vm8343_vm12, 0.0, %v1112_v30  ;;  %v1111_v61 = vsel %vm1090_vm3, %v8603_v13, %v8684_v7  ;;  %v5862_v3 = vld [vmem:[%s5991_s24 + $0x1c8] sm:$0xff] }
 0x216   : > { %v1549_v21 = vsel %vm1403_vm0, %v12580_v4, %v1548_v59  ;;  %2929 = vmatprep.subr.mxu1 %v1567_v12  ;;  %5325 = vmatmul.mubr.msk.f32.gmra.mxu0 %vm2250_vm11, %v8746_v39  ;;  %v8750_v59 = vpop.permute.xlu0 %1076  ;;  %v2014_v12 = vsel %vm1820_vm5, %v1997_v19, %v2013_v1  ;;  %v1484_v16 = vrot.slane %v5862_v3, 3  ;;  %v1486_v4 = vrot.slane %v5863_v62, 3  ;;  %v5866_v62 = vld [vmem:[%s5991_s24 + $0x1c0] sm:$0xff] }
 0x217   : > { %2930 = vmatpush2.msra.mxu1 %v1565_v55  ;;  %2197 = vperm.xlu1 %5580, %v2174_v48   ;;  %v12582_v49 = vrot.slane %v8647_v31, 3  ;;  %v12583_v32 = vrot.slane %v8606_v46, 3  ;;  %v1965_v34 = vrot.slane %v1271_v51, 6  ;;  %v1263_v55 = vsel %vm8379_vm13, 0.0, %v1125_v17  ;;  %v2176_v48 = vld [vmem:[%s11893_s2 + $0x20] sm:$0xff] }
 0x218   : > { %2931 = vmatprep.subr.mxu1 %v1551_v18  ;;  %5381 = vmatprep.subr.msk.mxu0 %vm2290_vm7, %v2016_v9  ;;  %v1124_v1 = vsel %vm1090_vm3, %v8172_v35, %v8603_v13  ;;  %v2000_v31 = vsel %vm1820_vm5, %v1983_v11, %v8676_v40  ;;  %v1951_v9 = vrot.slane %v1264_v60, 6  ;;  %v1256_v51 = vsel %vm8343_vm12, 0.0, %v1111_v61  ;;  %v5865_v60 = vld [vmem:[%s5991_s24 + $0x228] sm:$0xff] }
 0x219   : > { %v1533_v30 = vsel %vm1403_vm0, %v12583_v32, %v12582_v49  ;;  %2932 = vmatpush2.msra.mxu1 %v1549_v21  ;;  %2836 = vmatprep.mubr.f32.mxu0 %v12568_v43  ;;  %v8780_v18 = vpop.permute.xlu1 %1068  ;;  %v1519_v35 = vsel %vm1403_vm0, %v1502_v44, %v1518_v58  ;;  %v1998_v40 = vsel %vm1820_vm5, %v1981_v15, %v1997_v19  ;;  %v8792_v21 = vld [vmem:[%s11892_s1 + $0xa0] sm:$0xff]  ;;  %v12585_v17 = vrot.slane %v8610_v37, 3  ;;  %v2178_v37 = vld [vmem:[%s11893_s2 + $0x30] sm:$0xff] }
 0x21a   : > { %2933 = vmatprep.subr.mxu1 %v1535_v25  ;;  %5382 = vmatpush1.msk.msra.mxu0 %vm2290_vm7, %v2014_v12  ;;  %v8786_v13 = vpop.permute.xlu0 %1070  ;;  %v12584_v5 = vmov %v12583_v32  ;;  %v1984_v58 = vsel %vm1820_vm5, %v1967_v24, %v1983_v11  ;;  %v1470_v61 = vrot.slane %v5865_v60, 3  ;;  %v1949_v19 = vrot.slane %v1263_v55, 6 }
 0x21b   : > { %5326 = vmatmul.mubr.msk.f32.gmra.mxu0 %vm2250_vm11, %v8792_v21  ;;  %2934 = vmatpush2.msra.mxu1 %v1533_v30  ;;  %v1517_v25 = vsel %vm1403_vm0, %v12585_v17, %v12584_v5  ;;  %v1255_v12 = vsel %vm8379_vm13, 0.0, %v1124_v1  ;;  %v1503_v3 = vsel %vm1403_vm0, %v1486_v4, %v1502_v44  ;;  %v1468_v49 = vrot.slane %v5866_v62, 3 }
 0x21c   : > { %3044 = vmatprep.subr.mxu0 %v2000_v31  ;;  %2207 = vperm.xlu1 %5580, %v2176_v48   ;;  %v1935_v32 = vrot.slane %v1256_v51, 6  ;;  %v1982_v46 = vsel %vm1820_vm5, %v1965_v34, %v1981_v15  ;;  %v12586_v30 = vmov %v12585_v17  ;;  %v1968_v38 = vsel %vm1820_vm5, %v1951_v9, %v1967_v24  ;;  %v2175_v15 = vld [vmem:[%s11893_s2 + $0x18] sm:$0xff]  ;;  %v8826_v48 = vld [vmem:[%s5991_s24 + $0x288] sm:$0xff] }
 0x21d   : > { %2935 = vmatprep.subr.mxu1 %v1519_v35  ;;  %3045 = vmatpush1.msra.mxu0 %v1998_v40  ;;  %v1501_v11 = vsel %vm1403_vm0, %v1484_v16, %v12586_v30  ;;  %v8811_v55 = vpop.permute.xlu1 %1064  ;;  %v1933_v44 = vrot.slane %v1255_v12, 6  ;;  %v1487_v24 = vsel %vm1403_vm0, %v1470_v61, %v1486_v4  ;;  %v1966_v31 = vsel %vm1820_vm5, %v1949_v19, %v1965_v34  ;;  %v8832_v35 = vld [vmem:[%s11892_s1 + $0xb8] sm:$0xff]  ;;  %v5869_v34 = vld [vmem:[%s5991_s24 + $0x2e8] sm:$0xff]  ;;  %v12588_v12 = vld [vmem:[#allocation48_spill] sm:$0xff] }
 0x21e   : > { %2936 = vmatpush2.msra.mxu1 %v1517_v25  ;;  %3046 = vmatprep.subr.mxu0 %v1984_v58  ;;  %v8814_v1 = vpop.permute.xlu0 %1066  ;;  %12587 = vst [vmem:[#allocation69_spill] sm:$0xff] %v8826_v48  ;;  %v12079_v51 = vrot.slane %v8826_v48, 3  ;;  %v1485_v40 = vsel %vm1403_vm0, %v1468_v49, %v1484_v16  ;;  %v1952_v4 = vsel %vm1820_vm5, %v1935_v32, %v1951_v9  ;;  %v1442_v17 = vrot.slane %v5869_v34, 3  ;;  %v8842_v25 = vld [vmem:[%s5991_s24 + $0x2f0] sm:$0xff]  ;;  %v5871_v9 = vld [vmem:[%s5991_s24 + $0x280] sm:$0xff] }
 0x21f   : > { %2842 = vmatprep.mubr.f32.mxu0 %v12568_v43  ;;  %2937 = vmatprep.subr.mxu1 %v1503_v3  ;;  %v12080_v58 = vrot.slane %v8842_v25, 3  ;;  %v8846_v60 = vadd.s32 896, %v6441_v20  ;;  %v12589_v3 = vrot.slane %v12588_v12, 3  ;;  %v8855_v30 = vadd.s32 768, %v6441_v20  ;;  %v9460_v20 = vld [vmem:[%s11892_s1 + $0xc0] sm:$0xff] }
 0x220   : > { %3047 = vmatpush1.msra.mxu0 %v1982_v46  ;;  %2938 = vmatpush2.msra.mxu1 %v1501_v11  ;;  %v1440_v46 = vrot.slane %v5871_v9, 3  ;;  %v1950_v11 = vsel %vm1820_vm5, %v1933_v44, %v1949_v19  ;;  %v5873_v19 = vld [vmem:[%s5991_s24 + $0x278] sm:$0xff] }
 0x221   : > { %5327 = vmatmul.mubr.msk.f32.gmra.mxu0 %vm2250_vm11, %v8832_v35  ;;  %3048 = vmatprep.subr.mxu0 %v1968_v38  ;;  %v8838_v5 = vpop.permute.xlu1 %1080  ;;  %v1471_v16 = vsel %vm1403_vm0, %v12589_v3, %v1470_v61  ;;  %v12590_v38 = vld [vmem:[#allocation60_spill] sm:$0xff]  ;;  %v1936_v61 = vsel %vm1820_vm5, %v8455_v45, %v1935_v32  ;;  %v1424_v3 = vrot.slane %v5873_v19, 3  ;;  %v12081_v45 = vand.u32 127, %v8855_v30 }
 0x222   : > { %2217 = vperm.xlu1 %5580, %v2178_v37   ;;  %2202 = vperm.xlu0 %5579, %v2175_v15   ;;  %v8851_v62 = vpop.permute.xlu0 %1078  ;;  %v12591_v34 = vrot.slane %v12590_v38, 3  ;;  %v5872_v15 = vld [vmem:[%s5991_s24 + $0x2e0] sm:$0xff]  ;;  %v8881_v32 = vld [vmem:[%s11892_s1 + $0xd0] sm:$0xff]  ;;  %v1457_v9 = vsel %vm1403_vm0, %v1440_v46, %v12079_v51 }
 0x223   : > { %2939 = vmatprep.subr.mxu1 %v1487_v24  ;;  %3049 = vmatpush1.msra.mxu0 %v1966_v31  ;;  %v1426_v12 = vrot.slane %v5872_v15, 3  ;;  %v2180_v24 = vld [vmem:[%s11893_s2 + $0x40] sm:$0xff]  ;;  %vm8914_vm15 = vcmp.eq.s32.totalorder %v12081_v45, 0 }
 0x224   : > { %v1469_v37 = vsel %vm1403_vm0, %v12591_v34, %v1468_v49  ;;  %2940 = vmatpush2.msra.mxu1 %v1485_v40  ;;  %3050 = vmatprep.subr.mxu0 %v1952_v4  ;;  %v406_v49 = vand.u32 127, %v8846_v60  ;;  %v1459_v40 = vsel %vm1403_vm0, %v1442_v17, %v12080_v58  ;;  %v12592_v60 = vld [vmem:[#allocation45_spill] sm:$0xff]  ;;  %v8895_v38 = vld [vmem:[%s11892_s1] sm:$0xff]  ;;  %v12602_v58 = vld [vmem:[#allocation16_spill] sm:$0xff] }
 0x225   : > { %2848 = vmatprep.mubr.f32.mxu0 %v12568_v43  ;;  %2941 = vmatprep.subr.mxu1 %v1471_v16  ;;  %v8868_v31 = vpop.permute.xlu1 %1084  ;;  %v1934_v16 = vsel %vm1820_vm5, %v8496_v26, %v1933_v44  ;;  %12593 = vst [vmem:[#allocation44_spill] sm:$0xff] %v8895_v38  ;;  %v5876_v34 = vld [vmem:[%s5991_s24 + $0x2d8] sm:$0xff]  ;;  %v12594_v26 = vld [vmem:[#allocation62_spill] sm:$0xff]  ;;  %v12595_v44 = vld [vmem:[#allocation128_spill] sm:$0xff] }
 0x226   : > { %3051 = vmatpush1.msra.mxu0 %v1950_v11  ;;  %2942 = vmatpush2.msra.mxu1 %v1469_v37  ;;  %v8875_v4 = vpop.permute.xlu0 %1082  ;;  %v1443_v11 = vsel %vm1403_vm0, %v1426_v12, %v1442_v17  ;;  %v1411_v37 = vrot.slane %v5876_v34, 3  ;;  %v678_v15 = vsel %vm665_vm2, %v12595_v44, %v12594_v26  ;;  %v2182_v17 = vld [vmem:[%s11893_s2 + $0x50] sm:$0xff]  ;;  %vm8907_vm14 = vcmp.eq.s32.totalorder %v406_v49, 0  ;;  %v8936_v51 = vld [vmem:[%s11892_s1 + $0x20] sm:$0xff]  ;;  %vm8985_vm6 = vmneg %vm8914_vm15 }
 0x227   : > { %5328 = vmatmul.mubr.msk.f32.gmra.mxu0 %vm2250_vm11, %v8881_v32  ;;  %2943 = vmatprep.mubr.f32.mxu1 %v12592_v60  ;;  %v5877_v60 = vld [vmem:[%s5991_s24 + $0x270] sm:$0xff]  ;;  %12601 = vst [vmem:[#allocation51_spill] sm:$0xff] %v8936_v51  ;;  %vm8957_vm1 = vcmp.eq.s32.totalorder %v406_v49, 127  ;;  %vm8968_vm4 = vmneg %vm8907_vm14  ;;  %v8975_v49 = vld [vmem:[%s11892_s1 + $0x100] sm:$0xff] }
 0x228   : > { %3052 = vmatprep.subr.mxu0 %v1936_v61  ;;  %2227 = vperm.xlu1 %5580, %v2180_v24   ;;  %v1441_v61 = vsel %vm1403_vm0, %v1424_v3, %v1440_v46  ;;  %v1410_v34 = vrot.slane %v5877_v60, 3  ;;  %v12600_v46 = vld [vmem:[#allocation113_spill] sm:$0xff]  ;;  %v8929_v60 = vld [vmem:[%s11892_s1 + $0xe8] sm:$0xff] }
 0x229   : > { %2944 = vmatmul.mubr.f32.vlgmr.msra.gmra.mxu1 %v8895_v38  ;;  %3165 = vmatprep.subr.mxu1 %v1459_v40  ;;  %v1089_v19 = vpop.permute.xlu1 %1088  ;;  %v12603_v38 = vld [vmem:[#allocation6_spill] sm:$0xff]  ;;  %v8992_v24 = vld [vmem:[%s11892_s1 + $0x38] sm:$0xff] }
 0x22a   : > { %3053 = vmatpush1.msra.mxu0 %v1934_v16  ;;  %3166 = vmatpush1.msra.mxu1 %v1457_v9  ;;  %v1087_v40 = vpop.permute.xlu0 %1086  ;;  %v691_v16 = vsel %vm665_vm2, %v12600_v46, %v12595_v44  ;;  %v2177_v9 = vld [vmem:[%s11893_s2 + $0x28] sm:$0xff]  ;;  %v1425_v44 = vsel %vm1403_vm0, %v1410_v34, %v1424_v3  ;;  %v873_v46 = vsel %vm8907_vm14, 0.0, %v678_v15  ;;  %v1194_v45 = vsel %vm1090_vm3, %v1089_v19, %v12602_v58  ;;  %v2184_v58 = vld [vmem:[%s11893_s2 + $0x60] sm:$0x1f]  ;;  %v12611_v26 = vld [vmem:[#allocation125_spill] sm:$0xff] }
 0x22b   : > { %2854 = vmatprep.mubr.f32.mxu0 %v12568_v43  ;;  %3167 = vmatprep.subr.mxu1 %v1443_v11  ;;  %v1427_v11 = vsel %vm1403_vm0, %v1411_v37, %v1426_v12  ;;  %v1193_v48 = vsel %vm1090_vm3, %v1087_v40, %v12603_v38  ;;  %v8954_v12 = vld [vmem:[%s11892_s1 + $0x18] sm:$0xff]  ;;  %v2124_v38 = vsel %vm1403_vm0, %v873_v46, %v1411_v37  ;;  %v12612_v46 = vand.u32 127, %v8855_v30 }
 0x22c   : > { %5329 = vmatmul.mubr.msk.f32.gmra.mxu0 %vm2250_vm11, %v8929_v60  ;;  %2949 = vmatprep.mubr.f32.mxu1 %v8936_v51  ;;  %v872_v51 = vsel %vm8914_vm15, 0.0, %v691_v16  ;;  %v1290_v37 = vsel %vm8957_vm1, 0.0, %v1193_v48  ;;  %v2179_v48 = vld [vmem:[%s11893_s2 + $0x38] sm:$0xff] }
 0x22d   : > { %3168 = vmatpush1.msra.mxu1 %v1441_v61  ;;  %2237 = vperm.xlu1 %5580, %v2182_v17   ;;  %v1298_v61 = vsel %vm8957_vm1, 0.0, %v1194_v45  ;;  %v2123_v16 = vsel %vm1403_vm0, %v872_v51, %v1410_v34  ;;  %v12610_v45 = vld [vmem:[#allocation28_spill] sm:$0xff]  ;;  %v9015_v34 = vrot.slane %v1290_v37, 6  ;;  %vm9019_vm8 = vcmp.eq.s32.totalorder %v12612_v46, 127  ;;  %v12616_v37 = vld [vmem:[#allocation126_spill] sm:$0xff]  ;;  %v9084_v46 = vld [vmem:[%s11892_s1 + $0x48] sm:$0xff] }
 0x22e   : > { %2212 = vperm.xlu0 %5579, %v2177_v9   ;;  %2950 = vmatmul.mubr.f32.gmra.mxu1 %v8954_v12  ;;  %v677_v9 = vsel %vm665_vm2, %v12611_v26, %v12610_v45  ;;  %v9010_v51 = vld [vmem:[%s11892_s1 + $0x30] sm:$0xff]  ;;  %v12618_v45 = vld [vmem:[#allocation123_spill] sm:$0xff] }
 0x22f   : > { %3169 = vmatprep.subr.mxu1 %v1427_v11  ;;  %2860 = vmatprep.mubr.f32.mxu0 %v12568_v43  ;;  %v690_v11 = vsel %vm665_vm2, %v12530_v10, %v12611_v26  ;;  %v1103_v10 = vsel %vm1090_vm3, %v8483_v8, %v1089_v19  ;;  %v689_v8 = vsel %vm665_vm2, %v12532_v2, %v12616_v37  ;;  %v9049_v19 = vld [vmem:[%s11892_s1 + $0x118] sm:$0xff]  ;;  %v2181_v2 = vld [vmem:[%s11893_s2 + $0x48] sm:$0xff] }
 0x230   : > { %3170 = vmatpush1.msra.mxu1 %v1425_v44  ;;  %5330 = vmatmul.mubr.msk.f32.gmra.mxu0 %vm2250_vm11, %v8975_v49  ;;  %v2019_v44 = vrot.slane %v1298_v61, 6  ;;  %v12615_v61 = vld [vmem:[#allocation7_spill] sm:$0xff] }
 0x231   : > { %3171 = vmatprep.subr.mxu1 %v2124_v38  ;;  %2955 = vmatprep.mubr.f32.mxu1 %v8992_v24  ;;  %v1102_v38 = vsel %vm1090_vm3, %v8375_v27, %v1087_v40  ;;  %v676_v30 = vsel %vm665_vm2, %v12616_v37, %v12615_v61  ;;  %v1101_v27 = vsel %vm1090_vm3, %v8543_v53, %v8868_v31  ;;  %v9056_v40 = vld [vmem:[%s11892_s1 + $0x50] sm:$0xff]  ;;  %v1297_v53 = vsel %vm9019_vm8, 0.0, %v1103_v10 }
 0x232   : > { %3172 = vmatpush1.msra.mxu1 %v2123_v16  ;;  %2247 = vperm.xlu1 %5580, %v2184_v58   ;;  %v1289_v16 = vsel %vm9019_vm8, 0.0, %v1102_v38  ;;  %v12619_v10 = vld [vmem:[#allocation4_spill] sm:$0xff]  ;;  %v1281_v38 = vsel %vm9019_vm8, 0.0, %v1101_v27  ;;  %v2017_v27 = vrot.slane %v1297_v53, 6  ;;  %v2183_v53 = vld [vmem:[%s11893_s2 + $0x58] sm:$0xff] }
 0x233   : > { %2956 = vmatmul.mubr.f32.gmra.mxu1 %v9010_v51  ;;  %5397 = vmatprep.subr.msk.mxu1 %vm8968_vm4, %v677_v9  ;;  %v9075_v9 = vsel %vm1820_vm5, %v9015_v34, %v2019_v44  ;;  %v1192_v44 = vsel %vm1090_vm3, %v8868_v31, %v12619_v10  ;;  %v12621_v61 = vld [vmem:[#allocation124_spill] sm:$0xff] }
 0x234   : > { %2222 = vperm.xlu0 %5579, %v2179_v48   ;;  %5399 = vmatpush1.msk.msra.mxu1 %vm8985_vm6, %v690_v11  ;;  %v12617_v48 = vld [vmem:[#allocation8_spill] sm:$0xff]  ;;  %v688_v11 = vsel %vm665_vm2, %v12536_v63, %v12618_v45  ;;  %v12620_v63 = vld [vmem:[#allocation135_spill] sm:$0xff] }
 0x235   : > { %2866 = vmatprep.mubr.f32.mxu0 %v12568_v43  ;;  %5401 = vmatprep.subr.msk.mxu1 %vm8968_vm4, %v676_v30  ;;  %v675_v26 = vsel %vm665_vm2, %v12618_v45, %v12617_v48  ;;  %v674_v37 = vsel %vm665_vm2, %v12621_v61, %v12620_v63  ;;  %v1100_v30 = vsel %vm1090_vm3, %v8569_v33, %v8875_v4  ;;  %v9120_v33 = vld [vmem:[%s11892_s1 + $0x130] sm:$0x1f]  ;;  %v1985_v45 = vrot.slane %v1281_v38, 6  ;;  %v9157_v38 = vld [vmem:[%s11892_s1 + $0x60] sm:$0xff] }
 0x236   : > { %5331 = vmatmul.mubr.msk.f32.gmra.mxu0 %vm2250_vm11, %v9049_v19  ;;  %2961 = vmatprep.mubr.f32.mxu1 %v9056_v40  ;;  %v687_v48 = vsel %vm665_vm2, %v12538_v0, %v12621_v61  ;;  %v1099_v0 = vsel %vm1090_vm3, %v8619_v50, %v8838_v5  ;;  %v1273_v50 = vsel %vm9019_vm8, 0.0, %v1100_v30  ;;  %v12625_v61 = vld [vmem:[#allocation122_spill] sm:$0xff] }
 0x237   : > { %5403 = vmatpush1.msk.msra.mxu1 %vm8985_vm6, %v689_v8  ;;  %2872 = vmatprep.mubr.f32.mxu0 %v12568_v43  ;;  %v12622_v8 = vld [vmem:[#allocation21_spill] sm:$0xff] }
 0x238   : > { %2962 = vmatmul.mubr.f32.gmra.mxu1 %v9084_v46  ;;  %5405 = vmatprep.subr.msk.mxu1 %vm8968_vm4, %v675_v26  ;;  %v1191_v31 = vsel %vm1090_vm3, %v8875_v4, %v12622_v8  ;;  %v9127_v4 = vld [vmem:[%s11892_s1 + $0x68] sm:$0xff]  ;;  %v12623_v26 = vld [vmem:[#allocation136_spill] sm:$0xff] }
 0x239   : > { %2232 = vperm.xlu0 %5579, %v2181_v2   ;;  %5407 = vmatpush1.msk.msra.mxu1 %vm8985_vm6, %v688_v11  ;;  %v2001_v2 = vrot.slane %v1289_v16, 6  ;;  %v1282_v16 = vsel %vm8957_vm1, 0.0, %v1192_v44  ;;  %v12624_v11 = vld [vmem:[#allocation121_spill] sm:$0xff]  ;;  %v1274_v44 = vsel %vm8957_vm1, 0.0, %v1191_v31 }
 0x23a   : > { %5409 = vmatprep.subr.msk.mxu1 %vm8968_vm4, %v674_v37  ;;  %5444 = vmatprep.subr.msk.mxu0 %vm2290_vm7, %v9075_v9  ;;  %v673_v10 = vsel %vm665_vm2, %v12624_v11, %v12623_v26  ;;  %v686_v63 = vsel %vm665_vm2, %v12541_v29, %v12624_v11  ;;  %v685_v29 = vsel %vm665_vm2, %v12543_v57, %v12625_v61  ;;  %v12626_v37 = vld [vmem:[#allocation133_spill] sm:$0xff]  ;;  %v1265_v57 = vsel %vm9019_vm8, 0.0, %v1099_v0 }
 0x23b   : > { %5332 = vmatmul.mubr.msk.f32.gmra.mxu0 %vm2250_vm11, %v9120_v33  ;;  %2967 = vmatprep.mubr.f32.mxu1 %v9127_v4  ;;  %v672_v30 = vsel %vm665_vm2, %v12625_v61, %v12626_v37  ;;  %v9173_v8 = vsel %vm1820_vm5, %v2001_v2, %v2017_v27  ;;  %v12627_v31 = vld [vmem:[#allocation33_spill] sm:$0xff]  ;;  %v1987_v26 = vrot.slane %v1282_v16, 6  ;;  %v9190_v27 = vld [vmem:[%s11892_s1 + $0x80] sm:$0xff]  ;;  %v1969_v11 = vrot.slane %v1273_v50, 6 }
 0x23c   : > { %5411 = vmatpush1.msk.msra.mxu1 %vm8985_vm6, %v687_v48  ;;  %3086 = vmatprep.mubr.f32.mxu0 %v12568_v43  ;;  %v1190_v48 = vsel %vm1090_vm3, %v8838_v5, %v12627_v31  ;;  %v12628_v5 = vld [vmem:[#allocation17_spill] sm:$0xff]  ;;  %v1953_v61 = vrot.slane %v1265_v57, 6  ;;  %v12633_v31 = vld [vmem:[#allocation120_spill] sm:$0xff] }
 0x23d   : > { %2968 = vmatmul.mubr.f32.gmra.mxu1 %v9157_v38  ;;  %5413 = vmatprep.subr.msk.mxu1 %vm8968_vm4, %v673_v10  ;;  %v1189_v0 = vsel %vm1090_vm3, %v8851_v62, %v12628_v5  ;;  %v1971_v10 = vrot.slane %v1274_v44, 6  ;;  %v9209_v16 = vld [vmem:[%s11892_s1 + $0x78] sm:$0xff]  ;;  %v9218_v50 = vsel %vm1820_vm5, %v1987_v26, %v9015_v34  ;;  %v1266_v44 = vsel %vm8957_vm1, 0.0, %v1190_v48  ;;  %v12634_v57 = vld [vmem:[#allocation116_spill] sm:$0xff] }
 0x23e   : > { %2242 = vperm.xlu0 %5579, %v2183_v53   ;;  %5415 = vmatpush1.msk.msra.mxu1 %vm8985_vm6, %v686_v63  ;;  %v1098_v53 = vsel %vm1090_vm3, %v8684_v7, %v8851_v62  ;;  %v9202_v7 = vsel %vm1820_vm5, %v1985_v45, %v2001_v2  ;;  %v12629_v62 = vld [vmem:[#allocation134_spill] sm:$0xff]  ;;  %v12630_v63 = vld [vmem:[#allocation119_spill] sm:$0xff]  ;;  %v9259_v5 = vsel %vm1820_vm5, %v1969_v11, %v1985_v45  ;;  %v9277_v45 = vld [vmem:[%s11892_s1 + $0x98] sm:$0xff] }
 0x23f   : > { %5417 = vmatprep.subr.msk.mxu1 %vm8968_vm4, %v672_v30  ;;  %2973 = vmatprep.mubr.f32.mxu1 %v9190_v27  ;;  %v684_v2 = vsel %vm665_vm2, %v12549_v14, %v12630_v63  ;;  %v1257_v37 = vsel %vm9019_vm8, 0.0, %v1098_v53  ;;  %v1258_v14 = vsel %vm8957_vm1, 0.0, %v1189_v0  ;;  %v12632_v30 = vld [vmem:[#allocation131_spill] sm:$0xff]  ;;  %v9256_v53 = vsel %vm1820_vm5, %v1971_v10, %v1987_v26 }
 0x240   : > { %5383 = vmatmul.mubr.msk.f32.vlgmr.msra.gmra.mxu0 %vm2250_vm11, %v8535_v36  ;;  %5419 = vmatpush1.msk.msra.mxu1 %vm8985_vm6, %v685_v29  ;;  %v671_v36 = vsel %vm665_vm2, %v12630_v63, %v12629_v62  ;;  %v12631_v29 = vld [vmem:[#allocation115_spill] sm:$0xff]  ;;  %v670_v48 = vsel %vm665_vm2, %v12633_v31, %v12632_v30  ;;  %v683_v0 = vsel %vm665_vm2, %v12559_v6, %v12633_v31  ;;  %v12635_v62 = vld [vmem:[#allocation5_spill] sm:$0xff]  ;;  %v1955_v26 = vrot.slane %v1266_v44, 6  ;;  %v12640_v31 = vld [vmem:[#allocation12_spill] sm:$0xff] }
 0x241   : > { %5445 = vmatpush1.msk.msra.mxu0 %vm2290_vm7, %v9173_v8  ;;  %2974 = vmatmul.mubr.f32.gmra.mxu1 %v9209_v16  ;;  %v9233_v34 = vsel %vm665_vm2, %v12565_v41, %v12631_v29  ;;  %v9250_v41 = vsel %vm665_vm2, %v12566_v54, %v12634_v57  ;;  %v1096_v54 = vsel %vm1090_vm3, %v7918_v47, %v8671_v23  ;;  %v9284_v6 = vrot.slane %v1257_v37, 6  ;;  %v12636_v44 = vld [vmem:[#allocation117_spill] sm:$0xff]  ;;  %v12638_v37 = vld [vmem:[#allocation118_spill] sm:$0xff] }
 0x242   : > { %5421 = vmatprep.subr.msk.mxu1 %vm8968_vm4, %v671_v36  ;;  %3330 = vmatprep.subr.mxu0 %v9218_v50  ;;  %v1188_v63 = vsel %vm1090_vm3, %v8750_v59, %v12635_v62  ;;  %v1097_v47 = vsel %vm1090_vm3, %v7957_v56, %v8750_v59  ;;  %v1939_v36 = vrot.slane %v1258_v14, 6  ;;  %v682_v30 = vsel %vm665_vm2, %v12561_v52, %v12636_v44  ;;  %v9301_v56 = vld [vmem:[%s11892_s1 + $0x90] sm:$0xff]  ;;  %v12639_v14 = vld [vmem:[#allocation103_spill] sm:$0xff] }
 0x243   : > { %5423 = vmatpush1.msk.msra.mxu1 %vm8985_vm6, %v684_v2  ;;  %3331 = vmatpush1.msra.mxu0 %v9202_v7  ;;  %v9291_v2 = vsel %vm1820_vm5, %v1953_v61, %v1969_v11  ;;  %v9309_v11 = vsel %vm1820_vm5, %v1955_v26, %v1971_v10  ;;  %v681_v52 = vsel %vm665_vm2, %v12639_v14, %v12638_v37  ;;  %v1241_v10 = vsel %vm9019_vm8, 0.0, %v1096_v54  ;;  %v12644_v54 = vld [vmem:[#allocation55_spill] sm:$0xff] }
 0x244   : > { %3092 = vmatprep.mubr.f32.mxu0 %v12568_v43  ;;  %5425 = vmatprep.subr.msk.mxu1 %vm8968_vm4, %v670_v48  ;;  %v1187_v48 = vsel %vm1090_vm3, %v8671_v23, %v12640_v31  ;;  %v1249_v14 = vsel %vm9019_vm8, 0.0, %v1097_v47  ;;  %v1094_v31 = vsel %vm1090_vm3, %v12644_v54, %v8786_v13  ;;  %v9355_v47 = vsel %vm1820_vm5, %v9284_v6, %v1953_v61  ;;  %v12648_v54 = vld [vmem:[#allocation29_spill] sm:$0xff] }
 0x245   : > { %3332 = vmatprep.subr.mxu0 %v9256_v53  ;;  %2979 = vmatprep.mubr.f32.mxu1 %v9277_v45  ;;  %v1905_v61 = vrot.slane %v1241_v10, 6  ;;  %v1184_v10 = vsel %vm1090_vm3, %v8780_v18, %v12648_v54 }
 0x246   : > { %5384 = vmatmul.mubr.msk.f32.gmra.mxu0 %vm2250_vm11, %v8560_v22  ;;  %5427 = vmatpush1.msk.msra.mxu1 %vm8985_vm6, %v683_v0  ;;  %v12637_v22 = vld [vmem:[#allocation132_spill] sm:$0xff]  ;;  %v12641_v0 = vld [vmem:[#allocation30_spill] sm:$0xff] }
 0x247   : > { %3333 = vmatpush1.msra.mxu0 %v9259_v5  ;;  %2980 = vmatmul.mubr.f32.gmra.mxu1 %v9301_v56  ;;  %v669_v59 = vsel %vm665_vm2, %v12636_v44, %v12637_v22  ;;  %v1095_v62 = vsel %vm1090_vm3, %v12641_v0, %v8729_v42  ;;  %v1250_v44 = vsel %vm8957_vm1, 0.0, %v1188_v63  ;;  %v12642_v22 = vld [vmem:[#allocation2_spill] sm:$0xff]  ;;  %v12643_v63 = vld [vmem:[#allocation129_spill] sm:$0xff] }
 0x248   : > { %5429 = vmatprep.subr.msk.mxu1 %vm8968_vm4, %v669_v59  ;;  %3334 = vmatprep.subr.mxu0 %v9309_v11  ;;  %v1186_v23 = vsel %vm1090_vm3, %v8729_v42, %v12642_v22  ;;  %v668_v59 = vsel %vm665_vm2, %v12638_v37, %v12643_v63  ;;  %v9351_v42 = vsel %vm1820_vm5, %v1939_v36, %v1955_v26  ;;  %v1233_v37 = vsel %vm9019_vm8, 0.0, %v1095_v62  ;;  %v12645_v22 = vld [vmem:[#allocation57_spill] sm:$0xff]  ;;  %v9369_v26 = vld [vmem:[%s11892_s1 + $0xb0] sm:$0xff] }
 0x249   : > { %5431 = vmatpush1.msk.msra.mxu1 %vm8985_vm6, %v682_v30  ;;  %3335 = vmatpush1.msra.mxu0 %v9291_v2  ;;  %v1242_v30 = vsel %vm8957_vm1, 0.0, %v1187_v48  ;;  %v1923_v0 = vrot.slane %v1250_v44, 6  ;;  %v1185_v63 = vsel %vm1090_vm3, %v8786_v13, %v12645_v22  ;;  %v1234_v48 = vsel %vm8957_vm1, 0.0, %v1186_v23  ;;  %v12646_v44 = vld [vmem:[#allocation31_spill] sm:$0xff]  ;;  %v12650_v22 = vld [vmem:[#allocation130_spill] sm:$0xff] }
 0x24a   : > { %3098 = vmatprep.mubr.f32.mxu0 %v12568_v43  ;;  %5433 = vmatprep.subr.msk.mxu1 %vm8968_vm4, %v668_v59  ;;  %v9374_v62 = vrot.slane %v1249_v14, 6  ;;  %v1093_v13 = vsel %vm1090_vm3, %v12646_v44, %v8780_v18  ;;  %v12647_v59 = vld [vmem:[#allocation26_spill] sm:$0xff]  ;;  %v1225_v23 = vsel %vm9019_vm8, 0.0, %v1094_v31  ;;  %v9394_v14 = vld [vmem:[%s11892_s1 + $0xa8] sm:$0xff]  ;;  %v1889_v18 = vrot.slane %v1233_v37, 6 }
 0x24b   : > { %3336 = vmatprep.subr.mxu0 %v9351_v42  ;;  %2985 = vmatprep.mubr.f32.mxu1 %v9369_v26  ;;  %12649 = vst [vmem:[#allocation27_spill] sm:$0xff] %v9394_v14  ;;  %v9402_v44 = vsel %vm1820_vm5, %v1923_v0, %v1939_v36  ;;  %v1226_v31 = vsel %vm8957_vm1, 0.0, %v1185_v63  ;;  %v1907_v36 = vrot.slane %v1242_v30, 6  ;;  %v1891_v37 = vrot.slane %v1234_v48, 6  ;;  %v12654_v30 = vld [vmem:[#allocation56_spill] sm:$0xff] }
 0x24c   : > { %5385 = vmatmul.mubr.msk.f32.gmra.mxu0 %vm2250_vm11, %v12647_v59  ;;  %5435 = vmatpush1.msk.msra.mxu1 %vm8985_vm6, %v681_v52  ;;  %v667_v52 = vsel %vm665_vm2, %v12631_v29, %v12650_v22  ;;  %v12651_v59 = vld [vmem:[#allocation86_spill] sm:$0xff]  ;;  %v1217_v63 = vsel %vm9019_vm8, 0.0, %v1093_v13  ;;  %v12653_v22 = vld [vmem:[#allocation13_spill] sm:$0xff]  ;;  %v1091_v48 = vsel %vm1090_vm3, %v12654_v30, %v8811_v55  ;;  %v1875_v13 = vrot.slane %v1226_v31, 6 }
 0x24d   : > { %3337 = vmatpush1.msra.mxu0 %v9355_v47  ;;  %2986 = vmatmul.mubr.f32.gmra.mxu1 %v9394_v14  ;;  %v1092_v54 = vsel %vm1090_vm3, %v12651_v59, %v8814_v1  ;;  %v12652_v14 = vld [vmem:[#allocation127_spill] sm:$0xff]  ;;  %v1183_v59 = vsel %vm1090_vm3, %v8814_v1, %v12653_v22  ;;  %v1857_v22 = vrot.slane %v1217_v63, 6  ;;  %v1201_v17 = vsel %vm9019_vm8, 0.0, %v1091_v48  ;;  %v5900_v48 = vld [vmem:[%s5991_s24 + $0x2d0] sm:$0x1f] }
 0x24e   : > { %5437 = vmatprep.subr.msk.mxu1 %vm8968_vm4, %v667_v52  ;;  %3338 = vmatprep.subr.mxu0 %v9402_v44  ;;  %v666_v29 = vsel %vm665_vm2, %v12634_v57, %v12652_v14  ;;  %v1218_v52 = vsel %vm8957_vm1, 0.0, %v1184_v10  ;;  %v1873_v57 = vrot.slane %v1225_v23, 6  ;;  %v9438_v1 = vld [vmem:[%s11892_s1 + $0xc8] sm:$0xff]  ;;  %v1209_v15 = vsel %vm9019_vm8, 0.0, %v1092_v54 }
 0x24f   : > { %5439 = vmatpush1.msk.msra.mxu1 %vm8985_vm6, %v9233_v34  ;;  %3104 = vmatprep.mubr.f32.mxu0 %v12568_v43  ;;  %v1922_v34 = vsel %vm1820_vm5, %v1905_v61, %v9374_v62  ;;  %v12655_v10 = vld [vmem:[#allocation3_spill] sm:$0xff]  ;;  %v1210_v31 = vsel %vm8957_vm1, 0.0, %v1183_v59  ;;  %v1859_v54 = vrot.slane %v1218_v52, 6  ;;  %v1841_v63 = vrot.slane %v1209_v15, 6  ;;  %v9473_v59 = vld [vmem:[%s11892_s1 + $0xe0] sm:$0xff]  ;;  %v9483_v52 = vld [vmem:[%s11892_s1 + $0xd8] sm:$0xff] }
 0x250   : > { %5441 = vmatprep.subr.msk.mxu1 %vm8968_vm4, %v666_v29  ;;  %2991 = vmatprep.mubr.f32.mxu1 %v9438_v1  ;;  %v1182_v23 = vsel %vm1090_vm3, %v8811_v55, %v12655_v10  ;;  %v12656_v14 = vld [vmem:[#allocation59_spill] sm:$0xff]  ;;  %v1924_v29 = vsel %vm1820_vm5, %v1907_v36, %v1923_v0  ;;  %v1906_v55 = vsel %vm1820_vm5, %v1889_v18, %v1905_v61  ;;  %v1843_v61 = vrot.slane %v1210_v31, 6  ;;  %v9493_v10 = vld [vmem:[%s11892_s1 + $0xf8] sm:$0xff] }
 0x251   : > { %5386 = vmatmul.mubr.msk.f32.gmra.mxu0 %vm2250_vm11, %v12656_v14  ;;  %5443 = vmatpush1.msk.msra.mxu1 %vm8985_vm6, %v9250_v41  ;;  %v1908_v41 = vsel %vm1820_vm5, %v1891_v37, %v1907_v36  ;;  %v1202_v0 = vsel %vm8957_vm1, 0.0, %v1182_v23  ;;  %v1890_v58 = vsel %vm1820_vm5, %v1873_v57, %v1889_v18  ;;  %v1892_v3 = vsel %vm1820_vm5, %v1875_v13, %v1891_v37  ;;  %v5902_v23 = vld [vmem:[%s5991_s24 + $0x338] sm:$0x1f]  ;;  %v5903_v14 = vld [vmem:[%s5991_s24 + $0x330] sm:$0xff]  ;;  %v5904_v31 = vld [vmem:[%s5991_s24 + $0x2c8] sm:$0xff] }
 0x252   : > { %2992 = vmatmul.mubr.f32.gmra.mxu1 %v9460_v20  ;;  %3197 = vmatprep.subr.mxu1 %v1924_v29  ;;  %v1827_v36 = vrot.slane %v1201_v17, 6  ;;  %v1874_v18 = vsel %vm1820_vm5, %v1857_v22, %v1873_v57  ;;  %v1828_v30 = vrot.slane %v1202_v0, 6  ;;  %v1876_v37 = vsel %vm1820_vm5, %v1859_v54, %v1875_v13  ;;  %v9506_v17 = vld [vmem:[%s11892_s1 + $0xf0] sm:$0xff] }
 0x253   : > { %3198 = vmatpush2.msra.mxu1 %v1922_v34  ;;  %3110 = vmatprep.mubr.f32.mxu0 %v12568_v43  ;;  %v1600_v34 = vrot.slane %v5900_v48, 3  ;;  %v1858_v57 = vsel %vm1820_vm5, %v1841_v63, %v1857_v22  ;;  %v1602_v15 = vrot.slane %v5902_v23, 3  ;;  %v1586_v29 = vrot.slane %v5903_v14, 3  ;;  %v5910_v23 = vld [vmem:[%s5991_s24 + $0x2b8] sm:$0xff] }
 0x254   : > { %3199 = vmatprep.subr.mxu1 %v1908_v41  ;;  %2997 = vmatprep.mubr.f32.mxu1 %v9473_v59  ;;  %v1860_v13 = vsel %vm1820_vm5, %v1843_v61, %v1859_v54  ;;  %v1842_v22 = vsel %vm1820_vm5, %v1827_v36, %v1841_v63  ;;  %v5906_v41 = vld [vmem:[%s5991_s24 + $0x328] sm:$0xff]  ;;  %v1844_v54 = vsel %vm1820_vm5, %v1828_v30, %v1843_v61  ;;  %v1552_v14 = vrot.slane %v5910_v23, 3 }
 0x255   : > { %5387 = vmatmul.mubr.msk.f32.gmra.mxu0 %vm2250_vm11, %v8695_v28  ;;  %3200 = vmatpush2.msra.mxu1 %v1906_v55  ;;  %v1584_v55 = vrot.slane %v5904_v31, 3  ;;  %v1570_v0 = vrot.slane %v5906_v41, 3  ;;  %v2131_v63 = vsel %vm1820_vm5, %v1600_v34, %v1827_v36  ;;  %v2132_v61 = vsel %vm1820_vm5, %v1602_v15, %v1828_v30  ;;  %v5912_v31 = vld [vmem:[%s5991_s24 + $0x318] sm:$0xff] }
 0x256   : > { %2998 = vmatmul.mubr.f32.gmra.mxu1 %v9483_v52  ;;  %3201 = vmatprep.subr.mxu1 %v1892_v3  ;;  %v1538_v41 = vrot.slane %v5912_v31, 3 }
 0x257   : > { %3202 = vmatpush2.msra.mxu1 %v1890_v58  ;;  %3116 = vmatprep.mubr.f32.mxu0 %v12568_v43  ;;  %v5907_v58 = vld [vmem:[%s5991_s24 + $0x2c0] sm:$0xff]  ;;  %v1601_v36 = vsel %vm1403_vm0, %v1584_v55, %v1600_v34  ;;  %v1587_v30 = vsel %vm1403_vm0, %v1570_v0, %v1586_v29 }
 0x258   : > { %3203 = vmatprep.subr.mxu1 %v1876_v37  ;;  %3003 = vmatprep.mubr.f32.mxu1 %v9493_v10  ;;  %v1568_v3 = vrot.slane %v5907_v58, 3  ;;  %v5909_v37 = vld [vmem:[%s5991_s24 + $0x320] sm:$0xff]  ;;  %v5915_v58 = vld [vmem:[%s5991_s24 + $0x310] sm:$0xff] }
 0x259   : > { %5388 = vmatmul.mubr.msk.f32.gmra.mxu0 %vm2250_vm11, %v8746_v39  ;;  %3204 = vmatpush2.msra.mxu1 %v1874_v18  ;;  %v9517_v18 = vld [vmem:[%s11892_s1 + $0x110] sm:$0xff]  ;;  %v1554_v48 = vrot.slane %v5909_v37, 3  ;;  %v1522_v37 = vrot.slane %v5915_v58, 3  ;;  %v9568_v58 = vpop.f32.mrf.mxu1 }
 0x25a   : > { %3004 = vmatmul.mubr.f32.gmra.mxu1 %v9506_v17  ;;  %3205 = vmatprep.subr.mxu1 %v1860_v13  ;;  %v9530_v13 = vld [vmem:[%s11892_s1 + $0x108] sm:$0xff]  ;;  %v1585_v34 = vsel %vm1403_vm0, %v1568_v3, %v1584_v55  ;;  %v9558_v55 = vld [vmem:[%s11892_s1 + $0x120] sm:$0x1f]  ;;  %v1569_v23 = vsel %vm1403_vm0, %v1552_v14, %v1568_v3 }
 0x25b   : > { %3206 = vmatpush2.msra.mxu1 %v1858_v57  ;;  %3122 = vmatprep.mubr.f32.mxu0 %v12568_v43  ;;  %v1603_v57 = vsel %vm1403_vm0, %v1586_v29, %v1602_v15  ;;  %v5913_v15 = vld [vmem:[%s5991_s24 + $0x2b0] sm:$0xff]  ;;  %v1571_v29 = vsel %vm1403_vm0, %v1554_v48, %v1570_v0  ;;  %12657 = vst [vmem:[#allocation52_spill] sm:$0xff] %v9558_v55 }
 0x25c   : > { %3207 = vmatprep.subr.mxu1 %v1844_v54  ;;  %3009 = vmatprep.mubr.f32.mxu1 %v9517_v18  ;;  %v9541_v54 = vld [vmem:[%s11892_s1 + $0x128] sm:$0x1f] }
 0x25d   : > { %5389 = vmatmul.mubr.msk.f32.gmra.mxu0 %vm2250_vm11, %v8792_v21  ;;  %3208 = vmatpush2.msra.mxu1 %v1842_v22  ;;  %v1536_v22 = vrot.slane %v5913_v15, 3 }
 0x25e   : > { %3010 = vmatmul.mubr.f32.gmra.mxu1 %v9530_v13  ;;  %3209 = vmatprep.subr.mxu1 %v2132_v61  ;;  %v5916_v61 = vld [vmem:[%s5991_s24 + $0x2a8] sm:$0xff] }
 0x25f   : > { %3210 = vmatpush2.msra.mxu1 %v2131_v63  ;;  %3128 = vmatprep.mubr.f32.mxu0 %v12568_v43  ;;  %v9552_v63 = vsel %vm1820_vm5, %v9374_v62, %v9284_v6  ;;  %v1555_v6 = vsel %vm1403_vm0, %v1538_v41, %v1554_v48  ;;  %v5919_v62 = vld [vmem:[%s5991_s24 + $0x2a0] sm:$0xff]  ;;  %v1553_v15 = vsel %vm1403_vm0, %v1536_v22, %v1552_v14  ;;  %v5921_v48 = vld [vmem:[%s5991_s24 + $0x298] sm:$0xff] }
 0x260   : > { %3211 = vmatprep.subr.mxu1 %v1603_v57  ;;  %3015 = vmatprep.mubr.f32.mxu1 %v9541_v54  ;;  %v1520_v57 = vrot.slane %v5916_v61, 3  ;;  %v1504_v31 = vrot.slane %v5919_v62, 3  ;;  %v1488_v61 = vrot.slane %v5921_v48, 3  ;;  %v12658_v48 = vrot.slane %v8842_v25, 3  ;;  %v12661_v25 = vld [vmem:[#allocation44_spill] sm:$0xff] }
 0x261   : > { %5390 = vmatmul.mubr.msk.f32.gmra.mxu0 %vm2250_vm11, %v8832_v35  ;;  %3212 = vmatpush2.msra.mxu1 %v1601_v36  ;;  %v5918_v36 = vld [vmem:[%s5991_s24 + $0x308] sm:$0xff] }
 0x262   : > { %3016 = vmatmul.mubr.f32.gmra.mxu1 %v9558_v55  ;;  %3213 = vmatprep.subr.mxu1 %v1587_v30  ;;  %v1506_v0 = vrot.slane %v5918_v36, 3  ;;  %v5920_v30 = vld [vmem:[%s5991_s24 + $0x300] sm:$0xff]  ;;  %v1537_v14 = vsel %vm1403_vm0, %v1520_v57, %v1536_v22 }
 0x263   : > { %3214 = vmatpush2.msra.mxu1 %v1585_v34  ;;  %3134 = vmatprep.mubr.f32.mxu0 %v12568_v43  ;;  %v1490_v3 = vrot.slane %v5920_v30, 3  ;;  %v1539_v34 = vsel %vm1403_vm0, %v1522_v37, %v1538_v41  ;;  %v5923_v30 = vld [vmem:[%s11892_s1 + $0x8] sm:$0xff]  ;;  %v1521_v41 = vsel %vm1403_vm0, %v1504_v31, %v1520_v57 }
 0x264   : > { %3215 = vmatprep.subr.mxu1 %v1571_v29  ;;  %3339 = vmatpush1.msra.mxu0 %v9552_v63  ;;  %v5922_v29 = vld [vmem:[%s5991_s24 + $0x2f8] sm:$0xff]  ;;  %v1523_v62 = vsel %vm1403_vm0, %v1506_v0, %v1522_v37  ;;  %v1505_v37 = vsel %vm1403_vm0, %v1488_v61, %v1504_v31 }
 0x265   : > { %5391 = vmatmul.mubr.msk.f32.gmra.mxu0 %vm2250_vm11, %v8881_v32  ;;  %3216 = vmatpush2.msra.mxu1 %v1569_v23  ;;  %v1474_v36 = vrot.slane %v5922_v29, 3  ;;  %v5924_v23 = vld [vmem:[%s5991_s24 + $0x290] sm:$0xff]  ;;  %v1507_v22 = vsel %vm1403_vm0, %v1490_v3, %v1506_v0  ;;  %v12659_v31 = vld [vmem:[#allocation69_spill] sm:$0xff] }
 0x266   : > { %3217 = vmatprep.subr.mxu1 %v1555_v6  ;;  %3140 = vmatprep.mubr.f32.mxu0 %v12568_v43  ;;  %v1472_v55 = vrot.slane %v5924_v23, 3  ;;  %v9584_v6 = vpop.f32.mrf.mxu1 }
 0x267   : > { %3218 = vmatpush2.msra.mxu1 %v1553_v15  ;;  %3229 = vmatprep.mubr.f32.mxu1 %v5923_v30  ;;  %v1491_v15 = vsel %vm1403_vm0, %v1474_v36, %v1490_v3  ;;  %v1475_v0 = vsel %vm1403_vm0, %v12658_v48, %v1474_v36 }
 0x268   : > { %3219 = vmatprep.subr.mxu1 %v1539_v34  ;;  %v1489_v34 = vsel %vm1403_vm0, %v1472_v55, %v1488_v61 }
 0x269   : > { %5392 = vmatmul.mubr.msk.f32.gmra.mxu0 %vm2250_vm11, %v8929_v60  ;;  %3220 = vmatpush2.msra.mxu1 %v1537_v14  ;;  %v12660_v14 = vrot.slane %v12659_v31, 3 }
 0x26a   : > { %3221 = vmatprep.subr.mxu1 %v1523_v62  ;;  %3146 = vmatprep.mubr.f32.mxu0 %v12568_v43 }
 0x26b   : > { %3222 = vmatpush2.msra.mxu1 %v1521_v41  ;;  %v1473_v3 = vsel %vm1403_vm0, %v12660_v14, %v1472_v55  ;;  %v12662_v55 = vld [vmem:[#allocation51_spill] sm:$0xff] }
 0x26c   : > { %3223 = vmatprep.subr.mxu1 %v1507_v22  ;;  %v9593_v57 = vpop.f32.mrf.mxu1 }
 0x26d   : > { %5393 = vmatmul.mubr.msk.f32.gmra.mxu0 %vm2250_vm11, %v8975_v49  ;;  %3224 = vmatpush2.msra.mxu1 %v1505_v37 }
 0x26e   : > { %3225 = vmatprep.subr.mxu1 %v1491_v15  ;;  %3152 = vmatprep.mubr.f32.mxu0 %v12568_v43  ;;  %v9604_v29 = vpop.f32.mrf.mxu1 }
 0x26f   : > { %3226 = vmatpush2.msra.mxu1 %v1489_v34 }
 0x270   : > { %3227 = vmatprep.subr.mxu1 %v1475_v0  ;;  %v9606_v61 = vpop.f32.mrf.mxu1 }
 0x271   : > { %5394 = vmatmul.mubr.msk.f32.gmra.mxu0 %vm2250_vm11, %v9049_v19  ;;  %3228 = vmatpush2.msra.mxu1 %v1473_v3 }
 0x272   : > { %3230 = vmatmul.mubr.f32.vlgmr.msra.gmra.mxu1 %v12661_v25  ;;  %5554 = vmatprep.subr.msk.mxu1 %vm2290_vm7, %v9075_v9  ;;  %v9613_v36 = vpop.f32.mrf.mxu1 }
 0x273   : > { %5560 = vmatpush1.msk.msra.mxu1 %vm2290_vm7, %v9173_v8  ;;  %3158 = vmatprep.mubr.f32.mxu0 %v12568_v43  ;;  %v5925_v8 = vld [vmem:[%s11892_s1 + $0x10] sm:$0xff] }
 0x274   : > { %5555 = vmatprep.subr.mxu1 %v9218_v50  ;;  %3235 = vmatprep.mubr.f32.mxu1 %v12662_v55  ;;  %v9620_v62 = vpop.f32.mrf.mxu1 }
 0x275   : > { %5395 = vmatmul.mubr.msk.f32.gmra.mxu0 %vm2250_vm11, %v9120_v33  ;;  %5561 = vmatpush1.msra.mxu1 %v9202_v7 }
 0x276   : > { %3236 = vmatmul.mubr.f32.gmra.mxu1 %v8954_v12  ;;  %5556 = vmatprep.subr.mxu1 %v9256_v53  ;;  %v9627_v9 = vpop.f32.mrf.mxu1 }
 0x277   : > { %5562 = vmatpush1.msra.mxu1 %v9259_v5  ;;  %3372 = vmatprep.mubr.f32.mxu0 %v12568_v43 }
 0x278   : > { %5557 = vmatprep.subr.mxu1 %v9309_v11  ;;  %3241 = vmatprep.mubr.f32.mxu1 %v8992_v24  ;;  %v9638_v12 = vpop.f32.mrf.mxu1  ;;  %v5926_v24 = vld [vmem:[%s11892_s1 + $0x28] sm:$0xff] }
 0x279   : > { %5563 = vmatpush1.msra.mxu1 %v9291_v2  ;;  %5446 = vmatmul.mubr.msk.f32.vlgmr.msra.gmra.mxu0 %vm2250_vm11, %v5925_v8 }
 0x27a   : > { %3242 = vmatmul.mubr.f32.gmra.mxu1 %v9010_v51  ;;  %5558 = vmatprep.subr.mxu1 %v9351_v42  ;;  %v9644_v7 = vpop.f32.mrf.mxu1 }
 0x27b   : > { %5564 = vmatpush1.msra.mxu1 %v9355_v47  ;;  %3378 = vmatprep.mubr.f32.mxu0 %v12568_v43  ;;  %v12663_v47 = vld [vmem:[#allocation27_spill] sm:$0xff] }
 0x27c   : > { %5559 = vmatprep.subr.mxu1 %v9402_v44  ;;  %3247 = vmatprep.mubr.f32.mxu1 %v9056_v40  ;;  %v9653_v51 = vpop.f32.mrf.mxu1  ;;  %v5927_v40 = vld [vmem:[%s11892_s1 + $0x40] sm:$0xff] }
 0x27d   : > { %5565 = vmatpush1.msra.mxu1 %v9552_v63  ;;  %5447 = vmatmul.mubr.msk.f32.gmra.mxu0 %vm2250_vm11, %v5926_v24  ;;  %v12665_v24 = vld [vmem:[#allocation52_spill] sm:$0xff] }
 0x27e   : > { %3248 = vmatmul.mubr.f32.gmra.mxu1 %v9084_v46  ;;  %3384 = vmatprep.mubr.f32.mxu0 %v12568_v43  ;;  %v9658_v50 = vpop.f32.mrf.mxu1 }
 0x27f   : > { %3253 = vmatprep.mubr.f32.mxu1 %v9127_v4  ;;  %v5928_v4 = vld [vmem:[%s11892_s1 + $0x58] sm:$0xff] }
 0x280   : > { %v9664_v53 = vpop.f32.mrf.mxu1 }
 0x281   : > { %5448 = vmatmul.mubr.msk.f32.gmra.mxu0 %vm2250_vm11, %v5927_v40 }
 0x282   : > { %3254 = vmatmul.mubr.f32.gmra.mxu1 %v9157_v38  ;;  %3390 = vmatprep.mubr.f32.mxu0 %v12568_v43  ;;  %v9669_v46 = vpop.f32.mrf.mxu1 }
 0x283   : > { %3259 = vmatprep.mubr.f32.mxu1 %v9190_v27 }
 0x284   : > { %v9675_v5 = vpop.f32.mrf.mxu1 }
 0x285   : > { %5449 = vmatmul.mubr.msk.f32.gmra.mxu0 %vm2250_vm11, %v5928_v4 }
 0x286   : > { %3260 = vmatmul.mubr.f32.gmra.mxu1 %v9209_v16  ;;  %3396 = vmatprep.mubr.f32.mxu0 %v12568_v43  ;;  %v9680_v38 = vpop.f32.mrf.mxu1 }
 0x287   : > { %3265 = vmatprep.mubr.f32.mxu1 %v9277_v45 }
 0x288   : > { %v2373_v2 = vpop.f32.mrf.mxu0  ;;  %v9684_v27 = vpop.f32.mrf.mxu1 }
 0x289   : > { %5450 = vmatmul.mubr.msk.f32.gmra.mxu0 %vm2250_vm11, %v8695_v28 }
 0x28a   : > { %3266 = vmatmul.mubr.f32.gmra.mxu1 %v9301_v56  ;;  %3402 = vmatprep.mubr.f32.mxu0 %v12568_v43  ;;  %v9688_v11 = vpop.f32.mrf.mxu0  ;;  %v9691_v16 = vpop.f32.mrf.mxu1 }
 0x28b   : > { %3271 = vmatprep.mubr.f32.mxu1 %v9369_v26 }
 0x28c   : > { %v2379_v42 = vpop.f32.mrf.mxu0 }
 0x28d   : > { %5451 = vmatmul.mubr.msk.f32.gmra.mxu0 %vm2250_vm11, %v8746_v39  ;;  %v9695_v45 = vpop.f32.mrf.mxu1 }
 0x28e   : > { %3272 = vmatmul.mubr.f32.gmra.mxu1 %v12663_v47  ;;  %3408 = vmatprep.mubr.f32.mxu0 %v12568_v43  ;;  %v9699_v28 = vpop.permute.xlu1 %2192  ;;  %v9701_v56 = vpop.permute.xlu0 %2187 }
 0x28f   : > { %3277 = vmatprep.mubr.f32.mxu1 %v9438_v1  ;;  %v2374_v26 = vadd.f32 %v2373_v2, %v9701_v56  ;;  %v2380_v44 = vadd.f32 %v2379_v42, %v9699_v28  ;;  %v9706_v63 = vpop.f32.mrf.mxu0  ;;  %v9708_v30 = vpop.f32.mrf.mxu1 }
 0x291   : > { %5452 = vmatmul.mubr.msk.f32.gmra.mxu0 %vm2250_vm11, %v8792_v21  ;;  %v9713_v39 = vadd.f32 %v9568_v58, %v2374_v26  ;;  %v9716_v23 = vadd.f32 %v9593_v57, %v2380_v44  ;;  %v2385_v41 = vpop.f32.mrf.mxu0 }
 0x292   : > { %3278 = vmatmul.mubr.f32.gmra.mxu1 %v9460_v20  ;;  %3414 = vmatprep.mubr.f32.mxu0 %v12568_v43  ;;  %v9720_v1 = vpop.permute.xlu1 %2197  ;;  %v9722_v22 = vpop.f32.mrf.mxu1 }
 0x293   : > { %3283 = vmatprep.mubr.f32.mxu1 %v9473_v59  ;;  %v12093_v37 = vmax.f32 %v9713_v39, 0.0  ;;  %v12092_v21 = vmax.f32 %v9716_v23, 0.0  ;;  %v2386_v58 = vadd.f32 %v2385_v41, %v9720_v1  ;;  %v9728_v15 = vpop.f32.mrf.mxu0 }
 0x294   : > { %v9730_v34 = vpop.f32.mrf.mxu1 }
 0x295   : > { %5453 = vmatmul.mubr.msk.f32.gmra.mxu0 %vm2250_vm11, %v8832_v35  ;;  %3557 = vadd.xlane.f32.xlu0 %v12093_v37  ;;  %v9737_v20 = vadd.f32 %v9606_v61, %v2386_v58  ;;  %v2391_v59 = vpop.f32.mrf.mxu0 }
 0x296   : > { %3284 = vmatmul.mubr.f32.gmra.mxu1 %v9483_v52  ;;  %3420 = vmatprep.mubr.f32.mxu0 %v12568_v43 }
 0x297   : > { %3289 = vmatprep.mubr.f32.mxu1 %v9493_v10  ;;  %v12089_v57 = vmax.f32 %v9737_v20, 0.0  ;;  %3559 = vadd.xlane.f32.xlu1 %v12092_v21  ;;  %v9745_v48 = vpop.f32.mrf.mxu1  ;;  %v9747_v35 = vpop.f32.mrf.mxu0 }
 0x298   : > { %v9757_v52 = vpop.permute.xlu1 %2207 }
 0x299   : > { %5454 = vmatmul.mubr.msk.f32.gmra.mxu0 %vm2250_vm11, %v8881_v32  ;;  %v9751_v0 = vpop.f32.mrf.mxu1  ;;  %3561 = vadd.xlane.f32.xlu0 %v12089_v57  ;;  %v2397_v10 = vpop.f32.mrf.mxu0 }
 0x29a   : > { %3290 = vmatmul.mubr.f32.gmra.mxu1 %v9506_v17  ;;  %3426 = vmatprep.mubr.f32.mxu0 %v12568_v43  ;;  %v2398_v31 = vadd.f32 %v2397_v10, %v9757_v52 }
 0x29b   : > { %3295 = vmatprep.mubr.f32.mxu1 %v9517_v18  ;;  %v9761_v14 = vpop.f32.mrf.mxu1  ;;  %v9763_v3 = vpop.f32.mrf.mxu0 }
 0x29c   : > { %v9770_v17 = vadd.f32 %v9638_v12, %v2398_v31 }
 0x29d   : > { %5455 = vmatmul.mubr.msk.f32.gmra.mxu0 %vm2250_vm11, %v8929_v60  ;;  %v9767_v32 = vpop.permute.xlu0 %2202  ;;  %v9775_v61 = vpop.f32.mrf.mxu1 }
 0x29e   : > { %3296 = vmatmul.mubr.f32.gmra.mxu1 %v9530_v13  ;;  %3432 = vmatprep.mubr.f32.mxu0 %v12568_v43  ;;  %v2392_v18 = vadd.f32 %v2391_v59, %v9767_v32  ;;  %v2403_v25 = vpop.f32.mrf.mxu0  ;;  %v12088_v55 = vmax.f32 %v9770_v17, 0.0  ;;  %v9788_v13 = vpop.permute.xlu1 %2217 }
 0x29f   : > { %3301 = vmatprep.mubr.f32.mxu1 %v9541_v54  ;;  %v9782_v8 = vpop.f32.mrf.mxu1 }
 0x2a0   : > { %v9780_v60 = vadd.f32 %v9620_v62, %v2392_v18  ;;  %12664 = vst [vmem:[#allocation22_spill] sm:$0xff] %v9782_v8  ;;  %v9784_v12 = vpop.f32.mrf.mxu0  ;;  %3565 = vadd.xlane.f32.xlu1 %v12088_v55 }
 0x2a1   : > { %5456 = vmatmul.mubr.msk.f32.gmra.mxu0 %vm2250_vm11, %v8975_v49  ;;  %v9794_v40 = vpop.f32.mrf.mxu1 }
 0x2a2   : > { %3302 = vmatmul.mubr.f32.gmra.mxu1 %v12665_v24  ;;  %v12090_v54 = vmax.f32 %v9780_v60, 0.0  ;;  %v2409_v62 = vpop.f32.mrf.mxu0 }
 0x2a3   : > { %3438 = vmatprep.mubr.f32.mxu1 %v12568_v43  ;;  %v2410_v4 = vadd.f32 %v2409_v62, %v9788_v13  ;;  %v9826_v10 = vpop.permute.xlu1 %2227 }
 0x2a4   : > { %3563 = vadd.xlane.f32.xlu0 %v12090_v54  ;;  %v9800_v49 = vpop.f32.mrf.mxu1  ;;  %v9802_v2 = vpop.f32.mrf.mxu0  ;;  %12670 = vst [vmem:[#allocation81_spill] sm:$0xff] %v9826_v10 }
 0x2a5   : > { %12666 = vst [vmem:[#allocation40_spill] sm:$0xff] %v9800_v49  ;;  %v9805_v42 = vadd.f32 %v9664_v53, %v2410_v4 }
 0x2a6   : > { %5457 = vmatmul.mubr.msk.f32.vlgmr.msra.gmra.mxu1 %vm2250_vm11, %v9049_v19  ;;  %v9809_v47 = vpop.f32.mrf.mxu1  ;;  %v2415_v26 = vpop.f32.mrf.mxu0 }
 0x2a7   : > { %12667 = vst [vmem:[#allocation73_spill] sm:$0xff] %v9805_v42  ;;  %3444 = vmatprep.mubr.f32.mxu1 %v12568_v43  ;;  %v12087_v44 = vmax.f32 %v9805_v42, 0.0 }
 0x2a8   : > { %v9813_v41 = vpop.f32.mrf.mxu1  ;;  %v9817_v59 = vpop.f32.mrf.mxu0 }
 0x2a9   : > { %12668 = vst [vmem:[#allocation46_spill] sm:$0xff] %v9813_v41  ;;  %v9815_v58 = vpop.permute.xlu0 %2212  ;;  %3569 = vadd.xlane.f32.xlu1 %v12087_v44 }
 0x2aa   : > { %12669 = vst [vmem:[#allocation23_spill] sm:$0xff] %v9815_v58  ;;  %5458 = vmatmul.mubr.msk.f32.gmra.mxu1 %vm2250_vm11, %v9120_v33  ;;  %v2404_v19 = vadd.f32 %v2403_v25, %v9815_v58  ;;  %v9824_v53 = vpop.f32.mrf.mxu1 }
 0x2ab   : > { %v2421_v43 = vpop.f32.mrf.mxu0 }
 0x2ac   : > { %v9829_v31 = vadd.f32 %v9653_v51, %v2404_v19  ;;  %v2422_v18 = vadd.f32 %v2421_v43, %v9826_v10 }
 0x2ad   : > { %v9832_v24 = vpop.f32.mrf.mxu1  ;;  %v9838_v33 = vpop.f32.mrf.mxu0 }
 0x2ae   : > { %12671 = vst [vmem:[#allocation47_spill] sm:$0xff] %v9832_v24  ;;  %v12091_v62 = vmax.f32 %v9829_v31, 0.0  ;;  %v9836_v4 = vadd.f32 %v9684_v27, %v2422_v18  ;;  %v9857_v18 = vpop.permute.xlu1 %2237 }
 0x2af   : > { %v9840_v25 = vpop.permute.xlu0 %2222  ;;  %v9842_v44 = vpop.f32.mrf.mxu1  ;;  %12675 = vst [vmem:[#allocation70_spill] sm:$0xff] %v9857_v18 }
 0x2b0   : > { %12672 = vst [vmem:[#allocation18_spill] sm:$0xff] %v9836_v4  ;;  %12673 = vst [vmem:[#allocation82_spill] sm:$0xff] %v9840_v25  ;;  %3567 = vadd.xlane.f32.xlu0 %v12091_v62  ;;  %v2416_v51 = vadd.f32 %v2415_v26, %v9840_v25  ;;  %v12094_v19 = vmax.f32 %v9836_v4, 0.0  ;;  %v2427_v43 = vpop.f32.mrf.mxu0 }
 0x2b1   : > { %v9848_v55 = vpop.f32.mrf.mxu1 }
 0x2b2   : > { %12674 = vst [vmem:[#allocation41_spill] sm:$0xff] %v9848_v55  ;;  %v9851_v57 = vadd.f32 %v9675_v5, %v2416_v51  ;;  %v9853_v27 = vpop.f32.mrf.mxu0  ;;  %3573 = vadd.xlane.f32.xlu1 %v12094_v19 }
 0x2b3   : > { %v9859_v54 = vpop.f32.mrf.mxu1 }
 0x2b4   : > { %v12095_v62 = vmax.f32 %v9851_v57, 0.0  ;;  %v9862_v26 = vpop.permute.xlu0 %2232  ;;  %v2433_v21 = vpop.f32.mrf.mxu0 }
 0x2b5   : > { %12676 = vst [vmem:[#allocation42_spill] sm:$0xff] %v9862_v26  ;;  %v2428_v37 = vadd.f32 %v2427_v43, %v9862_v26  ;;  %v2434_v24 = vadd.f32 %v2433_v21, %v9857_v18 }
 0x2b6   : > { %3571 = vadd.xlane.f32.xlu0 %v12095_v62  ;;  %v9868_v5 = vpop.f32.mrf.mxu1  ;;  %v9870_v51 = vpop.f32.mrf.mxu0  ;;  %v2382_v62 = vadd.f32 %v9706_v63, %v9699_v28 }
 0x2b7   : > { %12677 = vst [vmem:[#allocation19_spill] sm:$0xff] %v9868_v5  ;;  %v9873_v19 = vadd.f32 %v9695_v45, %v2428_v37  ;;  %v9876_v55 = vadd.f32 %v9722_v22, %v2434_v24  ;;  %v9893_v37 = vpop.permute.xlu1 %2247 }
 0x2b8   : > { %v9878_v49 = vpop.f32.mrf.mxu1  ;;  %v9901_v63 = vadd.f32 %v9604_v29, %v2382_v62 }
 0x2b9   : > { %12678 = vst [vmem:[#allocation77_spill] sm:$0xff] %v9876_v55  ;;  %v9880_v41 = vpop.permute.xlu0 %2242  ;;  %v12098_v43 = vmax.f32 %v9873_v19, 0.0  ;;  %v12099_v21 = vmax.f32 %v9876_v55, 0.0  ;;  %v2439_v8 = vpop.f32.mrf.mxu0 }
 0x2ba   : > { %12679 = vst [vmem:[#allocation43_spill] sm:$0xff] %v9880_v41  ;;  %v2440_v5 = vadd.f32 %v2439_v8, %v9880_v41  ;;  %v2394_v8 = vadd.f32 %v9747_v35, %v9767_v32 }
 0x2bb   : > { %3575 = vadd.xlane.f32.xlu0 %v12098_v43  ;;  %v9889_v45 = vpop.f32.mrf.mxu1  ;;  %v2441_v22 = vpop.f32.mrf.mxu0  ;;  %3577 = vadd.xlane.f32.xlu1 %v12099_v21  ;;  %v2376_v21 = vadd.f32 %v9688_v11, %v9701_v56  ;;  %v2406_v11 = vadd.f32 %v9784_v12, %v9815_v58 }
 0x2bc   : > { %12680 = vst [vmem:[#allocation14_spill] sm:$0xff] %v9889_v45  ;;  %v9896_v24 = vadd.f32 %v9745_v48, %v2440_v5  ;;  %v9922_v62 = vadd.f32 %v9627_v9, %v2394_v8  ;;  %v12684_v8 = vmax.f32 %v9901_v63, 0.0 }
 0x2bd   : > { %v9898_v4 = vpop.f32.mrf.mxu1  ;;  %v2445_v42 = vpop.f32.mrf.mxu0 }
 0x2be   : > { %v12101_v43 = vmax.f32 %v9896_v24, 0.0  ;;  %v2446_v45 = vadd.f32 %v2445_v42, %v9893_v37 }
 0x2bf   : > { %v9909_v55 = vpop.f32.mrf.mxu1  ;;  %v9911_v48 = vpop.f32.mrf.mxu0 }
 0x2c0   : > { %12681 = vst [vmem:[#allocation78_spill] sm:$0xff] %v9909_v55  ;;  %v9914_v5 = vadd.f32 %v9761_v14, %v2446_v45  ;;  %3579 = vadd.xlane.f32.xlu0 %v12101_v43  ;;  %v9930_v14 = vadd.f32 %v9584_v6, %v2376_v21  ;;  %v2388_v45 = vadd.f32 %v9728_v15, %v9720_v1  ;;  %v12103_v6 = vmax.f32 %v9922_v62, 0.0 }
 0x2c1   : > { %v9918_v29 = vpop.f32.mrf.mxu1  ;;  %v2662_v43 = vadd.f32 %v9794_v40, %v9701_v56  ;;  %v9947_v15 = vadd.f32 %v9658_v50, %v2406_v11  ;;  %v2418_v40 = vadd.f32 %v9817_v59, %v9840_v25 }
 0x2c2   : > { %v12102_v42 = vmax.f32 %v9914_v5, 0.0  ;;  %v9927_v55 = vpop.f32.mrf.mxu0 }
 0x2c3   : > { %12682 = vst [vmem:[#allocation36_spill] sm:$0xff] %v9927_v55  ;;  %v9936_v35 = vpop.f32.mrf.mxu1  ;;  %v9971_v11 = vadd.f32 %v9680_v38, %v2418_v40 }
 0x2c4   : > { %12683 = vst [vmem:[#allocation65_spill] sm:$0xff] %v9936_v35  ;;  %v2804_v9 = vpop.f32.mrf.mxu0  ;;  %3756 = vadd.xlane.f32.xlu0 %v12684_v8  ;;  %v3581_v12 = vsel %vm1403_vm0, %v12102_v42, 0.0  ;;  %v12104_v35 = vmax.f32 %v9930_v14, 0.0  ;;  %v9955_v8 = vadd.f32 %v9613_v36, %v2388_v45  ;;  %v12105_v36 = vmax.f32 %v9947_v15, 0.0 }
 0x2c5   : > { %v9943_v55 = vadd.f32 %v2804_v9, %v2662_v43  ;;  %3582 = vadd.xlane.f32.xlu1 %v3581_v12  ;;  %v2400_v43 = vadd.f32 %v9763_v3, %v9757_v52  ;;  %v2668_v9 = vadd.f32 %v9809_v47, %v9699_v28  ;;  %v9961_v12 = vpop.f32.mrf.mxu1  ;;  %v2430_v3 = vadd.f32 %v9853_v27, %v9862_v26 }
 0x2c6   : > { %v9951_v21 = vpop.f32.mrf.mxu0  ;;  %v12106_v45 = vmax.f32 %v9955_v8, 0.0 }
 0x2c7   : > { %12685 = vst [vmem:[#allocation38_spill] sm:$0xff] %v9943_v55  ;;  %v9979_v42 = vadd.f32 %v9644_v7, %v2400_v43  ;;  %v12107_v7 = vmax.f32 %v9971_v11, 0.0  ;;  %v9995_v40 = vadd.f32 %v9708_v30, %v2430_v3 }
 0x2c8   : > { %v2810_v50 = vpop.f32.mrf.mxu0  ;;  %3760 = vadd.xlane.f32.xlu0 %v12103_v6  ;;  %v9985_v6 = vpop.f32.mrf.mxu1 }
 0x2c9   : > { %v9965_v59 = vadd.f32 %v2810_v50, %v2668_v9  ;;  %3754 = vadd.xlane.f32.xlu1 %v12104_v35  ;;  %v2412_v9 = vadd.f32 %v9802_v2, %v9788_v13  ;;  %v2674_v50 = vadd.f32 %v9824_v53, %v9720_v1  ;;  %12687 = vst [vmem:[#allocation74_spill] sm:$0xff] %v9985_v6  ;;  %v12108_v53 = vmax.f32 %v9979_v42, 0.0 }
 0x2ca   : > { %v9975_v47 = vpop.f32.mrf.mxu0  ;;  %v2442_v2 = vadd.f32 %v2441_v22, %v9880_v41  ;;  %v12109_v22 = vmax.f32 %v9995_v40, 0.0 }
 0x2cb   : > { %12686 = vst [vmem:[#allocation10_spill] sm:$0xff] %v9965_v59  ;;  %v10002_v35 = vadd.f32 %v9669_v46, %v2412_v9  ;;  %v2686_v9 = vadd.f32 %v9859_v54, %v9757_v52 }
 0x2cc   : > { %v2816_v38 = vpop.f32.mrf.mxu0  ;;  %3764 = vadd.xlane.f32.xlu0 %v12105_v36  ;;  %v2715_v36 = vpop.f32.mrf.mxu1  ;;  %v10016_v46 = vadd.f32 %v9751_v0, %v2442_v2 }
 0x2cd   : > { %v9989_v27 = vadd.f32 %v2816_v38, %v2674_v50  ;;  %3758 = vadd.xlane.f32.xlu1 %v12106_v45  ;;  %v2424_v50 = vadd.f32 %v9838_v33, %v9826_v10  ;;  %v2680_v38 = vadd.f32 %v9842_v44, %v9767_v32  ;;  %v12110_v33 = vmax.f32 %v10002_v35, 0.0 }
 0x2ce   : > { %v9998_v43 = vpop.f32.mrf.mxu0 }
 0x2cf   : > { %12688 = vst [vmem:[#allocation39_spill] sm:$0xff] %v9989_v27  ;;  %v10022_v44 = vadd.f32 %v9691_v16, %v2424_v50  ;;  %v12111_v16 = vmax.f32 %v10016_v46, 0.0 }
 0x2d0   : > { %v2822_v45 = vpop.f32.mrf.mxu0  ;;  %3768 = vadd.xlane.f32.xlu0 %v12107_v7  ;;  %v2448_v7 = vadd.f32 %v9911_v48, %v9893_v37  ;;  %v2692_v48 = vadd.f32 %v9878_v49, %v9815_v58  ;;  %v2698_v49 = vadd.f32 %v9898_v4, %v9788_v13 }
 0x2d1   : > { %v10010_v30 = vadd.f32 %v2822_v45, %v2680_v38  ;;  %3762 = vadd.xlane.f32.xlu1 %v12108_v53  ;;  %v2436_v45 = vadd.f32 %v9870_v51, %v9857_v18  ;;  %v10028_v38 = vpop.f32.mrf.mxu1  ;;  %v12112_v51 = vmax.f32 %v10022_v44, 0.0 }
 0x2d2   : > { %v10018_v3 = vpop.f32.mrf.mxu0 }
 0x2d3   : > { %12689 = vst [vmem:[#allocation15_spill] sm:$0xff] %v10010_v30  ;;  %v10043_v50 = vadd.f32 %v9730_v34, %v2436_v45  ;;  %v2721_v53 = vpop.f32.mrf.mxu1 }
 0x2d4   : > { %v2828_v0 = vpop.f32.mrf.mxu0  ;;  %3772 = vadd.xlane.f32.xlu0 %v12109_v22  ;;  %v10048_v22 = vadd.f32 %v9775_v61, %v2448_v7 }
 0x2d5   : > { %v10034_v2 = vadd.f32 %v2828_v0, %v2686_v9  ;;  %3766 = vadd.xlane.f32.xlu1 %v12110_v33  ;;  %v12117_v33 = vmax.f32 %v10043_v50, 0.0  ;;  %v10057_v34 = vpop.f32.mrf.mxu1 }
 0x2d6   : > { %v10039_v54 = vpop.f32.mrf.mxu0  ;;  %12693 = vst [vmem:[#allocation71_spill] sm:$0xff] %v10057_v34  ;;  %v12118_v61 = vmax.f32 %v10048_v22, 0.0 }
 0x2d7   : > { %12690 = vst [vmem:[#allocation75_spill] sm:$0xff] %v10034_v2  ;;  %12691 = vst [vmem:[#allocation34_spill] sm:$0xff] %v10039_v54  ;;  %v2704_v2 = vadd.f32 %v9918_v29, %v9840_v25  ;;  %v2716_v29 = vadd.f32 %v2715_v36, %v9862_v26 }
 0x2d8   : > { %v2834_v9 = vpop.f32.mrf.mxu0  ;;  %3776 = vadd.xlane.f32.xlu0 %v12111_v16  ;;  %v3778_v16 = vsel %vm1403_vm0, %v12118_v61, 0.0 }
 0x2d9   : > { %v10052_v0 = vadd.f32 %v2834_v9, %v2692_v48  ;;  %3770 = vadd.xlane.f32.xlu1 %v12112_v51  ;;  %v2727_v9 = vpop.f32.mrf.mxu1 }
 0x2da   : > { %v2728_v36 = vadd.f32 %v2727_v9, %v9880_v41 }
 0x2db   : > { %12692 = vst [vmem:[#allocation11_spill] sm:$0xff] %v10052_v0  ;;  %v10059_v45 = vpop.f32.mrf.mxu0  ;;  %v10075_v4 = vpop.f32.mrf.mxu1 }
 0x2dc   : > { %12696 = vst [vmem:[#allocation72_spill] sm:$0xff] %v10075_v4 }
 0x2dd   : > { %v2840_v7 = vpop.f32.mrf.mxu0  ;;  %3774 = vadd.xlane.f32.xlu1 %v12117_v33  ;;  %v10079_v55 = vpop.f32.mrf.mxu1 }
 0x2de   : > { %v10066_v48 = vadd.f32 %v2840_v7, %v2698_v49  ;;  %12698 = vst [vmem:[#allocation61_spill] sm:$0xff] %v10079_v55  ;;  %v2710_v7 = vadd.f32 %v9961_v12, %v9826_v10  ;;  %v2722_v12 = vadd.f32 %v2721_v53, %v9857_v18 }
 0x2e0   : > { %12694 = vst [vmem:[#allocation37_spill] sm:$0xff] %v10066_v48 }
 0x2e1   : > { %v10071_v51 = vpop.f32.mrf.mxu0  ;;  %3779 = vadd.xlane.f32.xlu1 %v3778_v16 }
 0x2e2   : > { %12695 = vst [vmem:[#allocation66_spill] sm:$0xff] %v10071_v51 }
 0x2e3   : > { %v2846_v27 = vpop.f32.mrf.mxu0 }
 0x2e4   : > { %v10077_v0 = vadd.f32 %v2846_v27, %v2704_v2 }
 0x2e6   : > { %12697 = vst [vmem:[#allocation84_spill] sm:$0xff] %v10077_v0 }
 0x2e7   : > { %v10081_v49 = vpop.f32.mrf.mxu0 }
 0x2e9   : > { %v10085_v33 = vpop.f32.mrf.mxu1  ;;  %v2852_v61 = vpop.f32.mrf.mxu0 }
 0x2ea   : > { %12699 = vst [vmem:[#allocation67_spill] sm:$0xff] %v10085_v33  ;;  %v10087_v48 = vadd.f32 %v2852_v61, %v2710_v7 }
 0x2eb   : > { %v2947_v16 = vpop.f32.mrf.mxu1 }
 0x2ec   : > { %12700 = vst [vmem:[#allocation68_spill] sm:$0xff] %v10087_v48  ;;  %v10089_v30 = vpop.f32.mrf.mxu0 }
 0x2ed   : > { %12701 = vst [vmem:[#allocation79_spill] sm:$0xff] %v10089_v30 }
 0x2ee   : > { %v10092_v59 = vpop.f32.mrf.mxu1  ;;  %v2858_v27 = vpop.f32.mrf.mxu0 }
 0x2ef   : > { %12702 = vst [vmem:[#allocation83_spill] sm:$0xff] %v10092_v59  ;;  %v10094_v2 = vadd.f32 %v2858_v27, %v2716_v29 }
 0x2f0   : > { %v2953_v55 = vpop.f32.mrf.mxu1  ;;  %v10096_v0 = vpop.f32.mrf.mxu0 }
 0x2f1   : > { %12703 = vst [vmem:[#allocation63_spill] sm:$0xff] %v10094_v2  ;;  %12704 = vst [vmem:[#allocation85_spill] sm:$0xff] %v10096_v0 }
 0x2f2   : > { %v2864_v34 = vpop.f32.mrf.mxu0 }
 0x2f3   : > { %v10099_v33 = vpop.f32.mrf.mxu1  ;;  %v10101_v61 = vadd.f32 %v2864_v34, %v2722_v12  ;;  %v2948_v12 = vadd.f32 %v2947_v16, %v9701_v56 }
 0x2f4   : > { %12705 = vst [vmem:[#allocation64_spill] sm:$0xff] %v10099_v33 }
 0x2f5   : > { %12706 = vst [vmem:[#allocation76_spill] sm:$0xff] %v10101_v61  ;;  %v2959_v7 = vpop.f32.mrf.mxu1 }
 0x2f6   : > { %v10103_v48 = vpop.f32.mrf.mxu0  ;;  %v2960_v16 = vadd.f32 %v2959_v7, %v9720_v1 }
 0x2f7   : > { %12707 = vst [vmem:[#allocation80_spill] sm:$0xff] %v10103_v48 }
 0x2f8   : > { %v10106_v30 = vpop.f32.mrf.mxu1  ;;  %v2870_v59 = vpop.f32.mrf.mxu0 }
 0x2f9   : > { %12708 = vst [vmem:[#allocation102_spill] sm:$0xff] %v10106_v30  ;;  %v10108_v29 = vadd.f32 %v2870_v59, %v2728_v36  ;;  %v2954_v36 = vadd.f32 %v2953_v55, %v9699_v28 }
 0x2fa   : > { %v2965_v27 = vpop.f32.mrf.mxu1 }
 0x2fb   : > { %12709 = vst [vmem:[#allocation88_spill] sm:$0xff] %v10108_v29  ;;  %v10110_v2 = vpop.f32.mrf.mxu0  ;;  %v2966_v55 = vadd.f32 %v2965_v27, %v9767_v32 }
 0x2fc   : > { %12710 = vst [vmem:[#allocation50_spill] sm:$0xff] %v10110_v2 }
 0x2fd   : > { %v10112_v6 = vpop.f32.mrf.mxu1  ;;  %v10114_v53 = vpop.f32.mrf.mxu0 }
 0x2fe   : > { %12711 = vst [vmem:[#allocation114_spill] sm:$0xff] %v10112_v6  ;;  %12712 = vst [vmem:[#allocation99_spill] sm:$0xff] %v10114_v53 }
 0x2ff   : > { %v2971_v33 = vpop.f32.mrf.mxu1 }
 0x300   : > { %v10116_v34 = vpop.f32.mrf.mxu0  ;;  %v2972_v7 = vadd.f32 %v2971_v33, %v9757_v52 }
 0x301   : > { %12713 = vst [vmem:[#allocation111_spill] sm:$0xff] %v10116_v34  ;;  %v10119_v61 = vpop.f32.mrf.mxu1 }
 0x302   : > { %12714 = vst [vmem:[#allocation100_spill] sm:$0xff] %v10119_v61  ;;  %v3090_v9 = vpop.f32.mrf.mxu0 }
 0x303   : > { %v10121_v48 = vadd.f32 %v3090_v9, %v2948_v12  ;;  %v2977_v30 = vpop.f32.mrf.mxu1 }
 0x304   : > { %v2978_v27 = vadd.f32 %v2977_v30, %v9815_v58  ;;  %v12734_v30 = vmax.f32 %v9713_v39, 0.0 }
 0x305   : > { %12715 = vst [vmem:[#allocation32_spill] sm:$0xff] %v10121_v48 }
 0x306   : > { %v10123_v59 = vpop.f32.mrf.mxu0 }
 0x307   : > { %12716 = vst [vmem:[#allocation112_spill] sm:$0xff] %v10123_v59  ;;  %v10126_v29 = vpop.f32.mrf.mxu1 }
 0x308   : > { %12717 = vst [vmem:[#allocation97_spill] sm:$0xff] %v10126_v29  ;;  %v3096_v6 = vpop.f32.mrf.mxu0 }
 0x309   : > { %v10128_v51 = vadd.f32 %v3096_v6, %v2954_v36  ;;  %v2983_v53 = vpop.f32.mrf.mxu1 }
 0x30b   : > { %12718 = vst [vmem:[#allocation109_spill] sm:$0xff] %v10128_v51 }
 0x30c   : > { %v10130_v2 = vpop.f32.mrf.mxu0 }
 0x30d   : > { %12719 = vst [vmem:[#allocation98_spill] sm:$0xff] %v10130_v2  ;;  %v10133_v34 = vpop.f32.mrf.mxu1 }
 0x30e   : > { %12720 = vst [vmem:[#allocation110_spill] sm:$0xff] %v10133_v34  ;;  %v3102_v61 = vpop.f32.mrf.mxu0 }
 0x30f   : > { %v10135_v12 = vadd.f32 %v3102_v61, %v2960_v16  ;;  %v2989_v9 = vpop.f32.mrf.mxu1 }
 0x311   : > { %12721 = vst [vmem:[#allocation95_spill] sm:$0xff] %v10135_v12  ;;  %v10137_v48 = vpop.f32.mrf.mxu0 }
 0x312   : > { %12722 = vst [vmem:[#allocation107_spill] sm:$0xff] %v10137_v48  ;;  %v10140_v59 = vpop.f32.mrf.mxu1 }
 0x313   : > { %12723 = vst [vmem:[#allocation96_spill] sm:$0xff] %v10140_v59  ;;  %v3108_v29 = vpop.f32.mrf.mxu0 }
 0x314   : > { %v10142_v6 = vadd.f32 %v3108_v29, %v2966_v55  ;;  %v2995_v36 = vpop.f32.mrf.mxu1 }
 0x315   : > { %v10144_v51 = vpop.f32.mrf.mxu0 }
 0x316   : > { %12724 = vst [vmem:[#allocation87_spill] sm:$0xff] %v10142_v6  ;;  %12725 = vst [vmem:[#allocation89_spill] sm:$0xff] %v10144_v51  ;;  %v10147_v2 = vpop.f32.mrf.mxu1  ;;  %v2984_v6 = vadd.f32 %v2983_v53, %v9788_v13 }
 0x317   : > { %12726 = vst [vmem:[#allocation90_spill] sm:$0xff] %v10147_v2  ;;  %v3114_v34 = vpop.f32.mrf.mxu0 }
 0x318   : > { %v10149_v61 = vadd.f32 %v3114_v34, %v2972_v7  ;;  %v3001_v16 = vpop.f32.mrf.mxu1 }
 0x319   : > { %v10151_v12 = vpop.f32.mrf.mxu0 }
 0x31a   : > { %12727 = vst [vmem:[#allocation108_spill] sm:$0xff] %v10149_v61  ;;  %12728 = vst [vmem:[#allocation93_spill] sm:$0xff] %v10151_v12  ;;  %v10154_v59 = vpop.f32.mrf.mxu1 }
 0x31b   : > { %v3120_v48 = vpop.f32.mrf.mxu0  ;;  %12729 = vst [vmem:[#allocation91_spill] sm:$0xff] %v10154_v59 }
 0x31c   : > { %v10156_v29 = vadd.f32 %v3120_v48, %v2978_v27  ;;  %v3007_v54 = vpop.f32.mrf.mxu1  ;;  %v2990_v48 = vadd.f32 %v2989_v9, %v9840_v25 }
 0x31d   : > { %v10158_v55 = vpop.f32.mrf.mxu0 }
 0x31e   : > { %12730 = vst [vmem:[#allocation92_spill] sm:$0xff] %v10156_v29  ;;  %12731 = vst [vmem:[#allocation105_spill] sm:$0xff] %v10158_v55  ;;  %v3558_v33 = vpop.xlane.xlu0 %3557  ;;  %v12736_v29 = vmax.f32 %v9716_v23, 0.0 }
 0x31f   : > { %v3126_v51 = vpop.f32.mrf.mxu0  ;;  %v3585_v2 = vmul.f32 0.0078125, %v3558_v33 }
 0x320   : > { %v10161_v34 = vadd.f32 %v3126_v51, %v2984_v6  ;;  %v3560_v7 = vpop.xlane.xlu1 %3559  ;;  %v10176_v51 = vpop.f32.mrf.mxu1 }
 0x321   : > { %v10163_v61 = vpop.f32.mrf.mxu0  ;;  %v10167_v12 = vsub.f32 %v12734_v30, %v3585_v2  ;;  %v3586_v59 = vmul.f32 0.0078125, %v3560_v7  ;;  %12738 = vst [vmem:[#allocation104_spill] sm:$0xff] %v10176_v51  ;;  %v2996_v2 = vadd.f32 %v2995_v36, %v9826_v10  ;;  %v3002_v7 = vadd.f32 %v3001_v16, %v9862_v26 }
 0x322   : > { %12732 = vst [vmem:[#allocation94_spill] sm:$0xff] %v10161_v34  ;;  %12733 = vst [vmem:[#allocation106_spill] sm:$0xff] %v10163_v61  ;;  %v3013_v23 = vpop.f32.mrf.mxu1 }
 0x323   : > { %12735 = vst [vmem:[#allocation53_spill] sm:$0xff] %v10167_v12  ;;  %v3132_v27 = vpop.f32.mrf.mxu0  ;;  %v10172_v53 = vsub.f32 %v12736_v29, %v3586_v59  ;;  %v3611_v33 = vmul.f32 %v10167_v12, %v10167_v12 }
 0x324   : > { %v10178_v6 = vadd.f32 %v3132_v27, %v2990_v48  ;;  %v10190_v48 = vpop.f32.mrf.mxu1 }
 0x325   : > { %12737 = vst [vmem:[#allocation24_spill] sm:$0xff] %v10172_v53  ;;  %v10180_v34 = vpop.f32.mrf.mxu0  ;;  %3624 = vadd.xlane.f32.xlu0 %v3611_v33  ;;  %v3612_v39 = vmul.f32 %v10172_v53, %v10172_v53  ;;  %12743 = vst [vmem:[#allocation35_spill] sm:$0xff] %v10190_v48  ;;  %v12766_v53 = vmax.f32 %v9901_v63, 0.0  ;;  %v12770_v63 = vmax.f32 %v9930_v14, 0.0 }
 0x326   : > { %12739 = vst [vmem:[#allocation101_spill] sm:$0xff] %v10178_v6  ;;  %12740 = vst [vmem:[#allocation9_spill] sm:$0xff] %v10180_v34  ;;  %v3008_v6 = vadd.f32 %v3007_v54, %v9857_v18  ;;  %v10197_v36 = vpop.f32.mrf.mxu1 }
 0x327   : > { %v3138_v9 = vpop.f32.mrf.mxu0  ;;  %3626 = vadd.xlane.f32.xlu1 %v3612_v39  ;;  %12746 = vst [vmem:[#allocation49_spill] sm:$0xff] %v10197_v36 }
 0x328   : > { %v10185_v59 = vadd.f32 %v3138_v9, %v2996_v2  ;;  %v3014_v9 = vadd.f32 %v3013_v23, %v9880_v41 }
 0x329   : > { %v10187_v29 = vpop.f32.mrf.mxu0 }
 0x32a   : > { %12741 = vst [vmem:[#allocation25_spill] sm:$0xff] %v10185_v59  ;;  %12742 = vst [vmem:[#allocation54_spill] sm:$0xff] %v10187_v29  ;;  %v3562_v29 = vpop.xlane.xlu0 %3561 }
 0x32b   : > { %v3144_v30 = vpop.f32.mrf.mxu0 }
 0x32c   : > { %v10192_v27 = vadd.f32 %v3144_v30, %v3002_v7 }
 0x32d   : > { %v10194_v33 = vpop.f32.mrf.mxu0 }
 0x32e   : > { %12744 = vst [vmem:[#allocation58_spill] sm:$0xff] %v10192_v27  ;;  %12745 = vst [vmem:[#allocation20_spill] sm:$0xff] %v10194_v33  ;;  %v3564_v27 = vpop.xlane.xlu0 %3563 }
 0x32f   : > { %v3150_v51 = vpop.f32.mrf.mxu0  ;;  %v3588_v48 = vmul.f32 0.0078125, %v3564_v27 }
 0x330   : > { %v10199_v39 = vadd.f32 %v3150_v51, %v3008_v6 }
 0x331   : > { %v10201_v2 = vpop.f32.mrf.mxu0 }
 0x332   : > { %12747 = vst [vmem:[#allocation48_spill] sm:$0xff] %v10199_v39  ;;  %12748 = vst [vmem:[#allocation60_spill] sm:$0xff] %v10201_v2  ;;  %v10204_v59 = vpop.f32.mrf.mxu1  ;;  %v3566_v39 = vpop.xlane.xlu1 %3565 }
 0x333   : > { %12749 = vst [vmem:[#allocation45_spill] sm:$0xff] %v10204_v59  ;;  %v3156_v16 = vpop.f32.mrf.mxu0 }
 0x334   : > { %v10206_v61 = vadd.f32 %v3156_v16, %v3014_v9  ;;  %v10208_v7 = vpop.f32.mrf.mxu1 }
 0x335   : > { %12751 = vst [vmem:[#allocation128_spill] sm:$0xff] %v10208_v7 }
 0x336   : > { %12750 = vst [vmem:[#allocation62_spill] sm:$0xff] %v10206_v61  ;;  %v10210_v30 = vpop.f32.mrf.mxu1  ;;  %v10224_v16 = vpop.xlane.xlu1 %3569 }
 0x337   : > { %12752 = vst [vmem:[#allocation113_spill] sm:$0xff] %v10210_v30 }
 0x338   : > { %v10212_v54 = vpop.f32.mrf.mxu1 }
 0x339   : > { %12753 = vst [vmem:[#allocation16_spill] sm:$0xff] %v10212_v54  ;;  %v3568_v6 = vpop.xlane.xlu0 %3567 }
 0x33a   : > { %v10214_v36 = vpop.f32.mrf.mxu1 }
 0x33b   : > { %12754 = vst [vmem:[#allocation6_spill] sm:$0xff] %v10214_v36  ;;  %v10232_v36 = vpop.xlane.xlu1 %3573 }
 0x33c   : > { %v10216_v51 = vpop.f32.mrf.mxu1 }
 0x33d   : > { %12755 = vst [vmem:[#allocation28_spill] sm:$0xff] %v10216_v51 }
 0x33e   : > { %v10218_v23 = vpop.f32.mrf.mxu1 }
 0x33f   : > { %12756 = vst [vmem:[#allocation125_spill] sm:$0xff] %v10218_v23  ;;  %v3572_v2 = vpop.xlane.xlu0 %3571 }
 0x340   : > { %v10220_v59 = vpop.f32.mrf.mxu1 }
 0x341   : > { %12757 = vst [vmem:[#allocation7_spill] sm:$0xff] %v10220_v59 }
 0x342   : > { %v10222_v9 = vpop.f32.mrf.mxu1 }
 0x343   : > { %12758 = vst [vmem:[#allocation126_spill] sm:$0xff] %v10222_v9 }
 0x344   : > { %v10226_v7 = vpop.f32.mrf.mxu1  ;;  %v10228_v61 = vpop.xlane.xlu0 %3575 }
 0x345   : > { %12759 = vst [vmem:[#allocation8_spill] sm:$0xff] %v10226_v7  ;;  %v10240_v59 = vpop.xlane.xlu1 %3577 }
 0x346   : > { %v10230_v54 = vpop.f32.mrf.mxu1 }
 0x347   : > { %12760 = vst [vmem:[#allocation123_spill] sm:$0xff] %v10230_v54 }
 0x348   : > { %v10234_v51 = vpop.f32.mrf.mxu1 }
 0x349   : > { %12761 = vst [vmem:[#allocation4_spill] sm:$0xff] %v10234_v51  ;;  %v10236_v30 = vpop.xlane.xlu0 %3579 }
 0x34a   : > { %v10238_v23 = vpop.f32.mrf.mxu1 }
 0x34b   : > { %12762 = vst [vmem:[#allocation135_spill] sm:$0xff] %v10238_v23  ;;  %v12767_v23 = vmax.f32 %v9780_v60, 0.0 }
 0x34c   : > { %v10242_v33 = vpop.f32.mrf.mxu1 }
 0x34d   : > { %12763 = vst [vmem:[#allocation124_spill] sm:$0xff] %v10242_v33  ;;  %v3757_v9 = vpop.xlane.xlu0 %3756  ;;  %v10256_v26 = vsub.f32 %v12767_v23, %v3588_v48  ;;  %v12772_v48 = vmax.f32 %v9922_v62, 0.0  ;;  %v12775_v62 = vmax.f32 %v9829_v31, 0.0  ;;  %v3592_v31 = vmul.f32 0.0078125, %v3572_v2 }
 0x34e   : > { %v10244_v34 = vpop.f32.mrf.mxu1  ;;  %v3782_v7 = vmul.f32 0.0078125, %v3757_v9  ;;  %v10246_v55 = vpop.xlane.xlu1 %3582  ;;  %v12782_v2 = vmax.f32 %v9851_v57, 0.0 }
 0x34f   : > { %12764 = vst [vmem:[#allocation21_spill] sm:$0xff] %v10244_v34  ;;  %v3587_v34 = vmul.f32 0.0078125, %v3562_v29  ;;  %v12773_v29 = vmax.f32 %v9737_v20, 0.0 }
 0x350   : > { %v10248_v54 = vpop.f32.mrf.mxu1  ;;  %v10252_v51 = vsub.f32 %v12766_v53, %v3782_v7  ;;  %v3590_v7 = vmul.f32 0.0078125, %v3568_v6 }
 0x351   : > { %12765 = vst [vmem:[#allocation136_spill] sm:$0xff] %v10248_v54  ;;  %v3761_v12 = vpop.xlane.xlu0 %3760  ;;  %v3614_v54 = vmul.f32 %v10256_v26, %v10256_v26 }
 0x352   : > { %v10258_v25 = vpop.f32.mrf.mxu1  ;;  %v3784_v33 = vmul.f32 0.0078125, %v3761_v12  ;;  %v3755_v27 = vpop.xlane.xlu1 %3754  ;;  %v3808_v9 = vmul.f32 %v10252_v51, %v10252_v51 }
 0x353   : > { %12768 = vst [vmem:[#allocation121_spill] sm:$0xff] %v10258_v25  ;;  %v3781_v0 = vmul.f32 0.0078125, %v3755_v27  ;;  %v10278_v27 = vsub.f32 %v12773_v29, %v3587_v34  ;;  %v3589_v34 = vmul.f32 0.0078125, %v3566_v39 }
 0x354   : > { %v10262_v4 = vpop.f32.mrf.mxu1  ;;  %3822 = vadd.xlane.f32.xlu1 %v3808_v9  ;;  %v10272_v23 = vsub.f32 %v12772_v48, %v3784_v33  ;;  %v10286_v33 = vsub.f32 %v12775_v62, %v3590_v7  ;;  %v12777_v48 = vmax.f32 %v9955_v8, 0.0 }
 0x355   : > { %12769 = vst [vmem:[#allocation122_spill] sm:$0xff] %v10262_v4  ;;  %v10266_v53 = vsub.f32 %v12770_v63, %v3781_v0  ;;  %v3765_v9 = vpop.xlane.xlu0 %3764  ;;  %v3613_v29 = vmul.f32 %v10278_v27, %v10278_v27 }
 0x356   : > { %v10268_v60 = vpop.f32.mrf.mxu1  ;;  %v3759_v12 = vpop.xlane.xlu1 %3758  ;;  %v3786_v63 = vmul.f32 0.0078125, %v3765_v9  ;;  %v3810_v20 = vmul.f32 %v10272_v23, %v10272_v23  ;;  %v12780_v9 = vmax.f32 %v9947_v15, 0.0  ;;  %v3616_v8 = vmul.f32 %v10286_v33, %v10286_v33 }
 0x357   : > { %12771 = vst [vmem:[#allocation133_spill] sm:$0xff] %v10268_v60  ;;  %v3783_v4 = vmul.f32 0.0078125, %v3759_v12  ;;  %v3807_v14 = vmul.f32 %v10266_v53, %v10266_v53  ;;  %v10316_v15 = vsub.f32 %v12782_v2, %v3592_v31  ;;  %v3594_v31 = vmul.f32 0.0078125, %v10228_v61 }
 0x358   : > { %v10282_v0 = vpop.f32.mrf.mxu1  ;;  %3630 = vadd.xlane.f32.xlu1 %v3614_v54  ;;  %v10304_v62 = vsub.f32 %v12780_v9, %v3786_v63  ;;  %v12787_v2 = vmax.f32 %v9971_v11, 0.0  ;;  %v12791_v11 = vmax.f32 %v9873_v19, 0.0  ;;  %v3596_v19 = vmul.f32 0.0078125, %v10236_v30 }
 0x359   : > { %12774 = vst [vmem:[#allocation33_spill] sm:$0xff] %v10282_v0  ;;  %3820 = vadd.xlane.f32.xlu0 %v3807_v14  ;;  %v10294_v12 = vsub.f32 %v12777_v48, %v3783_v4  ;;  %v12781_v4 = vmax.f32 %v9770_v17, 0.0  ;;  %v3769_v48 = vpop.xlane.xlu0 %3768  ;;  %v12796_v30 = vmax.f32 %v9896_v24, 0.0  ;;  %v12798_v24 = vmax.f32 %v10016_v46, 0.0 }
 0x35a   : > { %v10288_v6 = vpop.f32.mrf.mxu1  ;;  %v3763_v14 = vpop.xlane.xlu1 %3762  ;;  %v3788_v9 = vmul.f32 0.0078125, %v3769_v48  ;;  %v3812_v17 = vmul.f32 %v10304_v62, %v10304_v62 }
 0x35b   : > { %12776 = vst [vmem:[#allocation17_spill] sm:$0xff] %v10288_v6  ;;  %v10310_v39 = vsub.f32 %v12781_v4, %v3589_v34  ;;  %v3785_v0 = vmul.f32 0.0078125, %v3763_v14  ;;  %v3591_v34 = vmul.f32 0.0078125, %v10224_v16  ;;  %v12784_v14 = vmax.f32 %v9979_v42, 0.0  ;;  %v12788_v16 = vld [vmem:[#allocation73_spill] sm:$0xff] }
 0x35c   : > { %v10298_v54 = vpop.f32.mrf.mxu1  ;;  %3826 = vadd.xlane.f32.xlu1 %v3810_v20  ;;  %v3809_v20 = vmul.f32 %v10294_v12, %v10294_v12  ;;  %v3618_v42 = vmul.f32 %v10316_v15, %v10316_v15 }
 0x35d   : > { %12778 = vst [vmem:[#allocation134_spill] sm:$0xff] %v10298_v54  ;;  %3628 = vadd.xlane.f32.xlu0 %v3613_v29  ;;  %v10325_v4 = vsub.f32 %v12784_v14, %v3785_v0  ;;  %v10336_v54 = vsub.f32 %v12787_v2, %v3788_v9  ;;  %v12789_v0 = vmax.f32 %v12788_v16, 0.0  ;;  %v3773_v25 = vpop.xlane.xlu0 %3772  ;;  %v10351_v9 = vsub.f32 %v12791_v11, %v3594_v31 }
 0x35e   : > { %v10300_v7 = vpop.f32.mrf.mxu1  ;;  %v3767_v57 = vpop.xlane.xlu1 %3766  ;;  %v3790_v2 = vmul.f32 0.0078125, %v3773_v25  ;;  %v12793_v31 = vmax.f32 %v9995_v40, 0.0 }
 0x35f   : > { %12779 = vst [vmem:[#allocation119_spill] sm:$0xff] %v10300_v7  ;;  %v10342_v14 = vsub.f32 %v12789_v0, %v3591_v34  ;;  %v3811_v61 = vmul.f32 %v10325_v4, %v10325_v4  ;;  %v3814_v34 = vmul.f32 %v10336_v54, %v10336_v54  ;;  %v3620_v0 = vmul.f32 %v10351_v9, %v10351_v9 }
 0x360   : > { %v3299_v29 = vpop.f32.mrf.mxu1  ;;  %3634 = vadd.xlane.f32.xlu1 %v3616_v8  ;;  %v3615_v8 = vmul.f32 %v10310_v39, %v10310_v39  ;;  %v10365_v25 = vsub.f32 %v12793_v31, %v3790_v2 }
 0x361   : > { %3824 = vadd.xlane.f32.xlu0 %v3809_v20  ;;  %v3300_v6 = vadd.f32 %v3299_v29, %v9880_v41  ;;  %v3593_v29 = vmul.f32 0.0078125, %v10232_v36  ;;  %v12794_v36 = vld [vmem:[#allocation18_spill] sm:$0xff] }
 0x362   : > { %v10318_v63 = vpop.f32.mrf.mxu1  ;;  %v3816_v2 = vmul.f32 %v10365_v25, %v10365_v25 }
 0x363   : > { %12783 = vst [vmem:[#allocation115_spill] sm:$0xff] %v10318_v63 }
 0x364   : > { %v10329_v20 = vpop.f32.mrf.mxu1  ;;  %3830 = vadd.xlane.f32.xlu1 %v3812_v17  ;;  %v3787_v17 = vmul.f32 0.0078125, %v3767_v57  ;;  %v12792_v57 = vmax.f32 %v10002_v35, 0.0 }
 0x365   : > { %12785 = vst [vmem:[#allocation131_spill] sm:$0xff] %v10329_v20  ;;  %3632 = vadd.xlane.f32.xlu0 %v3615_v8 }
 0x366   : > { %v10332_v48 = vpop.f32.mrf.mxu1  ;;  %v10358_v16 = vsub.f32 %v12792_v57, %v3787_v17  ;;  %v3777_v17 = vpop.xlane.xlu0 %3776  ;;  %v3595_v57 = vmul.f32 0.0078125, %v10240_v59 }
 0x367   : > { %12786 = vst [vmem:[#allocation120_spill] sm:$0xff] %v10332_v48  ;;  %v3792_v40 = vmul.f32 0.0078125, %v3777_v17 }
 0x368   : > { %v3442_v8 = vpop.f32.mrf.mxu1  ;;  %3638 = vadd.xlane.f32.xlu1 %v3618_v42  ;;  %v3617_v42 = vmul.f32 %v10342_v14, %v10342_v14  ;;  %v3813_v11 = vmul.f32 %v10358_v16, %v10358_v16 }
 0x369   : > { %v10347_v48 = vadd.f32 %v3442_v8, %v3300_v6  ;;  %3828 = vadd.xlane.f32.xlu0 %v3811_v61  ;;  %v3771_v6 = vpop.xlane.xlu1 %3770  ;;  %v12795_v61 = vmax.f32 %v12794_v36, 0.0  ;;  %v12799_v36 = vld [vmem:[#allocation77_spill] sm:$0xff] }
 0x36a   : > { %v3789_v8 = vmul.f32 0.0078125, %v3771_v6 }
 0x36b   : > { %12790 = vst [vmem:[#allocation116_spill] sm:$0xff] %v10347_v48  ;;  %v10371_v35 = vsub.f32 %v12795_v61, %v3593_v29  ;;  %v12797_v29 = vmax.f32 %v10022_v44, 0.0  ;;  %v12800_v61 = vmax.f32 %v12799_v36, 0.0 }
 0x36c   : > { %3834 = vadd.xlane.f32.xlu1 %v3814_v34  ;;  %v10377_v34 = vsub.f32 %v12796_v30, %v3596_v19  ;;  %v10390_v19 = vsub.f32 %v12798_v24, %v3792_v40  ;;  %v12802_v30 = vld [vmem:[#allocation36_spill] sm:$0xff]  ;;  %v3597_v24 = vmul.f32 0.0078125, %v10246_v55 }
 0x36d   : > { %3636 = vadd.xlane.f32.xlu0 %v3617_v42  ;;  %v10384_v42 = vsub.f32 %v12797_v29, %v3789_v8  ;;  %v3619_v6 = vmul.f32 %v10371_v35, %v10371_v35  ;;  %v3775_v31 = vpop.xlane.xlu1 %3774  ;;  %v10396_v59 = vsub.f32 %v12800_v61, %v3595_v57  ;;  %v12801_v8 = vld [vmem:[#allocation22_spill] sm:$0xff] }
 0x36e   : > { %v3791_v44 = vmul.f32 0.0078125, %v3775_v31  ;;  %v3818_v40 = vmul.f32 %v10390_v19, %v10390_v19 }
 0x36f   : > { %v3815_v17 = vmul.f32 %v10384_v42, %v10384_v42  ;;  %v3621_v57 = vmul.f32 %v10396_v59, %v10396_v59 }
 0x370   : > { %3642 = vadd.xlane.f32.xlu1 %v3620_v0  ;;  %v3622_v0 = vmul.f32 %v10377_v34, %v10377_v34 }
 0x371   : > { %3832 = vadd.xlane.f32.xlu0 %v3813_v11  ;;  %v2660_v11 = vadd.f32 %v12801_v8, %v9701_v56  ;;  %v3780_v61 = vpop.xlane.xlu1 %3779 }
 0x373   : > { %v10403_v46 = vadd.f32 %v12802_v30, %v2660_v11  ;;  %v12806_v11 = vld [vmem:[#allocation41_spill] sm:$0xff]  ;;  %v12807_v30 = vmax.f32 %v9914_v5, 0.0 }
 0x374   : > { %3838 = vadd.xlane.f32.xlu1 %v3816_v2  ;;  %v12803_v2 = vmax.f32 %v10043_v50, 0.0  ;;  %v2684_v55 = vadd.f32 %v12806_v11, %v9757_v52 }
 0x375   : > { %3640 = vadd.xlane.f32.xlu0 %v3619_v6  ;;  %v12804_v6 = vld [vmem:[#allocation46_spill] sm:$0xff] }
 0x376   : > { %v10409_v29 = vsub.f32 %v12803_v2, %v3791_v44  ;;  %v2672_v31 = vadd.f32 %v12804_v6, %v9720_v1  ;;  %v3793_v2 = vmul.f32 0.0078125, %v3780_v61  ;;  %v12808_v6 = vld [vmem:[#allocation14_spill] sm:$0xff]  ;;  %v12810_v61 = vld [vmem:[#allocation65_spill] sm:$0xff] }
 0x378   : > { %3646 = vadd.xlane.f32.xlu1 %v3622_v0  ;;  %v12805_v0 = vld [vmem:[#allocation40_spill] sm:$0xff]  ;;  %v10420_v50 = vadd.f32 %v9975_v47, %v2672_v31  ;;  %v3817_v8 = vmul.f32 %v10409_v29, %v10409_v29  ;;  %v2696_v31 = vadd.f32 %v12808_v6, %v9788_v13 }
 0x379   : > { %3836 = vadd.xlane.f32.xlu0 %v3815_v17  ;;  %v2666_v36 = vadd.f32 %v12805_v0, %v9699_v28  ;;  %v12151_v17 = vmax.f32 %v10403_v46, 0.0  ;;  %v12809_v0 = vmax.f32 %v10048_v22, 0.0 }
 0x37a   : > { %v12148_v47 = vmax.f32 %v10420_v50, 0.0 }
 0x37b   : > { %v10423_v44 = vadd.f32 %v9951_v21, %v2666_v36  ;;  %v10437_v21 = vadd.f32 %v10018_v3, %v2684_v55  ;;  %v10444_v5 = vsub.f32 %v12809_v0, %v3793_v2  ;;  %v10454_v36 = vadd.f32 %v10059_v45, %v2696_v31  ;;  %v12811_v55 = vld [vmem:[#allocation47_spill] sm:$0xff] }
 0x37c   : > { %3842 = vadd.xlane.f32.xlu1 %v3818_v40  ;;  %v10431_v40 = vsub.f32 %v12807_v30, %v3597_v24  ;;  %v2678_v30 = vadd.f32 %v12811_v55, %v9767_v32  ;;  %v2720_v31 = vadd.f32 %v10028_v38, %v9857_v18  ;;  %v12815_v38 = vld [vmem:[#allocation34_spill] sm:$0xff] }
 0x37d   : > { %3644 = vadd.xlane.f32.xlu0 %v3621_v57  ;;  %v12147_v57 = vmax.f32 %v10423_v44, 0.0  ;;  %v12145_v3 = vmax.f32 %v10437_v21, 0.0  ;;  %v3819_v11 = vmul.f32 %v10444_v5, %v10444_v5  ;;  %v12146_v2 = vmax.f32 %v10454_v36, 0.0 }
 0x37e   : > { %v3623_v24 = vmul.f32 %v10431_v40, %v10431_v40  ;;  %v10470_v6 = vadd.f32 %v9998_v43, %v2678_v30 }
 0x37f   : > { %v3844_v0 = vsel %vm1403_vm0, %v3819_v11, 0.0  ;;  %v12817_v11 = vld [vmem:[#allocation82_spill] sm:$0xff] }
 0x380   : > { %3939 = vadd.xlane.f32.xlu1 %v12151_v17  ;;  %v3648_v22 = vsel %vm1403_vm0, %v3623_v24, 0.0  ;;  %v12812_v24 = vld [vmem:[#allocation19_spill] sm:$0xff]  ;;  %v12149_v30 = vmax.f32 %v10470_v6, 0.0 }
 0x381   : > { %3840 = vadd.xlane.f32.xlu0 %v3817_v8  ;;  %v2708_v8 = vadd.f32 %v12810_v61, %v9826_v10  ;;  %v2690_v61 = vadd.f32 %v12812_v24, %v9815_v58  ;;  %v12818_v24 = vld [vmem:[#allocation78_spill] sm:$0xff] }
 0x383   : > { %v10467_v45 = vadd.f32 %v10081_v49, %v2708_v8  ;;  %v12814_v8 = vld [vmem:[#allocation85_spill] sm:$0xff] }
 0x384   : > { %3943 = vadd.xlane.f32.xlu1 %v12148_v47  ;;  %v10483_v43 = vadd.f32 %v12814_v8, %v2720_v31  ;;  %v12819_v8 = vld [vmem:[#allocation66_spill] sm:$0xff] }
 0x385   : > { %3941 = vadd.xlane.f32.xlu0 %v12147_v57  ;;  %v12150_v49 = vmax.f32 %v10467_v45, 0.0 }
 0x386   : > { %v12152_v31 = vmax.f32 %v10483_v43, 0.0 }
 0x388   : > { %3947 = vadd.xlane.f32.xlu1 %v12145_v3  ;;  %v10487_v3 = vadd.f32 %v12815_v38, %v2690_v61 }
 0x389   : > { %3649 = vadd.xlane.f32.xlu0 %v3648_v22  ;;  %v12813_v22 = vld [vmem:[#allocation72_spill] sm:$0xff] }
 0x38a   : > { %v2732_v55 = vadd.f32 %v12813_v22, %v9893_v37  ;;  %v2702_v22 = vadd.f32 %v12818_v24, %v12817_v11 }
 0x38c   : > { %3951 = vadd.xlane.f32.xlu1 %v12146_v2  ;;  %v12816_v2 = vld [vmem:[#allocation50_spill] sm:$0xff]  ;;  %v10501_v47 = vadd.f32 %v12819_v8, %v2702_v22  ;;  %v12823_v8 = vld [vmem:[#allocation71_spill] sm:$0xff] }
 0x38d   : > { %3845 = vadd.xlane.f32.xlu0 %v3844_v0  ;;  %v10490_v57 = vadd.f32 %v12816_v2, %v2732_v55  ;;  %v12153_v0 = vmax.f32 %v10487_v3, 0.0  ;;  %v12820_v2 = vld [vmem:[#allocation42_spill] sm:$0xff]  ;;  %v2726_v17 = vadd.f32 %v12823_v8, %v9880_v41 }
 0x38e   : > { %v12821_v55 = vld [vmem:[#allocation74_spill] sm:$0xff]  ;;  %v12156_v24 = vmax.f32 %v10501_v47, 0.0 }
 0x38f   : > { %v12154_v61 = vmax.f32 %v10490_v57, 0.0  ;;  %v2714_v38 = vadd.f32 %v12821_v55, %v12820_v2 }
 0x390   : > { %3955 = vadd.xlane.f32.xlu1 %v12150_v49 }
 0x391   : > { %3945 = vadd.xlane.f32.xlu0 %v12149_v30  ;;  %v12822_v30 = vld [vmem:[#allocation79_spill] sm:$0xff]  ;;  %v3963_v22 = vsel %vm1403_vm0, %v12154_v61, 0.0 }
 0x392   : > { %v10512_v49 = vadd.f32 %v12822_v30, %v2714_v38 }
 0x394   : > { %3959 = vadd.xlane.f32.xlu1 %v12152_v31  ;;  %v12157_v55 = vmax.f32 %v10512_v49, 0.0  ;;  %v12824_v31 = vld [vmem:[#allocation80_spill] sm:$0xff] }
 0x395   : > { %3949 = vadd.xlane.f32.xlu0 %v12153_v0  ;;  %v10523_v0 = vadd.f32 %v12824_v31, %v2726_v17  ;;  %v10533_v17 = vld [vmem:[%s11894_s3] ss:$0 sm:$0xff]  ;;  %v12825_v31 = vld [vmem:[#allocation53_spill] sm:$0xff] }
 0x397   : > { %v12158_v30 = vmax.f32 %v10523_v0, 0.0 }
 0x398   : > { %3964 = vadd.xlane.f32.xlu1 %v3963_v22 }
 0x399   : > { %3953 = vadd.xlane.f32.xlu0 %v12156_v24 }
 0x39d   : > { %3957 = vadd.xlane.f32.xlu0 %v12157_v55 }
 0x3a1   : > { %3961 = vadd.xlane.f32.xlu0 %v12158_v30  ;;  %v10539_v30 = vld [vmem:[%s11895_s4] ss:$0 sm:$0xff] }
 0x3ae   : > { %v3625_v38 = vpop.xlane.xlu0 %3624 }
 0x3af   : > { %v3651_v22 = vmul.f32 0.0078125, %v3625_v38 }
 0x3b0   : > { %v3627_v8 = vpop.xlane.xlu1 %3626 }
 0x3b1   : > { %v3664_v61 = vadd.f32 1e-05, %v3651_v22  ;;  %v3652_v48 = vmul.f32 0.0078125, %v3627_v8  ;;  %v12826_v22 = vld [vmem:[#allocation24_spill] sm:$0xff] }
 0x3b3   : > { %5581 = vrsqrt.f32 %v3664_v61  ;;  %v3665_v24 = vadd.f32 1e-05, %v3652_v48 }
 0x3b5   : > { %5583 = vrsqrt.f32 %v3665_v24 }
 0x3c0   : > { %v5582_v7 = vpop.eup %5581 }
 0x3c1   : > { %v3690_v55 = vmul.f32 %v5582_v7, %v12825_v31 }
 0x3c2   : > { %v5584_v60 = vpop.eup %5583 }
 0x3c3   : > { %v3709_v38 = vmul.f32 %v10533_v17, %v3690_v55  ;;  %v3691_v61 = vmul.f32 %v5584_v60, %v12826_v22 }
 0x3c5   : > { %v3728_v7 = vadd.f32 %v10539_v30, %v3709_v38  ;;  %v3710_v48 = vmul.f32 %v10533_v17, %v3691_v61 }
 0x3c7   : > { %3741 = vst [vmem:[%s10548_s10] sm:$0xff] %v3728_v7  ;;  %v3729_v24 = vadd.f32 %v10539_v30, %v3710_v48 }
 0x3c9   : > { %3742 = vst [vmem:[%s10548_s10 + $0x8] sm:$0xff] %v3729_v24 }
 0x3dd   : > { %v3823_v8 = vpop.xlane.xlu1 %3822 }
 0x3de   : > { %v3848_v55 = vmul.f32 0.0078125, %v3823_v8 }
 0x3e0   : > { %v3861_v31 = vadd.f32 1e-05, %v3848_v55 }
 0x3e1   : > { %v3631_v60 = vpop.xlane.xlu1 %3630 }
 0x3e2   : > { %5585 = vrsqrt.f32 %v3861_v31  ;;  %v3654_v22 = vmul.f32 0.0078125, %v3631_v60  ;;  %v3821_v63 = vpop.xlane.xlu0 %3820 }
 0x3e3   : > { %v3847_v20 = vmul.f32 0.0078125, %v3821_v63 }
 0x3e4   : > { %v3667_v41 = vadd.f32 1e-05, %v3654_v22 }
 0x3e5   : > { %v3860_v2 = vadd.f32 1e-05, %v3847_v20  ;;  %v3827_v11 = vpop.xlane.xlu1 %3826 }
 0x3e6   : > { %5587 = vrsqrt.f32 %v3667_v41  ;;  %v3850_v18 = vmul.f32 0.0078125, %v3827_v11  ;;  %v3629_v38 = vpop.xlane.xlu0 %3628 }
 0x3e7   : > { %5589 = vrsqrt.f32 %v3860_v2  ;;  %v3653_v61 = vmul.f32 0.0078125, %v3629_v38 }
 0x3e8   : > { %v3863_v7 = vadd.f32 1e-05, %v3850_v18 }
 0x3e9   : > { %v3666_v58 = vadd.f32 1e-05, %v3653_v61  ;;  %v3635_v48 = vpop.xlane.xlu1 %3634 }
 0x3ea   : > { %5591 = vrsqrt.f32 %v3863_v7  ;;  %v3656_v24 = vmul.f32 0.0078125, %v3635_v48  ;;  %v3825_v8 = vpop.xlane.xlu0 %3824 }
 0x3eb   : > { %5593 = vrsqrt.f32 %v3666_v58  ;;  %v3849_v55 = vmul.f32 0.0078125, %v3825_v8 }
 0x3ec   : > { %v3669_v31 = vadd.f32 1e-05, %v3656_v24 }
 0x3ed   : > { %v3862_v60 = vadd.f32 1e-05, %v3849_v55  ;;  %v3831_v10 = vpop.xlane.xlu1 %3830 }
 0x3ee   : > { %5595 = vrsqrt.f32 %v3669_v31  ;;  %v3852_v63 = vmul.f32 0.0078125, %v3831_v10  ;;  %v3633_v20 = vpop.xlane.xlu0 %3632 }
 0x3ef   : > { %v5586_v22 = vpop.eup %5585  ;;  %5597 = vrsqrt.f32 %v3862_v60  ;;  %v3655_v41 = vmul.f32 0.0078125, %v3633_v20 }
 0x3f0   : > { %v3887_v11 = vmul.f32 %v5586_v22, %v10252_v51  ;;  %v3865_v2 = vadd.f32 1e-05, %v3852_v63 }
 0x3f1   : > { %v3668_v18 = vadd.f32 1e-05, %v3655_v41  ;;  %v3639_v38 = vpop.xlane.xlu1 %3638 }
 0x3f2   : > { %v3900_v61 = vmul.f32 %v10533_v17, %v3887_v11  ;;  %5599 = vrsqrt.f32 %v3865_v2  ;;  %v3658_v58 = vmul.f32 0.0078125, %v3639_v38  ;;  %v3829_v7 = vpop.xlane.xlu0 %3828 }
 0x3f3   : > { %v5588_v48 = vpop.eup %5587  ;;  %5601 = vrsqrt.f32 %v3668_v18  ;;  %v3851_v24 = vmul.f32 0.0078125, %v3829_v7 }
 0x3f4   : > { %v5590_v8 = vpop.eup %5589  ;;  %v3913_v10 = vadd.f32 %v10539_v30, %v3900_v61  ;;  %v3693_v55 = vmul.f32 %v5588_v48, %v10256_v26  ;;  %v3671_v31 = vadd.f32 1e-05, %v3658_v58 }
 0x3f5   : > { %v3886_v51 = vmul.f32 %v5590_v8, %v10266_v53  ;;  %v3864_v60 = vadd.f32 1e-05, %v3851_v24  ;;  %v3835_v63 = vpop.xlane.xlu1 %3834 }
 0x3f6   : > { %5462 = vst [vmem:[%s10548_s10 + $0x70] sm:$0xff] %v3913_v10  ;;  %v3712_v20 = vmul.f32 %v10533_v17, %v3693_v55  ;;  %5603 = vrsqrt.f32 %v3671_v31  ;;  %v3854_v22 = vmul.f32 0.0078125, %v3835_v63  ;;  %v3637_v41 = vpop.xlane.xlu0 %3636 }
 0x3f7   : > { %v5592_v11 = vpop.eup %5591  ;;  %v3899_v2 = vmul.f32 %v10533_v17, %v3886_v51  ;;  %5605 = vrsqrt.f32 %v3864_v60  ;;  %v3657_v18 = vmul.f32 0.0078125, %v3637_v41 }
 0x3f8   : > { %v5594_v38 = vpop.eup %5593  ;;  %v3731_v26 = vadd.f32 %v10539_v30, %v3712_v20  ;;  %v3889_v53 = vmul.f32 %v5592_v11, %v10272_v23  ;;  %v3867_v61 = vadd.f32 1e-05, %v3854_v22 }
 0x3f9   : > { %v3912_v58 = vadd.f32 %v10539_v30, %v3899_v2  ;;  %v3692_v7 = vmul.f32 %v5594_v38, %v10278_v27  ;;  %v3670_v48 = vadd.f32 1e-05, %v3657_v18  ;;  %v3643_v24 = vpop.xlane.xlu1 %3642 }
 0x3fa   : > { %3744 = vst [vmem:[%s10548_s10 + $0x18] sm:$0xff] %v3731_v26  ;;  %v3902_v8 = vmul.f32 %v10533_v17, %v3889_v53  ;;  %5607 = vrsqrt.f32 %v3867_v61  ;;  %v3660_v10 = vmul.f32 0.0078125, %v3643_v24  ;;  %v3833_v55 = vpop.xlane.xlu0 %3832 }
 0x3fb   : > { %v5596_v31 = vpop.eup %5595  ;;  %5461 = vst [vmem:[%s10548_s10 + $0x68] sm:$0xff] %v3912_v58  ;;  %v3711_v51 = vmul.f32 %v10533_v17, %v3692_v7  ;;  %5609 = vrsqrt.f32 %v3670_v48  ;;  %v3853_v23 = vmul.f32 0.0078125, %v3833_v55 }
 0x3fc   : > { %v5598_v60 = vpop.eup %5597  ;;  %v3915_v63 = vadd.f32 %v10539_v30, %v3902_v8  ;;  %v3695_v27 = vmul.f32 %v5596_v31, %v10286_v33  ;;  %v3673_v20 = vadd.f32 1e-05, %v3660_v10 }
 0x3fd   : > { %v3730_v22 = vadd.f32 %v10539_v30, %v3711_v51  ;;  %v3888_v41 = vmul.f32 %v5598_v60, %v10294_v12  ;;  %v3866_v11 = vadd.f32 1e-05, %v3853_v23  ;;  %v3839_v2 = vpop.xlane.xlu1 %3838 }
 0x3fe   : > { %5464 = vst [vmem:[%s10548_s10 + $0x80] sm:$0xff] %v3915_v63  ;;  %v3714_v18 = vmul.f32 %v10533_v17, %v3695_v27  ;;  %5611 = vrsqrt.f32 %v3673_v20  ;;  %v3856_v38 = vmul.f32 0.0078125, %v3839_v2  ;;  %v3641_v26 = vpop.xlane.xlu0 %3640 }
 0x3ff   : > { %v5600_v53 = vpop.eup %5599  ;;  %3743 = vst [vmem:[%s10548_s10 + $0x10] sm:$0xff] %v3730_v22  ;;  %v3901_v61 = vmul.f32 %v10533_v17, %v3888_v41  ;;  %5613 = vrsqrt.f32 %v3866_v11  ;;  %v3659_v33 = vmul.f32 0.0078125, %v3641_v26 }
 0x400   : > { %v5602_v58 = vpop.eup %5601  ;;  %v3733_v7 = vadd.f32 %v10539_v30, %v3714_v18  ;;  %v3891_v12 = vmul.f32 %v5600_v53, %v10304_v62  ;;  %v3869_v48 = vadd.f32 1e-05, %v3856_v38 }
 0x401   : > { %v3914_v24 = vadd.f32 %v10539_v30, %v3901_v61  ;;  %v3694_v8 = vmul.f32 %v5602_v58, %v10310_v39  ;;  %v3672_v10 = vadd.f32 1e-05, %v3659_v33  ;;  %v3647_v55 = vpop.xlane.xlu1 %3646 }
 0x402   : > { %3746 = vst [vmem:[%s10548_s10 + $0x28] sm:$0xff] %v3733_v7  ;;  %v3904_v31 = vmul.f32 %v10533_v17, %v3891_v12  ;;  %5615 = vrsqrt.f32 %v3869_v48  ;;  %v3662_v51 = vmul.f32 0.0078125, %v3647_v55  ;;  %v3837_v23 = vpop.xlane.xlu0 %3836 }
 0x403   : > { %v5604_v60 = vpop.eup %5603  ;;  %5463 = vst [vmem:[%s10548_s10 + $0x78] sm:$0xff] %v3914_v24  ;;  %v3713_v63 = vmul.f32 %v10533_v17, %v3694_v8  ;;  %5617 = vrsqrt.f32 %v3672_v10  ;;  %v3855_v62 = vmul.f32 0.0078125, %v3837_v23 }
 0x404   : > { %v5606_v27 = vpop.eup %5605  ;;  %v3917_v20 = vadd.f32 %v10539_v30, %v3904_v31  ;;  %v3697_v39 = vmul.f32 %v5604_v60, %v10316_v15  ;;  %v3675_v22 = vadd.f32 1e-05, %v3662_v51 }
 0x405   : > { %v3732_v41 = vadd.f32 %v10539_v30, %v3713_v63  ;;  %v3890_v11 = vmul.f32 %v5606_v27, %v10325_v4  ;;  %v3868_v2 = vadd.f32 1e-05, %v3855_v62  ;;  %v3843_v18 = vpop.xlane.xlu1 %3842  ;;  %v12827_v27 = vmax.f32 %v10403_v46, 0.0 }
 0x406   : > { %5466 = vst [vmem:[%s10548_s10 + $0x90] sm:$0xff] %v3917_v20  ;;  %v3716_v38 = vmul.f32 %v10533_v17, %v3697_v39  ;;  %5619 = vrsqrt.f32 %v3675_v22  ;;  %v3858_v26 = vmul.f32 0.0078125, %v3843_v18  ;;  %v3645_v53 = vpop.xlane.xlu0 %3644 }
 0x407   : > { %v5608_v61 = vpop.eup %5607  ;;  %3745 = vst [vmem:[%s10548_s10 + $0x20] sm:$0xff] %v3732_v41  ;;  %v3903_v33 = vmul.f32 %v10533_v17, %v3890_v11  ;;  %5621 = vrsqrt.f32 %v3868_v2  ;;  %v3661_v15 = vmul.f32 0.0078125, %v3645_v53 }
 0x408   : > { %v5610_v58 = vpop.eup %5609  ;;  %v3735_v7 = vadd.f32 %v10539_v30, %v3716_v38  ;;  %v3893_v4 = vmul.f32 %v5608_v61, %v10336_v54  ;;  %v3871_v12 = vadd.f32 1e-05, %v3858_v26 }
 0x409   : > { %v3916_v48 = vadd.f32 %v10539_v30, %v3903_v33  ;;  %v3696_v24 = vmul.f32 %v5610_v58, %v10342_v14  ;;  %v3674_v8 = vadd.f32 1e-05, %v3661_v15  ;;  %v3940_v10 = vpop.xlane.xlu1 %3939  ;;  %v12828_v15 = vmax.f32 %v10420_v50, 0.0 }
 0x40a   : > { %3748 = vst [vmem:[%s10548_s10 + $0x38] sm:$0xff] %v3735_v7  ;;  %v3906_v55 = vmul.f32 %v10533_v17, %v3893_v4  ;;  %5623 = vrsqrt.f32 %v3871_v12  ;;  %v3966_v31 = vmul.f32 0.0078125, %v3940_v10  ;;  %v3841_v51 = vpop.xlane.xlu0 %3840  ;;  %v12829_v12 = vmax.f32 %v10423_v44, 0.0 }
 0x40b   : > { %v5612_v23 = vpop.eup %5611  ;;  %5465 = vst [vmem:[%s10548_s10 + $0x88] sm:$0xff] %v3916_v48  ;;  %v3715_v60 = vmul.f32 %v10533_v17, %v3696_v24  ;;  %5625 = vrsqrt.f32 %v3674_v8  ;;  %v3857_v54 = vmul.f32 0.0078125, %v3841_v51 }
 0x40c   : > { %v5614_v63 = vpop.eup %5613  ;;  %v3919_v62 = vadd.f32 %v10539_v30, %v3906_v55  ;;  %v3699_v14 = vmul.f32 %v5612_v23, %v10351_v9  ;;  %v10607_v20 = vsub.f32 %v12827_v27, %v3966_v31 }
 0x40d   : > { %v3734_v39 = vadd.f32 %v10539_v30, %v3715_v60  ;;  %v3892_v22 = vmul.f32 %v5614_v63, %v10358_v16  ;;  %v3870_v41 = vadd.f32 1e-05, %v3857_v54  ;;  %v3944_v11 = vpop.xlane.xlu1 %3943  ;;  %v12830_v54 = vmax.f32 %v10437_v21, 0.0 }
 0x40e   : > { %5468 = vst [vmem:[%s10548_s10 + $0xa0] sm:$0xff] %v3919_v62  ;;  %v3718_v2 = vmul.f32 %v10533_v17, %v3699_v14  ;;  %v3968_v18 = vmul.f32 0.0078125, %v3944_v11  ;;  %v3942_v38 = vpop.xlane.xlu0 %3941  ;;  %v3992_v26 = vmul.f32 %v10607_v20, %v10607_v20 }
 0x40f   : > { %v5616_v9 = vpop.eup %5615  ;;  %3747 = vst [vmem:[%s10548_s10 + $0x30] sm:$0xff] %v3734_v39  ;;  %v3905_v46 = vmul.f32 %v10533_v17, %v3892_v22  ;;  %5627 = vrsqrt.f32 %v3870_v41  ;;  %v3967_v53 = vmul.f32 0.0078125, %v3942_v38 }
 0x410   : > { %v5618_v61 = vpop.eup %5617  ;;  %v3737_v16 = vadd.f32 %v10539_v30, %v3718_v2  ;;  %v3895_v33 = vmul.f32 %v5616_v9, %v10365_v25  ;;  %v10621_v58 = vsub.f32 %v12828_v15, %v3968_v18  ;;  %4005 = vadd.xlane.f32.xlu0 %v3992_v26  ;;  %v12831_v9 = vmax.f32 %v10454_v36, 0.0 }
 0x411   : > { %v3918_v7 = vadd.f32 %v10539_v30, %v3905_v46  ;;  %v3698_v4 = vmul.f32 %v5618_v61, %v10371_v35  ;;  %v10627_v48 = vsub.f32 %v12829_v12, %v3967_v53  ;;  %v3948_v24 = vpop.xlane.xlu1 %3947 }
 0x412   : > { %3750 = vst [vmem:[%s10548_s10 + $0x48] sm:$0xff] %v3737_v16  ;;  %v3908_v8 = vmul.f32 %v10533_v17, %v3895_v33  ;;  %v3970_v10 = vmul.f32 0.0078125, %v3948_v24  ;;  %v3650_v55 = vpop.xlane.xlu0 %3649  ;;  %v3994_v25 = vmul.f32 %v10621_v58, %v10621_v58 }
 0x413   : > { %v5620_v50 = vpop.eup %5619  ;;  %5467 = vst [vmem:[%s10548_s10 + $0x98] sm:$0xff] %v3918_v7  ;;  %v3717_v31 = vmul.f32 %v10533_v17, %v3698_v4  ;;  %v3663_v51 = vmul.f32 0.0078125, %v3650_v55  ;;  %v3993_v35 = vmul.f32 %v10627_v48, %v10627_v48 }
 0x414   : > { %v5622_v44 = vpop.eup %5621  ;;  %v3921_v23 = vadd.f32 %v10539_v30, %v3908_v8  ;;  %v3701_v60 = vmul.f32 %v5620_v50, %v10377_v34  ;;  %v10641_v63 = vsub.f32 %v12830_v54, %v3970_v10  ;;  %4009 = vadd.xlane.f32.xlu0 %v3994_v25  ;;  %v12832_v8 = vmax.f32 %v10467_v45, 0.0 }
 0x415   : > { %v3736_v62 = vadd.f32 %v10539_v30, %v3717_v31  ;;  %v3894_v14 = vmul.f32 %v5622_v44, %v10384_v42  ;;  %v3676_v27 = vadd.f32 1e-05, %v3663_v51  ;;  %v3952_v39 = vpop.xlane.xlu1 %3951  ;;  %4007 = vadd.xlane.f32.xlu1 %v3993_v35  ;;  %v12833_v50 = vmax.f32 %v10470_v6, 0.0 }
 0x416   : > { %5470 = vst [vmem:[%s10548_s10 + $0xb0] sm:$0xff] %v3921_v23  ;;  %v3720_v22 = vmul.f32 %v10533_v17, %v3701_v60  ;;  %v3972_v41 = vmul.f32 0.0078125, %v3952_v39  ;;  %v3846_v11 = vpop.xlane.xlu0 %3845  ;;  %v3996_v34 = vmul.f32 %v10641_v63, %v10641_v63 }
 0x417   : > { %v5624_v21 = vpop.eup %5623  ;;  %3749 = vst [vmem:[%s10548_s10 + $0x40] sm:$0xff] %v3736_v62  ;;  %v3907_v2 = vmul.f32 %v10533_v17, %v3894_v14  ;;  %5629 = vrsqrt.f32 %v3676_v27  ;;  %v3859_v18 = vmul.f32 0.0078125, %v3846_v11  ;;  %v12835_v14 = vmax.f32 %v10487_v3, 0.0 }
 0x418   : > { %v5626_v42 = vpop.eup %5625  ;;  %v3739_v38 = vadd.f32 %v10539_v30, %v3720_v22  ;;  %v3897_v26 = vmul.f32 %v5624_v21, %v10390_v19  ;;  %v10655_v46 = vsub.f32 %v12831_v9, %v3972_v41  ;;  %4013 = vadd.xlane.f32.xlu0 %v3996_v34 }
 0x419   : > { %v3920_v53 = vadd.f32 %v10539_v30, %v3907_v2  ;;  %v3700_v61 = vmul.f32 %v5626_v42, %v10396_v59  ;;  %v3872_v16 = vadd.f32 1e-05, %v3859_v18  ;;  %v3956_v33 = vpop.xlane.xlu1 %3955  ;;  %v12836_v2 = vmax.f32 %v10490_v57, 0.0 }
 0x41a   : > { %3752 = vst [vmem:[%s10548_s10 + $0x58] sm:$0xff] %v3739_v38  ;;  %v3910_v15 = vmul.f32 %v10533_v17, %v3897_v26  ;;  %v3974_v7 = vmul.f32 0.0078125, %v3956_v33  ;;  %v3946_v4 = vpop.xlane.xlu0 %3945  ;;  %v3998_v19 = vmul.f32 %v10655_v46, %v10655_v46  ;;  %v12837_v42 = vmax.f32 %v10501_v47, 0.0 }
 0x41b   : > { %5469 = vst [vmem:[%s10548_s10 + $0xa8] sm:$0xff] %v3920_v53  ;;  %v3719_v36 = vmul.f32 %v10533_v17, %v3700_v61  ;;  %5631 = vrsqrt.f32 %v3872_v16  ;;  %v3969_v12 = vmul.f32 0.0078125, %v3946_v4 }
 0x41c   : > { %v5628_v24 = vpop.eup %5627  ;;  %v3923_v59 = vadd.f32 %v10539_v30, %v3910_v15  ;;  %v10668_v10 = vsub.f32 %v12832_v8, %v3974_v7  ;;  %4017 = vadd.xlane.f32.xlu0 %v3998_v19  ;;  %v12838_v15 = vmax.f32 %v10512_v49, 0.0  ;;  %v12839_v19 = vld [vmem:[#allocation10_spill] sm:$0xff]  ;;  %v12841_v49 = vld [vmem:[#allocation15_spill] sm:$0xff] }
 0x41d   : > { %v3738_v55 = vadd.f32 %v10539_v30, %v3719_v36  ;;  %v3896_v25 = vmul.f32 %v5628_v24, %v10409_v29  ;;  %v10674_v31 = vsub.f32 %v12833_v50, %v3969_v12  ;;  %v3960_v51 = vpop.xlane.xlu1 %3959  ;;  %v12834_v29 = vmax.f32 %v10483_v43, 0.0 }
 0x41e   : > { %5472 = vst [vmem:[%s10548_s10 + $0xc0] sm:$0xff] %v3923_v59  ;;  %v3976_v35 = vmul.f32 0.0078125, %v3960_v51  ;;  %v3950_v44 = vpop.xlane.xlu0 %3949  ;;  %v4000_v23 = vmul.f32 %v10668_v10, %v10668_v10  ;;  %v3462_v36 = vmax.f32 %v12839_v19, 0.0  ;;  %v12842_v51 = vld [vmem:[#allocation38_spill] sm:$0xff] }
 0x41f   : > { %3751 = vst [vmem:[%s10548_s10 + $0x50] sm:$0xff] %v3738_v55  ;;  %v3909_v45 = vmul.f32 %v10533_v17, %v3896_v25  ;;  %v3971_v60 = vmul.f32 0.0078125, %v3950_v44  ;;  %v3995_v54 = vmul.f32 %v10674_v31, %v10674_v31  ;;  %v3478_v25 = vmax.f32 %v12841_v49, 0.0  ;;  %v12843_v44 = vld [vmem:[#allocation11_spill] sm:$0xff] }
 0x420   : > { %v10685_v6 = vsub.f32 %v12834_v29, %v3976_v35  ;;  %4021 = vadd.xlane.f32.xlu0 %v4000_v23  ;;  %v3454_v35 = vmax.f32 %v12842_v51, 0.0  ;;  %v12844_v23 = vld [vmem:[#allocation39_spill] sm:$0xff] }
 0x421   : > { %v3922_v62 = vadd.f32 %v10539_v30, %v3909_v45  ;;  %v10690_v27 = vsub.f32 %v12835_v14, %v3971_v60  ;;  %v3965_v39 = vpop.xlane.xlu1 %3964  ;;  %4011 = vadd.xlane.f32.xlu1 %v3995_v54  ;;  %v3470_v45 = vmax.f32 %v12844_v23, 0.0  ;;  %v12845_v60 = vld [vmem:[#allocation84_spill] sm:$0xff]  ;;  %v12846_v29 = vld [vmem:[#allocation75_spill] sm:$0xff] }
 0x422   : > { %v3978_v22 = vmul.f32 0.0078125, %v3965_v39  ;;  %v3954_v41 = vpop.xlane.xlu0 %3953  ;;  %v4002_v11 = vmul.f32 %v10685_v6, %v10685_v6  ;;  %v3510_v54 = vmax.f32 %v12845_v60, 0.0  ;;  %v12847_v14 = vld [vmem:[#allocation63_spill] sm:$0xff] }
 0x423   : > { %5471 = vst [vmem:[%s10548_s10 + $0xb8] sm:$0xff] %v3922_v62  ;;  %v3973_v34 = vmul.f32 0.0078125, %v3954_v41  ;;  %v3997_v43 = vmul.f32 %v10690_v27, %v10690_v27  ;;  %v3486_v62 = vmax.f32 %v12846_v29, 0.0  ;;  %v3526_v39 = vmax.f32 %v12847_v14, 0.0 }
 0x424   : > { %v5630_v21 = vpop.eup %5629  ;;  %v10699_v18 = vsub.f32 %v12836_v2, %v3978_v22  ;;  %4025 = vadd.xlane.f32.xlu0 %v4002_v11  ;;  %v12848_v22 = vld [vmem:[#allocation37_spill] sm:$0xff]  ;;  %v12849_v11 = vld [vmem:[#allocation88_spill] sm:$0xff] }
 0x425   : > { %v3702_v3 = vmul.f32 %v5630_v21, %v10431_v40  ;;  %v10704_v38 = vsub.f32 %v12837_v42, %v3973_v34  ;;  %4015 = vadd.xlane.f32.xlu1 %v3997_v43  ;;  %v3502_v41 = vmax.f32 %v12848_v22, 0.0  ;;  %v3542_v34 = vmax.f32 %v12849_v11, 0.0  ;;  %v12850_v43 = vld [vmem:[#allocation61_spill] sm:$0xff]  ;;  %v12851_v2 = vld [vmem:[#allocation68_spill] sm:$0xff]  ;;  %v12852_v42 = vld [vmem:[#allocation99_spill] sm:$0xff] }
 0x426   : > { %v3958_v26 = vpop.xlane.xlu0 %3957  ;;  %v4004_v9 = vmul.f32 %v10699_v18, %v10699_v18  ;;  %v2734_v21 = vadd.f32 %v12850_v43, %v9893_v37 }
 0x427   : > { %v3721_v53 = vmul.f32 %v10533_v17, %v3702_v3  ;;  %v3975_v61 = vmul.f32 0.0078125, %v3958_v26  ;;  %v3999_v57 = vmul.f32 %v10704_v38, %v10704_v38  ;;  %v3518_v3 = vmax.f32 %v12851_v2, 0.0  ;;  %v12858_v2 = vld [vmem:[#allocation114_spill] sm:$0xff] }
 0x428   : > { %v5632_v16 = vpop.eup %5631  ;;  %v4029_v33 = vsel %vm1403_vm0, %v4004_v9, 0.0  ;;  %v10764_v26 = vadd.f32 %v12852_v42, %v2734_v21  ;;  %v12853_v9 = vld [vmem:[#allocation76_spill] sm:$0xff] }
 0x429   : > { %v3740_v40 = vadd.f32 %v10539_v30, %v3721_v53  ;;  %v3898_v47 = vmul.f32 %v5632_v16, %v10444_v5  ;;  %v10716_v7 = vsub.f32 %v12838_v15, %v3975_v61  ;;  %4030 = vadd.xlane.f32.xlu0 %v4029_v33  ;;  %4019 = vadd.xlane.f32.xlu1 %v3999_v57  ;;  %v12840_v5 = vmax.f32 %v10523_v0, 0.0 }
 0x42a   : > { %v3962_v4 = vpop.xlane.xlu0 %3961  ;;  %v3494_v0 = vmax.f32 %v12843_v44, 0.0  ;;  %v3534_v53 = vmax.f32 %v12853_v9, 0.0  ;;  %v12167_v61 = vmax.f32 %v10764_v26, 0.0  ;;  %v12860_v9 = vmax.f32 %v10764_v26, 0.0 }
 0x42b   : > { %3753 = vst [vmem:[%s10548_s10 + $0x60] sm:$0x1f] %v3740_v40  ;;  %v3911_v12 = vmul.f32 %v10533_v17, %v3898_v47  ;;  %v3977_v24 = vmul.f32 0.0078125, %v3962_v4  ;;  %v4001_v59 = vmul.f32 %v10716_v7, %v10716_v7 }
 0x42c   : > { %v4148_v57 = vsel %vm1403_vm0, %v12167_v61, 0.0 }
 0x42d   : > { %v3924_v8 = vadd.f32 %v10539_v30, %v3911_v12  ;;  %v10726_v55 = vsub.f32 %v12840_v5, %v3977_v24  ;;  %4126 = vadd.xlane.f32.xlu0 %v3462_v36  ;;  %4023 = vadd.xlane.f32.xlu1 %v4001_v59 }
 0x42f   : > { %5473 = vst [vmem:[%s10548_s10 + $0xc8] sm:$0x1f] %v3924_v8  ;;  %v4003_v50 = vmul.f32 %v10726_v55, %v10726_v55 }
 0x431   : > { %4130 = vadd.xlane.f32.xlu0 %v3478_v25  ;;  %4027 = vadd.xlane.f32.xlu1 %v4003_v50 }
 0x435   : > { %4134 = vadd.xlane.f32.xlu0 %v3494_v0  ;;  %4124 = vadd.xlane.f32.xlu1 %v3454_v35 }
 0x439   : > { %4138 = vadd.xlane.f32.xlu0 %v3510_v54  ;;  %4128 = vadd.xlane.f32.xlu1 %v3470_v45 }
 0x43d   : > { %4142 = vadd.xlane.f32.xlu0 %v3526_v39  ;;  %4132 = vadd.xlane.f32.xlu1 %v3486_v62 }
 0x441   : > { %4146 = vadd.xlane.f32.xlu0 %v3542_v34  ;;  %4136 = vadd.xlane.f32.xlu1 %v3502_v41 }
 0x445   : > { %4140 = vadd.xlane.f32.xlu1 %v3518_v3 }
 0x449   : > { %4144 = vadd.xlane.f32.xlu1 %v3534_v53 }
 0x44d   : > { %4149 = vadd.xlane.f32.xlu1 %v4148_v57 }
 0x499   : > { %v4006_v16 = vpop.xlane.xlu0 %4005 }
 0x49a   : > { %v4032_v33 = vmul.f32 0.0078125, %v4006_v16 }
 0x49c   : > { %v4045_v40 = vadd.f32 1e-05, %v4032_v33 }
 0x49d   : > { %v4010_v47 = vpop.xlane.xlu0 %4009 }
 0x49e   : > { %5633 = vrsqrt.f32 %v4045_v40  ;;  %v4034_v15 = vmul.f32 0.0078125, %v4010_v47  ;;  %v4008_v4 = vpop.xlane.xlu1 %4007 }
 0x49f   : > { %v4033_v12 = vmul.f32 0.0078125, %v4008_v4 }
 0x4a0   : > { %v4047_v24 = vadd.f32 1e-05, %v4034_v15 }
 0x4a1   : > { %v4046_v59 = vadd.f32 1e-05, %v4033_v12  ;;  %v4014_v8 = vpop.xlane.xlu0 %4013 }
 0x4a2   : > { %5635 = vrsqrt.f32 %v4047_v24  ;;  %v4036_v5 = vmul.f32 0.0078125, %v4014_v8 }
 0x4a3   : > { %5637 = vrsqrt.f32 %v4046_v59 }
 0x4a4   : > { %v4049_v50 = vadd.f32 1e-05, %v4036_v5 }
 0x4a5   : > { %v4018_v43 = vpop.xlane.xlu0 %4017 }
 0x4a6   : > { %5639 = vrsqrt.f32 %v4049_v50  ;;  %v4038_v21 = vmul.f32 0.0078125, %v4018_v43 }
 0x4a8   : > { %v4051_v42 = vadd.f32 1e-05, %v4038_v21 }
 0x4a9   : > { %v4022_v57 = vpop.xlane.xlu0 %4021 }
 0x4aa   : > { %5641 = vrsqrt.f32 %v4051_v42  ;;  %v4040_v16 = vmul.f32 0.0078125, %v4022_v57  ;;  %v4012_v33 = vpop.xlane.xlu1 %4011 }
 0x4ab   : > { %v5634_v61 = vpop.eup %5633  ;;  %v4035_v40 = vmul.f32 0.0078125, %v4012_v33 }
 0x4ac   : > { %v4071_v47 = vmul.f32 %v5634_v61, %v10607_v20  ;;  %v4053_v4 = vadd.f32 1e-05, %v4040_v16 }
 0x4ad   : > { %v4048_v15 = vadd.f32 1e-05, %v4035_v40  ;;  %v4026_v12 = vpop.xlane.xlu0 %4025 }
 0x4ae   : > { %v4084_v24 = vmul.f32 %v10533_v17, %v4071_v47  ;;  %5643 = vrsqrt.f32 %v4053_v4  ;;  %v4042_v59 = vmul.f32 0.0078125, %v4026_v12  ;;  %v4016_v8 = vpop.xlane.xlu1 %4015 }
 0x4af   : > { %v5636_v5 = vpop.eup %5635  ;;  %5645 = vrsqrt.f32 %v4048_v15  ;;  %v4037_v50 = vmul.f32 0.0078125, %v4016_v8 }
 0x4b0   : > { %v5638_v43 = vpop.eup %5637  ;;  %v4097_v21 = vadd.f32 %v10539_v30, %v4084_v24  ;;  %v4073_v42 = vmul.f32 %v5636_v5, %v10621_v58  ;;  %v4055_v57 = vadd.f32 1e-05, %v4042_v59 }
 0x4b1   : > { %v4072_v20 = vmul.f32 %v5638_v43, %v10627_v48  ;;  %v4050_v61 = vadd.f32 1e-05, %v4037_v50 }
 0x4b2   : > { %5474 = vst [vmem:[%s10548_s10 + $0xd0] sm:$0xff] %v4097_v21  ;;  %v4086_v16 = vmul.f32 %v10533_v17, %v4073_v42  ;;  %5647 = vrsqrt.f32 %v4055_v57  ;;  %v4020_v33 = vpop.xlane.xlu1 %4019  ;;  %v4031_v40 = vpop.xlane.xlu0 %4030 }
 0x4b3   : > { %v5640_v47 = vpop.eup %5639  ;;  %v4085_v4 = vmul.f32 %v10533_v17, %v4072_v20  ;;  %5649 = vrsqrt.f32 %v4050_v61  ;;  %v4039_v15 = vmul.f32 0.0078125, %v4020_v33  ;;  %v4044_v12 = vmul.f32 0.0078125, %v4031_v40 }
 0x4b4   : > { %v4099_v58 = vadd.f32 %v10539_v30, %v4086_v16  ;;  %v4075_v24 = vmul.f32 %v5640_v47, %v10641_v63 }
 0x4b5   : > { %v4098_v48 = vadd.f32 %v10539_v30, %v4085_v4  ;;  %v4052_v59 = vadd.f32 1e-05, %v4039_v15  ;;  %v4057_v8 = vadd.f32 1e-05, %v4044_v12 }
 0x4b6   : > { %5476 = vst [vmem:[%s10548_s10 + $0xe0] sm:$0xff] %v4099_v58  ;;  %v4088_v5 = vmul.f32 %v10533_v17, %v4075_v24  ;;  %v4024_v50 = vpop.xlane.xlu1 %4023  ;;  %v4127_v43 = vpop.xlane.xlu0 %4126 }
 0x4b7   : > { %v5642_v21 = vpop.eup %5641  ;;  %5475 = vst [vmem:[%s10548_s10 + $0xd8] sm:$0xff] %v4098_v48  ;;  %5651 = vrsqrt.f32 %v4052_v59  ;;  %v4041_v42 = vmul.f32 0.0078125, %v4024_v50  ;;  %v4152_v57 = vmul.f32 0.0078125, %v4127_v43 }
 0x4b8   : > { %v4101_v20 = vadd.f32 %v10539_v30, %v4088_v5  ;;  %v4077_v61 = vmul.f32 %v5642_v21, %v10655_v46  ;;  %5653 = vrsqrt.f32 %v4057_v8 }
 0x4b9   : > { %v4054_v63 = vadd.f32 1e-05, %v4041_v42  ;;  %v10793_v16 = vsub.f32 %v3462_v36, %v4152_v57 }
 0x4ba   : > { %5478 = vst [vmem:[%s10548_s10 + $0xf0] sm:$0xff] %v4101_v20  ;;  %v4090_v33 = vmul.f32 %v10533_v17, %v4077_v61  ;;  %v4028_v40 = vpop.xlane.xlu1 %4027  ;;  %v4131_v47 = vpop.xlane.xlu0 %4130 }
 0x4bb   : > { %v5644_v4 = vpop.eup %5643  ;;  %5655 = vrsqrt.f32 %v4054_v63  ;;  %v4043_v15 = vmul.f32 0.0078125, %v4028_v40  ;;  %v4154_v12 = vmul.f32 0.0078125, %v4131_v47  ;;  %v4178_v58 = vmul.f32 %v10793_v16, %v10793_v16 }
 0x4bc   : > { %v5646_v46 = vpop.eup %5645  ;;  %v4103_v24 = vadd.f32 %v10539_v30, %v4090_v33  ;;  %v4079_v19 = vmul.f32 %v5644_v4, %v10668_v10 }
 0x4bd   : > { %v4074_v36 = vmul.f32 %v5646_v46, %v10674_v31  ;;  %v4056_v48 = vadd.f32 1e-05, %v4043_v15  ;;  %v10804_v59 = vsub.f32 %v3478_v25, %v4154_v12  ;;  %4192 = vadd.xlane.f32.xlu1 %v4178_v58 }
 0x4be   : > { %5480 = vst [vmem:[%s10548_s10 + $0x100] sm:$0xff] %v4103_v24  ;;  %v4092_v8 = vmul.f32 %v10533_v17, %v4079_v19  ;;  %v4125_v5 = vpop.xlane.xlu1 %4124  ;;  %v4135_v50 = vpop.xlane.xlu0 %4134 }
 0x4bf   : > { %v5648_v43 = vpop.eup %5647  ;;  %v4087_v21 = vmul.f32 %v10533_v17, %v4074_v36  ;;  %5657 = vrsqrt.f32 %v4056_v48  ;;  %v4151_v10 = vmul.f32 0.0078125, %v4125_v5  ;;  %v4156_v42 = vmul.f32 0.0078125, %v4135_v50 }
 0x4c0   : > { %v5650_v31 = vpop.eup %5649  ;;  %v4105_v57 = vadd.f32 %v10539_v30, %v4092_v8  ;;  %v4081_v49 = vmul.f32 %v5648_v43, %v10685_v6  ;;  %v4180_v25 = vmul.f32 %v10804_v59, %v10804_v59 }
 0x4c1   : > { %v4100_v20 = vadd.f32 %v10539_v30, %v4087_v21  ;;  %v4076_v61 = vmul.f32 %v5650_v31, %v10690_v27  ;;  %v10817_v63 = vsub.f32 %v3454_v35, %v4151_v10  ;;  %v10821_v33 = vsub.f32 %v3494_v0, %v4156_v42 }
 0x4c2   : > { %5482 = vst [vmem:[%s10548_s10 + $0x110] sm:$0xff] %v4105_v57  ;;  %v4094_v40 = vmul.f32 %v10533_v17, %v4081_v49  ;;  %4196 = vadd.xlane.f32.xlu1 %v4180_v25  ;;  %v4129_v6 = vpop.xlane.xlu1 %4128  ;;  %v4139_v47 = vpop.xlane.xlu0 %4138 }
 0x4c3   : > { %5477 = vst [vmem:[%s10548_s10 + $0xe8] sm:$0xff] %v4100_v20  ;;  %v4089_v4 = vmul.f32 %v10533_v17, %v4076_v61  ;;  %v4153_v15 = vmul.f32 0.0078125, %v4129_v6  ;;  %v4158_v27 = vmul.f32 0.0078125, %v4139_v47  ;;  %v4177_v51 = vmul.f32 %v10817_v63, %v10817_v63  ;;  %v12854_v6 = vld [vmem:[#allocation67_spill] sm:$0xff] }
 0x4c4   : > { %v5652_v35 = vpop.eup %5651  ;;  %v4107_v44 = vadd.f32 %v10539_v30, %v4094_v40  ;;  %v4182_v0 = vmul.f32 %v10821_v33, %v10821_v33  ;;  %v2946_v47 = vadd.f32 %v12854_v6, %v9701_v56  ;;  %v12868_v6 = vld [vmem:[#allocation107_spill] sm:$0xff] }
 0x4c5   : > { %v5654_v12 = vpop.eup %5653  ;;  %v4102_v58 = vadd.f32 %v10539_v30, %v4089_v4  ;;  %v4078_v46 = vmul.f32 %v5652_v35, %v10704_v38  ;;  %v10836_v24 = vsub.f32 %v3470_v45, %v4153_v15  ;;  %v10840_v19 = vsub.f32 %v3510_v54, %v4158_v27  ;;  %4190 = vadd.xlane.f32.xlu0 %v4177_v51  ;;  %v12856_v35 = vld [vmem:[#allocation64_spill] sm:$0xff] }
 0x4c6   : > { %5484 = vst [vmem:[%s10548_s10 + $0x120] sm:$0xff] %v4107_v44  ;;  %v4083_v36 = vmul.f32 %v5654_v12, %v10699_v18  ;;  %4200 = vadd.xlane.f32.xlu1 %v4182_v0  ;;  %v4133_v48 = vpop.xlane.xlu1 %4132  ;;  %v4143_v8 = vpop.xlane.xlu0 %4142 }
 0x4c7   : > { %5479 = vst [vmem:[%s10548_s10 + $0xf8] sm:$0xff] %v4102_v58  ;;  %v4091_v5 = vmul.f32 %v10533_v17, %v4078_v46  ;;  %v4155_v38 = vmul.f32 0.0078125, %v4133_v48  ;;  %v4160_v50 = vmul.f32 0.0078125, %v4143_v8  ;;  %v4179_v23 = vmul.f32 %v10836_v24, %v10836_v24  ;;  %v12857_v46 = vld [vmem:[#allocation98_spill] sm:$0xff] }
 0x4c8   : > { %v5656_v45 = vpop.eup %5655  ;;  %v4096_v60 = vmul.f32 %v10533_v17, %v4083_v36  ;;  %v4184_v54 = vmul.f32 %v10840_v19, %v10840_v19 }
 0x4c9   : > { %v4104_v18 = vadd.f32 %v10539_v30, %v4091_v5  ;;  %v4080_v43 = vmul.f32 %v5656_v45, %v10716_v7  ;;  %v10855_v21 = vsub.f32 %v3486_v62, %v4155_v38  ;;  %v10859_v10 = vsub.f32 %v3526_v39, %v4160_v50  ;;  %4194 = vadd.xlane.f32.xlu0 %v4179_v23  ;;  %v12859_v50 = vld [vmem:[#allocation89_spill] sm:$0xff]  ;;  %v12861_v45 = vld [vmem:[#allocation83_spill] sm:$0xff] }
 0x4ca   : > { %v4109_v42 = vadd.f32 %v10539_v30, %v4096_v60  ;;  %4204 = vadd.xlane.f32.xlu1 %v4184_v54  ;;  %v4137_v31 = vpop.xlane.xlu1 %4136  ;;  %v4147_v57 = vpop.xlane.xlu0 %4146  ;;  %v2952_v60 = vadd.f32 %v12861_v45, %v9699_v28  ;;  %v12862_v54 = vld [vmem:[#allocation97_spill] sm:$0xff]  ;;  %v12878_v45 = vld [vmem:[#allocation110_spill] sm:$0xff] }
 0x4cb   : > { %5481 = vst [vmem:[%s10548_s10 + $0x108] sm:$0xff] %v4104_v18  ;;  %v4093_v49 = vmul.f32 %v10533_v17, %v4080_v43  ;;  %v4157_v25 = vmul.f32 0.0078125, %v4137_v31  ;;  %v4162_v7 = vmul.f32 0.0078125, %v4147_v57  ;;  %v4181_v29 = vmul.f32 %v10855_v21, %v10855_v21  ;;  %v12864_v57 = vld [vmem:[#allocation105_spill] sm:$0xff] }
 0x4cc   : > { %v5658_v62 = vpop.eup %5657  ;;  %5486 = vst [vmem:[%s10548_s10 + $0x130] sm:$0x1f] %v4109_v42  ;;  %v4186_v14 = vmul.f32 %v10859_v10, %v10859_v10  ;;  %v2982_v18 = vadd.f32 %v12862_v54, %v9788_v13  ;;  %v12863_v42 = vld [vmem:[#allocation112_spill] sm:$0xff] }
 0x4cd   : > { %v4106_v39 = vadd.f32 %v10539_v30, %v4093_v49  ;;  %v4082_v20 = vmul.f32 %v5658_v62, %v10726_v55  ;;  %v10873_v61 = vsub.f32 %v3502_v41, %v4157_v25  ;;  %v10877_v40 = vsub.f32 %v3542_v34, %v4162_v7  ;;  %4198 = vadd.xlane.f32.xlu0 %v4181_v29  ;;  %v12855_v41 = vld [vmem:[#allocation111_spill] sm:$0xff]  ;;  %v12865_v7 = vld [vmem:[#allocation102_spill] sm:$0xff]  ;;  %v12866_v62 = vld [vmem:[#allocation81_spill] sm:$0xff] }
 0x4ce   : > { %4208 = vadd.xlane.f32.xlu1 %v4186_v14  ;;  %v4141_v4 = vpop.xlane.xlu1 %4140  ;;  %v10888_v11 = vadd.f32 %v12855_v41, %v2946_v47  ;;  %v10931_v31 = vadd.f32 %v12863_v42, %v2952_v60  ;;  %v10935_v49 = vadd.f32 %v12864_v57, %v2982_v18  ;;  %v2964_v29 = vadd.f32 %v12865_v7, %v9767_v32  ;;  %v12867_v14 = vld [vmem:[#allocation96_spill] sm:$0xff]  ;;  %v12879_v18 = vld [vmem:[#allocation106_spill] sm:$0xff] }
 0x4cf   : > { %5483 = vst [vmem:[%s10548_s10 + $0x118] sm:$0xff] %v4106_v39  ;;  %v4095_v15 = vmul.f32 %v10533_v17, %v4082_v20  ;;  %v4159_v27 = vmul.f32 0.0078125, %v4141_v4  ;;  %v4183_v55 = vmul.f32 %v10873_v61, %v10873_v61  ;;  %v4188_v22 = vmul.f32 %v10877_v40, %v10877_v40  ;;  %v12881_v7 = vld [vmem:[#allocation90_spill] sm:$0xff] }
 0x4d0   : > { %v2958_v17 = vadd.f32 %v12856_v35, %v9720_v1  ;;  %v3455_v58 = vmax.f32 %v10888_v11, 0.0  ;;  %v2994_v39 = vadd.f32 %v12867_v14, %v12866_v62  ;;  %v12177_v20 = vmax.f32 %v10931_v31, 0.0  ;;  %v12873_v35 = vld [vmem:[#allocation91_spill] sm:$0xff] }
 0x4d1   : > { %v4108_v34 = vadd.f32 %v10539_v30, %v4095_v15  ;;  %v10893_v51 = vsub.f32 %v3518_v3, %v4159_v27  ;;  %4202 = vadd.xlane.f32.xlu0 %v4183_v55  ;;  %v2970_v3 = vadd.f32 %v12858_v2, %v9757_v52  ;;  %v10946_v47 = vadd.f32 %v12868_v6, %v2964_v29  ;;  %v12869_v15 = vld [vmem:[#allocation9_spill] sm:$0xff]  ;;  %v12870_v55 = vld [vmem:[#allocation23_spill] sm:$0xff] }
 0x4d2   : > { %4212 = vadd.xlane.f32.xlu1 %v4188_v22  ;;  %v4145_v44 = vpop.xlane.xlu1 %4144  ;;  %v10902_v36 = vadd.f32 %v12857_v46, %v2958_v17  ;;  %v12172_v4 = vmax.f32 %v10935_v49, 0.0  ;;  %v10950_v27 = vadd.f32 %v12869_v15, %v2994_v39  ;;  %v12871_v22 = vld [vmem:[#allocation100_spill] sm:$0xff]  ;;  %v12875_v2 = vld [vmem:[#allocation93_spill] sm:$0xff]  ;;  %v12882_v39 = vld [vmem:[#allocation54_spill] sm:$0xff] }
 0x4d3   : > { %5485 = vst [vmem:[%s10548_s10 + $0x128] sm:$0xff] %v4108_v34  ;;  %v4161_v0 = vmul.f32 0.0078125, %v4145_v44  ;;  %v4185_v12 = vmul.f32 %v10893_v51, %v10893_v51  ;;  %v10916_v23 = vadd.f32 %v12859_v50, %v2970_v3  ;;  %v2976_v41 = vadd.f32 %v12871_v22, %v12870_v55  ;;  %v12872_v34 = vld [vmem:[#allocation70_spill] sm:$0xff]  ;;  %v3160_v44 = vpop.f32.mrf.mxu0  ;;  %v12883_v22 = vld [vmem:[#allocation43_spill] sm:$0xff] }
 0x4d4   : > { %v3471_v38 = vmax.f32 %v10902_v36, 0.0  ;;  %v3006_v17 = vadd.f32 %v12873_v35, %v12872_v34  ;;  %v12176_v46 = vmax.f32 %v10946_v47, 0.0 }
 0x4d5   : > { %v10906_v30 = vsub.f32 %v3534_v53, %v4161_v0  ;;  %4206 = vadd.xlane.f32.xlu0 %v4185_v12  ;;  %v3487_v26 = vmax.f32 %v10916_v23, 0.0  ;;  %v12874_v0 = vld [vmem:[#allocation35_spill] sm:$0xff]  ;;  %v10964_v3 = vadd.f32 %v12875_v2, %v2976_v41  ;;  %v12884_v41 = vld [vmem:[#allocation104_spill] sm:$0xff] }
 0x4d6   : > { %4309 = vadd.xlane.f32.xlu1 %v3455_v58  ;;  %v4150_v48 = vpop.xlane.xlu1 %4149  ;;  %v3018_v12 = vadd.f32 %v12874_v0, %v9893_v37  ;;  %v3012_v35 = vadd.f32 %v12884_v41, %v12883_v22 }
 0x4d7   : > { %v4163_v8 = vmul.f32 0.0078125, %v4150_v48  ;;  %v4187_v5 = vmul.f32 %v10906_v30, %v10906_v30  ;;  %v12170_v48 = vmax.f32 %v10950_v27, 0.0  ;;  %v12175_v54 = vmax.f32 %v10964_v3, 0.0 }
 0x4d8   : > { %v10970_v50 = vadd.f32 %v3160_v44, %v3018_v12  ;;  %v12885_v44 = vld [vmem:[#allocation60_spill] sm:$0xff] }
 0x4d9   : > { %v10920_v53 = vsub.f32 %v12860_v9, %v4163_v8  ;;  %4210 = vadd.xlane.f32.xlu0 %v4187_v5  ;;  %v12876_v8 = vld [vmem:[#allocation20_spill] sm:$0xff]  ;;  %v12877_v9 = vld [vmem:[#allocation82_spill] sm:$0xff]  ;;  %v11003_v0 = vadd.f32 %v12885_v44, %v3012_v35 }
 0x4da   : > { %4313 = vadd.xlane.f32.xlu1 %v3471_v38  ;;  %v10968_v5 = vadd.f32 %v12876_v8, %v3006_v17  ;;  %v2988_v60 = vadd.f32 %v12878_v45, %v12877_v9  ;;  %v12168_v57 = vmax.f32 %v10970_v50, 0.0 }
 0x4db   : > { %v4189_v43 = vmul.f32 %v10920_v53, %v10920_v53  ;;  %v12171_v12 = vmax.f32 %v11003_v0, 0.0 }
 0x4dc   : > { %v12169_v42 = vmax.f32 %v10968_v5, 0.0  ;;  %v4333_v15 = vsel %vm1403_vm0, %v12168_v57, 0.0 }
 0x4dd   : > { %v4214_v25 = vsel %vm1403_vm0, %v4189_v43, 0.0  ;;  %v10980_v43 = vadd.f32 %v12879_v18, %v2988_v60 }
 0x4de   : > { %4317 = vadd.xlane.f32.xlu1 %v3487_v26  ;;  %4215 = vadd.xlane.f32.xlu0 %v4214_v25  ;;  %v12880_v25 = vld [vmem:[#allocation42_spill] sm:$0xff] }
 0x4df   : > { %v3000_v29 = vadd.f32 %v12881_v7, %v12880_v25  ;;  %v12174_v14 = vmax.f32 %v10980_v43, 0.0  ;;  %v11010_v7 = vpop.f32.mrf.mxu0 }
 0x4e1   : > { %v10992_v6 = vadd.f32 %v12882_v39, %v3000_v29  ;;  %v11012_v57 = vpop.f32.mrf.mxu0 }
 0x4e2   : > { %4321 = vadd.xlane.f32.xlu1 %v12172_v4  ;;  %4311 = vadd.xlane.f32.xlu0 %v12177_v20 }
 0x4e3   : > { %v12173_v17 = vmax.f32 %v10992_v6, 0.0 }
 0x4e6   : > { %4325 = vadd.xlane.f32.xlu1 %v12170_v48  ;;  %4315 = vadd.xlane.f32.xlu0 %v12176_v46 }
 0x4ea   : > { %4329 = vadd.xlane.f32.xlu1 %v12169_v42  ;;  %4319 = vadd.xlane.f32.xlu0 %v12175_v54 }
 0x4ee   : > { %4334 = vadd.xlane.f32.xlu1 %v4333_v15  ;;  %4323 = vadd.xlane.f32.xlu0 %v12174_v14 }
 0x4f2   : > { %4327 = vadd.xlane.f32.xlu0 %v12173_v17 }
 0x4f6   : > { %4331 = vadd.xlane.f32.xlu0 %v12171_v12 }
 0x546   : > { %v4193_v2 = vpop.xlane.xlu1 %4192 }
 0x547   : > { %v4218_v8 = vmul.f32 0.0078125, %v4193_v2 }
 0x549   : > { %v4231_v45 = vadd.f32 1e-05, %v4218_v8 }
 0x54b   : > { %5659 = vrsqrt.f32 %v4231_v45  ;;  %v4197_v60 = vpop.xlane.xlu1 %4196 }
 0x54c   : > { %v4220_v18 = vmul.f32 0.0078125, %v4197_v60  ;;  %v11014_v60 = vpop.f32.mrf.mxu0 }
 0x54e   : > { %v4233_v29 = vadd.f32 1e-05, %v4220_v18  ;;  %v4191_v39 = vpop.xlane.xlu0 %4190  ;;  %v11017_v14 = vpop.f32.mrf.mxu0 }
 0x54f   : > { %v4201_v15 = vpop.xlane.xlu1 %4200  ;;  %v4217_v41 = vmul.f32 0.0078125, %v4191_v39 }
 0x550   : > { %5661 = vrsqrt.f32 %v4233_v29  ;;  %v4222_v35 = vmul.f32 0.0078125, %v4201_v15 }
 0x551   : > { %v4230_v44 = vadd.f32 1e-05, %v4217_v41 }
 0x552   : > { %v4235_v42 = vadd.f32 1e-05, %v4222_v35  ;;  %v4195_v48 = vpop.xlane.xlu0 %4194 }
 0x553   : > { %5663 = vrsqrt.f32 %v4230_v44  ;;  %v4205_v12 = vpop.xlane.xlu1 %4204  ;;  %v4219_v2 = vmul.f32 0.0078125, %v4195_v48 }
 0x554   : > { %5665 = vrsqrt.f32 %v4235_v42  ;;  %v4224_v8 = vmul.f32 0.0078125, %v4205_v12  ;;  %v11022_v42 = vld [vmem:[%s11894_s3] ss:$0 sm:$0xff] }
 0x555   : > { %v4232_v45 = vadd.f32 1e-05, %v4219_v2 }
 0x556   : > { %v4237_v4 = vadd.f32 1e-05, %v4224_v8  ;;  %v4199_v18 = vpop.xlane.xlu0 %4198 }
 0x557   : > { %5667 = vrsqrt.f32 %v4232_v45  ;;  %v4209_v17 = vpop.xlane.xlu1 %4208  ;;  %v4221_v39 = vmul.f32 0.0078125, %v4199_v18 }
 0x558   : > { %v5660_v29 = vpop.eup %5659  ;;  %5669 = vrsqrt.f32 %v4237_v4  ;;  %v4226_v15 = vmul.f32 0.0078125, %v4209_v17 }
 0x559   : > { %v4257_v41 = vmul.f32 %v5660_v29, %v10793_v16  ;;  %v4234_v35 = vadd.f32 1e-05, %v4221_v39  ;;  %v11028_v16 = vld [vmem:[%s11895_s4] ss:$0 sm:$0xff]  ;;  %v11031_v39 = vpop.f32.mrf.mxu0 }
 0x55a   : > { %v4239_v44 = vadd.f32 1e-05, %v4226_v15  ;;  %v4203_v48 = vpop.xlane.xlu0 %4202 }
 0x55b   : > { %v4270_v12 = vmul.f32 %v11022_v42, %v4257_v41  ;;  %5671 = vrsqrt.f32 %v4234_v35  ;;  %v4213_v2 = vpop.xlane.xlu1 %4212  ;;  %v4223_v8 = vmul.f32 0.0078125, %v4203_v48  ;;  %v11037_v20 = vpop.f32.mrf.mxu0 }
 0x55c   : > { %5673 = vrsqrt.f32 %v4239_v44  ;;  %v4228_v4 = vmul.f32 0.0078125, %v4213_v2 }
 0x55d   : > { %v5662_v17 = vpop.eup %5661  ;;  %v4283_v45 = vadd.f32 %v11028_v16, %v4270_v12  ;;  %v4236_v18 = vadd.f32 1e-05, %v4223_v8 }
 0x55e   : > { %v4259_v29 = vmul.f32 %v5662_v17, %v10804_v59  ;;  %v4241_v15 = vadd.f32 1e-05, %v4228_v4  ;;  %v4207_v41 = vpop.xlane.xlu0 %4206 }
 0x55f   : > { %5488 = vst [vmem:[%s10548_s10 + $0x140] sm:$0xff] %v4283_v45  ;;  %5675 = vrsqrt.f32 %v4236_v18  ;;  %v4310_v35 = vpop.xlane.xlu1 %4309  ;;  %v4225_v44 = vmul.f32 0.0078125, %v4207_v41 }
 0x560   : > { %v5664_v48 = vpop.eup %5663  ;;  %v4272_v2 = vmul.f32 %v11022_v42, %v4259_v29  ;;  %5677 = vrsqrt.f32 %v4241_v15  ;;  %v4336_v54 = vmul.f32 0.0078125, %v4310_v35 }
 0x561   : > { %v5666_v46 = vpop.eup %5665  ;;  %v4256_v12 = vmul.f32 %v5664_v48, %v10817_v63  ;;  %v4238_v8 = vadd.f32 1e-05, %v4225_v44  ;;  %v11054_v48 = vpop.f32.mrf.mxu1 }
 0x562   : > { %v4285_v59 = vadd.f32 %v11028_v16, %v4272_v2  ;;  %v4261_v4 = vmul.f32 %v5666_v46, %v10821_v33  ;;  %v11043_v17 = vsub.f32 %v3455_v58, %v4336_v54  ;;  %v4211_v45 = vpop.xlane.xlu0 %4210  ;;  %v11052_v54 = vpop.f32.mrf.mxu0 }
 0x563   : > { %v4269_v18 = vmul.f32 %v11022_v42, %v4256_v12  ;;  %5679 = vrsqrt.f32 %v4238_v8  ;;  %v4314_v29 = vpop.xlane.xlu1 %4313  ;;  %v4227_v15 = vmul.f32 0.0078125, %v4211_v45 }
 0x564   : > { %v5668_v41 = vpop.eup %5667  ;;  %5490 = vst [vmem:[%s10548_s10 + $0x150] sm:$0xff] %v4285_v59  ;;  %v4274_v63 = vmul.f32 %v11022_v42, %v4261_v4  ;;  %v4338_v35 = vmul.f32 0.0078125, %v4314_v29  ;;  %v4362_v44 = vmul.f32 %v11043_v17, %v11043_v17  ;;  %v12886_v59 = vld [vmem:[#allocation49_spill] sm:$0xff] }
 0x565   : > { %v5670_v33 = vpop.eup %5669  ;;  %v4282_v11 = vadd.f32 %v11028_v16, %v4269_v18  ;;  %v4258_v58 = vmul.f32 %v5668_v41, %v10836_v24  ;;  %v4240_v46 = vadd.f32 1e-05, %v4227_v15  ;;  %v3020_v4 = vadd.f32 %v12886_v59, %v9893_v37 }
 0x566   : > { %v4287_v2 = vadd.f32 %v11028_v16, %v4274_v63  ;;  %v4263_v12 = vmul.f32 %v5670_v33, %v10840_v19  ;;  %v11060_v8 = vsub.f32 %v3471_v38, %v4338_v35  ;;  %4375 = vadd.xlane.f32.xlu0 %v4362_v44  ;;  %v11075_v33 = vpop.f32.mrf.mxu0 }
 0x567   : > { %5487 = vst [vmem:[%s10548_s10 + $0x138] sm:$0xff] %v4282_v11  ;;  %v4271_v24 = vmul.f32 %v11022_v42, %v4258_v58  ;;  %5681 = vrsqrt.f32 %v4240_v46  ;;  %v4318_v45 = vpop.xlane.xlu1 %4317  ;;  %v4216_v18 = vpop.xlane.xlu0 %4215  ;;  %v11071_v63 = vadd.f32 %v11010_v7, %v3020_v4 }
 0x568   : > { %v5672_v29 = vpop.eup %5671  ;;  %5492 = vst [vmem:[%s10548_s10 + $0x160] sm:$0xff] %v4287_v2  ;;  %v4276_v15 = vmul.f32 %v11022_v42, %v4263_v12  ;;  %v4340_v19 = vmul.f32 0.0078125, %v4318_v45  ;;  %v4229_v41 = vmul.f32 0.0078125, %v4216_v18  ;;  %v4364_v36 = vmul.f32 %v11060_v8, %v11060_v8  ;;  %v3448_v12 = vpop.f32.mrf.mxu1 }
 0x569   : > { %v5674_v38 = vpop.eup %5673  ;;  %12887 = vst [vmem:[#allocation5_spill] sm:$0xff] %v11071_v63  ;;  %v4284_v35 = vadd.f32 %v11028_v16, %v4271_v24  ;;  %v4260_v44 = vmul.f32 %v5672_v29, %v10855_v21  ;;  %v12888_v21 = vld [vmem:[#allocation131_spill] sm:$0xff] }
 0x56a   : > { %v4289_v11 = vadd.f32 %v11028_v16, %v4276_v15  ;;  %v4265_v58 = vmul.f32 %v5674_v38, %v10859_v10  ;;  %v11081_v46 = vsub.f32 %v3487_v26, %v4340_v19  ;;  %v4242_v2 = vadd.f32 1e-05, %v4229_v41  ;;  %4379 = vadd.xlane.f32.xlu0 %v4364_v36  ;;  %v11094_v19 = vpop.f32.mrf.mxu0 }
 0x56b   : > { %5489 = vst [vmem:[%s10548_s10 + $0x148] sm:$0xff] %v4284_v35  ;;  %v4273_v7 = vmul.f32 %v11022_v42, %v4260_v44  ;;  %v4312_v59 = vpop.xlane.xlu0 %4311  ;;  %v3306_v24 = vadd.f32 %v12888_v21, %v9893_v37  ;;  %v12180_v26 = vmax.f32 %v11071_v63, 0.0  ;;  %v12890_v35 = vmax.f32 %v10931_v31, 0.0 }
 0x56c   : > { %v5676_v4 = vpop.eup %5675  ;;  %5494 = vst [vmem:[%s10548_s10 + $0x170] sm:$0xff] %v4289_v11  ;;  %v4278_v45 = vmul.f32 %v11022_v42, %v4265_v58  ;;  %5683 = vrsqrt.f32 %v4242_v2  ;;  %v4337_v10 = vmul.f32 0.0078125, %v4312_v59  ;;  %v4366_v15 = vmul.f32 %v11081_v46, %v11081_v46  ;;  %v11112_v59 = vpop.f32.mrf.mxu0 }
 0x56d   : > { %v5678_v23 = vpop.eup %5677  ;;  %v4286_v18 = vadd.f32 %v11028_v16, %v4273_v7  ;;  %v4262_v29 = vmul.f32 %v5676_v4, %v10873_v61  ;;  %v11096_v41 = vadd.f32 %v3448_v12, %v3306_v24  ;;  %v12891_v24 = vmax.f32 %v10946_v47, 0.0 }
 0x56e   : > { %v4291_v36 = vadd.f32 %v11028_v16, %v4278_v45  ;;  %v4267_v38 = vmul.f32 %v5678_v23, %v10877_v40  ;;  %v11102_v44 = vsub.f32 %v12890_v35, %v4337_v10  ;;  %4383 = vadd.xlane.f32.xlu0 %v4366_v15  ;;  %v4518_v10 = vsel %vm1403_vm0, %v12180_v26, 0.0  ;;  %v12892_v23 = vld [vmem:[#allocation115_spill] sm:$0xff]  ;;  %v12904_v26 = vld [vmem:[#allocation94_spill] sm:$0xff] }
 0x56f   : > { %12889 = vst [vmem:[#allocation117_spill] sm:$0xff] %v11096_v41  ;;  %5491 = vst [vmem:[%s10548_s10 + $0x158] sm:$0xff] %v4286_v18  ;;  %v4275_v11 = vmul.f32 %v11022_v42, %v4262_v29  ;;  %v4316_v61 = vpop.xlane.xlu0 %4315  ;;  %v12178_v4 = vmax.f32 %v11096_v41, 0.0  ;;  %v3304_v18 = vadd.f32 %v12892_v23, %v9893_v37  ;;  %v11135_v37 = vpop.f32.mrf.mxu0  ;;  %v12896_v23 = vld [vmem:[#allocation87_spill] sm:$0xff] }
 0x570   : > { %v5680_v58 = vpop.eup %5679  ;;  %5496 = vst [vmem:[%s10548_s10 + $0x180] sm:$0xff] %v4291_v36  ;;  %v4280_v2 = vmul.f32 %v11022_v42, %v4267_v38  ;;  %v4339_v12 = vmul.f32 0.0078125, %v4316_v61  ;;  %v4363_v7 = vmul.f32 %v11102_v44, %v11102_v44  ;;  %v12894_v61 = vmax.f32 %v10964_v3, 0.0 }
 0x571   : > { %v4288_v40 = vadd.f32 %v11028_v16, %v4275_v11  ;;  %v4264_v31 = vmul.f32 %v5680_v58, %v10893_v51  ;;  %v11131_v38 = vadd.f32 %v11054_v48, %v3304_v18  ;;  %v12185_v18 = vmax.f32 %v12896_v23, 0.0 }
 0x572   : > { %v4293_v21 = vadd.f32 %v11028_v16, %v4280_v2  ;;  %v11118_v45 = vsub.f32 %v12891_v24, %v4339_v12  ;;  %4377 = vadd.xlane.f32.xlu1 %v4363_v7  ;;  %4519 = vadd.xlane.f32.xlu0 %v4518_v10  ;;  %v4888_v2 = vsel %vm1403_vm0, %v12178_v4, 0.0  ;;  %v12895_v7 = vld [vmem:[#allocation109_spill] sm:$0xff] }
 0x573   : > { %5493 = vst [vmem:[%s10548_s10 + $0x168] sm:$0xff] %v4288_v40  ;;  %v4277_v51 = vmul.f32 %v11022_v42, %v4264_v31  ;;  %v4320_v29 = vpop.xlane.xlu0 %4319  ;;  %12893 = vst [vmem:[#allocation132_spill] sm:$0xff] %v11131_v38  ;;  %v12187_v40 = vmax.f32 %v12895_v7, 0.0  ;;  %v12179_v3 = vmax.f32 %v11131_v38, 0.0  ;;  %v12903_v4 = vld [vmem:[#allocation113_spill] sm:$0xff] }
 0x574   : > { %v5682_v15 = vpop.eup %5681  ;;  %5498 = vst [vmem:[%s10548_s10 + $0x190] sm:$0xff] %v4293_v21  ;;  %v4341_v36 = vmul.f32 0.0078125, %v4320_v29  ;;  %v4365_v47 = vmul.f32 %v11118_v45, %v11118_v45  ;;  %v3404_v21 = vpop.f32.mrf.mxu0 }
 0x575   : > { %v4290_v35 = vadd.f32 %v11028_v16, %v4277_v51  ;;  %v4266_v11 = vmul.f32 %v5682_v15, %v10906_v30  ;;  %v4703_v51 = vsel %vm1403_vm0, %v12179_v3, 0.0  ;;  %v3238_v3 = vadd.f32 %v12903_v4, %v9699_v28  ;;  %v12908_v4 = vld [vmem:[#allocation25_spill] sm:$0xff] }
 0x576   : > { %v11139_v58 = vsub.f32 %v12894_v61, %v4341_v36  ;;  %4381 = vadd.xlane.f32.xlu1 %v4365_v47  ;;  %4889 = vadd.xlane.f32.xlu0 %v4888_v2  ;;  %v11160_v29 = vpop.f32.mrf.mxu0  ;;  %v12898_v47 = vld [vmem:[#allocation92_spill] sm:$0xff]  ;;  %v12899_v61 = vld [vmem:[#allocation95_spill] sm:$0xff] }
 0x577   : > { %5495 = vst [vmem:[%s10548_s10 + $0x178] sm:$0xff] %v4290_v35  ;;  %v4279_v48 = vmul.f32 %v11022_v42, %v4266_v11  ;;  %v12181_v35 = vmax.f32 %v12898_v47, 0.0  ;;  %v12182_v2 = vmax.f32 %v12899_v61, 0.0 }
 0x578   : > { %v4367_v12 = vmul.f32 %v11139_v58, %v11139_v58  ;;  %v3410_v11 = vpop.f32.mrf.mxu0 }
 0x579   : > { %v5684_v30 = vpop.eup %5683  ;;  %v4292_v31 = vadd.f32 %v11028_v16, %v4279_v48  ;;  %v12900_v48 = vld [vmem:[#allocation101_spill] sm:$0xff] }
 0x57a   : > { %v4268_v24 = vmul.f32 %v5684_v30, %v10920_v53  ;;  %4385 = vadd.xlane.f32.xlu1 %v4367_v12  ;;  %4496 = vadd.xlane.f32.xlu0 %v12187_v40  ;;  %v12897_v53 = vld [vmem:[#allocation32_spill] sm:$0xff]  ;;  %v12184_v12 = vmax.f32 %v12900_v48, 0.0  ;;  %v11174_v30 = vpop.f32.mrf.mxu0 }
 0x57b   : > { %5497 = vst [vmem:[%s10548_s10 + $0x188] sm:$0xff] %v4292_v31  ;;  %v12183_v36 = vmax.f32 %v12897_v53, 0.0  ;;  %v12901_v31 = vld [vmem:[#allocation108_spill] sm:$0xff] }
 0x57c   : > { %v4281_v10 = vmul.f32 %v11022_v42, %v4268_v24  ;;  %v12186_v24 = vmax.f32 %v12901_v31, 0.0 }
 0x57e   : > { %v4294_v15 = vadd.f32 %v11028_v16, %v4281_v10  ;;  %4704 = vadd.xlane.f32.xlu1 %v4703_v51  ;;  %4500 = vadd.xlane.f32.xlu0 %v12185_v18  ;;  %v12902_v10 = vld [vmem:[#allocation58_spill] sm:$0xff] }
 0x57f   : > { %v12188_v51 = vmax.f32 %v12902_v10, 0.0 }
 0x580   : > { %5499 = vst [vmem:[%s10548_s10 + $0x198] sm:$0x1f] %v4294_v15  ;;  %v3416_v15 = vpop.f32.mrf.mxu0 }
 0x582   : > { %4494 = vadd.xlane.f32.xlu1 %v12183_v36  ;;  %4504 = vadd.xlane.f32.xlu0 %v12181_v35  ;;  %v12192_v35 = vmax.f32 %v12904_v26, 0.0  ;;  %v11193_v18 = vpop.f32.mrf.mxu0 }
 0x584   : > { %v3422_v63 = vpop.f32.mrf.mxu0 }
 0x586   : > { %4498 = vadd.xlane.f32.xlu1 %v12182_v2  ;;  %4508 = vadd.xlane.f32.xlu0 %v12184_v12  ;;  %v12905_v2 = vld [vmem:[#allocation62_spill] sm:$0xff]  ;;  %v11191_v12 = vadd.f32 %v11017_v14, %v3238_v3  ;;  %v12910_v14 = vld [vmem:[#allocation45_spill] sm:$0xff] }
 0x587   : > { %v12193_v36 = vmax.f32 %v12905_v2, 0.0  ;;  %v3232_v3 = vadd.f32 %v12910_v14, %v9701_v56  ;;  %v12914_v14 = vld [vmem:[#allocation6_spill] sm:$0xff] }
 0x588   : > { %12906 = vst [vmem:[#allocation118_spill] sm:$0xff] %v11191_v12  ;;  %v12198_v41 = vmax.f32 %v11191_v12, 0.0  ;;  %v3244_v10 = vadd.f32 %v12914_v14, %v9720_v1  ;;  %v12916_v14 = vld [vmem:[#allocation126_spill] sm:$0xff] }
 0x589   : > { %v11216_v26 = vadd.f32 %v11012_v57, %v3232_v3 }
 0x58a   : > { %4502 = vadd.xlane.f32.xlu1 %v12186_v24  ;;  %4512 = vadd.xlane.f32.xlu0 %v12188_v51  ;;  %v12907_v24 = vld [vmem:[#allocation125_spill] sm:$0xff]  ;;  %v12199_v51 = vmax.f32 %v12908_v4, 0.0  ;;  %v11223_v4 = vpop.f32.mrf.mxu0  ;;  %v11233_v3 = vadd.f32 %v11037_v20, %v3244_v10 }
 0x58b   : > { %v3250_v40 = vadd.f32 %v12907_v24, %v9767_v32  ;;  %v12203_v57 = vmax.f32 %v11216_v26, 0.0 }
 0x58c   : > { %v3428_v12 = vpop.f32.mrf.mxu0  ;;  %v12208_v20 = vmax.f32 %v11233_v3, 0.0 }
 0x58d   : > { %v11204_v38 = vadd.f32 %v11075_v33, %v3250_v40 }
 0x58e   : > { %4506 = vadd.xlane.f32.xlu1 %v12192_v35  ;;  %4516 = vadd.xlane.f32.xlu0 %v12193_v36  ;;  %v12911_v35 = vld [vmem:[#allocation123_spill] sm:$0xff]  ;;  %v12912_v36 = vld [vmem:[#allocation48_spill] sm:$0xff] }
 0x58f   : > { %12909 = vst [vmem:[#allocation103_spill] sm:$0xff] %v11204_v38  ;;  %v3262_v24 = vadd.f32 %v12911_v35, %v12870_v55  ;;  %v12201_v2 = vmax.f32 %v12912_v36, 0.0  ;;  %v12202_v33 = vmax.f32 %v11204_v38, 0.0  ;;  %v12915_v35 = vld [vmem:[#allocation21_spill] sm:$0xff] }
 0x591   : > { %v11219_v40 = vadd.f32 %v3404_v21, %v3262_v24 }
 0x592   : > { %4510 = vadd.xlane.f32.xlu1 %v12199_v51  ;;  %4681 = vadd.xlane.f32.xlu0 %v12198_v41  ;;  %v3274_v41 = vadd.f32 %v12915_v35, %v12877_v9  ;;  %v3256_v51 = vadd.f32 %v12916_v14, %v9757_v52  ;;  %v12917_v35 = vld [vmem:[#allocation133_spill] sm:$0xff]  ;;  %v12918_v14 = vld [vmem:[#allocation135_spill] sm:$0xff] }
 0x593   : > { %12913 = vst [vmem:[#allocation12_spill] sm:$0xff] %v11219_v40  ;;  %v12204_v21 = vmax.f32 %v11219_v40, 0.0 }
 0x594   : > { %v11236_v24 = vadd.f32 %v3416_v15, %v3274_v41  ;;  %v11248_v10 = vadd.f32 %v11112_v59, %v3256_v51 }
 0x596   : > { %4514 = vadd.xlane.f32.xlu1 %v12201_v2  ;;  %4685 = vadd.xlane.f32.xlu0 %v12202_v33  ;;  %v3286_v2 = vadd.f32 %v12917_v35, %v12880_v25  ;;  %v12207_v41 = vmax.f32 %v11236_v24, 0.0  ;;  %v3268_v33 = vadd.f32 %v12918_v14, %v9788_v13  ;;  %v12919_v35 = vld [vmem:[#allocation119_spill] sm:$0xff]  ;;  %v12921_v14 = vld [vmem:[#allocation121_spill] sm:$0xff] }
 0x597   : > { %v3280_v38 = vadd.f32 %v12921_v14, %v12866_v62  ;;  %v12923_v14 = vld [vmem:[#allocation17_spill] sm:$0xff] }
 0x598   : > { %v11251_v15 = vadd.f32 %v3428_v12, %v3286_v2  ;;  %v11262_v59 = vadd.f32 %v3410_v11, %v3268_v33  ;;  %v3430_v2 = vpop.f32.mrf.mxu0  ;;  %v12920_v12 = vld [vmem:[#allocation120_spill] sm:$0xff] }
 0x599   : > { %v11277_v33 = vadd.f32 %v3422_v63, %v3280_v38 }
 0x59a   : > { %4679 = vadd.xlane.f32.xlu1 %v12203_v57  ;;  %4689 = vadd.xlane.f32.xlu0 %v12204_v21  ;;  %v3298_v57 = vadd.f32 %v12919_v35, %v12883_v22  ;;  %v3489_v21 = vmax.f32 %v11248_v10, 0.0  ;;  %v12209_v51 = vmax.f32 %v11251_v15, 0.0  ;;  %v12922_v22 = vld [vmem:[#allocation16_spill] sm:$0xff]  ;;  %v3505_v11 = vmax.f32 %v11262_v59, 0.0 }
 0x59b   : > { %v3240_v35 = vadd.f32 %v12922_v22, %v9699_v28  ;;  %v12924_v28 = vld [vmem:[#allocation7_spill] sm:$0xff]  ;;  %v12224_v63 = vmax.f32 %v11277_v33, 0.0  ;;  %v12968_v10 = vmax.f32 %v11236_v24, 0.0 }
 0x59c   : > { %v11266_v40 = vadd.f32 %v12920_v12, %v3298_v57  ;;  %v3434_v57 = vpop.f32.mrf.mxu0  ;;  %v3252_v22 = vadd.f32 %v12924_v28, %v9767_v32  ;;  %v12926_v32 = vld [vmem:[#allocation4_spill] sm:$0xff] }
 0x59d   : > { %v3264_v28 = vadd.f32 %v12926_v32, %v12870_v55  ;;  %v12928_v55 = vld [vmem:[#allocation136_spill] sm:$0xff] }
 0x59e   : > { %4683 = vadd.xlane.f32.xlu1 %v12208_v20  ;;  %4693 = vadd.xlane.f32.xlu0 %v12207_v41  ;;  %v11280_v41 = vadd.f32 %v11031_v39, %v3240_v35  ;;  %v12216_v12 = vmax.f32 %v11266_v40, 0.0  ;;  %v3292_v20 = vadd.f32 %v12923_v14, %v12872_v34  ;;  %v11296_v35 = vadd.f32 %v11094_v19, %v3252_v22  ;;  %v12925_v14 = vld [vmem:[#allocation128_spill] sm:$0xff] }
 0x59f   : > { %v11312_v22 = vadd.f32 %v11160_v29, %v3264_v28  ;;  %v3276_v32 = vadd.f32 %v12928_v55, %v12877_v9  ;;  %v12930_v9 = vld [vmem:[#allocation33_spill] sm:$0xff] }
 0x5a0   : > { %v11292_v38 = vadd.f32 %v3434_v57, %v3292_v20  ;;  %v12210_v39 = vmax.f32 %v11280_v41, 0.0  ;;  %v12211_v19 = vmax.f32 %v11296_v35, 0.0  ;;  %v3288_v55 = vadd.f32 %v12930_v9, %v12880_v25 }
 0x5a1   : > { %v12212_v29 = vmax.f32 %v11312_v22, 0.0  ;;  %v11328_v28 = vadd.f32 %v11193_v18, %v3276_v32  ;;  %v4322_v18 = vpop.xlane.xlu1 %4321 }
 0x5a2   : > { %4687 = vadd.xlane.f32.xlu1 %v3489_v21  ;;  %4697 = vadd.xlane.f32.xlu0 %v12209_v51  ;;  %v3234_v51 = vadd.f32 %v12925_v14, %v9701_v56  ;;  %v12219_v57 = vmax.f32 %v11292_v38, 0.0  ;;  %v12927_v56 = vld [vmem:[#allocation28_spill] sm:$0xff] }
 0x5a3   : > { %v3246_v14 = vadd.f32 %v12927_v56, %v9720_v1  ;;  %v12929_v1 = vld [vmem:[#allocation8_spill] sm:$0xff]  ;;  %v12214_v32 = vmax.f32 %v11328_v28, 0.0 }
 0x5a4   : > { %v11307_v20 = vadd.f32 %v11014_v60, %v3234_v51  ;;  %v3258_v56 = vadd.f32 %v12929_v1, %v9757_v52  ;;  %v12931_v52 = vld [vmem:[#allocation124_spill] sm:$0xff] }
 0x5a5   : > { %v11324_v51 = vadd.f32 %v11052_v54, %v3246_v14  ;;  %v3270_v1 = vadd.f32 %v12931_v52, %v9788_v13 }
 0x5a6   : > { %4691 = vadd.xlane.f32.xlu1 %v3505_v11  ;;  %4701 = vadd.xlane.f32.xlu0 %v12216_v12  ;;  %v12213_v60 = vmax.f32 %v11307_v20, 0.0  ;;  %v11340_v14 = vadd.f32 %v11135_v37, %v3258_v56 }
 0x5a7   : > { %v12215_v54 = vmax.f32 %v11324_v51, 0.0  ;;  %v11353_v9 = vadd.f32 %v11174_v30, %v3270_v1  ;;  %v3436_v30 = vpop.f32.mrf.mxu0  ;;  %v12933_v1 = vld [vmem:[#allocation116_spill] sm:$0xff] }
 0x5a8   : > { %v12217_v25 = vmax.f32 %v11340_v14, 0.0 }
 0x5a9   : > { %v12223_v13 = vmax.f32 %v11353_v9, 0.0 }
 0x5aa   : > { %4695 = vadd.xlane.f32.xlu1 %v12224_v63  ;;  %4866 = vadd.xlane.f32.xlu0 %v12210_v39  ;;  %v4324_v39 = vpop.xlane.xlu0 %4323 }
 0x5ae   : > { %4699 = vadd.xlane.f32.xlu1 %v12219_v57  ;;  %4870 = vadd.xlane.f32.xlu0 %v12211_v19  ;;  %v11343_v19 = vadd.f32 %v3430_v2, %v3288_v55  ;;  %v4328_v37 = vpop.xlane.xlu0 %4327  ;;  %v12932_v2 = vld [vmem:[#allocation122_spill] sm:$0xff] }
 0x5af   : > { %v3282_v55 = vadd.f32 %v12932_v2, %v12866_v62  ;;  %v4345_v62 = vmul.f32 0.0078125, %v4328_v37  ;;  %v12935_v2 = vld [vmem:[#allocation134_spill] sm:$0xff] }
 0x5b0   : > { %v12218_v56 = vmax.f32 %v11343_v19, 0.0  ;;  %v3294_v12 = vadd.f32 %v12935_v2, %v12872_v34  ;;  %v12937_v2 = vmax.f32 %v10935_v49, 0.0 }
 0x5b1   : > { %v11364_v52 = vadd.f32 %v11223_v4, %v3282_v55 }
 0x5b2   : > { %4864 = vadd.xlane.f32.xlu1 %v12213_v60  ;;  %4874 = vadd.xlane.f32.xlu0 %v12212_v29  ;;  %v4343_v29 = vmul.f32 0.0078125, %v4324_v39  ;;  %v4326_v60 = vpop.xlane.xlu1 %4325  ;;  %v12934_v39 = vmax.f32 %v10980_v43, 0.0  ;;  %v11378_v55 = vadd.f32 %v3436_v30, %v3294_v12  ;;  %v12936_v43 = vmax.f32 %v10992_v6, 0.0 }
 0x5b3   : > { %v12222_v4 = vmax.f32 %v11364_v52, 0.0  ;;  %v12938_v30 = vmax.f32 %v11003_v0, 0.0 }
 0x5b6   : > { %4868 = vadd.xlane.f32.xlu1 %v12215_v54  ;;  %4878 = vadd.xlane.f32.xlu0 %v12214_v32  ;;  %v12221_v32 = vmax.f32 %v12933_v1, 0.0  ;;  %v11369_v54 = vsub.f32 %v12934_v39, %v4343_v29  ;;  %v4330_v57 = vpop.xlane.xlu1 %4329  ;;  %v11382_v29 = vsub.f32 %v12936_v43, %v4345_v62  ;;  %v12220_v39 = vmax.f32 %v11378_v55, 0.0 }
 0x5b7   : > { %v12939_v43 = vmax.f32 %v10950_v27, 0.0  ;;  %v4346_v49 = vmul.f32 0.0078125, %v4330_v57  ;;  %v12941_v27 = vmax.f32 %v10970_v50, 0.0 }
 0x5b8   : > { %v4369_v34 = vmul.f32 %v11369_v54, %v11369_v54 }
 0x5ba   : > { %4872 = vadd.xlane.f32.xlu1 %v12217_v25  ;;  %4882 = vadd.xlane.f32.xlu0 %v12218_v56  ;;  %v4332_v25 = vpop.xlane.xlu0 %4331  ;;  %v4342_v56 = vmul.f32 0.0078125, %v4322_v18  ;;  %v4344_v18 = vmul.f32 0.0078125, %v4326_v60  ;;  %v4335_v62 = vpop.xlane.xlu1 %4334 }
 0x5bb   : > { %v4347_v37 = vmul.f32 0.0078125, %v4332_v25  ;;  %v4371_v25 = vmul.f32 %v11382_v29, %v11382_v29 }
 0x5bc   : > { %v11391_v12 = vsub.f32 %v12937_v2, %v4342_v56  ;;  %v4348_v56 = vmul.f32 0.0078125, %v4335_v62 }
 0x5bd   : > { %v11395_v6 = vsub.f32 %v12938_v30, %v4347_v37  ;;  %v12940_v37 = vmax.f32 %v10968_v5, 0.0 }
 0x5be   : > { %4876 = vadd.xlane.f32.xlu1 %v12223_v13  ;;  %4886 = vadd.xlane.f32.xlu0 %v12221_v32  ;;  %v4368_v60 = vmul.f32 %v11391_v12, %v11391_v12 }
 0x5bf   : > { %v4373_v0 = vmul.f32 %v11395_v6, %v11395_v6  ;;  %v11411_v2 = vsub.f32 %v12940_v37, %v4346_v49 }
 0x5c1   : > { %v4372_v57 = vmul.f32 %v11411_v2, %v11411_v2 }
 0x5c2   : > { %4880 = vadd.xlane.f32.xlu1 %v12222_v4  ;;  %4389 = vadd.xlane.f32.xlu0 %v4369_v34  ;;  %v11403_v34 = vsub.f32 %v12939_v43, %v4344_v18  ;;  %v11417_v18 = vsub.f32 %v12941_v27, %v4348_v56 }
 0x5c4   : > { %v4370_v30 = vmul.f32 %v11403_v34, %v11403_v34 }
 0x5c6   : > { %4884 = vadd.xlane.f32.xlu1 %v12220_v39  ;;  %4393 = vadd.xlane.f32.xlu0 %v4371_v25  ;;  %v4374_v25 = vmul.f32 %v11417_v18, %v11417_v18 }
 0x5c8   : > { %v4399_v62 = vsel %vm1403_vm0, %v4374_v25, 0.0 }
 0x5ca   : > { %4387 = vadd.xlane.f32.xlu1 %v4368_v60  ;;  %4397 = vadd.xlane.f32.xlu0 %v4373_v0 }
 0x5ce   : > { %4391 = vadd.xlane.f32.xlu1 %v4370_v30 }
 0x5d2   : > { %4395 = vadd.xlane.f32.xlu1 %v4372_v57 }
 0x5d6   : > { %4400 = vadd.xlane.f32.xlu1 %v4399_v62 }
 0x5ef   : > { %v4376_v5 = vpop.xlane.xlu0 %4375 }
 0x5f0   : > { %v4402_v43 = vmul.f32 0.0078125, %v4376_v5 }
 0x5f2   : > { %v4415_v49 = vadd.f32 1e-05, %v4402_v43 }
 0x5f3   : > { %v4380_v60 = vpop.xlane.xlu0 %4379 }
 0x5f4   : > { %5685 = vrsqrt.f32 %v4415_v49  ;;  %v4404_v0 = vmul.f32 0.0078125, %v4380_v60 }
 0x5f6   : > { %v4417_v50 = vadd.f32 1e-05, %v4404_v0 }
 0x5f7   : > { %v4384_v56 = vpop.xlane.xlu0 %4383 }
 0x5f8   : > { %5687 = vrsqrt.f32 %v4417_v50  ;;  %v4406_v37 = vmul.f32 0.0078125, %v4384_v56 }
 0x5fa   : > { %v4419_v30 = vadd.f32 1e-05, %v4406_v37 }
 0x5fb   : > { %v4378_v27 = vpop.xlane.xlu1 %4377  ;;  %v11424_v39 = vpop.xlane.xlu0 %4519 }
 0x5fc   : > { %v4403_v32 = vmul.f32 0.0078125, %v4378_v27  ;;  %5689 = vrsqrt.f32 %v4419_v30 }
 0x5fe   : > { %v4416_v57 = vadd.f32 1e-05, %v4403_v32 }
 0x5ff   : > { %v4382_v4 = vpop.xlane.xlu1 %4381  ;;  %v11426_v25 = vpop.xlane.xlu0 %4889 }
 0x600   : > { %5691 = vrsqrt.f32 %v4416_v57  ;;  %v4405_v62 = vmul.f32 0.0078125, %v4382_v4  ;;  %v12942_v4 = vmax.f32 %v12895_v7, 0.0  ;;  %v12943_v7 = vmax.f32 %v12896_v23, 0.0 }
 0x601   : > { %v5686_v5 = vpop.eup %5685 }
 0x602   : > { %v4441_v43 = vmul.f32 %v5686_v5, %v11043_v17  ;;  %v4418_v49 = vadd.f32 1e-05, %v4405_v62 }
 0x603   : > { %v4386_v60 = vpop.xlane.xlu1 %4385  ;;  %v4497_v50 = vpop.xlane.xlu0 %4496 }
 0x604   : > { %v4454_v0 = vmul.f32 %v11022_v42, %v4441_v43  ;;  %5693 = vrsqrt.f32 %v4418_v49  ;;  %v4407_v56 = vmul.f32 0.0078125, %v4386_v60  ;;  %v4522_v27 = vmul.f32 0.0078125, %v4497_v50 }
 0x605   : > { %v5688_v37 = vpop.eup %5687 }
 0x606   : > { %v4467_v32 = vadd.f32 %v11028_v16, %v4454_v0  ;;  %v4443_v30 = vmul.f32 %v5688_v37, %v11060_v8  ;;  %v4420_v57 = vadd.f32 1e-05, %v4407_v56  ;;  %v11434_v13 = vsub.f32 %v12942_v4, %v4522_v27 }
 0x607   : > { %v11436_v17 = vpop.xlane.xlu1 %4704  ;;  %v4501_v5 = vpop.xlane.xlu0 %4500 }
 0x608   : > { %5500 = vst [vmem:[%s10548_s10 + $0x1a0] sm:$0xff] %v4467_v32  ;;  %v4456_v62 = vmul.f32 %v11022_v42, %v4443_v30  ;;  %5695 = vrsqrt.f32 %v4420_v57  ;;  %v4524_v43 = vmul.f32 0.0078125, %v4501_v5  ;;  %v4548_v49 = vmul.f32 %v11434_v13, %v11434_v13 }
 0x609   : > { %v5690_v60 = vpop.eup %5689  ;;  %v4718_v59 = vmul.f32 0.0078125, %v11436_v17 }
 0x60a   : > { %v4469_v8 = vadd.f32 %v11028_v16, %v4456_v62  ;;  %v4445_v0 = vmul.f32 %v5690_v60, %v11081_v46  ;;  %v11446_v50 = vsub.f32 %v12943_v7, %v4524_v43  ;;  %4562 = vadd.xlane.f32.xlu1 %v4548_v49  ;;  %v12944_v46 = vmax.f32 %v12897_v53, 0.0 }
 0x60b   : > { %v4495_v56 = vpop.xlane.xlu1 %4494  ;;  %v4505_v37 = vpop.xlane.xlu0 %4504  ;;  %v12945_v43 = vmax.f32 %v12898_v47, 0.0 }
 0x60c   : > { %5502 = vst [vmem:[%s10548_s10 + $0x1b0] sm:$0xff] %v4469_v8  ;;  %v4521_v27 = vmul.f32 0.0078125, %v4495_v56  ;;  %v4458_v30 = vmul.f32 %v11022_v42, %v4445_v0  ;;  %v4526_v57 = vmul.f32 0.0078125, %v4505_v37  ;;  %v4550_v4 = vmul.f32 %v11446_v50, %v11446_v50 }
 0x60d   : > { %v5692_v32 = vpop.eup %5691 }
 0x60e   : > { %v4442_v62 = vmul.f32 %v5692_v32, %v11102_v44  ;;  %v11455_v23 = vsub.f32 %v12944_v46, %v4521_v27  ;;  %v4471_v5 = vadd.f32 %v11028_v16, %v4458_v30  ;;  %v11460_v49 = vsub.f32 %v12945_v43, %v4526_v57  ;;  %4566 = vadd.xlane.f32.xlu1 %v4550_v4 }
 0x60f   : > { %v4499_v60 = vpop.xlane.xlu1 %4498  ;;  %v4509_v0 = vpop.xlane.xlu0 %4508  ;;  %v12946_v32 = vmax.f32 %v12899_v61, 0.0  ;;  %v12947_v57 = vmax.f32 %v12900_v48, 0.0 }
 0x610   : > { %v4455_v8 = vmul.f32 %v11022_v42, %v4442_v62  ;;  %v4523_v7 = vmul.f32 0.0078125, %v4499_v60  ;;  %v4547_v44 = vmul.f32 %v11455_v23, %v11455_v23  ;;  %5504 = vst [vmem:[%s10548_s10 + $0x1c0] sm:$0xff] %v4471_v5  ;;  %v4528_v53 = vmul.f32 0.0078125, %v4509_v0 }
 0x611   : > { %v5694_v56 = vpop.eup %5693  ;;  %v4552_v37 = vmul.f32 %v11460_v49, %v11460_v49 }
 0x612   : > { %v4468_v47 = vadd.f32 %v11028_v16, %v4455_v8  ;;  %v4444_v27 = vmul.f32 %v5694_v56, %v11118_v45  ;;  %v11472_v30 = vsub.f32 %v12946_v32, %v4523_v7  ;;  %4560 = vadd.xlane.f32.xlu0 %v4547_v44  ;;  %v11476_v4 = vsub.f32 %v12947_v57, %v4528_v53  ;;  %v12949_v56 = vld [vmem:[#allocation58_spill] sm:$0xff] }
 0x613   : > { %4570 = vadd.xlane.f32.xlu1 %v4552_v37  ;;  %v4503_v62 = vpop.xlane.xlu1 %4502  ;;  %v4513_v5 = vpop.xlane.xlu0 %4512  ;;  %v12948_v7 = vmax.f32 %v12901_v31, 0.0  ;;  %v12950_v53 = vmax.f32 %v12949_v56, 0.0  ;;  %v4533_v56 = vmul.f32 0.0078125, %v11424_v39  ;;  %v12959_v39 = vmax.f32 %v12912_v36, 0.0 }
 0x614   : > { %5501 = vst [vmem:[%s10548_s10 + $0x1a8] sm:$0xff] %v4468_v47  ;;  %v4457_v46 = vmul.f32 %v11022_v42, %v4444_v27  ;;  %v4525_v43 = vmul.f32 0.0078125, %v4503_v62  ;;  %v4549_v45 = vmul.f32 %v11472_v30, %v11472_v30  ;;  %v4530_v61 = vmul.f32 0.0078125, %v4513_v5  ;;  %v12951_v5 = vld [vmem:[#allocation94_spill] sm:$0xff] }
 0x615   : > { %v5696_v60 = vpop.eup %5695  ;;  %v4554_v8 = vmul.f32 %v11476_v4, %v11476_v4 }
 0x616   : > { %v4470_v48 = vadd.f32 %v11028_v16, %v4457_v46  ;;  %v4446_v0 = vmul.f32 %v5696_v60, %v11139_v58  ;;  %v11488_v44 = vsub.f32 %v12948_v7, %v4525_v43  ;;  %4564 = vadd.xlane.f32.xlu0 %v4549_v45  ;;  %v11492_v37 = vsub.f32 %v12950_v53, %v4530_v61  ;;  %v12953_v60 = vld [vmem:[#allocation62_spill] sm:$0xff]  ;;  %v12955_v53 = vld [vmem:[#allocation25_spill] sm:$0xff] }
 0x617   : > { %4574 = vadd.xlane.f32.xlu1 %v4554_v8  ;;  %v4507_v47 = vpop.xlane.xlu1 %4506  ;;  %v4517_v32 = vpop.xlane.xlu0 %4516  ;;  %v12952_v43 = vmax.f32 %v12951_v5, 0.0  ;;  %v12954_v61 = vmax.f32 %v12953_v60, 0.0 }
 0x618   : > { %5503 = vst [vmem:[%s10548_s10 + $0x1b8] sm:$0xff] %v4470_v48  ;;  %v4459_v27 = vmul.f32 %v11022_v42, %v4446_v0  ;;  %v4527_v57 = vmul.f32 0.0078125, %v4507_v47  ;;  %v4551_v58 = vmul.f32 %v11488_v44, %v11488_v44  ;;  %v4532_v62 = vmul.f32 0.0078125, %v4517_v32 }
 0x619   : > { %v4556_v31 = vmul.f32 %v11492_v37, %v11492_v37  ;;  %v12956_v47 = vmax.f32 %v12955_v53, 0.0  ;;  %v12960_v53 = vmax.f32 %v11216_v26, 0.0 }
 0x61a   : > { %v4472_v46 = vadd.f32 %v11028_v16, %v4459_v27  ;;  %v11503_v45 = vsub.f32 %v12952_v43, %v4527_v57  ;;  %4568 = vadd.xlane.f32.xlu0 %v4551_v58  ;;  %v11507_v8 = vsub.f32 %v12954_v61, %v4532_v62 }
 0x61b   : > { %4578 = vadd.xlane.f32.xlu1 %v4556_v31  ;;  %v4511_v42 = vpop.xlane.xlu1 %4510  ;;  %v4682_v48 = vpop.xlane.xlu0 %4681  ;;  %v12957_v31 = vld [vmem:[#allocation5_spill] sm:$0xff] }
 0x61c   : > { %5505 = vst [vmem:[%s10548_s10 + $0x1c8] sm:$0xff] %v4472_v46  ;;  %v4529_v0 = vmul.f32 0.0078125, %v4511_v42  ;;  %v4553_v7 = vmul.f32 %v11503_v45, %v11503_v45  ;;  %v4558_v16 = vmul.f32 %v11507_v8, %v11507_v8  ;;  %v12958_v46 = vmax.f32 %v12957_v31, 0.0 }
 0x61d   : > { %v4707_v60 = vmul.f32 0.0078125, %v4682_v48 }
 0x61e   : > { %v11517_v27 = vsub.f32 %v12956_v47, %v4529_v0  ;;  %4572 = vadd.xlane.f32.xlu0 %v4553_v7  ;;  %v11523_v5 = vsub.f32 %v12958_v46, %v4533_v56  ;;  %v12961_v56 = vld [vmem:[#allocation118_spill] sm:$0xff] }
 0x61f   : > { %4582 = vadd.xlane.f32.xlu1 %v4558_v16  ;;  %v4515_v32 = vpop.xlane.xlu1 %4514  ;;  %v4686_v57 = vpop.xlane.xlu0 %4685  ;;  %v12962_v36 = vmax.f32 %v12961_v56, 0.0 }
 0x620   : > { %v4531_v58 = vmul.f32 0.0078125, %v4515_v32  ;;  %v4555_v62 = vmul.f32 %v11517_v27, %v11517_v27  ;;  %v4559_v16 = vmul.f32 %v11523_v5, %v11523_v5  ;;  %v4709_v48 = vmul.f32 0.0078125, %v4686_v57 }
 0x621   : > { %v11539_v32 = vsub.f32 %v12962_v36, %v4707_v60 }
 0x622   : > { %v11527_v43 = vsub.f32 %v12959_v39, %v4531_v58  ;;  %4576 = vadd.xlane.f32.xlu0 %v4555_v62  ;;  %v4584_v39 = vsel %vm1403_vm0, %v4559_v16, 0.0 }
 0x623   : > { %v4680_v61 = vpop.xlane.xlu1 %4679  ;;  %v4690_v42 = vpop.xlane.xlu0 %4689  ;;  %v4733_v60 = vmul.f32 %v11539_v32, %v11539_v32 }
 0x624   : > { %v4706_v0 = vmul.f32 0.0078125, %v4680_v61  ;;  %v4557_v7 = vmul.f32 %v11527_v43, %v11527_v43  ;;  %v12963_v61 = vmax.f32 %v11233_v3, 0.0 }
 0x626   : > { %v11535_v47 = vsub.f32 %v12960_v53, %v4706_v0  ;;  %4580 = vadd.xlane.f32.xlu0 %v4557_v7  ;;  %v12964_v0 = vld [vmem:[#allocation103_spill] sm:$0xff]  ;;  %v4711_v53 = vmul.f32 0.0078125, %v4690_v42 }
 0x627   : > { %v4684_v58 = vpop.xlane.xlu1 %4683  ;;  %v4694_v62 = vpop.xlane.xlu0 %4693  ;;  %v12965_v7 = vmax.f32 %v12964_v0, 0.0 }
 0x628   : > { %v4708_v31 = vmul.f32 0.0078125, %v4684_v58  ;;  %v4732_v46 = vmul.f32 %v11535_v47, %v11535_v47  ;;  %v4713_v58 = vmul.f32 0.0078125, %v4694_v62 }
 0x629   : > { %v11552_v57 = vsub.f32 %v12965_v7, %v4709_v48 }
 0x62a   : > { %v11546_v63 = vsub.f32 %v12963_v61, %v4708_v31  ;;  %4585 = vadd.xlane.f32.xlu0 %v4584_v39  ;;  %4745 = vadd.xlane.f32.xlu1 %v4732_v46  ;;  %v12966_v46 = vld [vmem:[#allocation12_spill] sm:$0xff]  ;;  %v11574_v62 = vsub.f32 %v12968_v10, %v4713_v58  ;;  %v12970_v58 = vmax.f32 %v11251_v15, 0.0 }
 0x62b   : > { %v4688_v26 = vpop.xlane.xlu1 %4687  ;;  %v4698_v56 = vpop.xlane.xlu0 %4697  ;;  %v12967_v39 = vmax.f32 %v12966_v46, 0.0  ;;  %v12971_v10 = vld [vmem:[#allocation132_spill] sm:$0xff] }
 0x62c   : > { %v4710_v36 = vmul.f32 0.0078125, %v4688_v26  ;;  %v4734_v16 = vmul.f32 %v11546_v63, %v11546_v63  ;;  %v4735_v26 = vmul.f32 %v11552_v57, %v11552_v57  ;;  %v4715_v7 = vmul.f32 0.0078125, %v4698_v56 }
 0x62d   : > { %v11562_v61 = vsub.f32 %v12967_v39, %v4711_v53  ;;  %v4739_v56 = vmul.f32 %v11574_v62, %v11574_v62 }
 0x62e   : > { %v11558_v3 = vsub.f32 %v3489_v21, %v4710_v36  ;;  %4749 = vadd.xlane.f32.xlu1 %v4734_v16  ;;  %4747 = vadd.xlane.f32.xlu0 %v4733_v60  ;;  %v11589_v39 = vsub.f32 %v12970_v58, %v4715_v7  ;;  %v12974_v7 = vmax.f32 %v11266_v40, 0.0 }
 0x62f   : > { %v4692_v31 = vpop.xlane.xlu1 %4691  ;;  %v4702_v48 = vpop.xlane.xlu0 %4701 }
 0x630   : > { %v4712_v0 = vmul.f32 0.0078125, %v4692_v31  ;;  %v4736_v42 = vmul.f32 %v11558_v3, %v11558_v3  ;;  %v4737_v31 = vmul.f32 %v11562_v61, %v11562_v61 }
 0x632   : > { %v11570_v21 = vsub.f32 %v3505_v11, %v4712_v0  ;;  %4753 = vadd.xlane.f32.xlu1 %v4736_v42  ;;  %4751 = vadd.xlane.f32.xlu0 %v4735_v26  ;;  %v12969_v11 = vmax.f32 %v11277_v33, 0.0  ;;  %v4717_v0 = vmul.f32 0.0078125, %v4702_v48  ;;  %v12972_v33 = vmax.f32 %v12971_v10, 0.0 }
 0x633   : > { %v4696_v60 = vpop.xlane.xlu1 %4695  ;;  %v4867_v53 = vpop.xlane.xlu0 %4866 }
 0x634   : > { %v4714_v36 = vmul.f32 0.0078125, %v4696_v60  ;;  %v4738_v16 = vmul.f32 %v11570_v21, %v11570_v21  ;;  %v11595_v60 = vsub.f32 %v12972_v33, %v4718_v59  ;;  %v11603_v48 = vsub.f32 %v12974_v7, %v4717_v0 }
 0x635   : > { %v4741_v59 = vmul.f32 %v11589_v39, %v11589_v39  ;;  %v12977_v7 = vmax.f32 %v11296_v35, 0.0 }
 0x636   : > { %v11583_v46 = vsub.f32 %v12969_v11, %v4714_v36  ;;  %4757 = vadd.xlane.f32.xlu1 %v4738_v16  ;;  %4755 = vadd.xlane.f32.xlu0 %v4737_v31  ;;  %v12973_v36 = vmax.f32 %v11292_v38, 0.0  ;;  %v4892_v31 = vmul.f32 0.0078125, %v4867_v53  ;;  %v4744_v38 = vmul.f32 %v11595_v60, %v11595_v60 }
 0x637   : > { %v4700_v24 = vpop.xlane.xlu1 %4699  ;;  %v4871_v42 = vpop.xlane.xlu0 %4870  ;;  %v12975_v53 = vmax.f32 %v11280_v41, 0.0 }
 0x638   : > { %v4716_v26 = vmul.f32 0.0078125, %v4700_v24  ;;  %v4740_v17 = vmul.f32 %v11583_v46, %v11583_v46  ;;  %v4894_v40 = vmul.f32 0.0078125, %v4871_v42 }
 0x63a   : > { %v11599_v16 = vsub.f32 %v12973_v36, %v4716_v26  ;;  %4761 = vadd.xlane.f32.xlu1 %v4740_v17  ;;  %4759 = vadd.xlane.f32.xlu0 %v4739_v56  ;;  %v11613_v56 = vsub.f32 %v12975_v53, %v4892_v31  ;;  %v12976_v26 = vmax.f32 %v11307_v20, 0.0  ;;  %v4743_v36 = vmul.f32 %v11603_v48, %v11603_v48 }
 0x63b   : > { %v4865_v15 = vpop.xlane.xlu1 %4864  ;;  %v4875_v11 = vpop.xlane.xlu0 %4874  ;;  %v11624_v41 = vsub.f32 %v12977_v7, %v4894_v40 }
 0x63c   : > { %v4891_v24 = vmul.f32 0.0078125, %v4865_v15  ;;  %v4742_v58 = vmul.f32 %v11599_v16, %v11599_v16  ;;  %v4769_v15 = vsel %vm1403_vm0, %v4744_v38, 0.0  ;;  %v4918_v42 = vmul.f32 %v11613_v56, %v11613_v56 }
 0x63d   : > { %v4896_v20 = vmul.f32 0.0078125, %v4875_v11  ;;  %v4920_v40 = vmul.f32 %v11624_v41, %v11624_v41 }
 0x63e   : > { %4765 = vadd.xlane.f32.xlu1 %v4742_v58  ;;  %4763 = vadd.xlane.f32.xlu0 %v4741_v59  ;;  %v11617_v17 = vsub.f32 %v12976_v26, %v4891_v24  ;;  %v12978_v24 = vmax.f32 %v11324_v51, 0.0  ;;  %v12979_v26 = vmax.f32 %v11312_v22, 0.0  ;;  %v12980_v51 = vmax.f32 %v11340_v14, 0.0 }
 0x63f   : > { %v4869_v0 = vpop.xlane.xlu1 %4868  ;;  %v4879_v10 = vpop.xlane.xlu0 %4878  ;;  %v12982_v22 = vmax.f32 %v11353_v9, 0.0 }
 0x640   : > { %v4893_v33 = vmul.f32 0.0078125, %v4869_v0  ;;  %v4917_v38 = vmul.f32 %v11617_v17, %v11617_v17  ;;  %v4898_v0 = vmul.f32 0.0078125, %v4879_v10  ;;  %v12981_v10 = vmax.f32 %v11328_v28, 0.0 }
 0x641   : > { %v12983_v28 = vmax.f32 %v11343_v19, 0.0 }
 0x642   : > { %4770 = vadd.xlane.f32.xlu1 %v4769_v15  ;;  %4767 = vadd.xlane.f32.xlu0 %v4743_v36  ;;  %v11630_v58 = vsub.f32 %v12978_v24, %v4893_v33  ;;  %v11638_v36 = vsub.f32 %v12979_v26, %v4896_v20 }
 0x643   : > { %v4873_v31 = vpop.xlane.xlu1 %4872  ;;  %v4883_v59 = vpop.xlane.xlu0 %4882 }
 0x644   : > { %v4895_v53 = vmul.f32 0.0078125, %v4873_v31  ;;  %v4919_v7 = vmul.f32 %v11630_v58, %v11630_v58  ;;  %v11648_v31 = vsub.f32 %v12981_v10, %v4898_v0 }
 0x646   : > { %4930 = vadd.xlane.f32.xlu0 %v4917_v38  ;;  %4932 = vadd.xlane.f32.xlu1 %v4918_v42  ;;  %v11642_v11 = vsub.f32 %v12980_v51, %v4895_v53  ;;  %v4900_v42 = vmul.f32 0.0078125, %v4883_v59  ;;  %v4924_v9 = vmul.f32 %v11648_v31, %v11648_v31 }
 0x647   : > { %v4877_v35 = vpop.xlane.xlu1 %4876  ;;  %v4887_v33 = vpop.xlane.xlu0 %4886 }
 0x648   : > { %v4897_v15 = vmul.f32 0.0078125, %v4877_v35  ;;  %v4921_v38 = vmul.f32 %v11642_v11, %v11642_v11  ;;  %v4922_v35 = vmul.f32 %v11638_v36, %v11638_v36  ;;  %v11660_v0 = vsub.f32 %v12983_v28, %v4900_v42 }
 0x649   : > { %v4902_v51 = vmul.f32 0.0078125, %v4887_v33 }
 0x64a   : > { %4934 = vadd.xlane.f32.xlu0 %v4919_v7  ;;  %4936 = vadd.xlane.f32.xlu1 %v4920_v40  ;;  %v11652_v20 = vsub.f32 %v12982_v22, %v4897_v15  ;;  %v12984_v15 = vmax.f32 %v11364_v52, 0.0  ;;  %v4926_v33 = vmul.f32 %v11660_v0, %v11660_v0  ;;  %v12985_v52 = vmax.f32 %v12933_v1, 0.0 }
 0x64b   : > { %v4881_v24 = vpop.xlane.xlu1 %4880  ;;  %v4390_v14 = vpop.xlane.xlu0 %4389 }
 0x64c   : > { %v4899_v53 = vmul.f32 0.0078125, %v4881_v24  ;;  %v4409_v26 = vmul.f32 0.0078125, %v4390_v14  ;;  %v4923_v22 = vmul.f32 %v11652_v20, %v11652_v20  ;;  %v4903_v14 = vmul.f32 0.0078125, %v11426_v25 }
 0x64e   : > { %4938 = vadd.xlane.f32.xlu0 %v4921_v38  ;;  %4940 = vadd.xlane.f32.xlu1 %v4922_v35  ;;  %v4422_v59 = vadd.f32 1e-05, %v4409_v26  ;;  %v11666_v7 = vsub.f32 %v12984_v15, %v4899_v53  ;;  %v11675_v53 = vsub.f32 %v12985_v52, %v4902_v51  ;;  %v12986_v35 = vmax.f32 %v11378_v55, 0.0 }
 0x64f   : > { %v4885_v40 = vpop.xlane.xlu1 %4884  ;;  %v4394_v10 = vpop.xlane.xlu0 %4393 }
 0x650   : > { %v4901_v24 = vmul.f32 0.0078125, %v4885_v40  ;;  %5697 = vrsqrt.f32 %v4422_v59  ;;  %v4411_v19 = vmul.f32 0.0078125, %v4394_v10  ;;  %v4925_v25 = vmul.f32 %v11666_v7, %v11666_v7  ;;  %v12987_v59 = vld [vmem:[#allocation117_spill] sm:$0xff] }
 0x652   : > { %4942 = vadd.xlane.f32.xlu0 %v4923_v22  ;;  %4944 = vadd.xlane.f32.xlu1 %v4924_v9  ;;  %v4424_v42 = vadd.f32 1e-05, %v4411_v19  ;;  %v11679_v26 = vsub.f32 %v12986_v35, %v4901_v24  ;;  %v12988_v9 = vmax.f32 %v12987_v59, 0.0  ;;  %v4928_v19 = vmul.f32 %v11675_v53, %v11675_v53 }
 0x653   : > { %v4388_v38 = vpop.xlane.xlu1 %4387  ;;  %v4398_v28 = vpop.xlane.xlu0 %4397 }
 0x654   : > { %v4408_v40 = vmul.f32 0.0078125, %v4388_v38  ;;  %v11685_v15 = vsub.f32 %v12988_v9, %v4903_v14  ;;  %5699 = vrsqrt.f32 %v4424_v42  ;;  %v4413_v10 = vmul.f32 0.0078125, %v4398_v28  ;;  %v11698_v9 = vld [vmem:[%s11894_s3] ss:$0 sm:$0xff] }
 0x655   : > { %v4927_v24 = vmul.f32 %v11679_v26, %v11679_v26 }
 0x656   : > { %v4421_v22 = vadd.f32 1e-05, %v4408_v40  ;;  %4946 = vadd.xlane.f32.xlu0 %v4925_v25  ;;  %4948 = vadd.xlane.f32.xlu1 %v4926_v33  ;;  %v4426_v1 = vadd.f32 1e-05, %v4413_v10  ;;  %v4929_v14 = vmul.f32 %v11685_v15, %v11685_v15 }
 0x657   : > { %v4392_v51 = vpop.xlane.xlu1 %4391 }
 0x658   : > { %5701 = vrsqrt.f32 %v4421_v22  ;;  %v4410_v55 = vmul.f32 0.0078125, %v4392_v51  ;;  %v4954_v52 = vsel %vm1403_vm0, %v4929_v14, 0.0  ;;  %v11704_v51 = vld [vmem:[%s11895_s4] ss:$0 sm:$0xff] }
 0x659   : > { %5703 = vrsqrt.f32 %v4426_v1 }
 0x65a   : > { %v4423_v38 = vadd.f32 1e-05, %v4410_v55  ;;  %4950 = vadd.xlane.f32.xlu0 %v4927_v24  ;;  %4952 = vadd.xlane.f32.xlu1 %v4928_v19 }
 0x65b   : > { %v4396_v42 = vpop.xlane.xlu1 %4395 }
 0x65c   : > { %5705 = vrsqrt.f32 %v4423_v38  ;;  %v4412_v33 = vmul.f32 0.0078125, %v4396_v42 }
 0x65d   : > { %v5698_v35 = vpop.eup %5697 }
 0x65e   : > { %v4425_v28 = vadd.f32 1e-05, %v4412_v33  ;;  %4955 = vadd.xlane.f32.xlu0 %v4954_v52  ;;  %v4448_v40 = vmul.f32 %v5698_v35, %v11369_v54 }
 0x65f   : > { %v4401_v25 = vpop.xlane.xlu1 %4400 }
 0x660   : > { %5707 = vrsqrt.f32 %v4425_v28  ;;  %v4414_v59 = vmul.f32 0.0078125, %v4401_v25  ;;  %v4461_v10 = vmul.f32 %v11698_v9, %v4448_v40 }
 0x661   : > { %v5700_v22 = vpop.eup %5699 }
 0x662   : > { %v4427_v1 = vadd.f32 1e-05, %v4414_v59  ;;  %v4474_v54 = vadd.f32 %v11704_v51, %v4461_v10  ;;  %v4450_v55 = vmul.f32 %v5700_v22, %v11382_v29 }
 0x664   : > { %5709 = vrsqrt.f32 %v4427_v1  ;;  %5507 = vst [vmem:[%s10548_s10 + $0x1d8] sm:$0xff] %v4474_v54  ;;  %v4463_v19 = vmul.f32 %v11698_v9, %v4450_v55 }
 0x665   : > { %v5702_v24 = vpop.eup %5701 }
 0x666   : > { %v5704_v14 = vpop.eup %5703  ;;  %v4447_v38 = vmul.f32 %v5702_v24, %v11391_v12  ;;  %v4476_v42 = vadd.f32 %v11704_v51, %v4463_v19 }
 0x667   : > { %v4452_v33 = vmul.f32 %v5704_v14, %v11395_v6 }
 0x668   : > { %v4460_v52 = vmul.f32 %v11698_v9, %v4447_v38  ;;  %5509 = vst [vmem:[%s10548_s10 + $0x1e8] sm:$0xff] %v4476_v42 }
 0x669   : > { %v5706_v35 = vpop.eup %5705  ;;  %v4465_v29 = vmul.f32 %v11698_v9, %v4452_v33 }
 0x66a   : > { %v4473_v28 = vadd.f32 %v11704_v51, %v4460_v52  ;;  %v4449_v40 = vmul.f32 %v5706_v35, %v11403_v34 }
 0x66b   : > { %v4478_v25 = vadd.f32 %v11704_v51, %v4465_v29 }
 0x66c   : > { %5506 = vst [vmem:[%s10548_s10 + $0x1d0] sm:$0xff] %v4473_v28  ;;  %v4462_v12 = vmul.f32 %v11698_v9, %v4449_v40 }
 0x66d   : > { %v5708_v59 = vpop.eup %5707  ;;  %5511 = vst [vmem:[%s10548_s10 + $0x1f8] sm:$0xff] %v4478_v25 }
 0x66e   : > { %v4475_v6 = vadd.f32 %v11704_v51, %v4462_v12  ;;  %v4451_v10 = vmul.f32 %v5708_v59, %v11411_v2 }
 0x670   : > { %5508 = vst [vmem:[%s10548_s10 + $0x1e0] sm:$0xff] %v4475_v6  ;;  %v4464_v22 = vmul.f32 %v11698_v9, %v4451_v10 }
 0x671   : > { %v5710_v1 = vpop.eup %5709 }
 0x672   : > { %v4477_v54 = vadd.f32 %v11704_v51, %v4464_v22  ;;  %v4453_v34 = vmul.f32 %v5710_v1, %v11417_v18 }
 0x674   : > { %5510 = vst [vmem:[%s10548_s10 + $0x1f0] sm:$0xff] %v4477_v54  ;;  %v4466_v55 = vmul.f32 %v11698_v9, %v4453_v34 }
 0x676   : > { %v4479_v24 = vadd.f32 %v11704_v51, %v4466_v55 }
 0x678   : > { %5512 = vst [vmem:[%s10548_s10 + $0x200] sm:$0x1f] %v4479_v24 }
 0x693   : > { %v4563_v19 = vpop.xlane.xlu1 %4562 }
 0x694   : > { %v4588_v14 = vmul.f32 0.0078125, %v4563_v19 }
 0x696   : > { %v4601_v38 = vadd.f32 1e-05, %v4588_v14 }
 0x697   : > { %v4567_v42 = vpop.xlane.xlu1 %4566 }
 0x698   : > { %5711 = vrsqrt.f32 %v4601_v38  ;;  %v4590_v2 = vmul.f32 0.0078125, %v4567_v42 }
 0x69a   : > { %v4603_v33 = vadd.f32 1e-05, %v4590_v2 }
 0x69b   : > { %v4561_v52 = vpop.xlane.xlu0 %4560 }
 0x69c   : > { %v4571_v35 = vpop.xlane.xlu1 %4570  ;;  %v4587_v29 = vmul.f32 0.0078125, %v4561_v52  ;;  %5713 = vrsqrt.f32 %v4603_v33 }
 0x69d   : > { %v4592_v28 = vmul.f32 0.0078125, %v4571_v35 }
 0x69e   : > { %v4600_v40 = vadd.f32 1e-05, %v4587_v29 }
 0x69f   : > { %v4605_v18 = vadd.f32 1e-05, %v4592_v28  ;;  %v4565_v25 = vpop.xlane.xlu0 %4564 }
 0x6a0   : > { %5715 = vrsqrt.f32 %v4600_v40  ;;  %v4575_v12 = vpop.xlane.xlu1 %4574  ;;  %v4589_v59 = vmul.f32 0.0078125, %v4565_v25 }
 0x6a1   : > { %5717 = vrsqrt.f32 %v4605_v18  ;;  %v4594_v6 = vmul.f32 0.0078125, %v4575_v12 }
 0x6a2   : > { %v4602_v10 = vadd.f32 1e-05, %v4589_v59 }
 0x6a3   : > { %v4607_v22 = vadd.f32 1e-05, %v4594_v6  ;;  %v4569_v1 = vpop.xlane.xlu0 %4568 }
 0x6a4   : > { %5719 = vrsqrt.f32 %v4602_v10  ;;  %v4579_v54 = vpop.xlane.xlu1 %4578  ;;  %v4591_v34 = vmul.f32 0.0078125, %v4569_v1 }
 0x6a5   : > { %5721 = vrsqrt.f32 %v4607_v22  ;;  %v4596_v55 = vmul.f32 0.0078125, %v4579_v54  ;;  %v5712_v24 = vpop.eup %5711 }
 0x6a6   : > { %v4604_v19 = vadd.f32 1e-05, %v4591_v34  ;;  %v4627_v14 = vmul.f32 %v5712_v24, %v11434_v13 }
 0x6a7   : > { %v4609_v38 = vadd.f32 1e-05, %v4596_v55  ;;  %v4573_v42 = vpop.xlane.xlu0 %4572 }
 0x6a8   : > { %5723 = vrsqrt.f32 %v4604_v19  ;;  %v4583_v2 = vpop.xlane.xlu1 %4582  ;;  %v4593_v33 = vmul.f32 0.0078125, %v4573_v42  ;;  %v4640_v52 = vmul.f32 %v11698_v9, %v4627_v14 }
 0x6a9   : > { %5725 = vrsqrt.f32 %v4609_v38  ;;  %v4598_v35 = vmul.f32 0.0078125, %v4583_v2  ;;  %v5714_v29 = vpop.eup %5713 }
 0x6aa   : > { %v4606_v28 = vadd.f32 1e-05, %v4593_v33  ;;  %v4653_v40 = vadd.f32 %v11704_v51, %v4640_v52  ;;  %v4629_v18 = vmul.f32 %v5714_v29, %v11446_v50 }
 0x6ab   : > { %v4611_v25 = vadd.f32 1e-05, %v4598_v35  ;;  %v4577_v12 = vpop.xlane.xlu0 %4576 }
 0x6ac   : > { %5727 = vrsqrt.f32 %v4606_v28  ;;  %v4595_v13 = vmul.f32 0.0078125, %v4577_v12  ;;  %5514 = vst [vmem:[%s10548_s10 + $0x210] sm:$0xff] %v4653_v40  ;;  %v4642_v6 = vmul.f32 %v11698_v9, %v4629_v18 }
 0x6ad   : > { %v5716_v59 = vpop.eup %5715  ;;  %5729 = vrsqrt.f32 %v4611_v25 }
 0x6ae   : > { %v5718_v10 = vpop.eup %5717  ;;  %v4626_v22 = vmul.f32 %v5716_v59, %v11455_v23  ;;  %v4608_v1 = vadd.f32 1e-05, %v4595_v13  ;;  %v4655_v54 = vadd.f32 %v11704_v51, %v4642_v6 }
 0x6af   : > { %v4631_v34 = vmul.f32 %v5718_v10, %v11460_v49  ;;  %v4581_v50 = vpop.xlane.xlu0 %4580 }
 0x6b0   : > { %v4639_v55 = vmul.f32 %v11698_v9, %v4626_v22  ;;  %5731 = vrsqrt.f32 %v4608_v1  ;;  %v4597_v24 = vmul.f32 0.0078125, %v4581_v50  ;;  %5516 = vst [vmem:[%s10548_s10 + $0x220] sm:$0xff] %v4655_v54 }
 0x6b1   : > { %v5720_v19 = vpop.eup %5719  ;;  %v4644_v14 = vmul.f32 %v11698_v9, %v4631_v34 }
 0x6b2   : > { %v5722_v38 = vpop.eup %5721  ;;  %v4652_v42 = vadd.f32 %v11704_v51, %v4639_v55  ;;  %v4628_v23 = vmul.f32 %v5720_v19, %v11472_v30  ;;  %v4610_v2 = vadd.f32 1e-05, %v4597_v24 }
 0x6b3   : > { %v4657_v33 = vadd.f32 %v11704_v51, %v4644_v14  ;;  %v4633_v49 = vmul.f32 %v5722_v38, %v11476_v4  ;;  %v4746_v52 = vpop.xlane.xlu1 %4745  ;;  %v4586_v35 = vpop.xlane.xlu0 %4585 }
 0x6b4   : > { %5513 = vst [vmem:[%s10548_s10 + $0x208] sm:$0xff] %v4652_v42  ;;  %v4641_v29 = vmul.f32 %v11698_v9, %v4628_v23  ;;  %5733 = vrsqrt.f32 %v4610_v2  ;;  %v4772_v28 = vmul.f32 0.0078125, %v4746_v52  ;;  %v4599_v40 = vmul.f32 0.0078125, %v4586_v35 }
 0x6b5   : > { %v5724_v18 = vpop.eup %5723  ;;  %5518 = vst [vmem:[%s10548_s10 + $0x230] sm:$0xff] %v4657_v33  ;;  %v4646_v25 = vmul.f32 %v11698_v9, %v4633_v49 }
 0x6b6   : > { %v5726_v30 = vpop.eup %5725  ;;  %v4654_v12 = vadd.f32 %v11704_v51, %v4641_v29  ;;  %v4630_v13 = vmul.f32 %v5724_v18, %v11488_v44  ;;  %v4785_v4 = vadd.f32 1e-05, %v4772_v28  ;;  %v4612_v59 = vadd.f32 1e-05, %v4599_v40 }
 0x6b7   : > { %v4659_v6 = vadd.f32 %v11704_v51, %v4646_v25  ;;  %v4635_v10 = vmul.f32 %v5726_v30, %v11492_v37  ;;  %v4750_v22 = vpop.xlane.xlu1 %4749  ;;  %v4748_v1 = vpop.xlane.xlu0 %4747 }
 0x6b8   : > { %5515 = vst [vmem:[%s10548_s10 + $0x218] sm:$0xff] %v4654_v12  ;;  %v4643_v54 = vmul.f32 %v11698_v9, %v4630_v13  ;;  %5735 = vrsqrt.f32 %v4785_v4  ;;  %v4774_v34 = vmul.f32 0.0078125, %v4750_v22  ;;  %v4773_v50 = vmul.f32 0.0078125, %v4748_v1 }
 0x6b9   : > { %v5728_v55 = vpop.eup %5727  ;;  %5520 = vst [vmem:[%s10548_s10 + $0x240] sm:$0xff] %v4659_v6  ;;  %v4648_v24 = vmul.f32 %v11698_v9, %v4635_v10  ;;  %5737 = vrsqrt.f32 %v4612_v59 }
 0x6ba   : > { %v5730_v44 = vpop.eup %5729  ;;  %v4656_v19 = vadd.f32 %v11704_v51, %v4643_v54  ;;  %v4632_v37 = vmul.f32 %v5728_v55, %v11503_v45  ;;  %v4787_v14 = vadd.f32 1e-05, %v4774_v34  ;;  %v4786_v38 = vadd.f32 1e-05, %v4773_v50 }
 0x6bb   : > { %v4661_v42 = vadd.f32 %v11704_v51, %v4648_v24  ;;  %v4637_v23 = vmul.f32 %v5730_v44, %v11507_v8  ;;  %v4754_v2 = vpop.xlane.xlu1 %4753  ;;  %v4752_v33 = vpop.xlane.xlu0 %4751 }
 0x6bc   : > { %5517 = vst [vmem:[%s10548_s10 + $0x228] sm:$0xff] %v4656_v19  ;;  %v4645_v49 = vmul.f32 %v11698_v9, %v4632_v37  ;;  %5739 = vrsqrt.f32 %v4787_v14  ;;  %v4776_v52 = vmul.f32 0.0078125, %v4754_v2  ;;  %v4775_v35 = vmul.f32 0.0078125, %v4752_v33 }
 0x6bd   : > { %v5732_v29 = vpop.eup %5731  ;;  %5522 = vst [vmem:[%s10548_s10 + $0x250] sm:$0xff] %v4661_v42  ;;  %v4650_v45 = vmul.f32 %v11698_v9, %v4637_v23  ;;  %5741 = vrsqrt.f32 %v4786_v38 }
 0x6be   : > { %v4658_v28 = vadd.f32 %v11704_v51, %v4645_v49  ;;  %v4634_v40 = vmul.f32 %v5732_v29, %v11517_v27  ;;  %v4789_v8 = vadd.f32 1e-05, %v4776_v52  ;;  %v4788_v18 = vadd.f32 1e-05, %v4775_v35 }
 0x6bf   : > { %v4663_v25 = vadd.f32 %v11704_v51, %v4650_v45  ;;  %v4758_v30 = vpop.xlane.xlu1 %4757  ;;  %v4756_v12 = vpop.xlane.xlu0 %4755 }
 0x6c0   : > { %5519 = vst [vmem:[%s10548_s10 + $0x238] sm:$0xff] %v4658_v28  ;;  %v4647_v13 = vmul.f32 %v11698_v9, %v4634_v40  ;;  %5743 = vrsqrt.f32 %v4789_v8  ;;  %v4778_v4 = vmul.f32 0.0078125, %v4758_v30  ;;  %v4777_v59 = vmul.f32 0.0078125, %v4756_v12 }
 0x6c1   : > { %v5734_v6 = vpop.eup %5733  ;;  %5524 = vst [vmem:[%s10548_s10 + $0x260] sm:$0xff] %v4663_v25  ;;  %5745 = vrsqrt.f32 %v4788_v18 }
 0x6c2   : > { %v4660_v10 = vadd.f32 %v11704_v51, %v4647_v13  ;;  %v4636_v27 = vmul.f32 %v5734_v6, %v11527_v43  ;;  %v4791_v22 = vadd.f32 1e-05, %v4778_v4  ;;  %v4790_v1 = vadd.f32 1e-05, %v4777_v59 }
 0x6c3   : > { %v4762_v54 = vpop.xlane.xlu1 %4761  ;;  %v4760_v34 = vpop.xlane.xlu0 %4759 }
 0x6c4   : > { %5521 = vst [vmem:[%s10548_s10 + $0x248] sm:$0xff] %v4660_v10  ;;  %v4649_v50 = vmul.f32 %v11698_v9, %v4636_v27  ;;  %5747 = vrsqrt.f32 %v4791_v22  ;;  %v4780_v55 = vmul.f32 0.0078125, %v4762_v54  ;;  %v4779_v24 = vmul.f32 0.0078125, %v4760_v34 }
 0x6c5   : > { %v5736_v44 = vpop.eup %5735  ;;  %5749 = vrsqrt.f32 %v4790_v1 }
 0x6c6   : > { %v5738_v19 = vpop.eup %5737  ;;  %v4662_v37 = vadd.f32 %v11704_v51, %v4649_v50  ;;  %v4811_v14 = vmul.f32 %v5736_v44, %v11535_v47  ;;  %v4793_v38 = vadd.f32 1e-05, %v4780_v55  ;;  %v4792_v43 = vadd.f32 1e-05, %v4779_v24 }
 0x6c7   : > { %v4638_v42 = vmul.f32 %v5738_v19, %v11523_v5  ;;  %v4766_v23 = vpop.xlane.xlu1 %4765  ;;  %v4764_v2 = vpop.xlane.xlu0 %4763 }
 0x6c8   : > { %5523 = vst [vmem:[%s10548_s10 + $0x258] sm:$0xff] %v4662_v37  ;;  %v4824_v33 = vmul.f32 %v11698_v9, %v4811_v14  ;;  %5751 = vrsqrt.f32 %v4793_v38  ;;  %v4782_v49 = vmul.f32 0.0078125, %v4766_v23  ;;  %v4781_v52 = vmul.f32 0.0078125, %v4764_v2 }
 0x6c9   : > { %v5740_v35 = vpop.eup %5739  ;;  %v4651_v29 = vmul.f32 %v11698_v9, %v4638_v42  ;;  %5753 = vrsqrt.f32 %v4792_v43 }
 0x6ca   : > { %v5742_v45 = vpop.eup %5741  ;;  %v4837_v47 = vadd.f32 %v11704_v51, %v4824_v33  ;;  %v4813_v28 = vmul.f32 %v5740_v35, %v11546_v63  ;;  %v4795_v5 = vadd.f32 1e-05, %v4782_v49  ;;  %v4794_v40 = vadd.f32 1e-05, %v4781_v52 }
 0x6cb   : > { %v4664_v8 = vadd.f32 %v11704_v51, %v4651_v29  ;;  %v4812_v18 = vmul.f32 %v5742_v45, %v11539_v32  ;;  %v4771_v25 = vpop.xlane.xlu1 %4770  ;;  %v4768_v30 = vpop.xlane.xlu0 %4767 }
 0x6cc   : > { %5526 = vst [vmem:[%s10548_s10 + $0x270] sm:$0xff] %v4837_v47  ;;  %v4826_v12 = vmul.f32 %v11698_v9, %v4813_v28  ;;  %5755 = vrsqrt.f32 %v4795_v5  ;;  %v4784_v13 = vmul.f32 0.0078125, %v4771_v25  ;;  %v4783_v4 = vmul.f32 0.0078125, %v4768_v30 }
 0x6cd   : > { %v5744_v59 = vpop.eup %5743  ;;  %5525 = vst [vmem:[%s10548_s10 + $0x268] sm:$0x1f] %v4664_v8  ;;  %v4825_v6 = vmul.f32 %v11698_v9, %v4812_v18  ;;  %5757 = vrsqrt.f32 %v4794_v40 }
 0x6ce   : > { %v5746_v63 = vpop.eup %5745  ;;  %v4839_v10 = vadd.f32 %v11704_v51, %v4826_v12  ;;  %v4815_v32 = vmul.f32 %v5744_v59, %v11558_v3  ;;  %v4797_v27 = vadd.f32 1e-05, %v4784_v13  ;;  %v4796_v22 = vadd.f32 1e-05, %v4783_v4 }
 0x6cf   : > { %v4838_v1 = vadd.f32 %v11704_v51, %v4825_v6  ;;  %v4814_v54 = vmul.f32 %v5746_v63, %v11552_v57  ;;  %v4933_v34 = vpop.xlane.xlu1 %4932  ;;  %v4931_v50 = vpop.xlane.xlu0 %4930 }
 0x6d0   : > { %5528 = vst [vmem:[%s10548_s10 + $0x280] sm:$0xff] %v4839_v10  ;;  %v4828_v55 = vmul.f32 %v11698_v9, %v4815_v32  ;;  %5759 = vrsqrt.f32 %v4797_v27  ;;  %v4958_v24 = vmul.f32 0.0078125, %v4933_v34  ;;  %v4957_v44 = vmul.f32 0.0078125, %v4931_v50 }
 0x6d1   : > { %v5748_v19 = vpop.eup %5747  ;;  %5527 = vst [vmem:[%s10548_s10 + $0x278] sm:$0xff] %v4838_v1  ;;  %v4827_v37 = vmul.f32 %v11698_v9, %v4814_v54  ;;  %5761 = vrsqrt.f32 %v4796_v22 }
 0x6d2   : > { %v5750_v3 = vpop.eup %5749  ;;  %v4841_v14 = vadd.f32 %v11704_v51, %v4828_v55  ;;  %v4817_v57 = vmul.f32 %v5748_v19, %v11570_v21  ;;  %v4971_v38 = vadd.f32 1e-05, %v4958_v24  ;;  %v4970_v43 = vadd.f32 1e-05, %v4957_v44 }
 0x6d3   : > { %v4840_v42 = vadd.f32 %v11704_v51, %v4827_v37  ;;  %v4816_v23 = vmul.f32 %v5750_v3, %v11562_v61  ;;  %v4937_v2 = vpop.xlane.xlu1 %4936  ;;  %v4935_v33 = vpop.xlane.xlu0 %4934 }
 0x6d4   : > { %5530 = vst [vmem:[%s10548_s10 + $0x290] sm:$0xff] %v4841_v14  ;;  %v4830_v49 = vmul.f32 %v11698_v9, %v4817_v57  ;;  %5763 = vrsqrt.f32 %v4971_v38  ;;  %v4960_v52 = vmul.f32 0.0078125, %v4937_v2  ;;  %v4959_v35 = vmul.f32 0.0078125, %v4935_v33 }
 0x6d5   : > { %v5752_v29 = vpop.eup %5751  ;;  %5529 = vst [vmem:[%s10548_s10 + $0x288] sm:$0xff] %v4840_v42  ;;  %v4829_v45 = vmul.f32 %v11698_v9, %v4816_v23  ;;  %5765 = vrsqrt.f32 %v4970_v43 }
 0x6d6   : > { %v5754_v21 = vpop.eup %5753  ;;  %v4843_v47 = vadd.f32 %v11704_v51, %v4830_v49  ;;  %v4819_v61 = vmul.f32 %v5752_v29, %v11583_v46  ;;  %v4973_v28 = vadd.f32 1e-05, %v4960_v52  ;;  %v4972_v5 = vadd.f32 1e-05, %v4959_v35 }
 0x6d7   : > { %v4842_v40 = vadd.f32 %v11704_v51, %v4829_v45  ;;  %v4818_v8 = vmul.f32 %v5754_v21, %v11574_v62  ;;  %v4941_v18 = vpop.xlane.xlu1 %4940  ;;  %v4939_v25 = vpop.xlane.xlu0 %4938 }
 0x6d8   : > { %5532 = vst [vmem:[%s10548_s10 + $0x2a0] sm:$0xff] %v4843_v47  ;;  %v4832_v30 = vmul.f32 %v11698_v9, %v4819_v61  ;;  %5767 = vrsqrt.f32 %v4973_v28  ;;  %v4962_v12 = vmul.f32 0.0078125, %v4941_v18  ;;  %v4961_v13 = vmul.f32 0.0078125, %v4939_v25 }
 0x6d9   : > { %v5756_v4 = vpop.eup %5755  ;;  %5531 = vst [vmem:[%s10548_s10 + $0x298] sm:$0xff] %v4842_v40  ;;  %v4831_v59 = vmul.f32 %v11698_v9, %v4818_v8  ;;  %5769 = vrsqrt.f32 %v4972_v5 }
 0x6da   : > { %v5758_v46 = vpop.eup %5757  ;;  %v4845_v6 = vadd.f32 %v11704_v51, %v4832_v30  ;;  %v4821_v62 = vmul.f32 %v5756_v4, %v11599_v16  ;;  %v4975_v63 = vadd.f32 1e-05, %v4962_v12  ;;  %v4974_v10 = vadd.f32 1e-05, %v4961_v13 }
 0x6db   : > { %v4844_v32 = vadd.f32 %v11704_v51, %v4831_v59  ;;  %v4820_v27 = vmul.f32 %v5758_v46, %v11589_v39  ;;  %v4945_v22 = vpop.xlane.xlu1 %4944  ;;  %v4943_v1 = vpop.xlane.xlu0 %4942 }
 0x6dc   : > { %5534 = vst [vmem:[%s10548_s10 + $0x2b0] sm:$0xff] %v4845_v6  ;;  %v4834_v54 = vmul.f32 %v11698_v9, %v4821_v62  ;;  %5771 = vrsqrt.f32 %v4975_v63  ;;  %v4964_v34 = vmul.f32 0.0078125, %v4945_v22  ;;  %v4963_v50 = vmul.f32 0.0078125, %v4943_v1 }
 0x6dd   : > { %v5760_v55 = vpop.eup %5759  ;;  %5533 = vst [vmem:[%s10548_s10 + $0x2a8] sm:$0xff] %v4844_v32  ;;  %v4833_v24 = vmul.f32 %v11698_v9, %v4820_v27  ;;  %5773 = vrsqrt.f32 %v4974_v10 }
 0x6de   : > { %v5762_v16 = vpop.eup %5761  ;;  %v4847_v44 = vadd.f32 %v11704_v51, %v4834_v54  ;;  %v4823_v39 = vmul.f32 %v5760_v55, %v11595_v60  ;;  %v4977_v19 = vadd.f32 1e-05, %v4964_v34  ;;  %v4976_v37 = vadd.f32 1e-05, %v4963_v50 }
 0x6df   : > { %v4846_v3 = vadd.f32 %v11704_v51, %v4833_v24  ;;  %v4822_v14 = vmul.f32 %v5762_v16, %v11603_v48  ;;  %v4949_v57 = vpop.xlane.xlu1 %4948  ;;  %v4947_v38 = vpop.xlane.xlu0 %4946 }
 0x6e0   : > { %5536 = vst [vmem:[%s10548_s10 + $0x2c0] sm:$0xff] %v4847_v44  ;;  %v4836_v43 = vmul.f32 %v11698_v9, %v4823_v39  ;;  %5775 = vrsqrt.f32 %v4977_v19  ;;  %v4966_v42 = vmul.f32 0.0078125, %v4949_v57  ;;  %v4965_v23 = vmul.f32 0.0078125, %v4947_v38 }
 0x6e1   : > { %v5764_v2 = vpop.eup %5763  ;;  %5535 = vst [vmem:[%s10548_s10 + $0x2b8] sm:$0xff] %v4846_v3  ;;  %v4835_v33 = vmul.f32 %v11698_v9, %v4822_v14  ;;  %5777 = vrsqrt.f32 %v4976_v37 }
 0x6e2   : > { %v5766_v60 = vpop.eup %5765  ;;  %v4849_v49 = vadd.f32 %v11704_v51, %v4836_v43  ;;  %v4997_v48 = vmul.f32 %v5764_v2, %v11613_v56  ;;  %v4979_v52 = vadd.f32 1e-05, %v4966_v42  ;;  %v4978_v35 = vadd.f32 1e-05, %v4965_v23 }
 0x6e3   : > { %v4848_v29 = vadd.f32 %v11704_v51, %v4835_v33  ;;  %v4996_v45 = vmul.f32 %v5766_v60, %v11617_v17  ;;  %v4953_v21 = vpop.xlane.xlu1 %4952  ;;  %v4951_v47 = vpop.xlane.xlu0 %4950 }
 0x6e4   : > { %5538 = vst [vmem:[%s10548_s10 + $0x2d0] sm:$0x1f] %v4849_v49  ;;  %v5010_v61 = vmul.f32 %v11698_v9, %v4997_v48  ;;  %5779 = vrsqrt.f32 %v4979_v52  ;;  %v4968_v28 = vmul.f32 0.0078125, %v4953_v21  ;;  %v4967_v5 = vmul.f32 0.0078125, %v4951_v47 }
 0x6e5   : > { %v5768_v40 = vpop.eup %5767  ;;  %5537 = vst [vmem:[%s10548_s10 + $0x2c8] sm:$0xff] %v4848_v29  ;;  %v5009_v56 = vmul.f32 %v11698_v9, %v4996_v45  ;;  %5781 = vrsqrt.f32 %v4978_v35 }
 0x6e6   : > { %v5770_v8 = vpop.eup %5769  ;;  %v5023_v18 = vadd.f32 %v11704_v51, %v5010_v61  ;;  %v4999_v17 = vmul.f32 %v5768_v40, %v11624_v41  ;;  %v4981_v25 = vadd.f32 1e-05, %v4968_v28  ;;  %v4980_v30 = vadd.f32 1e-05, %v4967_v5 }
 0x6e7   : > { %v5022_v12 = vadd.f32 %v11704_v51, %v5009_v56  ;;  %v4998_v13 = vmul.f32 %v5770_v8, %v11630_v58  ;;  %v4956_v4 = vpop.xlane.xlu0 %4955 }
 0x6e8   : > { %5540 = vst [vmem:[%s10548_s10 + $0x2e0] sm:$0xff] %v5023_v18  ;;  %v5012_v59 = vmul.f32 %v11698_v9, %v4999_v17  ;;  %5783 = vrsqrt.f32 %v4981_v25  ;;  %v4969_v46 = vmul.f32 0.0078125, %v4956_v4 }
 0x6e9   : > { %v5772_v6 = vpop.eup %5771  ;;  %5539 = vst [vmem:[%s10548_s10 + $0x2d8] sm:$0xff] %v5022_v12  ;;  %v5011_v62 = vmul.f32 %v11698_v9, %v4998_v13  ;;  %5785 = vrsqrt.f32 %v4980_v30 }
 0x6ea   : > { %v5774_v41 = vpop.eup %5773  ;;  %v5025_v63 = vadd.f32 %v11704_v51, %v5012_v59  ;;  %v5001_v10 = vmul.f32 %v5772_v6, %v11638_v36  ;;  %v4982_v58 = vadd.f32 1e-05, %v4969_v46 }
 0x6eb   : > { %v5024_v32 = vadd.f32 %v11704_v51, %v5011_v62  ;;  %v5000_v27 = vmul.f32 %v5774_v41, %v11642_v11 }
 0x6ec   : > { %5542 = vst [vmem:[%s10548_s10 + $0x2f0] sm:$0xff] %v5025_v63  ;;  %v5014_v22 = vmul.f32 %v11698_v9, %v5001_v10  ;;  %5787 = vrsqrt.f32 %v4982_v58 }
 0x6ed   : > { %v5776_v1 = vpop.eup %5775  ;;  %5541 = vst [vmem:[%s10548_s10 + $0x2e8] sm:$0xff] %v5024_v32  ;;  %v5013_v54 = vmul.f32 %v11698_v9, %v5000_v27 }
 0x6ee   : > { %v5778_v34 = vpop.eup %5777  ;;  %v5027_v50 = vadd.f32 %v11704_v51, %v5014_v22  ;;  %v5003_v36 = vmul.f32 %v5776_v1, %v11648_v31 }
 0x6ef   : > { %v5026_v55 = vadd.f32 %v11704_v51, %v5013_v54  ;;  %v5002_v24 = vmul.f32 %v5778_v34, %v11652_v20 }
 0x6f0   : > { %5544 = vst [vmem:[%s10548_s10 + $0x300] sm:$0xff] %v5027_v50  ;;  %v5016_v11 = vmul.f32 %v11698_v9, %v5003_v36 }
 0x6f1   : > { %v5780_v16 = vpop.eup %5779  ;;  %5543 = vst [vmem:[%s10548_s10 + $0x2f8] sm:$0xff] %v5026_v55  ;;  %v5015_v44 = vmul.f32 %v11698_v9, %v5002_v24 }
 0x6f2   : > { %v5782_v39 = vpop.eup %5781  ;;  %v5029_v19 = vadd.f32 %v11704_v51, %v5016_v11  ;;  %v5005_v37 = vmul.f32 %v5780_v16, %v11660_v0 }
 0x6f3   : > { %v5028_v31 = vadd.f32 %v11704_v51, %v5015_v44  ;;  %v5004_v3 = vmul.f32 %v5782_v39, %v11666_v7 }
 0x6f4   : > { %5546 = vst [vmem:[%s10548_s10 + $0x310] sm:$0xff] %v5029_v19  ;;  %v5018_v20 = vmul.f32 %v11698_v9, %v5005_v37 }
 0x6f5   : > { %v5784_v14 = vpop.eup %5783  ;;  %5545 = vst [vmem:[%s10548_s10 + $0x308] sm:$0xff] %v5028_v31  ;;  %v5017_v57 = vmul.f32 %v11698_v9, %v5004_v3 }
 0x6f6   : > { %v5786_v38 = vpop.eup %5785  ;;  %v5031_v43 = vadd.f32 %v11704_v51, %v5018_v20  ;;  %v5007_v0 = vmul.f32 %v5784_v14, %v11675_v53 }
 0x6f7   : > { %v5030_v42 = vadd.f32 %v11704_v51, %v5017_v57  ;;  %v5006_v23 = vmul.f32 %v5786_v38, %v11679_v26 }
 0x6f8   : > { %5548 = vst [vmem:[%s10548_s10 + $0x320] sm:$0xff] %v5031_v43  ;;  %v5020_v7 = vmul.f32 %v11698_v9, %v5007_v0 }
 0x6f9   : > { %v5788_v2 = vpop.eup %5787  ;;  %5547 = vst [vmem:[%s10548_s10 + $0x318] sm:$0xff] %v5030_v42  ;;  %v5019_v33 = vmul.f32 %v11698_v9, %v5006_v23 }
 0x6fa   : > { %v5033_v60 = vadd.f32 %v11704_v51, %v5020_v7  ;;  %v5008_v49 = vmul.f32 %v5788_v2, %v11685_v15 }
 0x6fb   : > { %v5032_v48 = vadd.f32 %v11704_v51, %v5019_v33 }
 0x6fc   : > { %5550 = vst [vmem:[%s10548_s10 + $0x330] sm:$0xff] %v5033_v60  ;;  %v5021_v53 = vmul.f32 %v11698_v9, %v5008_v49 }
 0x6fd   : > { %5549 = vst [vmem:[%s10548_s10 + $0x328] sm:$0xff] %v5032_v48 }
 0x6fe   : > { %v5034_v52 = vadd.f32 %v11704_v51, %v5021_v53 }
 0x700   : > { %5551 = vst [vmem:[%s10548_s10 + $0x338] sm:$0x1f] %v5034_v52 }
 0x701 PF: > { %s15_s18 = sadd.s32 1, %s5939_s18  }
 0x702   : > { %p12_p4 = scmp.ge.s32.totalorder %s15_s18, 4  }
 0x704   :  { %14 = sbr.rel (!%p12_p4) target bundleno = 1 (0x1), region = 84 }

</bundles_post_ra>
